<compile_context>
chip_gen: v7x
topology: tpu7x:2x2x1
jax: 0.10.0
libtpu: 0.0.40
codegen_flags: <defaults>
</compile_context>

<pallas_src>
import numpy as np
import jax
import jax.numpy as jnp
from jax import lax
from jax.experimental import pallas as pl
from jax.experimental.pallas import tpu as pltpu

# ----------------------------- hyper-parameters (small, forward-consistent) ------
INPUT_WIDTH = 263                 # fixed by the module (leg_dim=59, arm_dim=108)
NB_CODE = 64                      # nb_code (small)
CODE_DIM = 128                    # code_dim == output_emb_width; per-part dim = 32
CODE_PART = CODE_DIM // 4         # 32
DOWN_T = 2
STRIDE_T = 2
WIDTH = 64                        # per-part encoder width == decoder width
DEPTH = 2
DIL_RATE = 3
NUM_QUANTIZERS = 2
NUM_PARTS = 4
FUSED_W = NUM_PARTS * WIDTH       # 256 (4 encoders fused along lanes)
N, T = 2, 16                      # batch, sequence length (divisible by 2**DOWN_T)
T_ENC = T // (STRIDE_T ** DOWN_T)
M_IN = N * T                      # 32
M_ENC = N * T_ENC                 # 8
NRES = DOWN_T * DEPTH             # 4
MASK_OFF = 4                      # mask column j  <->  time offset (j - 4)

# ----------------------------- body / joint masks (synthetic, count-exact) -------
HML_LEFT_LEG_MASK = np.zeros(263, bool);  HML_LEFT_LEG_MASK[0:59] = True           # 59
HML_RIGHT_LEG_MASK = np.zeros(263, bool); HML_RIGHT_LEG_MASK[0:7] = True
HML_RIGHT_LEG_MASK[59:111] = True                                                  # 59
HML_LEFT_ARM_MASK = np.zeros(263, bool);  HML_LEFT_ARM_MASK[111:219] = True        # 108
HML_RIGHT_ARM_MASK = np.zeros(263, bool); HML_RIGHT_ARM_MASK[111:175] = True
HML_RIGHT_ARM_MASK[219:263] = True                                                 # 108
BODY_MASKS = [HML_LEFT_ARM_MASK, HML_RIGHT_ARM_MASK, HML_LEFT_LEG_MASK, HML_RIGHT_LEG_MASK]
MASK_IDX = [np.nonzero(m)[0] for m in BODY_MASKS]

UPPER_JOINT_Y_IDX = np.array([115 + 8 * i for i in range(13)], np.int32)
UPPER_JOINT_Y_MASK = np.zeros(263, bool); UPPER_JOINT_Y_MASK[UPPER_JOINT_Y_IDX] = True

MEAN_UPPER = np.array([0.1216, 0.2488, 0.2967, 0.5027, 0.4053, 0.41, 0.5703,
                       0.403, 0.4078, 0.1994, 0.1992, 0.0661, 0.0639], np.float32)
STD_UPPER = np.array([0.0164, 0.0412, 0.0523, 0.0864, 0.0695, 0.0703, 0.1108,
                      0.0853, 0.0847, 0.1289, 0.1291, 0.2463, 0.2484], np.float32)

# ----------------------------- host-precomputed constants ------------------------


def _pad_mask(t):
    """[N*t, 8] mask: column j says whether time (row%t) + (j-4) is inside [0, t)."""
    rows = np.arange(N * t)
    tt = rows % t
    m = np.zeros((N * t, 2 * MASK_OFF), np.float32)
    for j in range(2 * MASK_OFF):
        off = j - MASK_OFF
        m[:, j] = ((tt + off >= 0) & (tt + off < t)).astype(np.float32)
    return m


def _down_select(t_in):
    """0/1 row-selection for stride-2 downsample (batch-aware)."""
    t_out = t_in // STRIDE_T
    d = np.zeros((N * t_out, N * t_in), np.float32)
    for b in range(N):
        for t in range(t_out):
            d[b * t_out + t, b * t_in + STRIDE_T * t] = 1.0
    return d


def _up_select(t_in):
    """0/1 row-duplication for x2 nearest-neighbor upsample (batch-aware)."""
    t_out = 2 * t_in
    u = np.zeros((N * t_out, N * t_in), np.float32)
    for b in range(N):
        for t in range(t_out):
            u[b * t_out + t, b * t_in + t // 2] = 1.0
    return u


# ----------------------------- in-kernel building blocks -------------------------


def _rolled(x, off, mask):
    """y[row] = x[row + off] within each batch's time range, 0 in the conv padding."""
    if off == 0:
        return x
    nrows = x.shape[0]
    y = pltpu.roll(x, shift=(-off) % nrows, axis=0)          # XLU sublane rotate
    return y * mask[:, off + MASK_OFF:off + MASK_OFF + 1]    # host-precomputed pad mask


def _conv_s1(x, w, bias, mask, *, dil=1, relu_in=False, relu_out=False):
    """k=3, stride-1, pad=dil conv: taps lane-concatenated into one MXU dot."""
    if relu_in:
        x = jnp.maximum(x, 0.0)
    xk = jnp.concatenate([_rolled(x, -dil, mask), x, _rolled(x, dil, mask)],
                         axis=1).astype(jnp.bfloat16)
    y = jnp.dot(xk, w, preferred_element_type=jnp.float32) + bias
    if relu_out:
        y = jnp.maximum(y, 0.0)
    return y


def _conv_down(x, w, bias, mask, dsel):
    """k=4, stride-2, pad-1 conv: rolls at full rate + stride-2 row-select matmul."""
    xk = jnp.concatenate([_rolled(x, o, mask) for o in (-1, 0, 1, 2)],
                         axis=1).astype(jnp.bfloat16)
    xg = jnp.dot(dsel, xk, preferred_element_type=jnp.float32)          # row select
    return jnp.dot(xg.astype(jnp.bfloat16), w,
                   preferred_element_type=jnp.float32) + bias


# ----------------------------- the single fused kernel ---------------------------

ARG_NAMES = (
    'x', 'c1', 'c2', 'c3', 'd1', 'd2', 'd3',
    'mask16', 'mask8', 'mask4', 'D0', 'D1', 'U0', 'U1',
    'We_in', 'be_in', 'We_dn', 'be_dn', 'We_r1', 'be_r1', 'We_r2', 'be_r2',
    'We_out', 'be_out', 'CBT', 'CB', 'C2',
    'Wd_in', 'bd_in', 'Wd_r1', 'bd_r1', 'Wd_r2', 'bd_r2', 'Wd_up', 'bd_up',
    'Wd_mid', 'bd_mid', 'Wd_out', 'bd_out',
)


def _rvqvae_kernel(*refs):
    g = dict(zip(ARG_NAMES, refs))
    x_out_ref = refs[len(ARG_NAMES)]
    misc_ref = refs[len(ARG_NAMES) + 1]

    masks = {T: g['mask16'][...], T // 2: g['mask8'][...], T // 4: g['mask4'][...]}

    # ---- fused shift_upper_down: pre-folded per-channel affine + channel-3 term ----
    x = g['x'][...]
    x = g['c1'][...] * x + g['c2'][...] - g['c3'][...] * x[:, 3:4]

    # ---- 4 body-part encoders, channel-fused (block-diagonal 256-wide weights) ----
    acc = None
    for kk, off in enumerate((-1, 0, 1)):        # 263-ch input: 3 dots (K=263 already full)
        xt = _rolled(x, off, masks[T]).astype(jnp.bfloat16)
        term = jnp.dot(xt, g['We_in'][kk], preferred_element_type=jnp.float32)
        acc = term if acc is None else acc + term
    h = jnp.maximum(acc + g['be_in'][...], 0.0)

    be_dn = g['be_dn'][...]
    be_r1 = g['be_r1'][...]
    be_r2 = g['be_r2'][...]
    t_cur = T
    for d in range(DOWN_T):
        h = _conv_down(h, g['We_dn'][d], be_dn[d:d + 1, :], masks[t_cur],
                       g['D%d' % d][...])
        t_cur //= 2
        for r in range(DEPTH):
            dil = DIL_RATE ** r
            i = d * DEPTH + r
            hh = _conv_s1(h, g['We_r1'][i], be_r1[i:i + 1, :], masks[t_cur],
                          dil=dil, relu_in=True, relu_out=True)
            hh = jnp.dot(hh.astype(jnp.bfloat16), g['We_r2'][i],
                         preferred_element_type=jnp.float32) + be_r2[i:i + 1, :]
            h = h + hh
    z = _conv_s1(h, g['We_out'][...], g['be_out'][...], masks[t_cur])   # [M_ENC, 128]

    # ---- residual VQ, parts fused along lanes; distances / argmin kept in f32 ----
    lane64 = lax.broadcasted_iota(jnp.int32, (M_ENC, NB_CODE), 1)
    resid = z
    qsum = jnp.zeros_like(z)
    commit = jnp.zeros((1, 1), jnp.float32)
    perp = jnp.zeros((1, 1), jnp.float32)
    for layer in range(NUM_QUANTIZERS):
        xc = jnp.dot(resid, g['CBT'][layer], preferred_element_type=jnp.float32)
        dist = g['C2'][layer] - 2.0 * xc                     # argmin-equivalent distance
        ohs = []
        for p in range(NUM_PARTS):
            dp = dist[:, p * NB_CODE:(p + 1) * NB_CODE]
            dmin = jnp.min(dp, axis=1, keepdims=True)
            first = jnp.min(jnp.where(dp <= dmin, lane64, NB_CODE),
                            axis=1, keepdims=True)
            ohs.append((lane64 == first).astype(jnp.float32))
        onehot = jnp.concatenate(ohs, axis=1)                # [M_ENC, 4*NB_CODE]
        qv = jnp.dot(onehot, g['CB'][layer], preferred_element_type=jnp.float32)
        err = resid - qv
        sse = jnp.sum(jnp.sum(err * err, axis=1, keepdims=True), axis=0, keepdims=True)
        commit = commit + sse / float(M_ENC * CODE_PART)     # == sum over parts of mean MSE
        counts = jnp.sum(onehot, axis=0, keepdims=True)      # [1, 4*NB_CODE]
        prob = counts / float(M_ENC)
        entl = -prob * jnp.log(prob + 1e-7)   # eps vs exact zero-prob masking: negligible
        for p in range(NUM_PARTS):
            e = jnp.sum(entl[:, p * NB_CODE:(p + 1) * NB_CODE], axis=1, keepdims=True)
            perp = perp + jnp.exp(e)
        qsum = qsum + qv
        resid = resid - qv
    perp = perp / float(NUM_QUANTIZERS)

    # ---- decoder (q stays lane-dense [M_ENC, 128] in VMEM) --------------------------
    bd_r1 = g['bd_r1'][...]
    bd_r2 = g['bd_r2'][...]
    bd_up = g['bd_up'][...]
    t_cur = T_ENC
    h = _conv_s1(qsum, g['Wd_in'][...], g['bd_in'][...], masks[t_cur], relu_out=True)
    for u in range(DOWN_T):
        for r in range(DEPTH):
            dil = DIL_RATE ** (DEPTH - 1 - r)                # reversed dilation
            i = u * DEPTH + r
            hh = _conv_s1(h, g['Wd_r1'][i], bd_r1[i:i + 1, :], masks[t_cur],
                          dil=dil, relu_in=True, relu_out=True)
            hh = jnp.dot(hh.astype(jnp.bfloat16), g['Wd_r2'][i],
                         preferred_element_type=jnp.float32) + bd_r2[i:i + 1, :]
            h = h + hh
        # nn.Upsample(x2, 'nearest') as a constant row-duplication matmul
        h = jnp.dot(g['U%d' % u][...], h.astype(jnp.bfloat16),
                    preferred_element_type=jnp.float32)
        t_cur *= 2
        h = _conv_s1(h, g['Wd_up'][u], bd_up[u:u + 1, :], masks[t_cur])
    h = _conv_s1(h, g['Wd_mid'][...], g['bd_mid'][...], masks[t_cur], relu_out=True)
    y = _conv_s1(h, g['Wd_out'][...], g['bd_out'][...], masks[t_cur])   # [M_IN, 263]

    # ---- fused shift_upper_up ------------------------------------------------------
    x_out_ref[...] = g['d1'][...] * y + g['d2'][...] + g['d3'][...] * y[:, 3:4]
    lane = lax.broadcasted_iota(jnp.int32, (1, 128), 1)
    misc_ref[...] = jnp.where(lane == 0, commit, 0.0) + jnp.where(lane == 1, perp, 0.0)


# ----------------------------- pallas_call wrapper -------------------------------


def _full_spec(a):
    nd = a.ndim
    return pl.BlockSpec(a.shape, lambda i, _nd=nd: (0,) * _nd)


def rvqvae_group_forward(params, x):
    nb, tt, c = x.shape
    x2 = x.reshape(nb * tt, c).astype(jnp.float32)
    args = [x2] + [params[k] for k in ARG_NAMES[1:]]
    x_out, misc = pl.pallas_call(
        _rvqvae_kernel,
        grid=(1,),
        in_specs=[_full_spec(a) for a in args],
        out_specs=(pl.BlockSpec((M_IN, INPUT_WIDTH), lambda i: (0, 0)),
                   pl.BlockSpec((1, 128), lambda i: (0, 0))),
        out_shape=(jax.ShapeDtypeStruct((M_IN, INPUT_WIDTH), jnp.float32),
                   jax.ShapeDtypeStruct((1, 128), jnp.float32)),
        compiler_params=pltpu.CompilerParams(dimension_semantics=("arbitrary",)),
    )(*args)
    return x_out.reshape(nb, tt, c), misc[0, 0], misc[0, 1]


# ----------------------------- deterministic parameter init ----------------------


def make_params(key):
    ks = [key]

    def nk():
        ks[0], sub = jax.random.split(ks[0])
        return sub

    def rnd(shape, scale=0.05):
        return np.asarray(scale * jax.random.normal(nk(), shape), np.float32)

    def blkdiag(blocks):
        a, b = blocks[0].shape
        out = np.zeros((len(blocks) * a, len(blocks) * b), np.float32)
        for p_, blk in enumerate(blocks):
            out[p_ * a:(p_ + 1) * a, p_ * b:(p_ + 1) * b] = blk
        return out

    C = FUSED_W
    p = {}

    # encoder conv_in: per-part channel gather + 4-part fusion folded into weights
    we_in = np.zeros((3, INPUT_WIDTH, C), np.float32)
    for prt in range(NUM_PARTS):
        wp = rnd((3, len(MASK_IDX[prt]), WIDTH))
        cols = np.arange(prt * WIDTH, (prt + 1) * WIDTH)
        for kk in range(3):
            we_in[kk][np.ix_(MASK_IDX[prt], cols)] = wp[kk]
    p['We_in'] = we_in
    p['be_in'] = np.concatenate([rnd((1, WIDTH), 0.01) for _ in range(NUM_PARTS)], axis=1)

    # encoder strided down-convs (k=4): taps stacked along K, parts block-diagonal
    we_dn = np.zeros((DOWN_T, 4 * C, C), np.float32)
    be_dn = np.zeros((DOWN_T, C), np.float32)
    for d in range(DOWN_T):
        for kk in range(4):
            we_dn[d, kk * C:(kk + 1) * C, :] = blkdiag(
                [rnd((WIDTH, WIDTH)) for _ in range(NUM_PARTS)])
        be_dn[d] = np.concatenate([rnd((WIDTH,), 0.01) for _ in range(NUM_PARTS)])
    p['We_dn'], p['be_dn'] = we_dn, be_dn

    # encoder resnet blocks
    we_r1 = np.zeros((NRES, 3 * C, C), np.float32)
    we_r2 = np.zeros((NRES, C, C), np.float32)
    be_r1 = np.zeros((NRES, C), np.float32)
    be_r2 = np.zeros((NRES, C), np.float32)
    for i in range(NRES):
        for kk in range(3):
            we_r1[i, kk * C:(kk + 1) * C, :] = blkdiag(
                [rnd((WIDTH, WIDTH)) for _ in range(NUM_PARTS)])
        we_r2[i] = blkdiag([rnd((WIDTH, WIDTH)) for _ in range(NUM_PARTS)])
        be_r1[i] = np.concatenate([rnd((WIDTH,), 0.01) for _ in range(NUM_PARTS)])
        be_r2[i] = np.concatenate([rnd((WIDTH,), 0.01) for _ in range(NUM_PARTS)])
    p['We_r1'], p['be_r1'], p['We_r2'], p['be_r2'] = we_r1, be_r1, we_r2, be_r2

    # encoder conv_out -> per-part 32-dim codes, lane-dense [*, 128]
    we_out = np.zeros((3 * C, CODE_DIM), np.float32)
    for kk in range(3):
        we_out[kk * C:(kk + 1) * C, :] = blkdiag(
            [rnd((WIDTH, CODE_PART)) for _ in range(NUM_PARTS)])
    p['We_out'] = we_out
    p['be_out'] = np.concatenate([rnd((1, CODE_PART), 0.01) for _ in range(NUM_PARTS)], axis=1)

    # residual-VQ codebooks: block-diag distance / lookup matrices + host-side ||c||^2
    cb = rnd((NUM_PARTS, NUM_QUANTIZERS, NB_CODE, CODE_PART), 0.5)
    cbt = np.zeros((NUM_QUANTIZERS, CODE_DIM, NUM_PARTS * NB_CODE), np.float32)
    cbm = np.zeros((NUM_QUANTIZERS, NUM_PARTS * NB_CODE, CODE_DIM), np.float32)
    c2 = np.zeros((NUM_QUANTIZERS, 1, NUM_PARTS * NB_CODE), np.float32)
    for lyr in range(NUM_QUANTIZERS):
        for prt in range(NUM_PARTS):
            cbt[lyr, prt * CODE_PART:(prt + 1) * CODE_PART,
                prt * NB_CODE:(prt + 1) * NB_CODE] = cb[prt, lyr].T
            cbm[lyr, prt * NB_CODE:(prt + 1) * NB_CODE,
                prt * CODE_PART:(prt + 1) * CODE_PART] = cb[prt, lyr]
            c2[lyr, 0, prt * NB_CODE:(prt + 1) * NB_CODE] = np.sum(cb[prt, lyr] ** 2, axis=1)
    p['CBT'], p['CB'], p['C2'] = cbt, cbm, c2

    # decoder (single, width=WIDTH); conv taps pre-stacked along K
    def taps(cin, cout, k=3):
        return np.concatenate([rnd((cin, cout)) for _ in range(k)], axis=0)

    p['Wd_in'], p['bd_in'] = taps(CODE_DIM, WIDTH), rnd((1, WIDTH), 0.01)
    p['Wd_r1'] = np.stack([taps(WIDTH, WIDTH) for _ in range(NRES)])
    p['bd_r1'] = rnd((NRES, WIDTH), 0.01)
    p['Wd_r2'] = np.stack([rnd((WIDTH, WIDTH)) for _ in range(NRES)])
    p['bd_r2'] = rnd((NRES, WIDTH), 0.01)
    p['Wd_up'] = np.stack([taps(WIDTH, WIDTH) for _ in range(DOWN_T)])
    p['bd_up'] = rnd((DOWN_T, WIDTH), 0.01)
    p['Wd_mid'], p['bd_mid'] = taps(WIDTH, WIDTH), rnd((1, WIDTH), 0.01)
    p['Wd_out'], p['bd_out'] = taps(WIDTH, INPUT_WIDTH), rnd((1, INPUT_WIDTH), 0.01)

    # moment buffers (synthetic deterministic stand-ins) and pre-folded shift affines
    mean = np.asarray(0.1 * jax.random.normal(nk(), (INPUT_WIDTH,)), np.float32)
    std = np.asarray(0.5 + jnp.abs(0.3 * jax.random.normal(nk(), (INPUT_WIDTH,))), np.float32)
    mean_u = np.zeros(INPUT_WIDTH, np.float32); mean_u[UPPER_JOINT_Y_IDX] = MEAN_UPPER
    std_u = np.ones(INPUT_WIDTH, np.float32);   std_u[UPPER_JOINT_Y_IDX] = STD_UPPER
    up = UPPER_JOINT_Y_MASK
    s = np.where(up, 1.0 / std_u, 0.0)
    # shift_upper_down:  out = c1*x + c2 - c3*x[..., 3]   (identity on non-upper channels)
    p['c1'] = np.where(up, std / std_u, 1.0)
    p['c2'] = np.where(up, (mean - mean_u) / std_u, 0.0) - s * mean[3]
    p['c3'] = s * std[3]
    # shift_upper_up:    out = d1*y + d2 + d3*y[..., 3]
    p['d1'] = np.where(up, std_u / std, 1.0)
    p['d2'] = np.where(up, (mean_u + mean[3] - mean) / std, 0.0)
    p['d3'] = np.where(up, std[3] / std, 0.0)
    for kname in ('c1', 'c2', 'c3', 'd1', 'd2', 'd3'):
        p[kname] = p[kname].reshape(1, INPUT_WIDTH).astype(np.float32)

    # host-precomputed pad masks and stride-2 / x2-upsample row-selection matrices
    p['mask16'], p['mask8'], p['mask4'] = _pad_mask(T), _pad_mask(T // 2), _pad_mask(T // 4)
    p['D0'], p['D1'] = _down_select(T), _down_select(T // 2)
    p['U0'], p['U1'] = _up_select(T_ENC), _up_select(T_ENC * 2)

    # final dtypes: bf16 for MXU conv-weight / selection operands, f32 everywhere else
    bf16_keys = ('We_in', 'We_dn', 'We_r1', 'We_r2', 'We_out',
                 'Wd_in', 'Wd_r1', 'Wd_r2', 'Wd_up', 'Wd_mid', 'Wd_out',
                 'D0', 'D1', 'U0', 'U1')
    return {k: jnp.asarray(v, jnp.bfloat16 if k in bf16_keys else jnp.float32)
            for k, v in p.items()}


# ----------------------------- main ----------------------------------------------

if __name__ == "__main__":
    key = jax.random.PRNGKey(0)
    k_x, k_p = jax.random.split(key)
    x = jax.random.normal(k_x, (N, T, INPUT_WIDTH), jnp.float32)
    params = make_params(k_p)

    fwd = jax.jit(rvqvae_group_forward)
    x_out, commit_loss, perplexity = fwd(params, x)
    jax.block_until_ready((x_out, commit_loss, perplexity))

    assert x_out.shape == (N, T, INPUT_WIDTH)
    assert bool(jnp.isfinite(x_out).all())
    assert bool(jnp.isfinite(commit_loss)) and bool(jnp.isfinite(perplexity))
    print("KERNEL_OK")
</pallas_src>

<mosaic_0001>
module attributes {stable_mosaic.version = 11 : i64} {
  func.func @_rvqvae_kernel(%arg0: i32, %arg1: memref<32x263xf32, #tpu.memory_space<vmem>>, %arg2: memref<1x263xf32, #tpu.memory_space<vmem>>, %arg3: memref<1x263xf32, #tpu.memory_space<vmem>>, %arg4: memref<1x263xf32, #tpu.memory_space<vmem>>, %arg5: memref<1x263xf32, #tpu.memory_space<vmem>>, %arg6: memref<1x263xf32, #tpu.memory_space<vmem>>, %arg7: memref<1x263xf32, #tpu.memory_space<vmem>>, %arg8: memref<32x8xf32, #tpu.memory_space<vmem>>, %arg9: memref<16x8xf32, #tpu.memory_space<vmem>>, %arg10: memref<8x8xf32, #tpu.memory_space<vmem>>, %arg11: memref<16x32xbf16, #tpu.memory_space<vmem>>, %arg12: memref<8x16xbf16, #tpu.memory_space<vmem>>, %arg13: memref<16x8xbf16, #tpu.memory_space<vmem>>, %arg14: memref<32x16xbf16, #tpu.memory_space<vmem>>, %arg15: memref<3x263x256xbf16, #tpu.memory_space<vmem>>, %arg16: memref<1x256xf32, #tpu.memory_space<vmem>>, %arg17: memref<2x1024x256xbf16, #tpu.memory_space<vmem>>, %arg18: memref<2x256xf32, #tpu.memory_space<vmem>>, %arg19: memref<4x768x256xbf16, #tpu.memory_space<vmem>>, %arg20: memref<4x256xf32, #tpu.memory_space<vmem>>, %arg21: memref<4x256x256xbf16, #tpu.memory_space<vmem>>, %arg22: memref<4x256xf32, #tpu.memory_space<vmem>>, %arg23: memref<768x128xbf16, #tpu.memory_space<vmem>>, %arg24: memref<1x128xf32, #tpu.memory_space<vmem>>, %arg25: memref<2x128x256xf32, #tpu.memory_space<vmem>>, %arg26: memref<2x256x128xf32, #tpu.memory_space<vmem>>, %arg27: memref<2x1x256xf32, #tpu.memory_space<vmem>>, %arg28: memref<384x64xbf16, #tpu.memory_space<vmem>>, %arg29: memref<1x64xf32, #tpu.memory_space<vmem>>, %arg30: memref<4x192x64xbf16, #tpu.memory_space<vmem>>, %arg31: memref<4x64xf32, #tpu.memory_space<vmem>>, %arg32: memref<4x64x64xbf16, #tpu.memory_space<vmem>>, %arg33: memref<4x64xf32, #tpu.memory_space<vmem>>, %arg34: memref<2x192x64xbf16, #tpu.memory_space<vmem>>, %arg35: memref<2x64xf32, #tpu.memory_space<vmem>>, %arg36: memref<192x64xbf16, #tpu.memory_space<vmem>>, %arg37: memref<1x64xf32, #tpu.memory_space<vmem>>, %arg38: memref<192x263xbf16, #tpu.memory_space<vmem>>, %arg39: memref<1x263xf32, #tpu.memory_space<vmem>>, %arg40: memref<32x263xf32, #tpu.memory_space<vmem>>, %arg41: memref<1x128xf32, #tpu.memory_space<vmem>>) attributes {dimension_semantics = [#tpu.dimension_semantics<arbitrary>], iteration_bounds = array<i64: 1>, scalar_prefetch = 0 : i64, scratch_operands = 0 : i64, tpu.core_type = #tpu.core_type<tc>, window_params = [{pipeline_mode = #tpu.pipeline_mode<synchronous>, transform_indices = @transform_0, window_bounds = array<i64: 32, 263>}, {pipeline_mode = #tpu.pipeline_mode<synchronous>, transform_indices = @transform_1, window_bounds = array<i64: 1, 263>}, {pipeline_mode = #tpu.pipeline_mode<synchronous>, transform_indices = @transform_2, window_bounds = array<i64: 1, 263>}, {pipeline_mode = #tpu.pipeline_mode<synchronous>, transform_indices = @transform_3, window_bounds = array<i64: 1, 263>}, {pipeline_mode = #tpu.pipeline_mode<synchronous>, transform_indices = @transform_4, window_bounds = array<i64: 1, 263>}, {pipeline_mode = #tpu.pipeline_mode<synchronous>, transform_indices = @transform_5, window_bounds = array<i64: 1, 263>}, {pipeline_mode = #tpu.pipeline_mode<synchronous>, transform_indices = @transform_6, window_bounds = array<i64: 1, 263>}, {pipeline_mode = #tpu.pipeline_mode<synchronous>, transform_indices = @transform_7, window_bounds = array<i64: 32, 8>}, {pipeline_mode = #tpu.pipeline_mode<synchronous>, transform_indices = @transform_8, window_bounds = array<i64: 16, 8>}, {pipeline_mode = #tpu.pipeline_mode<synchronous>, transform_indices = @transform_9, window_bounds = array<i64: 8, 8>}, {pipeline_mode = #tpu.pipeline_mode<synchronous>, transform_indices = @transform_10, window_bounds = array<i64: 16, 32>}, {pipeline_mode = #tpu.pipeline_mode<synchronous>, transform_indices = @transform_11, window_bounds = array<i64: 8, 16>}, {pipeline_mode = #tpu.pipeline_mode<synchronous>, transform_indices = @transform_12, window_bounds = array<i64: 16, 8>}, {pipeline_mode = #tpu.pipeline_mode<synchronous>, transform_indices = @transform_13, window_bounds = array<i64: 32, 16>}, {pipeline_mode = #tpu.pipeline_mode<synchronous>, transform_indices = @transform_14, window_bounds = array<i64: 3, 263, 256>}, {pipeline_mode = #tpu.pipeline_mode<synchronous>, transform_indices = @transform_15, window_bounds = array<i64: 1, 256>}, {pipeline_mode = #tpu.pipeline_mode<synchronous>, transform_indices = @transform_16, window_bounds = array<i64: 2, 1024, 256>}, {pipeline_mode = #tpu.pipeline_mode<synchronous>, transform_indices = @transform_17, window_bounds = array<i64: 2, 256>}, {pipeline_mode = #tpu.pipeline_mode<synchronous>, transform_indices = @transform_18, window_bounds = array<i64: 4, 768, 256>}, {pipeline_mode = #tpu.pipeline_mode<synchronous>, transform_indices = @transform_19, window_bounds = array<i64: 4, 256>}, {pipeline_mode = #tpu.pipeline_mode<synchronous>, transform_indices = @transform_20, window_bounds = array<i64: 4, 256, 256>}, {pipeline_mode = #tpu.pipeline_mode<synchronous>, transform_indices = @transform_21, window_bounds = array<i64: 4, 256>}, {pipeline_mode = #tpu.pipeline_mode<synchronous>, transform_indices = @transform_22, window_bounds = array<i64: 768, 128>}, {pipeline_mode = #tpu.pipeline_mode<synchronous>, transform_indices = @transform_23, window_bounds = array<i64: 1, 128>}, {pipeline_mode = #tpu.pipeline_mode<synchronous>, transform_indices = @transform_24, window_bounds = array<i64: 2, 128, 256>}, {pipeline_mode = #tpu.pipeline_mode<synchronous>, transform_indices = @transform_25, window_bounds = array<i64: 2, 256, 128>}, {pipeline_mode = #tpu.pipeline_mode<synchronous>, transform_indices = @transform_26, window_bounds = array<i64: 2, 1, 256>}, {pipeline_mode = #tpu.pipeline_mode<synchronous>, transform_indices = @transform_27, window_bounds = array<i64: 384, 64>}, {pipeline_mode = #tpu.pipeline_mode<synchronous>, transform_indices = @transform_28, window_bounds = array<i64: 1, 64>}, {pipeline_mode = #tpu.pipeline_mode<synchronous>, transform_indices = @transform_29, window_bounds = array<i64: 4, 192, 64>}, {pipeline_mode = #tpu.pipeline_mode<synchronous>, transform_indices = @transform_30, window_bounds = array<i64: 4, 64>}, {pipeline_mode = #tpu.pipeline_mode<synchronous>, transform_indices = @transform_31, window_bounds = array<i64: 4, 64, 64>}, {pipeline_mode = #tpu.pipeline_mode<synchronous>, transform_indices = @transform_32, window_bounds = array<i64: 4, 64>}, {pipeline_mode = #tpu.pipeline_mode<synchronous>, transform_indices = @transform_33, window_bounds = array<i64: 2, 192, 64>}, {pipeline_mode = #tpu.pipeline_mode<synchronous>, transform_indices = @transform_34, window_bounds = array<i64: 2, 64>}, {pipeline_mode = #tpu.pipeline_mode<synchronous>, transform_indices = @transform_35, window_bounds = array<i64: 192, 64>}, {pipeline_mode = #tpu.pipeline_mode<synchronous>, transform_indices = @transform_36, window_bounds = array<i64: 1, 64>}, {pipeline_mode = #tpu.pipeline_mode<synchronous>, transform_indices = @transform_37, window_bounds = array<i64: 192, 263>}, {pipeline_mode = #tpu.pipeline_mode<synchronous>, transform_indices = @transform_38, window_bounds = array<i64: 1, 263>}, {pipeline_mode = #tpu.pipeline_mode<synchronous>, transform_indices = @transform_39, window_bounds = array<i64: 32, 263>}, {pipeline_mode = #tpu.pipeline_mode<synchronous>, transform_indices = @transform_40, window_bounds = array<i64: 1, 128>}]} {
    %c0 = arith.constant 0 : index
    %c0_0 = arith.constant 0 : index
    %0 = vector.load %arg8[%c0, %c0_0] : memref<32x8xf32, #tpu.memory_space<vmem>>, vector<32x8xf32>
    %c0_1 = arith.constant 0 : index
    %c0_2 = arith.constant 0 : index
    %1 = vector.load %arg9[%c0_1, %c0_2] : memref<16x8xf32, #tpu.memory_space<vmem>>, vector<16x8xf32>
    %c0_3 = arith.constant 0 : index
    %c0_4 = arith.constant 0 : index
    %2 = vector.load %arg10[%c0_3, %c0_4] : memref<8x8xf32, #tpu.memory_space<vmem>>, vector<8x8xf32>
    %c0_5 = arith.constant 0 : index
    %c0_6 = arith.constant 0 : index
    %3 = vector.load %arg1[%c0_5, %c0_6] : memref<32x263xf32, #tpu.memory_space<vmem>>, vector<32x263xf32>
    %c0_7 = arith.constant 0 : index
    %c0_8 = arith.constant 0 : index
    %4 = vector.load %arg2[%c0_7, %c0_8] : memref<1x263xf32, #tpu.memory_space<vmem>>, vector<1x263xf32>
    %5 = vector.broadcast %4 : vector<1x263xf32> to vector<32x263xf32>
    %6 = arith.mulf %5, %3 : vector<32x263xf32>
    %c0_9 = arith.constant 0 : index
    %c0_10 = arith.constant 0 : index
    %7 = vector.load %arg3[%c0_9, %c0_10] : memref<1x263xf32, #tpu.memory_space<vmem>>, vector<1x263xf32>
    %8 = vector.broadcast %7 : vector<1x263xf32> to vector<32x263xf32>
    %9 = arith.addf %6, %8 : vector<32x263xf32>
    %c0_11 = arith.constant 0 : index
    %c0_12 = arith.constant 0 : index
    %10 = vector.load %arg4[%c0_11, %c0_12] : memref<1x263xf32, #tpu.memory_space<vmem>>, vector<1x263xf32>
    %11 = vector.extract_strided_slice %3 {offsets = [0, 3], sizes = [32, 1], strides = [1, 1]} : vector<32x263xf32> to vector<32x1xf32>
    %12 = vector.broadcast %10 : vector<1x263xf32> to vector<32x263xf32>
    %13 = vector.broadcast %11 : vector<32x1xf32> to vector<32x263xf32>
    %14 = arith.mulf %12, %13 : vector<32x263xf32>
    %15 = arith.subf %9, %14 : vector<32x263xf32>
    %c1_i32 = arith.constant 1 : i32
    %16 = tpu.dynamic_rotate %15 by %c1_i32 dim 0 : vector<32x263xf32>, i32 -> vector<32x263xf32>
    %17 = vector.extract_strided_slice %0 {offsets = [0, 3], sizes = [32, 1], strides = [1, 1]} : vector<32x8xf32> to vector<32x1xf32>
    %18 = vector.broadcast %17 : vector<32x1xf32> to vector<32x263xf32>
    %19 = arith.mulf %16, %18 : vector<32x263xf32>
    %20 = arith.truncf %19 : vector<32x263xf32> to vector<32x263xbf16>
    %c0_13 = arith.constant 0 : index
    %c0_14 = arith.constant 0 : index
    %c0_15 = arith.constant 0 : index
    %21 = vector.load %arg15[%c0_13, %c0_14, %c0_15] : memref<3x263x256xbf16, #tpu.memory_space<vmem>>, vector<1x263x256xbf16>
    %22 = vector.shape_cast %21 : vector<1x263x256xbf16> to vector<263x256xbf16>
    %cst = arith.constant dense<0.000000e+00> : vector<32x256xf32>
    %23 = tpu.matmul %20, %22, %cst {dimension_numbers = #tpu.dot_dimension_numbers<[1], [0], [0], [1], [0, 0, 1, 1], [], []>} : vector<32x263xbf16>, vector<263x256xbf16>, vector<32x256xf32> -> vector<32x256xf32>
    %24 = arith.truncf %15 : vector<32x263xf32> to vector<32x263xbf16>
    %c1 = arith.constant 1 : index
    %c0_16 = arith.constant 0 : index
    %c0_17 = arith.constant 0 : index
    %25 = vector.load %arg15[%c1, %c0_16, %c0_17] : memref<3x263x256xbf16, #tpu.memory_space<vmem>>, vector<1x263x256xbf16>
    %26 = vector.shape_cast %25 : vector<1x263x256xbf16> to vector<263x256xbf16>
    %cst_18 = arith.constant dense<0.000000e+00> : vector<32x256xf32>
    %27 = tpu.matmul %24, %26, %cst_18 {dimension_numbers = #tpu.dot_dimension_numbers<[1], [0], [0], [1], [0, 0, 1, 1], [], []>} : vector<32x263xbf16>, vector<263x256xbf16>, vector<32x256xf32> -> vector<32x256xf32>
    %28 = arith.addf %23, %27 : vector<32x256xf32>
    %c31_i32 = arith.constant 31 : i32
    %29 = tpu.dynamic_rotate %15 by %c31_i32 dim 0 : vector<32x263xf32>, i32 -> vector<32x263xf32>
    %30 = vector.extract_strided_slice %0 {offsets = [0, 5], sizes = [32, 1], strides = [1, 1]} : vector<32x8xf32> to vector<32x1xf32>
    %31 = vector.broadcast %30 : vector<32x1xf32> to vector<32x263xf32>
    %32 = arith.mulf %29, %31 : vector<32x263xf32>
    %33 = arith.truncf %32 : vector<32x263xf32> to vector<32x263xbf16>
    %c2 = arith.constant 2 : index
    %c0_19 = arith.constant 0 : index
    %c0_20 = arith.constant 0 : index
    %34 = vector.load %arg15[%c2, %c0_19, %c0_20] : memref<3x263x256xbf16, #tpu.memory_space<vmem>>, vector<1x263x256xbf16>
    %35 = vector.shape_cast %34 : vector<1x263x256xbf16> to vector<263x256xbf16>
    %cst_21 = arith.constant dense<0.000000e+00> : vector<32x256xf32>
    %36 = tpu.matmul %33, %35, %cst_21 {dimension_numbers = #tpu.dot_dimension_numbers<[1], [0], [0], [1], [0, 0, 1, 1], [], []>} : vector<32x263xbf16>, vector<263x256xbf16>, vector<32x256xf32> -> vector<32x256xf32>
    %37 = arith.addf %28, %36 : vector<32x256xf32>
    %c0_22 = arith.constant 0 : index
    %c0_23 = arith.constant 0 : index
    %38 = vector.load %arg16[%c0_22, %c0_23] : memref<1x256xf32, #tpu.memory_space<vmem>>, vector<1x256xf32>
    %39 = vector.broadcast %38 : vector<1x256xf32> to vector<32x256xf32>
    %40 = arith.addf %37, %39 : vector<32x256xf32>
    %cst_24 = arith.constant 0.000000e+00 : f32
    %41 = vector.broadcast %cst_24 : f32 to vector<32x256xf32>
    %42 = arith.maximumf %40, %41 : vector<32x256xf32>
    %c0_25 = arith.constant 0 : index
    %c0_26 = arith.constant 0 : index
    %43 = vector.load %arg18[%c0_25, %c0_26] : memref<2x256xf32, #tpu.memory_space<vmem>>, vector<2x256xf32>
    %c0_27 = arith.constant 0 : index
    %c0_28 = arith.constant 0 : index
    %44 = vector.load %arg20[%c0_27, %c0_28] : memref<4x256xf32, #tpu.memory_space<vmem>>, vector<4x256xf32>
    %c0_29 = arith.constant 0 : index
    %c0_30 = arith.constant 0 : index
    %45 = vector.load %arg22[%c0_29, %c0_30] : memref<4x256xf32, #tpu.memory_space<vmem>>, vector<4x256xf32>
    %c0_31 = arith.constant 0 : index
    %c0_32 = arith.constant 0 : index
    %c0_33 = arith.constant 0 : index
    %46 = vector.load %arg17[%c0_31, %c0_32, %c0_33] : memref<2x1024x256xbf16, #tpu.memory_space<vmem>>, vector<1x1024x256xbf16>
    %47 = vector.shape_cast %46 : vector<1x1024x256xbf16> to vector<1024x256xbf16>
    %48 = vector.extract_strided_slice %43 {offsets = [0, 0], sizes = [1, 256], strides = [1, 1]} : vector<2x256xf32> to vector<1x256xf32>
    %c0_34 = arith.constant 0 : index
    %c0_35 = arith.constant 0 : index
    %49 = vector.load %arg11[%c0_34, %c0_35] : memref<16x32xbf16, #tpu.memory_space<vmem>>, vector<16x32xbf16>
    %c1_i32_36 = arith.constant 1 : i32
    %50 = tpu.dynamic_rotate %42 by %c1_i32_36 dim 0 : vector<32x256xf32>, i32 -> vector<32x256xf32>
    %51 = vector.extract_strided_slice %0 {offsets = [0, 3], sizes = [32, 1], strides = [1, 1]} : vector<32x8xf32> to vector<32x1xf32>
    %52 = vector.broadcast %51 : vector<32x1xf32> to vector<32x256xf32>
    %53 = arith.mulf %50, %52 : vector<32x256xf32>
    %c31_i32_37 = arith.constant 31 : i32
    %54 = tpu.dynamic_rotate %42 by %c31_i32_37 dim 0 : vector<32x256xf32>, i32 -> vector<32x256xf32>
    %55 = vector.extract_strided_slice %0 {offsets = [0, 5], sizes = [32, 1], strides = [1, 1]} : vector<32x8xf32> to vector<32x1xf32>
    %56 = vector.broadcast %55 : vector<32x1xf32> to vector<32x256xf32>
    %57 = arith.mulf %54, %56 : vector<32x256xf32>
    %c30_i32 = arith.constant 30 : i32
    %58 = tpu.dynamic_rotate %42 by %c30_i32 dim 0 : vector<32x256xf32>, i32 -> vector<32x256xf32>
    %59 = vector.extract_strided_slice %0 {offsets = [0, 6], sizes = [32, 1], strides = [1, 1]} : vector<32x8xf32> to vector<32x1xf32>
    %60 = vector.broadcast %59 : vector<32x1xf32> to vector<32x256xf32>
    %61 = arith.mulf %58, %60 : vector<32x256xf32>
    %62 = tpu.concatenate %53, %42, %57, %61 in 1 : vector<32x256xf32>, vector<32x256xf32>, vector<32x256xf32>, vector<32x256xf32> -> vector<32x1024xf32>
    %63 = arith.truncf %62 : vector<32x1024xf32> to vector<32x1024xbf16>
    %cst_38 = arith.constant dense<0.000000e+00> : vector<16x1024xf32>
    %64 = tpu.matmul %49, %63, %cst_38 {dimension_numbers = #tpu.dot_dimension_numbers<[1], [0], [0], [1], [0, 0, 1, 1], [], []>} : vector<16x32xbf16>, vector<32x1024xbf16>, vector<16x1024xf32> -> vector<16x1024xf32>
    %65 = arith.truncf %64 : vector<16x1024xf32> to vector<16x1024xbf16>
    %cst_39 = arith.constant dense<0.000000e+00> : vector<16x256xf32>
    %66 = tpu.matmul %65, %47, %cst_39 {dimension_numbers = #tpu.dot_dimension_numbers<[1], [0], [0], [1], [0, 0, 1, 1], [], []>} : vector<16x1024xbf16>, vector<1024x256xbf16>, vector<16x256xf32> -> vector<16x256xf32>
    %67 = vector.broadcast %48 : vector<1x256xf32> to vector<16x256xf32>
    %68 = arith.addf %66, %67 : vector<16x256xf32>
    %c0_40 = arith.constant 0 : index
    %c0_41 = arith.constant 0 : index
    %c0_42 = arith.constant 0 : index
    %69 = vector.load %arg19[%c0_40, %c0_41, %c0_42] : memref<4x768x256xbf16, #tpu.memory_space<vmem>>, vector<1x768x256xbf16>
    %70 = vector.shape_cast %69 : vector<1x768x256xbf16> to vector<768x256xbf16>
    %71 = vector.extract_strided_slice %44 {offsets = [0, 0], sizes = [1, 256], strides = [1, 1]} : vector<4x256xf32> to vector<1x256xf32>
    %cst_43 = arith.constant 0.000000e+00 : f32
    %72 = vector.broadcast %cst_43 : f32 to vector<16x256xf32>
    %73 = arith.maximumf %68, %72 : vector<16x256xf32>
    %c1_i32_44 = arith.constant 1 : i32
    %74 = tpu.dynamic_rotate %73 by %c1_i32_44 dim 0 : vector<16x256xf32>, i32 -> vector<16x256xf32>
    %75 = vector.extract_strided_slice %1 {offsets = [0, 3], sizes = [16, 1], strides = [1, 1]} : vector<16x8xf32> to vector<16x1xf32>
    %76 = vector.broadcast %75 : vector<16x1xf32> to vector<16x256xf32>
    %77 = arith.mulf %74, %76 : vector<16x256xf32>
    %c15_i32 = arith.constant 15 : i32
    %78 = tpu.dynamic_rotate %73 by %c15_i32 dim 0 : vector<16x256xf32>, i32 -> vector<16x256xf32>
    %79 = vector.extract_strided_slice %1 {offsets = [0, 5], sizes = [16, 1], strides = [1, 1]} : vector<16x8xf32> to vector<16x1xf32>
    %80 = vector.broadcast %79 : vector<16x1xf32> to vector<16x256xf32>
    %81 = arith.mulf %78, %80 : vector<16x256xf32>
    %82 = tpu.concatenate %77, %73, %81 in 1 : vector<16x256xf32>, vector<16x256xf32>, vector<16x256xf32> -> vector<16x768xf32>
    %83 = arith.truncf %82 : vector<16x768xf32> to vector<16x768xbf16>
    %cst_45 = arith.constant dense<0.000000e+00> : vector<16x256xf32>
    %84 = tpu.matmul %83, %70, %cst_45 {dimension_numbers = #tpu.dot_dimension_numbers<[1], [0], [0], [1], [0, 0, 1, 1], [], []>} : vector<16x768xbf16>, vector<768x256xbf16>, vector<16x256xf32> -> vector<16x256xf32>
    %85 = vector.broadcast %71 : vector<1x256xf32> to vector<16x256xf32>
    %86 = arith.addf %84, %85 : vector<16x256xf32>
    %cst_46 = arith.constant 0.000000e+00 : f32
    %87 = vector.broadcast %cst_46 : f32 to vector<16x256xf32>
    %88 = arith.maximumf %86, %87 : vector<16x256xf32>
    %89 = arith.truncf %88 : vector<16x256xf32> to vector<16x256xbf16>
    %c0_47 = arith.constant 0 : index
    %c0_48 = arith.constant 0 : index
    %c0_49 = arith.constant 0 : index
    %90 = vector.load %arg21[%c0_47, %c0_48, %c0_49] : memref<4x256x256xbf16, #tpu.memory_space<vmem>>, vector<1x256x256xbf16>
    %91 = vector.shape_cast %90 : vector<1x256x256xbf16> to vector<256x256xbf16>
    %cst_50 = arith.constant dense<0.000000e+00> : vector<16x256xf32>
    %92 = tpu.matmul %89, %91, %cst_50 {dimension_numbers = #tpu.dot_dimension_numbers<[1], [0], [0], [1], [0, 0, 1, 1], [], []>} : vector<16x256xbf16>, vector<256x256xbf16>, vector<16x256xf32> -> vector<16x256xf32>
    %93 = vector.extract_strided_slice %45 {offsets = [0, 0], sizes = [1, 256], strides = [1, 1]} : vector<4x256xf32> to vector<1x256xf32>
    %94 = vector.broadcast %93 : vector<1x256xf32> to vector<16x256xf32>
    %95 = arith.addf %92, %94 : vector<16x256xf32>
    %96 = arith.addf %68, %95 : vector<16x256xf32>
    %c1_51 = arith.constant 1 : index
    %c0_52 = arith.constant 0 : index
    %c0_53 = arith.constant 0 : index
    %97 = vector.load %arg19[%c1_51, %c0_52, %c0_53] : memref<4x768x256xbf16, #tpu.memory_space<vmem>>, vector<1x768x256xbf16>
    %98 = vector.shape_cast %97 : vector<1x768x256xbf16> to vector<768x256xbf16>
    %99 = vector.extract_strided_slice %44 {offsets = [1, 0], sizes = [1, 256], strides = [1, 1]} : vector<4x256xf32> to vector<1x256xf32>
    %cst_54 = arith.constant 0.000000e+00 : f32
    %100 = vector.broadcast %cst_54 : f32 to vector<16x256xf32>
    %101 = arith.maximumf %96, %100 : vector<16x256xf32>
    %c3_i32 = arith.constant 3 : i32
    %102 = tpu.dynamic_rotate %101 by %c3_i32 dim 0 : vector<16x256xf32>, i32 -> vector<16x256xf32>
    %103 = vector.extract_strided_slice %1 {offsets = [0, 1], sizes = [16, 1], strides = [1, 1]} : vector<16x8xf32> to vector<16x1xf32>
    %104 = vector.broadcast %103 : vector<16x1xf32> to vector<16x256xf32>
    %105 = arith.mulf %102, %104 : vector<16x256xf32>
    %c13_i32 = arith.constant 13 : i32
    %106 = tpu.dynamic_rotate %101 by %c13_i32 dim 0 : vector<16x256xf32>, i32 -> vector<16x256xf32>
    %107 = vector.extract_strided_slice %1 {offsets = [0, 7], sizes = [16, 1], strides = [1, 1]} : vector<16x8xf32> to vector<16x1xf32>
    %108 = vector.broadcast %107 : vector<16x1xf32> to vector<16x256xf32>
    %109 = arith.mulf %106, %108 : vector<16x256xf32>
    %110 = tpu.concatenate %105, %101, %109 in 1 : vector<16x256xf32>, vector<16x256xf32>, vector<16x256xf32> -> vector<16x768xf32>
    %111 = arith.truncf %110 : vector<16x768xf32> to vector<16x768xbf16>
    %cst_55 = arith.constant dense<0.000000e+00> : vector<16x256xf32>
    %112 = tpu.matmul %111, %98, %cst_55 {dimension_numbers = #tpu.dot_dimension_numbers<[1], [0], [0], [1], [0, 0, 1, 1], [], []>} : vector<16x768xbf16>, vector<768x256xbf16>, vector<16x256xf32> -> vector<16x256xf32>
    %113 = vector.broadcast %99 : vector<1x256xf32> to vector<16x256xf32>
    %114 = arith.addf %112, %113 : vector<16x256xf32>
    %cst_56 = arith.constant 0.000000e+00 : f32
    %115 = vector.broadcast %cst_56 : f32 to vector<16x256xf32>
    %116 = arith.maximumf %114, %115 : vector<16x256xf32>
    %117 = arith.truncf %116 : vector<16x256xf32> to vector<16x256xbf16>
    %c1_57 = arith.constant 1 : index
    %c0_58 = arith.constant 0 : index
    %c0_59 = arith.constant 0 : index
    %118 = vector.load %arg21[%c1_57, %c0_58, %c0_59] : memref<4x256x256xbf16, #tpu.memory_space<vmem>>, vector<1x256x256xbf16>
    %119 = vector.shape_cast %118 : vector<1x256x256xbf16> to vector<256x256xbf16>
    %cst_60 = arith.constant dense<0.000000e+00> : vector<16x256xf32>
    %120 = tpu.matmul %117, %119, %cst_60 {dimension_numbers = #tpu.dot_dimension_numbers<[1], [0], [0], [1], [0, 0, 1, 1], [], []>} : vector<16x256xbf16>, vector<256x256xbf16>, vector<16x256xf32> -> vector<16x256xf32>
    %121 = vector.extract_strided_slice %45 {offsets = [1, 0], sizes = [1, 256], strides = [1, 1]} : vector<4x256xf32> to vector<1x256xf32>
    %122 = vector.broadcast %121 : vector<1x256xf32> to vector<16x256xf32>
    %123 = arith.addf %120, %122 : vector<16x256xf32>
    %124 = arith.addf %96, %123 : vector<16x256xf32>
    %c1_61 = arith.constant 1 : index
    %c0_62 = arith.constant 0 : index
    %c0_63 = arith.constant 0 : index
    %125 = vector.load %arg17[%c1_61, %c0_62, %c0_63] : memref<2x1024x256xbf16, #tpu.memory_space<vmem>>, vector<1x1024x256xbf16>
    %126 = vector.shape_cast %125 : vector<1x1024x256xbf16> to vector<1024x256xbf16>
    %127 = vector.extract_strided_slice %43 {offsets = [1, 0], sizes = [1, 256], strides = [1, 1]} : vector<2x256xf32> to vector<1x256xf32>
    %c0_64 = arith.constant 0 : index
    %c0_65 = arith.constant 0 : index
    %128 = vector.load %arg12[%c0_64, %c0_65] : memref<8x16xbf16, #tpu.memory_space<vmem>>, vector<8x16xbf16>
    %c1_i32_66 = arith.constant 1 : i32
    %129 = tpu.dynamic_rotate %124 by %c1_i32_66 dim 0 : vector<16x256xf32>, i32 -> vector<16x256xf32>
    %130 = vector.extract_strided_slice %1 {offsets = [0, 3], sizes = [16, 1], strides = [1, 1]} : vector<16x8xf32> to vector<16x1xf32>
    %131 = vector.broadcast %130 : vector<16x1xf32> to vector<16x256xf32>
    %132 = arith.mulf %129, %131 : vector<16x256xf32>
    %c15_i32_67 = arith.constant 15 : i32
    %133 = tpu.dynamic_rotate %124 by %c15_i32_67 dim 0 : vector<16x256xf32>, i32 -> vector<16x256xf32>
    %134 = vector.extract_strided_slice %1 {offsets = [0, 5], sizes = [16, 1], strides = [1, 1]} : vector<16x8xf32> to vector<16x1xf32>
    %135 = vector.broadcast %134 : vector<16x1xf32> to vector<16x256xf32>
    %136 = arith.mulf %133, %135 : vector<16x256xf32>
    %c14_i32 = arith.constant 14 : i32
    %137 = tpu.dynamic_rotate %124 by %c14_i32 dim 0 : vector<16x256xf32>, i32 -> vector<16x256xf32>
    %138 = vector.extract_strided_slice %1 {offsets = [0, 6], sizes = [16, 1], strides = [1, 1]} : vector<16x8xf32> to vector<16x1xf32>
    %139 = vector.broadcast %138 : vector<16x1xf32> to vector<16x256xf32>
    %140 = arith.mulf %137, %139 : vector<16x256xf32>
    %141 = tpu.concatenate %132, %124, %136, %140 in 1 : vector<16x256xf32>, vector<16x256xf32>, vector<16x256xf32>, vector<16x256xf32> -> vector<16x1024xf32>
    %142 = arith.truncf %141 : vector<16x1024xf32> to vector<16x1024xbf16>
    %cst_68 = arith.constant dense<0.000000e+00> : vector<8x1024xf32>
    %143 = tpu.matmul %128, %142, %cst_68 {dimension_numbers = #tpu.dot_dimension_numbers<[1], [0], [0], [1], [0, 0, 1, 1], [], []>} : vector<8x16xbf16>, vector<16x1024xbf16>, vector<8x1024xf32> -> vector<8x1024xf32>
    %144 = arith.truncf %143 : vector<8x1024xf32> to vector<8x1024xbf16>
    %cst_69 = arith.constant dense<0.000000e+00> : vector<8x256xf32>
    %145 = tpu.matmul %144, %126, %cst_69 {dimension_numbers = #tpu.dot_dimension_numbers<[1], [0], [0], [1], [0, 0, 1, 1], [], []>} : vector<8x1024xbf16>, vector<1024x256xbf16>, vector<8x256xf32> -> vector<8x256xf32>
    %146 = vector.broadcast %127 : vector<1x256xf32> to vector<8x256xf32>
    %147 = arith.addf %145, %146 : vector<8x256xf32>
    %c2_70 = arith.constant 2 : index
    %c0_71 = arith.constant 0 : index
    %c0_72 = arith.constant 0 : index
    %148 = vector.load %arg19[%c2_70, %c0_71, %c0_72] : memref<4x768x256xbf16, #tpu.memory_space<vmem>>, vector<1x768x256xbf16>
    %149 = vector.shape_cast %148 : vector<1x768x256xbf16> to vector<768x256xbf16>
    %150 = vector.extract_strided_slice %44 {offsets = [2, 0], sizes = [1, 256], strides = [1, 1]} : vector<4x256xf32> to vector<1x256xf32>
    %cst_73 = arith.constant 0.000000e+00 : f32
    %151 = vector.broadcast %cst_73 : f32 to vector<8x256xf32>
    %152 = arith.maximumf %147, %151 : vector<8x256xf32>
    %c1_i32_74 = arith.constant 1 : i32
    %153 = tpu.dynamic_rotate %152 by %c1_i32_74 dim 0 : vector<8x256xf32>, i32 -> vector<8x256xf32>
    %154 = vector.extract_strided_slice %2 {offsets = [0, 3], sizes = [8, 1], strides = [1, 1]} : vector<8x8xf32> to vector<8x1xf32>
    %155 = vector.broadcast %154 : vector<8x1xf32> to vector<8x256xf32>
    %156 = arith.mulf %153, %155 : vector<8x256xf32>
    %c7_i32 = arith.constant 7 : i32
    %157 = tpu.dynamic_rotate %152 by %c7_i32 dim 0 : vector<8x256xf32>, i32 -> vector<8x256xf32>
    %158 = vector.extract_strided_slice %2 {offsets = [0, 5], sizes = [8, 1], strides = [1, 1]} : vector<8x8xf32> to vector<8x1xf32>
    %159 = vector.broadcast %158 : vector<8x1xf32> to vector<8x256xf32>
    %160 = arith.mulf %157, %159 : vector<8x256xf32>
    %161 = tpu.concatenate %156, %152, %160 in 1 : vector<8x256xf32>, vector<8x256xf32>, vector<8x256xf32> -> vector<8x768xf32>
    %162 = arith.truncf %161 : vector<8x768xf32> to vector<8x768xbf16>
    %cst_75 = arith.constant dense<0.000000e+00> : vector<8x256xf32>
    %163 = tpu.matmul %162, %149, %cst_75 {dimension_numbers = #tpu.dot_dimension_numbers<[1], [0], [0], [1], [0, 0, 1, 1], [], []>} : vector<8x768xbf16>, vector<768x256xbf16>, vector<8x256xf32> -> vector<8x256xf32>
    %164 = vector.broadcast %150 : vector<1x256xf32> to vector<8x256xf32>
    %165 = arith.addf %163, %164 : vector<8x256xf32>
    %cst_76 = arith.constant 0.000000e+00 : f32
    %166 = vector.broadcast %cst_76 : f32 to vector<8x256xf32>
    %167 = arith.maximumf %165, %166 : vector<8x256xf32>
    %168 = arith.truncf %167 : vector<8x256xf32> to vector<8x256xbf16>
    %c2_77 = arith.constant 2 : index
    %c0_78 = arith.constant 0 : index
    %c0_79 = arith.constant 0 : index
    %169 = vector.load %arg21[%c2_77, %c0_78, %c0_79] : memref<4x256x256xbf16, #tpu.memory_space<vmem>>, vector<1x256x256xbf16>
    %170 = vector.shape_cast %169 : vector<1x256x256xbf16> to vector<256x256xbf16>
    %cst_80 = arith.constant dense<0.000000e+00> : vector<8x256xf32>
    %171 = tpu.matmul %168, %170, %cst_80 {dimension_numbers = #tpu.dot_dimension_numbers<[1], [0], [0], [1], [0, 0, 1, 1], [], []>} : vector<8x256xbf16>, vector<256x256xbf16>, vector<8x256xf32> -> vector<8x256xf32>
    %172 = vector.extract_strided_slice %45 {offsets = [2, 0], sizes = [1, 256], strides = [1, 1]} : vector<4x256xf32> to vector<1x256xf32>
    %173 = vector.broadcast %172 : vector<1x256xf32> to vector<8x256xf32>
    %174 = arith.addf %171, %173 : vector<8x256xf32>
    %175 = arith.addf %147, %174 : vector<8x256xf32>
    %c3 = arith.constant 3 : index
    %c0_81 = arith.constant 0 : index
    %c0_82 = arith.constant 0 : index
    %176 = vector.load %arg19[%c3, %c0_81, %c0_82] : memref<4x768x256xbf16, #tpu.memory_space<vmem>>, vector<1x768x256xbf16>
    %177 = vector.shape_cast %176 : vector<1x768x256xbf16> to vector<768x256xbf16>
    %178 = vector.extract_strided_slice %44 {offsets = [3, 0], sizes = [1, 256], strides = [1, 1]} : vector<4x256xf32> to vector<1x256xf32>
    %cst_83 = arith.constant 0.000000e+00 : f32
    %179 = vector.broadcast %cst_83 : f32 to vector<8x256xf32>
    %180 = arith.maximumf %175, %179 : vector<8x256xf32>
    %c3_i32_84 = arith.constant 3 : i32
    %181 = tpu.dynamic_rotate %180 by %c3_i32_84 dim 0 : vector<8x256xf32>, i32 -> vector<8x256xf32>
    %182 = vector.extract_strided_slice %2 {offsets = [0, 1], sizes = [8, 1], strides = [1, 1]} : vector<8x8xf32> to vector<8x1xf32>
    %183 = vector.broadcast %182 : vector<8x1xf32> to vector<8x256xf32>
    %184 = arith.mulf %181, %183 : vector<8x256xf32>
    %c5_i32 = arith.constant 5 : i32
    %185 = tpu.dynamic_rotate %180 by %c5_i32 dim 0 : vector<8x256xf32>, i32 -> vector<8x256xf32>
    %186 = vector.extract_strided_slice %2 {offsets = [0, 7], sizes = [8, 1], strides = [1, 1]} : vector<8x8xf32> to vector<8x1xf32>
    %187 = vector.broadcast %186 : vector<8x1xf32> to vector<8x256xf32>
    %188 = arith.mulf %185, %187 : vector<8x256xf32>
    %189 = tpu.concatenate %184, %180, %188 in 1 : vector<8x256xf32>, vector<8x256xf32>, vector<8x256xf32> -> vector<8x768xf32>
    %190 = arith.truncf %189 : vector<8x768xf32> to vector<8x768xbf16>
    %cst_85 = arith.constant dense<0.000000e+00> : vector<8x256xf32>
    %191 = tpu.matmul %190, %177, %cst_85 {dimension_numbers = #tpu.dot_dimension_numbers<[1], [0], [0], [1], [0, 0, 1, 1], [], []>} : vector<8x768xbf16>, vector<768x256xbf16>, vector<8x256xf32> -> vector<8x256xf32>
    %192 = vector.broadcast %178 : vector<1x256xf32> to vector<8x256xf32>
    %193 = arith.addf %191, %192 : vector<8x256xf32>
    %cst_86 = arith.constant 0.000000e+00 : f32
    %194 = vector.broadcast %cst_86 : f32 to vector<8x256xf32>
    %195 = arith.maximumf %193, %194 : vector<8x256xf32>
    %196 = arith.truncf %195 : vector<8x256xf32> to vector<8x256xbf16>
    %c3_87 = arith.constant 3 : index
    %c0_88 = arith.constant 0 : index
    %c0_89 = arith.constant 0 : index
    %197 = vector.load %arg21[%c3_87, %c0_88, %c0_89] : memref<4x256x256xbf16, #tpu.memory_space<vmem>>, vector<1x256x256xbf16>
    %198 = vector.shape_cast %197 : vector<1x256x256xbf16> to vector<256x256xbf16>
    %cst_90 = arith.constant dense<0.000000e+00> : vector<8x256xf32>
    %199 = tpu.matmul %196, %198, %cst_90 {dimension_numbers = #tpu.dot_dimension_numbers<[1], [0], [0], [1], [0, 0, 1, 1], [], []>} : vector<8x256xbf16>, vector<256x256xbf16>, vector<8x256xf32> -> vector<8x256xf32>
    %200 = vector.extract_strided_slice %45 {offsets = [3, 0], sizes = [1, 256], strides = [1, 1]} : vector<4x256xf32> to vector<1x256xf32>
    %201 = vector.broadcast %200 : vector<1x256xf32> to vector<8x256xf32>
    %202 = arith.addf %199, %201 : vector<8x256xf32>
    %203 = arith.addf %175, %202 : vector<8x256xf32>
    %c0_91 = arith.constant 0 : index
    %c0_92 = arith.constant 0 : index
    %204 = vector.load %arg23[%c0_91, %c0_92] : memref<768x128xbf16, #tpu.memory_space<vmem>>, vector<768x128xbf16>
    %c0_93 = arith.constant 0 : index
    %c0_94 = arith.constant 0 : index
    %205 = vector.load %arg24[%c0_93, %c0_94] : memref<1x128xf32, #tpu.memory_space<vmem>>, vector<1x128xf32>
    %c1_i32_95 = arith.constant 1 : i32
    %206 = tpu.dynamic_rotate %203 by %c1_i32_95 dim 0 : vector<8x256xf32>, i32 -> vector<8x256xf32>
    %207 = vector.extract_strided_slice %2 {offsets = [0, 3], sizes = [8, 1], strides = [1, 1]} : vector<8x8xf32> to vector<8x1xf32>
    %208 = vector.broadcast %207 : vector<8x1xf32> to vector<8x256xf32>
    %209 = arith.mulf %206, %208 : vector<8x256xf32>
    %c7_i32_96 = arith.constant 7 : i32
    %210 = tpu.dynamic_rotate %203 by %c7_i32_96 dim 0 : vector<8x256xf32>, i32 -> vector<8x256xf32>
    %211 = vector.extract_strided_slice %2 {offsets = [0, 5], sizes = [8, 1], strides = [1, 1]} : vector<8x8xf32> to vector<8x1xf32>
    %212 = vector.broadcast %211 : vector<8x1xf32> to vector<8x256xf32>
    %213 = arith.mulf %210, %212 : vector<8x256xf32>
    %214 = tpu.concatenate %209, %203, %213 in 1 : vector<8x256xf32>, vector<8x256xf32>, vector<8x256xf32> -> vector<8x768xf32>
    %215 = arith.truncf %214 : vector<8x768xf32> to vector<8x768xbf16>
    %cst_97 = arith.constant dense<0.000000e+00> : vector<8x128xf32>
    %216 = tpu.matmul %215, %204, %cst_97 {dimension_numbers = #tpu.dot_dimension_numbers<[1], [0], [0], [1], [0, 0, 1, 1], [], []>} : vector<8x768xbf16>, vector<768x128xbf16>, vector<8x128xf32> -> vector<8x128xf32>
    %217 = vector.broadcast %205 : vector<1x128xf32> to vector<8x128xf32>
    %218 = arith.addf %216, %217 : vector<8x128xf32>
    %219 = tpu.iota {dimensions = array<i32: 1>} : vector<8x64xi32>
    %cst_98 = arith.constant 0.000000e+00 : f32
    %220 = vector.broadcast %cst_98 : f32 to vector<8x128xf32>
    %cst_99 = arith.constant 0.000000e+00 : f32
    %221 = vector.broadcast %cst_99 : f32 to vector<1x1xf32>
    %cst_100 = arith.constant 0.000000e+00 : f32
    %222 = vector.broadcast %cst_100 : f32 to vector<1x1xf32>
    %c0_101 = arith.constant 0 : index
    %c0_102 = arith.constant 0 : index
    %c0_103 = arith.constant 0 : index
    %223 = vector.load %arg25[%c0_101, %c0_102, %c0_103] : memref<2x128x256xf32, #tpu.memory_space<vmem>>, vector<1x128x256xf32>
    %224 = vector.shape_cast %223 : vector<1x128x256xf32> to vector<128x256xf32>
    %cst_104 = arith.constant dense<0.000000e+00> : vector<8x256xf32>
    %225 = tpu.matmul %218, %224, %cst_104 {dimension_numbers = #tpu.dot_dimension_numbers<[1], [0], [0], [1], [0, 0, 1, 1], [], []>} : vector<8x128xf32>, vector<128x256xf32>, vector<8x256xf32> -> vector<8x256xf32>
    %c0_105 = arith.constant 0 : index
    %c0_106 = arith.constant 0 : index
    %c0_107 = arith.constant 0 : index
    %226 = vector.load %arg27[%c0_105, %c0_106, %c0_107] : memref<2x1x256xf32, #tpu.memory_space<vmem>>, vector<1x1x256xf32>
    %227 = vector.shape_cast %226 : vector<1x1x256xf32> to vector<1x256xf32>
    %cst_108 = arith.constant 2.000000e+00 : f32
    %228 = vector.broadcast %cst_108 : f32 to vector<8x256xf32>
    %229 = arith.mulf %228, %225 : vector<8x256xf32>
    %230 = vector.broadcast %227 : vector<1x256xf32> to vector<8x256xf32>
    %231 = arith.subf %230, %229 : vector<8x256xf32>
    %232 = vector.extract_strided_slice %231 {offsets = [0, 0], sizes = [8, 64], strides = [1, 1]} : vector<8x256xf32> to vector<8x64xf32>
    %cst_109 = arith.constant dense<0x7F800000> : vector<8xf32>
    %233 = vector.multi_reduction <minimumf>, %232, %cst_109 [1] : vector<8x64xf32> to vector<8xf32>
    %234 = vector.shape_cast %233 : vector<8xf32> to vector<8x1xf32>
    %235 = vector.broadcast %234 : vector<8x1xf32> to vector<8x64xf32>
    %236 = arith.cmpf ole, %232, %235 : vector<8x64xf32>
    %c64_i32 = arith.constant 64 : i32
    %237 = vector.broadcast %c64_i32 : i32 to vector<8x64xi32>
    %238 = arith.select %236, %219, %237 : vector<8x64xi1>, vector<8x64xi32>
    %cst_110 = arith.constant dense<2147483647> : vector<8xi32>
    %239 = vector.multi_reduction <minsi>, %238, %cst_110 [1] : vector<8x64xi32> to vector<8xi32>
    %240 = vector.shape_cast %239 : vector<8xi32> to vector<8x1xi32>
    %241 = vector.broadcast %240 : vector<8x1xi32> to vector<8x64xi32>
    %242 = arith.cmpi eq, %219, %241 : vector<8x64xi32>
    %243 = arith.extui %242 : vector<8x64xi1> to vector<8x64xi32>
    %244 = arith.sitofp %243 : vector<8x64xi32> to vector<8x64xf32>
    %245 = vector.extract_strided_slice %231 {offsets = [0, 64], sizes = [8, 64], strides = [1, 1]} : vector<8x256xf32> to vector<8x64xf32>
    %cst_111 = arith.constant dense<0x7F800000> : vector<8xf32>
    %246 = vector.multi_reduction <minimumf>, %245, %cst_111 [1] : vector<8x64xf32> to vector<8xf32>
    %247 = vector.shape_cast %246 : vector<8xf32> to vector<8x1xf32>
    %248 = vector.broadcast %247 : vector<8x1xf32> to vector<8x64xf32>
    %249 = arith.cmpf ole, %245, %248 : vector<8x64xf32>
    %c64_i32_112 = arith.constant 64 : i32
    %250 = vector.broadcast %c64_i32_112 : i32 to vector<8x64xi32>
    %251 = arith.select %249, %219, %250 : vector<8x64xi1>, vector<8x64xi32>
    %cst_113 = arith.constant dense<2147483647> : vector<8xi32>
    %252 = vector.multi_reduction <minsi>, %251, %cst_113 [1] : vector<8x64xi32> to vector<8xi32>
    %253 = vector.shape_cast %252 : vector<8xi32> to vector<8x1xi32>
    %254 = vector.broadcast %253 : vector<8x1xi32> to vector<8x64xi32>
    %255 = arith.cmpi eq, %219, %254 : vector<8x64xi32>
    %256 = arith.extui %255 : vector<8x64xi1> to vector<8x64xi32>
    %257 = arith.sitofp %256 : vector<8x64xi32> to vector<8x64xf32>
    %258 = vector.extract_strided_slice %231 {offsets = [0, 128], sizes = [8, 64], strides = [1, 1]} : vector<8x256xf32> to vector<8x64xf32>
    %cst_114 = arith.constant dense<0x7F800000> : vector<8xf32>
    %259 = vector.multi_reduction <minimumf>, %258, %cst_114 [1] : vector<8x64xf32> to vector<8xf32>
    %260 = vector.shape_cast %259 : vector<8xf32> to vector<8x1xf32>
    %261 = vector.broadcast %260 : vector<8x1xf32> to vector<8x64xf32>
    %262 = arith.cmpf ole, %258, %261 : vector<8x64xf32>
    %c64_i32_115 = arith.constant 64 : i32
    %263 = vector.broadcast %c64_i32_115 : i32 to vector<8x64xi32>
    %264 = arith.select %262, %219, %263 : vector<8x64xi1>, vector<8x64xi32>
    %cst_116 = arith.constant dense<2147483647> : vector<8xi32>
    %265 = vector.multi_reduction <minsi>, %264, %cst_116 [1] : vector<8x64xi32> to vector<8xi32>
    %266 = vector.shape_cast %265 : vector<8xi32> to vector<8x1xi32>
    %267 = vector.broadcast %266 : vector<8x1xi32> to vector<8x64xi32>
    %268 = arith.cmpi eq, %219, %267 : vector<8x64xi32>
    %269 = arith.extui %268 : vector<8x64xi1> to vector<8x64xi32>
    %270 = arith.sitofp %269 : vector<8x64xi32> to vector<8x64xf32>
    %271 = vector.extract_strided_slice %231 {offsets = [0, 192], sizes = [8, 64], strides = [1, 1]} : vector<8x256xf32> to vector<8x64xf32>
    %cst_117 = arith.constant dense<0x7F800000> : vector<8xf32>
    %272 = vector.multi_reduction <minimumf>, %271, %cst_117 [1] : vector<8x64xf32> to vector<8xf32>
    %273 = vector.shape_cast %272 : vector<8xf32> to vector<8x1xf32>
    %274 = vector.broadcast %273 : vector<8x1xf32> to vector<8x64xf32>
    %275 = arith.cmpf ole, %271, %274 : vector<8x64xf32>
    %c64_i32_118 = arith.constant 64 : i32
    %276 = vector.broadcast %c64_i32_118 : i32 to vector<8x64xi32>
    %277 = arith.select %275, %219, %276 : vector<8x64xi1>, vector<8x64xi32>
    %cst_119 = arith.constant dense<2147483647> : vector<8xi32>
    %278 = vector.multi_reduction <minsi>, %277, %cst_119 [1] : vector<8x64xi32> to vector<8xi32>
    %279 = vector.shape_cast %278 : vector<8xi32> to vector<8x1xi32>
    %280 = vector.broadcast %279 : vector<8x1xi32> to vector<8x64xi32>
    %281 = arith.cmpi eq, %219, %280 : vector<8x64xi32>
    %282 = arith.extui %281 : vector<8x64xi1> to vector<8x64xi32>
    %283 = arith.sitofp %282 : vector<8x64xi32> to vector<8x64xf32>
    %284 = tpu.concatenate %244, %257, %270, %283 in 1 : vector<8x64xf32>, vector<8x64xf32>, vector<8x64xf32>, vector<8x64xf32> -> vector<8x256xf32>
    %c0_120 = arith.constant 0 : index
    %c0_121 = arith.constant 0 : index
    %c0_122 = arith.constant 0 : index
    %285 = vector.load %arg26[%c0_120, %c0_121, %c0_122] : memref<2x256x128xf32, #tpu.memory_space<vmem>>, vector<1x256x128xf32>
    %286 = vector.shape_cast %285 : vector<1x256x128xf32> to vector<256x128xf32>
    %cst_123 = arith.constant dense<0.000000e+00> : vector<8x128xf32>
    %287 = tpu.matmul %284, %286, %cst_123 {dimension_numbers = #tpu.dot_dimension_numbers<[1], [0], [0], [1], [0, 0, 1, 1], [], []>} : vector<8x256xf32>, vector<256x128xf32>, vector<8x128xf32> -> vector<8x128xf32>
    %288 = arith.subf %218, %287 : vector<8x128xf32>
    %289 = arith.mulf %288, %288 : vector<8x128xf32>
    %cst_124 = arith.constant dense<0.000000e+00> : vector<8xf32>
    %290 = vector.multi_reduction <add>, %289, %cst_124 [1] : vector<8x128xf32> to vector<8xf32>
    %291 = vector.shape_cast %290 : vector<8xf32> to vector<8x1xf32>
    %cst_125 = arith.constant dense<0.000000e+00> : vector<1xf32>
    %292 = vector.multi_reduction <add>, %291, %cst_125 [0] : vector<8x1xf32> to vector<1xf32>
    %293 = vector.shape_cast %292 : vector<1xf32> to vector<1x1xf32>
    %cst_126 = arith.constant 2.560000e+02 : f32
    %294 = vector.broadcast %cst_126 : f32 to vector<1x1xf32>
    %295 = arith.divf %293, %294 : vector<1x1xf32>
    %296 = arith.addf %221, %295 : vector<1x1xf32>
    %cst_127 = arith.constant dense<0.000000e+00> : vector<256xf32>
    %297 = vector.multi_reduction <add>, %284, %cst_127 [0] : vector<8x256xf32> to vector<256xf32>
    %298 = vector.shape_cast %297 : vector<256xf32> to vector<1x256xf32>
    %cst_128 = arith.constant 8.000000e+00 : f32
    %299 = vector.broadcast %cst_128 : f32 to vector<1x256xf32>
    %300 = arith.divf %298, %299 : vector<1x256xf32>
    %cst_129 = arith.constant 0.000000e+00 : f32
    %301 = vector.broadcast %cst_129 : f32 to vector<1x256xf32>
    %302 = arith.subf %301, %300 : vector<1x256xf32>
    %cst_130 = arith.constant 1.000000e-07 : f32
    %303 = vector.broadcast %cst_130 : f32 to vector<1x256xf32>
    %304 = arith.addf %300, %303 : vector<1x256xf32>
    %305 = math.log %304 : vector<1x256xf32>
    %306 = arith.mulf %302, %305 : vector<1x256xf32>
    %307 = vector.extract_strided_slice %306 {offsets = [0, 0], sizes = [1, 64], strides = [1, 1]} : vector<1x256xf32> to vector<1x64xf32>
    %cst_131 = arith.constant dense<0.000000e+00> : vector<1xf32>
    %308 = vector.multi_reduction <add>, %307, %cst_131 [1] : vector<1x64xf32> to vector<1xf32>
    %309 = vector.shape_cast %308 : vector<1xf32> to vector<1x1xf32>
    %310 = math.exp %309 : vector<1x1xf32>
    %311 = arith.addf %222, %310 : vector<1x1xf32>
    %312 = vector.extract_strided_slice %306 {offsets = [0, 64], sizes = [1, 64], strides = [1, 1]} : vector<1x256xf32> to vector<1x64xf32>
    %cst_132 = arith.constant dense<0.000000e+00> : vector<1xf32>
    %313 = vector.multi_reduction <add>, %312, %cst_132 [1] : vector<1x64xf32> to vector<1xf32>
    %314 = vector.shape_cast %313 : vector<1xf32> to vector<1x1xf32>
    %315 = math.exp %314 : vector<1x1xf32>
    %316 = arith.addf %311, %315 : vector<1x1xf32>
    %317 = vector.extract_strided_slice %306 {offsets = [0, 128], sizes = [1, 64], strides = [1, 1]} : vector<1x256xf32> to vector<1x64xf32>
    %cst_133 = arith.constant dense<0.000000e+00> : vector<1xf32>
    %318 = vector.multi_reduction <add>, %317, %cst_133 [1] : vector<1x64xf32> to vector<1xf32>
    %319 = vector.shape_cast %318 : vector<1xf32> to vector<1x1xf32>
    %320 = math.exp %319 : vector<1x1xf32>
    %321 = arith.addf %316, %320 : vector<1x1xf32>
    %322 = vector.extract_strided_slice %306 {offsets = [0, 192], sizes = [1, 64], strides = [1, 1]} : vector<1x256xf32> to vector<1x64xf32>
    %cst_134 = arith.constant dense<0.000000e+00> : vector<1xf32>
    %323 = vector.multi_reduction <add>, %322, %cst_134 [1] : vector<1x64xf32> to vector<1xf32>
    %324 = vector.shape_cast %323 : vector<1xf32> to vector<1x1xf32>
    %325 = math.exp %324 : vector<1x1xf32>
    %326 = arith.addf %321, %325 : vector<1x1xf32>
    %327 = arith.addf %220, %287 : vector<8x128xf32>
    %328 = arith.subf %218, %287 : vector<8x128xf32>
    %c1_135 = arith.constant 1 : index
    %c0_136 = arith.constant 0 : index
    %c0_137 = arith.constant 0 : index
    %329 = vector.load %arg25[%c1_135, %c0_136, %c0_137] : memref<2x128x256xf32, #tpu.memory_space<vmem>>, vector<1x128x256xf32>
    %330 = vector.shape_cast %329 : vector<1x128x256xf32> to vector<128x256xf32>
    %cst_138 = arith.constant dense<0.000000e+00> : vector<8x256xf32>
    %331 = tpu.matmul %328, %330, %cst_138 {dimension_numbers = #tpu.dot_dimension_numbers<[1], [0], [0], [1], [0, 0, 1, 1], [], []>} : vector<8x128xf32>, vector<128x256xf32>, vector<8x256xf32> -> vector<8x256xf32>
    %c1_139 = arith.constant 1 : index
    %c0_140 = arith.constant 0 : index
    %c0_141 = arith.constant 0 : index
    %332 = vector.load %arg27[%c1_139, %c0_140, %c0_141] : memref<2x1x256xf32, #tpu.memory_space<vmem>>, vector<1x1x256xf32>
    %333 = vector.shape_cast %332 : vector<1x1x256xf32> to vector<1x256xf32>
    %cst_142 = arith.constant 2.000000e+00 : f32
    %334 = vector.broadcast %cst_142 : f32 to vector<8x256xf32>
    %335 = arith.mulf %334, %331 : vector<8x256xf32>
    %336 = vector.broadcast %333 : vector<1x256xf32> to vector<8x256xf32>
    %337 = arith.subf %336, %335 : vector<8x256xf32>
    %338 = vector.extract_strided_slice %337 {offsets = [0, 0], sizes = [8, 64], strides = [1, 1]} : vector<8x256xf32> to vector<8x64xf32>
    %cst_143 = arith.constant dense<0x7F800000> : vector<8xf32>
    %339 = vector.multi_reduction <minimumf>, %338, %cst_143 [1] : vector<8x64xf32> to vector<8xf32>
    %340 = vector.shape_cast %339 : vector<8xf32> to vector<8x1xf32>
    %341 = vector.broadcast %340 : vector<8x1xf32> to vector<8x64xf32>
    %342 = arith.cmpf ole, %338, %341 : vector<8x64xf32>
    %c64_i32_144 = arith.constant 64 : i32
    %343 = vector.broadcast %c64_i32_144 : i32 to vector<8x64xi32>
    %344 = arith.select %342, %219, %343 : vector<8x64xi1>, vector<8x64xi32>
    %cst_145 = arith.constant dense<2147483647> : vector<8xi32>
    %345 = vector.multi_reduction <minsi>, %344, %cst_145 [1] : vector<8x64xi32> to vector<8xi32>
    %346 = vector.shape_cast %345 : vector<8xi32> to vector<8x1xi32>
    %347 = vector.broadcast %346 : vector<8x1xi32> to vector<8x64xi32>
    %348 = arith.cmpi eq, %219, %347 : vector<8x64xi32>
    %349 = arith.extui %348 : vector<8x64xi1> to vector<8x64xi32>
    %350 = arith.sitofp %349 : vector<8x64xi32> to vector<8x64xf32>
    %351 = vector.extract_strided_slice %337 {offsets = [0, 64], sizes = [8, 64], strides = [1, 1]} : vector<8x256xf32> to vector<8x64xf32>
    %cst_146 = arith.constant dense<0x7F800000> : vector<8xf32>
    %352 = vector.multi_reduction <minimumf>, %351, %cst_146 [1] : vector<8x64xf32> to vector<8xf32>
    %353 = vector.shape_cast %352 : vector<8xf32> to vector<8x1xf32>
    %354 = vector.broadcast %353 : vector<8x1xf32> to vector<8x64xf32>
    %355 = arith.cmpf ole, %351, %354 : vector<8x64xf32>
    %c64_i32_147 = arith.constant 64 : i32
    %356 = vector.broadcast %c64_i32_147 : i32 to vector<8x64xi32>
    %357 = arith.select %355, %219, %356 : vector<8x64xi1>, vector<8x64xi32>
    %cst_148 = arith.constant dense<2147483647> : vector<8xi32>
    %358 = vector.multi_reduction <minsi>, %357, %cst_148 [1] : vector<8x64xi32> to vector<8xi32>
    %359 = vector.shape_cast %358 : vector<8xi32> to vector<8x1xi32>
    %360 = vector.broadcast %359 : vector<8x1xi32> to vector<8x64xi32>
    %361 = arith.cmpi eq, %219, %360 : vector<8x64xi32>
    %362 = arith.extui %361 : vector<8x64xi1> to vector<8x64xi32>
    %363 = arith.sitofp %362 : vector<8x64xi32> to vector<8x64xf32>
    %364 = vector.extract_strided_slice %337 {offsets = [0, 128], sizes = [8, 64], strides = [1, 1]} : vector<8x256xf32> to vector<8x64xf32>
    %cst_149 = arith.constant dense<0x7F800000> : vector<8xf32>
    %365 = vector.multi_reduction <minimumf>, %364, %cst_149 [1] : vector<8x64xf32> to vector<8xf32>
    %366 = vector.shape_cast %365 : vector<8xf32> to vector<8x1xf32>
    %367 = vector.broadcast %366 : vector<8x1xf32> to vector<8x64xf32>
    %368 = arith.cmpf ole, %364, %367 : vector<8x64xf32>
    %c64_i32_150 = arith.constant 64 : i32
    %369 = vector.broadcast %c64_i32_150 : i32 to vector<8x64xi32>
    %370 = arith.select %368, %219, %369 : vector<8x64xi1>, vector<8x64xi32>
    %cst_151 = arith.constant dense<2147483647> : vector<8xi32>
    %371 = vector.multi_reduction <minsi>, %370, %cst_151 [1] : vector<8x64xi32> to vector<8xi32>
    %372 = vector.shape_cast %371 : vector<8xi32> to vector<8x1xi32>
    %373 = vector.broadcast %372 : vector<8x1xi32> to vector<8x64xi32>
    %374 = arith.cmpi eq, %219, %373 : vector<8x64xi32>
    %375 = arith.extui %374 : vector<8x64xi1> to vector<8x64xi32>
    %376 = arith.sitofp %375 : vector<8x64xi32> to vector<8x64xf32>
    %377 = vector.extract_strided_slice %337 {offsets = [0, 192], sizes = [8, 64], strides = [1, 1]} : vector<8x256xf32> to vector<8x64xf32>
    %cst_152 = arith.constant dense<0x7F800000> : vector<8xf32>
    %378 = vector.multi_reduction <minimumf>, %377, %cst_152 [1] : vector<8x64xf32> to vector<8xf32>
    %379 = vector.shape_cast %378 : vector<8xf32> to vector<8x1xf32>
    %380 = vector.broadcast %379 : vector<8x1xf32> to vector<8x64xf32>
    %381 = arith.cmpf ole, %377, %380 : vector<8x64xf32>
    %c64_i32_153 = arith.constant 64 : i32
    %382 = vector.broadcast %c64_i32_153 : i32 to vector<8x64xi32>
    %383 = arith.select %381, %219, %382 : vector<8x64xi1>, vector<8x64xi32>
    %cst_154 = arith.constant dense<2147483647> : vector<8xi32>
    %384 = vector.multi_reduction <minsi>, %383, %cst_154 [1] : vector<8x64xi32> to vector<8xi32>
    %385 = vector.shape_cast %384 : vector<8xi32> to vector<8x1xi32>
    %386 = vector.broadcast %385 : vector<8x1xi32> to vector<8x64xi32>
    %387 = arith.cmpi eq, %219, %386 : vector<8x64xi32>
    %388 = arith.extui %387 : vector<8x64xi1> to vector<8x64xi32>
    %389 = arith.sitofp %388 : vector<8x64xi32> to vector<8x64xf32>
    %390 = tpu.concatenate %350, %363, %376, %389 in 1 : vector<8x64xf32>, vector<8x64xf32>, vector<8x64xf32>, vector<8x64xf32> -> vector<8x256xf32>
    %c1_155 = arith.constant 1 : index
    %c0_156 = arith.constant 0 : index
    %c0_157 = arith.constant 0 : index
    %391 = vector.load %arg26[%c1_155, %c0_156, %c0_157] : memref<2x256x128xf32, #tpu.memory_space<vmem>>, vector<1x256x128xf32>
    %392 = vector.shape_cast %391 : vector<1x256x128xf32> to vector<256x128xf32>
    %cst_158 = arith.constant dense<0.000000e+00> : vector<8x128xf32>
    %393 = tpu.matmul %390, %392, %cst_158 {dimension_numbers = #tpu.dot_dimension_numbers<[1], [0], [0], [1], [0, 0, 1, 1], [], []>} : vector<8x256xf32>, vector<256x128xf32>, vector<8x128xf32> -> vector<8x128xf32>
    %394 = arith.subf %328, %393 : vector<8x128xf32>
    %395 = arith.mulf %394, %394 : vector<8x128xf32>
    %cst_159 = arith.constant dense<0.000000e+00> : vector<8xf32>
    %396 = vector.multi_reduction <add>, %395, %cst_159 [1] : vector<8x128xf32> to vector<8xf32>
    %397 = vector.shape_cast %396 : vector<8xf32> to vector<8x1xf32>
    %cst_160 = arith.constant dense<0.000000e+00> : vector<1xf32>
    %398 = vector.multi_reduction <add>, %397, %cst_160 [0] : vector<8x1xf32> to vector<1xf32>
    %399 = vector.shape_cast %398 : vector<1xf32> to vector<1x1xf32>
    %cst_161 = arith.constant 2.560000e+02 : f32
    %400 = vector.broadcast %cst_161 : f32 to vector<1x1xf32>
    %401 = arith.divf %399, %400 : vector<1x1xf32>
    %402 = arith.addf %296, %401 : vector<1x1xf32>
    %cst_162 = arith.constant dense<0.000000e+00> : vector<256xf32>
    %403 = vector.multi_reduction <add>, %390, %cst_162 [0] : vector<8x256xf32> to vector<256xf32>
    %404 = vector.shape_cast %403 : vector<256xf32> to vector<1x256xf32>
    %cst_163 = arith.constant 8.000000e+00 : f32
    %405 = vector.broadcast %cst_163 : f32 to vector<1x256xf32>
    %406 = arith.divf %404, %405 : vector<1x256xf32>
    %cst_164 = arith.constant 0.000000e+00 : f32
    %407 = vector.broadcast %cst_164 : f32 to vector<1x256xf32>
    %408 = arith.subf %407, %406 : vector<1x256xf32>
    %cst_165 = arith.constant 1.000000e-07 : f32
    %409 = vector.broadcast %cst_165 : f32 to vector<1x256xf32>
    %410 = arith.addf %406, %409 : vector<1x256xf32>
    %411 = math.log %410 : vector<1x256xf32>
    %412 = arith.mulf %408, %411 : vector<1x256xf32>
    %413 = vector.extract_strided_slice %412 {offsets = [0, 0], sizes = [1, 64], strides = [1, 1]} : vector<1x256xf32> to vector<1x64xf32>
    %cst_166 = arith.constant dense<0.000000e+00> : vector<1xf32>
    %414 = vector.multi_reduction <add>, %413, %cst_166 [1] : vector<1x64xf32> to vector<1xf32>
    %415 = vector.shape_cast %414 : vector<1xf32> to vector<1x1xf32>
    %416 = math.exp %415 : vector<1x1xf32>
    %417 = arith.addf %326, %416 : vector<1x1xf32>
    %418 = vector.extract_strided_slice %412 {offsets = [0, 64], sizes = [1, 64], strides = [1, 1]} : vector<1x256xf32> to vector<1x64xf32>
    %cst_167 = arith.constant dense<0.000000e+00> : vector<1xf32>
    %419 = vector.multi_reduction <add>, %418, %cst_167 [1] : vector<1x64xf32> to vector<1xf32>
    %420 = vector.shape_cast %419 : vector<1xf32> to vector<1x1xf32>
    %421 = math.exp %420 : vector<1x1xf32>
    %422 = arith.addf %417, %421 : vector<1x1xf32>
    %423 = vector.extract_strided_slice %412 {offsets = [0, 128], sizes = [1, 64], strides = [1, 1]} : vector<1x256xf32> to vector<1x64xf32>
    %cst_168 = arith.constant dense<0.000000e+00> : vector<1xf32>
    %424 = vector.multi_reduction <add>, %423, %cst_168 [1] : vector<1x64xf32> to vector<1xf32>
    %425 = vector.shape_cast %424 : vector<1xf32> to vector<1x1xf32>
    %426 = math.exp %425 : vector<1x1xf32>
    %427 = arith.addf %422, %426 : vector<1x1xf32>
    %428 = vector.extract_strided_slice %412 {offsets = [0, 192], sizes = [1, 64], strides = [1, 1]} : vector<1x256xf32> to vector<1x64xf32>
    %cst_169 = arith.constant dense<0.000000e+00> : vector<1xf32>
    %429 = vector.multi_reduction <add>, %428, %cst_169 [1] : vector<1x64xf32> to vector<1xf32>
    %430 = vector.shape_cast %429 : vector<1xf32> to vector<1x1xf32>
    %431 = math.exp %430 : vector<1x1xf32>
    %432 = arith.addf %427, %431 : vector<1x1xf32>
    %433 = arith.addf %327, %393 : vector<8x128xf32>
    %cst_170 = arith.constant 2.000000e+00 : f32
    %434 = vector.broadcast %cst_170 : f32 to vector<1x1xf32>
    %435 = arith.divf %432, %434 : vector<1x1xf32>
    %c0_171 = arith.constant 0 : index
    %c0_172 = arith.constant 0 : index
    %436 = vector.load %arg31[%c0_171, %c0_172] : memref<4x64xf32, #tpu.memory_space<vmem>>, vector<4x64xf32>
    %c0_173 = arith.constant 0 : index
    %c0_174 = arith.constant 0 : index
    %437 = vector.load %arg33[%c0_173, %c0_174] : memref<4x64xf32, #tpu.memory_space<vmem>>, vector<4x64xf32>
    %c0_175 = arith.constant 0 : index
    %c0_176 = arith.constant 0 : index
    %438 = vector.load %arg35[%c0_175, %c0_176] : memref<2x64xf32, #tpu.memory_space<vmem>>, vector<2x64xf32>
    %c0_177 = arith.constant 0 : index
    %c0_178 = arith.constant 0 : index
    %439 = vector.load %arg28[%c0_177, %c0_178] : memref<384x64xbf16, #tpu.memory_space<vmem>>, vector<384x64xbf16>
    %c0_179 = arith.constant 0 : index
    %c0_180 = arith.constant 0 : index
    %440 = vector.load %arg29[%c0_179, %c0_180] : memref<1x64xf32, #tpu.memory_space<vmem>>, vector<1x64xf32>
    %c1_i32_181 = arith.constant 1 : i32
    %441 = tpu.dynamic_rotate %433 by %c1_i32_181 dim 0 : vector<8x128xf32>, i32 -> vector<8x128xf32>
    %442 = vector.extract_strided_slice %2 {offsets = [0, 3], sizes = [8, 1], strides = [1, 1]} : vector<8x8xf32> to vector<8x1xf32>
    %443 = vector.broadcast %442 : vector<8x1xf32> to vector<8x128xf32>
    %444 = arith.mulf %441, %443 : vector<8x128xf32>
    %c7_i32_182 = arith.constant 7 : i32
    %445 = tpu.dynamic_rotate %433 by %c7_i32_182 dim 0 : vector<8x128xf32>, i32 -> vector<8x128xf32>
    %446 = vector.extract_strided_slice %2 {offsets = [0, 5], sizes = [8, 1], strides = [1, 1]} : vector<8x8xf32> to vector<8x1xf32>
    %447 = vector.broadcast %446 : vector<8x1xf32> to vector<8x128xf32>
    %448 = arith.mulf %445, %447 : vector<8x128xf32>
    %449 = tpu.concatenate %444, %433, %448 in 1 : vector<8x128xf32>, vector<8x128xf32>, vector<8x128xf32> -> vector<8x384xf32>
    %450 = arith.truncf %449 : vector<8x384xf32> to vector<8x384xbf16>
    %cst_183 = arith.constant dense<0.000000e+00> : vector<8x64xf32>
    %451 = tpu.matmul %450, %439, %cst_183 {dimension_numbers = #tpu.dot_dimension_numbers<[1], [0], [0], [1], [0, 0, 1, 1], [], []>} : vector<8x384xbf16>, vector<384x64xbf16>, vector<8x64xf32> -> vector<8x64xf32>
    %452 = vector.broadcast %440 : vector<1x64xf32> to vector<8x64xf32>
    %453 = arith.addf %451, %452 : vector<8x64xf32>
    %cst_184 = arith.constant 0.000000e+00 : f32
    %454 = vector.broadcast %cst_184 : f32 to vector<8x64xf32>
    %455 = arith.maximumf %453, %454 : vector<8x64xf32>
    %c0_185 = arith.constant 0 : index
    %c0_186 = arith.constant 0 : index
    %c0_187 = arith.constant 0 : index
    %456 = vector.load %arg30[%c0_185, %c0_186, %c0_187] : memref<4x192x64xbf16, #tpu.memory_space<vmem>>, vector<1x192x64xbf16>
    %457 = vector.shape_cast %456 : vector<1x192x64xbf16> to vector<192x64xbf16>
    %458 = vector.extract_strided_slice %436 {offsets = [0, 0], sizes = [1, 64], strides = [1, 1]} : vector<4x64xf32> to vector<1x64xf32>
    %cst_188 = arith.constant 0.000000e+00 : f32
    %459 = vector.broadcast %cst_188 : f32 to vector<8x64xf32>
    %460 = arith.maximumf %455, %459 : vector<8x64xf32>
    %c3_i32_189 = arith.constant 3 : i32
    %461 = tpu.dynamic_rotate %460 by %c3_i32_189 dim 0 : vector<8x64xf32>, i32 -> vector<8x64xf32>
    %462 = vector.extract_strided_slice %2 {offsets = [0, 1], sizes = [8, 1], strides = [1, 1]} : vector<8x8xf32> to vector<8x1xf32>
    %463 = vector.broadcast %462 : vector<8x1xf32> to vector<8x64xf32>
    %464 = arith.mulf %461, %463 : vector<8x64xf32>
    %c5_i32_190 = arith.constant 5 : i32
    %465 = tpu.dynamic_rotate %460 by %c5_i32_190 dim 0 : vector<8x64xf32>, i32 -> vector<8x64xf32>
    %466 = vector.extract_strided_slice %2 {offsets = [0, 7], sizes = [8, 1], strides = [1, 1]} : vector<8x8xf32> to vector<8x1xf32>
    %467 = vector.broadcast %466 : vector<8x1xf32> to vector<8x64xf32>
    %468 = arith.mulf %465, %467 : vector<8x64xf32>
    %469 = tpu.concatenate %464, %460, %468 in 1 : vector<8x64xf32>, vector<8x64xf32>, vector<8x64xf32> -> vector<8x192xf32>
    %470 = arith.truncf %469 : vector<8x192xf32> to vector<8x192xbf16>
    %cst_191 = arith.constant dense<0.000000e+00> : vector<8x64xf32>
    %471 = tpu.matmul %470, %457, %cst_191 {dimension_numbers = #tpu.dot_dimension_numbers<[1], [0], [0], [1], [0, 0, 1, 1], [], []>} : vector<8x192xbf16>, vector<192x64xbf16>, vector<8x64xf32> -> vector<8x64xf32>
    %472 = vector.broadcast %458 : vector<1x64xf32> to vector<8x64xf32>
    %473 = arith.addf %471, %472 : vector<8x64xf32>
    %cst_192 = arith.constant 0.000000e+00 : f32
    %474 = vector.broadcast %cst_192 : f32 to vector<8x64xf32>
    %475 = arith.maximumf %473, %474 : vector<8x64xf32>
    %476 = arith.truncf %475 : vector<8x64xf32> to vector<8x64xbf16>
    %c0_193 = arith.constant 0 : index
    %c0_194 = arith.constant 0 : index
    %c0_195 = arith.constant 0 : index
    %477 = vector.load %arg32[%c0_193, %c0_194, %c0_195] : memref<4x64x64xbf16, #tpu.memory_space<vmem>>, vector<1x64x64xbf16>
    %478 = vector.shape_cast %477 : vector<1x64x64xbf16> to vector<64x64xbf16>
    %cst_196 = arith.constant dense<0.000000e+00> : vector<8x64xf32>
    %479 = tpu.matmul %476, %478, %cst_196 {dimension_numbers = #tpu.dot_dimension_numbers<[1], [0], [0], [1], [0, 0, 1, 1], [], []>} : vector<8x64xbf16>, vector<64x64xbf16>, vector<8x64xf32> -> vector<8x64xf32>
    %480 = vector.extract_strided_slice %437 {offsets = [0, 0], sizes = [1, 64], strides = [1, 1]} : vector<4x64xf32> to vector<1x64xf32>
    %481 = vector.broadcast %480 : vector<1x64xf32> to vector<8x64xf32>
    %482 = arith.addf %479, %481 : vector<8x64xf32>
    %483 = arith.addf %455, %482 : vector<8x64xf32>
    %c1_197 = arith.constant 1 : index
    %c0_198 = arith.constant 0 : index
    %c0_199 = arith.constant 0 : index
    %484 = vector.load %arg30[%c1_197, %c0_198, %c0_199] : memref<4x192x64xbf16, #tpu.memory_space<vmem>>, vector<1x192x64xbf16>
    %485 = vector.shape_cast %484 : vector<1x192x64xbf16> to vector<192x64xbf16>
    %486 = vector.extract_strided_slice %436 {offsets = [1, 0], sizes = [1, 64], strides = [1, 1]} : vector<4x64xf32> to vector<1x64xf32>
    %cst_200 = arith.constant 0.000000e+00 : f32
    %487 = vector.broadcast %cst_200 : f32 to vector<8x64xf32>
    %488 = arith.maximumf %483, %487 : vector<8x64xf32>
    %c1_i32_201 = arith.constant 1 : i32
    %489 = tpu.dynamic_rotate %488 by %c1_i32_201 dim 0 : vector<8x64xf32>, i32 -> vector<8x64xf32>
    %490 = vector.extract_strided_slice %2 {offsets = [0, 3], sizes = [8, 1], strides = [1, 1]} : vector<8x8xf32> to vector<8x1xf32>
    %491 = vector.broadcast %490 : vector<8x1xf32> to vector<8x64xf32>
    %492 = arith.mulf %489, %491 : vector<8x64xf32>
    %c7_i32_202 = arith.constant 7 : i32
    %493 = tpu.dynamic_rotate %488 by %c7_i32_202 dim 0 : vector<8x64xf32>, i32 -> vector<8x64xf32>
    %494 = vector.extract_strided_slice %2 {offsets = [0, 5], sizes = [8, 1], strides = [1, 1]} : vector<8x8xf32> to vector<8x1xf32>
    %495 = vector.broadcast %494 : vector<8x1xf32> to vector<8x64xf32>
    %496 = arith.mulf %493, %495 : vector<8x64xf32>
    %497 = tpu.concatenate %492, %488, %496 in 1 : vector<8x64xf32>, vector<8x64xf32>, vector<8x64xf32> -> vector<8x192xf32>
    %498 = arith.truncf %497 : vector<8x192xf32> to vector<8x192xbf16>
    %cst_203 = arith.constant dense<0.000000e+00> : vector<8x64xf32>
    %499 = tpu.matmul %498, %485, %cst_203 {dimension_numbers = #tpu.dot_dimension_numbers<[1], [0], [0], [1], [0, 0, 1, 1], [], []>} : vector<8x192xbf16>, vector<192x64xbf16>, vector<8x64xf32> -> vector<8x64xf32>
    %500 = vector.broadcast %486 : vector<1x64xf32> to vector<8x64xf32>
    %501 = arith.addf %499, %500 : vector<8x64xf32>
    %cst_204 = arith.constant 0.000000e+00 : f32
    %502 = vector.broadcast %cst_204 : f32 to vector<8x64xf32>
    %503 = arith.maximumf %501, %502 : vector<8x64xf32>
    %504 = arith.truncf %503 : vector<8x64xf32> to vector<8x64xbf16>
    %c1_205 = arith.constant 1 : index
    %c0_206 = arith.constant 0 : index
    %c0_207 = arith.constant 0 : index
    %505 = vector.load %arg32[%c1_205, %c0_206, %c0_207] : memref<4x64x64xbf16, #tpu.memory_space<vmem>>, vector<1x64x64xbf16>
    %506 = vector.shape_cast %505 : vector<1x64x64xbf16> to vector<64x64xbf16>
    %cst_208 = arith.constant dense<0.000000e+00> : vector<8x64xf32>
    %507 = tpu.matmul %504, %506, %cst_208 {dimension_numbers = #tpu.dot_dimension_numbers<[1], [0], [0], [1], [0, 0, 1, 1], [], []>} : vector<8x64xbf16>, vector<64x64xbf16>, vector<8x64xf32> -> vector<8x64xf32>
    %508 = vector.extract_strided_slice %437 {offsets = [1, 0], sizes = [1, 64], strides = [1, 1]} : vector<4x64xf32> to vector<1x64xf32>
    %509 = vector.broadcast %508 : vector<1x64xf32> to vector<8x64xf32>
    %510 = arith.addf %507, %509 : vector<8x64xf32>
    %511 = arith.addf %483, %510 : vector<8x64xf32>
    %c0_209 = arith.constant 0 : index
    %c0_210 = arith.constant 0 : index
    %512 = vector.load %arg13[%c0_209, %c0_210] : memref<16x8xbf16, #tpu.memory_space<vmem>>, vector<16x8xbf16>
    %513 = arith.truncf %511 : vector<8x64xf32> to vector<8x64xbf16>
    %cst_211 = arith.constant dense<0.000000e+00> : vector<16x64xf32>
    %514 = tpu.matmul %512, %513, %cst_211 {dimension_numbers = #tpu.dot_dimension_numbers<[1], [0], [0], [1], [0, 0, 1, 1], [], []>} : vector<16x8xbf16>, vector<8x64xbf16>, vector<16x64xf32> -> vector<16x64xf32>
    %c0_212 = arith.constant 0 : index
    %c0_213 = arith.constant 0 : index
    %c0_214 = arith.constant 0 : index
    %515 = vector.load %arg34[%c0_212, %c0_213, %c0_214] : memref<2x192x64xbf16, #tpu.memory_space<vmem>>, vector<1x192x64xbf16>
    %516 = vector.shape_cast %515 : vector<1x192x64xbf16> to vector<192x64xbf16>
    %517 = vector.extract_strided_slice %438 {offsets = [0, 0], sizes = [1, 64], strides = [1, 1]} : vector<2x64xf32> to vector<1x64xf32>
    %c1_i32_215 = arith.constant 1 : i32
    %518 = tpu.dynamic_rotate %514 by %c1_i32_215 dim 0 : vector<16x64xf32>, i32 -> vector<16x64xf32>
    %519 = vector.extract_strided_slice %1 {offsets = [0, 3], sizes = [16, 1], strides = [1, 1]} : vector<16x8xf32> to vector<16x1xf32>
    %520 = vector.broadcast %519 : vector<16x1xf32> to vector<16x64xf32>
    %521 = arith.mulf %518, %520 : vector<16x64xf32>
    %c15_i32_216 = arith.constant 15 : i32
    %522 = tpu.dynamic_rotate %514 by %c15_i32_216 dim 0 : vector<16x64xf32>, i32 -> vector<16x64xf32>
    %523 = vector.extract_strided_slice %1 {offsets = [0, 5], sizes = [16, 1], strides = [1, 1]} : vector<16x8xf32> to vector<16x1xf32>
    %524 = vector.broadcast %523 : vector<16x1xf32> to vector<16x64xf32>
    %525 = arith.mulf %522, %524 : vector<16x64xf32>
    %526 = tpu.concatenate %521, %514, %525 in 1 : vector<16x64xf32>, vector<16x64xf32>, vector<16x64xf32> -> vector<16x192xf32>
    %527 = arith.truncf %526 : vector<16x192xf32> to vector<16x192xbf16>
    %cst_217 = arith.constant dense<0.000000e+00> : vector<16x64xf32>
    %528 = tpu.matmul %527, %516, %cst_217 {dimension_numbers = #tpu.dot_dimension_numbers<[1], [0], [0], [1], [0, 0, 1, 1], [], []>} : vector<16x192xbf16>, vector<192x64xbf16>, vector<16x64xf32> -> vector<16x64xf32>
    %529 = vector.broadcast %517 : vector<1x64xf32> to vector<16x64xf32>
    %530 = arith.addf %528, %529 : vector<16x64xf32>
    %c2_218 = arith.constant 2 : index
    %c0_219 = arith.constant 0 : index
    %c0_220 = arith.constant 0 : index
    %531 = vector.load %arg30[%c2_218, %c0_219, %c0_220] : memref<4x192x64xbf16, #tpu.memory_space<vmem>>, vector<1x192x64xbf16>
    %532 = vector.shape_cast %531 : vector<1x192x64xbf16> to vector<192x64xbf16>
    %533 = vector.extract_strided_slice %436 {offsets = [2, 0], sizes = [1, 64], strides = [1, 1]} : vector<4x64xf32> to vector<1x64xf32>
    %cst_221 = arith.constant 0.000000e+00 : f32
    %534 = vector.broadcast %cst_221 : f32 to vector<16x64xf32>
    %535 = arith.maximumf %530, %534 : vector<16x64xf32>
    %c3_i32_222 = arith.constant 3 : i32
    %536 = tpu.dynamic_rotate %535 by %c3_i32_222 dim 0 : vector<16x64xf32>, i32 -> vector<16x64xf32>
    %537 = vector.extract_strided_slice %1 {offsets = [0, 1], sizes = [16, 1], strides = [1, 1]} : vector<16x8xf32> to vector<16x1xf32>
    %538 = vector.broadcast %537 : vector<16x1xf32> to vector<16x64xf32>
    %539 = arith.mulf %536, %538 : vector<16x64xf32>
    %c13_i32_223 = arith.constant 13 : i32
    %540 = tpu.dynamic_rotate %535 by %c13_i32_223 dim 0 : vector<16x64xf32>, i32 -> vector<16x64xf32>
    %541 = vector.extract_strided_slice %1 {offsets = [0, 7], sizes = [16, 1], strides = [1, 1]} : vector<16x8xf32> to vector<16x1xf32>
    %542 = vector.broadcast %541 : vector<16x1xf32> to vector<16x64xf32>
    %543 = arith.mulf %540, %542 : vector<16x64xf32>
    %544 = tpu.concatenate %539, %535, %543 in 1 : vector<16x64xf32>, vector<16x64xf32>, vector<16x64xf32> -> vector<16x192xf32>
    %545 = arith.truncf %544 : vector<16x192xf32> to vector<16x192xbf16>
    %cst_224 = arith.constant dense<0.000000e+00> : vector<16x64xf32>
    %546 = tpu.matmul %545, %532, %cst_224 {dimension_numbers = #tpu.dot_dimension_numbers<[1], [0], [0], [1], [0, 0, 1, 1], [], []>} : vector<16x192xbf16>, vector<192x64xbf16>, vector<16x64xf32> -> vector<16x64xf32>
    %547 = vector.broadcast %533 : vector<1x64xf32> to vector<16x64xf32>
    %548 = arith.addf %546, %547 : vector<16x64xf32>
    %cst_225 = arith.constant 0.000000e+00 : f32
    %549 = vector.broadcast %cst_225 : f32 to vector<16x64xf32>
    %550 = arith.maximumf %548, %549 : vector<16x64xf32>
    %551 = arith.truncf %550 : vector<16x64xf32> to vector<16x64xbf16>
    %c2_226 = arith.constant 2 : index
    %c0_227 = arith.constant 0 : index
    %c0_228 = arith.constant 0 : index
    %552 = vector.load %arg32[%c2_226, %c0_227, %c0_228] : memref<4x64x64xbf16, #tpu.memory_space<vmem>>, vector<1x64x64xbf16>
    %553 = vector.shape_cast %552 : vector<1x64x64xbf16> to vector<64x64xbf16>
    %cst_229 = arith.constant dense<0.000000e+00> : vector<16x64xf32>
    %554 = tpu.matmul %551, %553, %cst_229 {dimension_numbers = #tpu.dot_dimension_numbers<[1], [0], [0], [1], [0, 0, 1, 1], [], []>} : vector<16x64xbf16>, vector<64x64xbf16>, vector<16x64xf32> -> vector<16x64xf32>
    %555 = vector.extract_strided_slice %437 {offsets = [2, 0], sizes = [1, 64], strides = [1, 1]} : vector<4x64xf32> to vector<1x64xf32>
    %556 = vector.broadcast %555 : vector<1x64xf32> to vector<16x64xf32>
    %557 = arith.addf %554, %556 : vector<16x64xf32>
    %558 = arith.addf %530, %557 : vector<16x64xf32>
    %c3_230 = arith.constant 3 : index
    %c0_231 = arith.constant 0 : index
    %c0_232 = arith.constant 0 : index
    %559 = vector.load %arg30[%c3_230, %c0_231, %c0_232] : memref<4x192x64xbf16, #tpu.memory_space<vmem>>, vector<1x192x64xbf16>
    %560 = vector.shape_cast %559 : vector<1x192x64xbf16> to vector<192x64xbf16>
    %561 = vector.extract_strided_slice %436 {offsets = [3, 0], sizes = [1, 64], strides = [1, 1]} : vector<4x64xf32> to vector<1x64xf32>
    %cst_233 = arith.constant 0.000000e+00 : f32
    %562 = vector.broadcast %cst_233 : f32 to vector<16x64xf32>
    %563 = arith.maximumf %558, %562 : vector<16x64xf32>
    %c1_i32_234 = arith.constant 1 : i32
    %564 = tpu.dynamic_rotate %563 by %c1_i32_234 dim 0 : vector<16x64xf32>, i32 -> vector<16x64xf32>
    %565 = vector.extract_strided_slice %1 {offsets = [0, 3], sizes = [16, 1], strides = [1, 1]} : vector<16x8xf32> to vector<16x1xf32>
    %566 = vector.broadcast %565 : vector<16x1xf32> to vector<16x64xf32>
    %567 = arith.mulf %564, %566 : vector<16x64xf32>
    %c15_i32_235 = arith.constant 15 : i32
    %568 = tpu.dynamic_rotate %563 by %c15_i32_235 dim 0 : vector<16x64xf32>, i32 -> vector<16x64xf32>
    %569 = vector.extract_strided_slice %1 {offsets = [0, 5], sizes = [16, 1], strides = [1, 1]} : vector<16x8xf32> to vector<16x1xf32>
    %570 = vector.broadcast %569 : vector<16x1xf32> to vector<16x64xf32>
    %571 = arith.mulf %568, %570 : vector<16x64xf32>
    %572 = tpu.concatenate %567, %563, %571 in 1 : vector<16x64xf32>, vector<16x64xf32>, vector<16x64xf32> -> vector<16x192xf32>
    %573 = arith.truncf %572 : vector<16x192xf32> to vector<16x192xbf16>
    %cst_236 = arith.constant dense<0.000000e+00> : vector<16x64xf32>
    %574 = tpu.matmul %573, %560, %cst_236 {dimension_numbers = #tpu.dot_dimension_numbers<[1], [0], [0], [1], [0, 0, 1, 1], [], []>} : vector<16x192xbf16>, vector<192x64xbf16>, vector<16x64xf32> -> vector<16x64xf32>
    %575 = vector.broadcast %561 : vector<1x64xf32> to vector<16x64xf32>
    %576 = arith.addf %574, %575 : vector<16x64xf32>
    %cst_237 = arith.constant 0.000000e+00 : f32
    %577 = vector.broadcast %cst_237 : f32 to vector<16x64xf32>
    %578 = arith.maximumf %576, %577 : vector<16x64xf32>
    %579 = arith.truncf %578 : vector<16x64xf32> to vector<16x64xbf16>
    %c3_238 = arith.constant 3 : index
    %c0_239 = arith.constant 0 : index
    %c0_240 = arith.constant 0 : index
    %580 = vector.load %arg32[%c3_238, %c0_239, %c0_240] : memref<4x64x64xbf16, #tpu.memory_space<vmem>>, vector<1x64x64xbf16>
    %581 = vector.shape_cast %580 : vector<1x64x64xbf16> to vector<64x64xbf16>
    %cst_241 = arith.constant dense<0.000000e+00> : vector<16x64xf32>
    %582 = tpu.matmul %579, %581, %cst_241 {dimension_numbers = #tpu.dot_dimension_numbers<[1], [0], [0], [1], [0, 0, 1, 1], [], []>} : vector<16x64xbf16>, vector<64x64xbf16>, vector<16x64xf32> -> vector<16x64xf32>
    %583 = vector.extract_strided_slice %437 {offsets = [3, 0], sizes = [1, 64], strides = [1, 1]} : vector<4x64xf32> to vector<1x64xf32>
    %584 = vector.broadcast %583 : vector<1x64xf32> to vector<16x64xf32>
    %585 = arith.addf %582, %584 : vector<16x64xf32>
    %586 = arith.addf %558, %585 : vector<16x64xf32>
    %c0_242 = arith.constant 0 : index
    %c0_243 = arith.constant 0 : index
    %587 = vector.load %arg14[%c0_242, %c0_243] : memref<32x16xbf16, #tpu.memory_space<vmem>>, vector<32x16xbf16>
    %588 = arith.truncf %586 : vector<16x64xf32> to vector<16x64xbf16>
    %cst_244 = arith.constant dense<0.000000e+00> : vector<32x64xf32>
    %589 = tpu.matmul %587, %588, %cst_244 {dimension_numbers = #tpu.dot_dimension_numbers<[1], [0], [0], [1], [0, 0, 1, 1], [], []>} : vector<32x16xbf16>, vector<16x64xbf16>, vector<32x64xf32> -> vector<32x64xf32>
    %c1_245 = arith.constant 1 : index
    %c0_246 = arith.constant 0 : index
    %c0_247 = arith.constant 0 : index
    %590 = vector.load %arg34[%c1_245, %c0_246, %c0_247] : memref<2x192x64xbf16, #tpu.memory_space<vmem>>, vector<1x192x64xbf16>
    %591 = vector.shape_cast %590 : vector<1x192x64xbf16> to vector<192x64xbf16>
    %592 = vector.extract_strided_slice %438 {offsets = [1, 0], sizes = [1, 64], strides = [1, 1]} : vector<2x64xf32> to vector<1x64xf32>
    %c1_i32_248 = arith.constant 1 : i32
    %593 = tpu.dynamic_rotate %589 by %c1_i32_248 dim 0 : vector<32x64xf32>, i32 -> vector<32x64xf32>
    %594 = vector.extract_strided_slice %0 {offsets = [0, 3], sizes = [32, 1], strides = [1, 1]} : vector<32x8xf32> to vector<32x1xf32>
    %595 = vector.broadcast %594 : vector<32x1xf32> to vector<32x64xf32>
    %596 = arith.mulf %593, %595 : vector<32x64xf32>
    %c31_i32_249 = arith.constant 31 : i32
    %597 = tpu.dynamic_rotate %589 by %c31_i32_249 dim 0 : vector<32x64xf32>, i32 -> vector<32x64xf32>
    %598 = vector.extract_strided_slice %0 {offsets = [0, 5], sizes = [32, 1], strides = [1, 1]} : vector<32x8xf32> to vector<32x1xf32>
    %599 = vector.broadcast %598 : vector<32x1xf32> to vector<32x64xf32>
    %600 = arith.mulf %597, %599 : vector<32x64xf32>
    %601 = tpu.concatenate %596, %589, %600 in 1 : vector<32x64xf32>, vector<32x64xf32>, vector<32x64xf32> -> vector<32x192xf32>
    %602 = arith.truncf %601 : vector<32x192xf32> to vector<32x192xbf16>
    %cst_250 = arith.constant dense<0.000000e+00> : vector<32x64xf32>
    %603 = tpu.matmul %602, %591, %cst_250 {dimension_numbers = #tpu.dot_dimension_numbers<[1], [0], [0], [1], [0, 0, 1, 1], [], []>} : vector<32x192xbf16>, vector<192x64xbf16>, vector<32x64xf32> -> vector<32x64xf32>
    %604 = vector.broadcast %592 : vector<1x64xf32> to vector<32x64xf32>
    %605 = arith.addf %603, %604 : vector<32x64xf32>
    %c0_251 = arith.constant 0 : index
    %c0_252 = arith.constant 0 : index
    %606 = vector.load %arg36[%c0_251, %c0_252] : memref<192x64xbf16, #tpu.memory_space<vmem>>, vector<192x64xbf16>
    %c0_253 = arith.constant 0 : index
    %c0_254 = arith.constant 0 : index
    %607 = vector.load %arg37[%c0_253, %c0_254] : memref<1x64xf32, #tpu.memory_space<vmem>>, vector<1x64xf32>
    %c1_i32_255 = arith.constant 1 : i32
    %608 = tpu.dynamic_rotate %605 by %c1_i32_255 dim 0 : vector<32x64xf32>, i32 -> vector<32x64xf32>
    %609 = vector.extract_strided_slice %0 {offsets = [0, 3], sizes = [32, 1], strides = [1, 1]} : vector<32x8xf32> to vector<32x1xf32>
    %610 = vector.broadcast %609 : vector<32x1xf32> to vector<32x64xf32>
    %611 = arith.mulf %608, %610 : vector<32x64xf32>
    %c31_i32_256 = arith.constant 31 : i32
    %612 = tpu.dynamic_rotate %605 by %c31_i32_256 dim 0 : vector<32x64xf32>, i32 -> vector<32x64xf32>
    %613 = vector.extract_strided_slice %0 {offsets = [0, 5], sizes = [32, 1], strides = [1, 1]} : vector<32x8xf32> to vector<32x1xf32>
    %614 = vector.broadcast %613 : vector<32x1xf32> to vector<32x64xf32>
    %615 = arith.mulf %612, %614 : vector<32x64xf32>
    %616 = tpu.concatenate %611, %605, %615 in 1 : vector<32x64xf32>, vector<32x64xf32>, vector<32x64xf32> -> vector<32x192xf32>
    %617 = arith.truncf %616 : vector<32x192xf32> to vector<32x192xbf16>
    %cst_257 = arith.constant dense<0.000000e+00> : vector<32x64xf32>
    %618 = tpu.matmul %617, %606, %cst_257 {dimension_numbers = #tpu.dot_dimension_numbers<[1], [0], [0], [1], [0, 0, 1, 1], [], []>} : vector<32x192xbf16>, vector<192x64xbf16>, vector<32x64xf32> -> vector<32x64xf32>
    %619 = vector.broadcast %607 : vector<1x64xf32> to vector<32x64xf32>
    %620 = arith.addf %618, %619 : vector<32x64xf32>
    %cst_258 = arith.constant 0.000000e+00 : f32
    %621 = vector.broadcast %cst_258 : f32 to vector<32x64xf32>
    %622 = arith.maximumf %620, %621 : vector<32x64xf32>
    %c0_259 = arith.constant 0 : index
    %c0_260 = arith.constant 0 : index
    %623 = vector.load %arg38[%c0_259, %c0_260] : memref<192x263xbf16, #tpu.memory_space<vmem>>, vector<192x263xbf16>
    %c0_261 = arith.constant 0 : index
    %c0_262 = arith.constant 0 : index
    %624 = vector.load %arg39[%c0_261, %c0_262] : memref<1x263xf32, #tpu.memory_space<vmem>>, vector<1x263xf32>
    %c1_i32_263 = arith.constant 1 : i32
    %625 = tpu.dynamic_rotate %622 by %c1_i32_263 dim 0 : vector<32x64xf32>, i32 -> vector<32x64xf32>
    %626 = vector.extract_strided_slice %0 {offsets = [0, 3], sizes = [32, 1], strides = [1, 1]} : vector<32x8xf32> to vector<32x1xf32>
    %627 = vector.broadcast %626 : vector<32x1xf32> to vector<32x64xf32>
    %628 = arith.mulf %625, %627 : vector<32x64xf32>
    %c31_i32_264 = arith.constant 31 : i32
    %629 = tpu.dynamic_rotate %622 by %c31_i32_264 dim 0 : vector<32x64xf32>, i32 -> vector<32x64xf32>
    %630 = vector.extract_strided_slice %0 {offsets = [0, 5], sizes = [32, 1], strides = [1, 1]} : vector<32x8xf32> to vector<32x1xf32>
    %631 = vector.broadcast %630 : vector<32x1xf32> to vector<32x64xf32>
    %632 = arith.mulf %629, %631 : vector<32x64xf32>
    %633 = tpu.concatenate %628, %622, %632 in 1 : vector<32x64xf32>, vector<32x64xf32>, vector<32x64xf32> -> vector<32x192xf32>
    %634 = arith.truncf %633 : vector<32x192xf32> to vector<32x192xbf16>
    %cst_265 = arith.constant dense<0.000000e+00> : vector<32x263xf32>
    %635 = tpu.matmul %634, %623, %cst_265 {dimension_numbers = #tpu.dot_dimension_numbers<[1], [0], [0], [1], [0, 0, 1, 1], [], []>} : vector<32x192xbf16>, vector<192x263xbf16>, vector<32x263xf32> -> vector<32x263xf32>
    %636 = vector.broadcast %624 : vector<1x263xf32> to vector<32x263xf32>
    %637 = arith.addf %635, %636 : vector<32x263xf32>
    %c0_266 = arith.constant 0 : index
    %c0_267 = arith.constant 0 : index
    %638 = vector.load %arg5[%c0_266, %c0_267] : memref<1x263xf32, #tpu.memory_space<vmem>>, vector<1x263xf32>
    %639 = vector.broadcast %638 : vector<1x263xf32> to vector<32x263xf32>
    %640 = arith.mulf %639, %637 : vector<32x263xf32>
    %c0_268 = arith.constant 0 : index
    %c0_269 = arith.constant 0 : index
    %641 = vector.load %arg6[%c0_268, %c0_269] : memref<1x263xf32, #tpu.memory_space<vmem>>, vector<1x263xf32>
    %642 = vector.broadcast %641 : vector<1x263xf32> to vector<32x263xf32>
    %643 = arith.addf %640, %642 : vector<32x263xf32>
    %c0_270 = arith.constant 0 : index
    %c0_271 = arith.constant 0 : index
    %644 = vector.load %arg7[%c0_270, %c0_271] : memref<1x263xf32, #tpu.memory_space<vmem>>, vector<1x263xf32>
    %645 = vector.extract_strided_slice %637 {offsets = [0, 3], sizes = [32, 1], strides = [1, 1]} : vector<32x263xf32> to vector<32x1xf32>
    %646 = vector.broadcast %644 : vector<1x263xf32> to vector<32x263xf32>
    %647 = vector.broadcast %645 : vector<32x1xf32> to vector<32x263xf32>
    %648 = arith.mulf %646, %647 : vector<32x263xf32>
    %649 = arith.addf %643, %648 : vector<32x263xf32>
    %c0_272 = arith.constant 0 : index
    %c0_273 = arith.constant 0 : index
    %650 = vector.load %arg40[%c0_272, %c0_273] : memref<32x263xf32, #tpu.memory_space<vmem>>, vector<32x263xf32>
    tpu.vector_store %arg40[%c0_272, %c0_273], %649 {strides = array<i32>} : memref<32x263xf32, #tpu.memory_space<vmem>>, vector<32x263xf32>,
    %651 = tpu.iota {dimensions = array<i32: 1>} : vector<1x128xi32>
    %c0_i32 = arith.constant 0 : i32
    %652 = vector.broadcast %c0_i32 : i32 to vector<1x128xi32>
    %653 = arith.cmpi eq, %651, %652 : vector<1x128xi32>
    %cst_274 = arith.constant 0.000000e+00 : f32
    %654 = vector.shape_cast %402 : vector<1x1xf32> to vector<1x1xf32>
    %655 = vector.broadcast %654 : vector<1x1xf32> to vector<1x128xf32>
    %656 = vector.broadcast %cst_274 : f32 to vector<1x128xf32>
    %657 = arith.select %653, %655, %656 : vector<1x128xi1>, vector<1x128xf32>
    %c1_i32_275 = arith.constant 1 : i32
    %658 = vector.broadcast %c1_i32_275 : i32 to vector<1x128xi32>
    %659 = arith.cmpi eq, %651, %658 : vector<1x128xi32>
    %cst_276 = arith.constant 0.000000e+00 : f32
    %660 = vector.shape_cast %435 : vector<1x1xf32> to vector<1x1xf32>
    %661 = vector.broadcast %660 : vector<1x1xf32> to vector<1x128xf32>
    %662 = vector.broadcast %cst_276 : f32 to vector<1x128xf32>
    %663 = arith.select %659, %661, %662 : vector<1x128xi1>, vector<1x128xf32>
    %664 = arith.addf %657, %663 : vector<1x128xf32>
    %c0_277 = arith.constant 0 : index
    %c0_278 = arith.constant 0 : index
    %665 = vector.load %arg41[%c0_277, %c0_278] : memref<1x128xf32, #tpu.memory_space<vmem>>, vector<1x128xf32>
    tpu.vector_store %arg41[%c0_277, %c0_278], %664 {strides = array<i32>} : memref<1x128xf32, #tpu.memory_space<vmem>>, vector<1x128xf32>,
    return
  }
  func.func @transform_0(%arg0: i32) -> (i32, i32) {
    %c0_i32 = arith.constant 0 : i32
    %c0_i32_0 = arith.constant 0 : i32
    %c0_i32_1 = arith.constant 0 : i32
    return %c0_i32, %c0_i32_0 : i32, i32
  }
  func.func @transform_1(%arg0: i32) -> (i32, i32) {
    %c0_i32 = arith.constant 0 : i32
    %c0_i32_0 = arith.constant 0 : i32
    %c0_i32_1 = arith.constant 0 : i32
    return %c0_i32, %c0_i32_0 : i32, i32
  }
  func.func @transform_2(%arg0: i32) -> (i32, i32) {
    %c0_i32 = arith.constant 0 : i32
    %c0_i32_0 = arith.constant 0 : i32
    %c0_i32_1 = arith.constant 0 : i32
    return %c0_i32, %c0_i32_0 : i32, i32
  }
  func.func @transform_3(%arg0: i32) -> (i32, i32) {
    %c0_i32 = arith.constant 0 : i32
    %c0_i32_0 = arith.constant 0 : i32
    %c0_i32_1 = arith.constant 0 : i32
    return %c0_i32, %c0_i32_0 : i32, i32
  }
  func.func @transform_4(%arg0: i32) -> (i32, i32) {
    %c0_i32 = arith.constant 0 : i32
    %c0_i32_0 = arith.constant 0 : i32
    %c0_i32_1 = arith.constant 0 : i32
    return %c0_i32, %c0_i32_0 : i32, i32
  }
  func.func @transform_5(%arg0: i32) -> (i32, i32) {
    %c0_i32 = arith.constant 0 : i32
    %c0_i32_0 = arith.constant 0 : i32
    %c0_i32_1 = arith.constant 0 : i32
    return %c0_i32, %c0_i32_0 : i32, i32
  }
  func.func @transform_6(%arg0: i32) -> (i32, i32) {
    %c0_i32 = arith.constant 0 : i32
    %c0_i32_0 = arith.constant 0 : i32
    %c0_i32_1 = arith.constant 0 : i32
    return %c0_i32, %c0_i32_0 : i32, i32
  }
  func.func @transform_7(%arg0: i32) -> (i32, i32) {
    %c0_i32 = arith.constant 0 : i32
    %c0_i32_0 = arith.constant 0 : i32
    %c0_i32_1 = arith.constant 0 : i32
    return %c0_i32, %c0_i32_0 : i32, i32
  }
  func.func @transform_8(%arg0: i32) -> (i32, i32) {
    %c0_i32 = arith.constant 0 : i32
    %c0_i32_0 = arith.constant 0 : i32
    %c0_i32_1 = arith.constant 0 : i32
    return %c0_i32, %c0_i32_0 : i32, i32
  }
  func.func @transform_9(%arg0: i32) -> (i32, i32) {
    %c0_i32 = arith.constant 0 : i32
    %c0_i32_0 = arith.constant 0 : i32
    %c0_i32_1 = arith.constant 0 : i32
    return %c0_i32, %c0_i32_0 : i32, i32
  }
  func.func @transform_10(%arg0: i32) -> (i32, i32) {
    %c0_i32 = arith.constant 0 : i32
    %c0_i32_0 = arith.constant 0 : i32
    %c0_i32_1 = arith.constant 0 : i32
    return %c0_i32, %c0_i32_0 : i32, i32
  }
  func.func @transform_11(%arg0: i32) -> (i32, i32) {
    %c0_i32 = arith.constant 0 : i32
    %c0_i32_0 = arith.constant 0 : i32
    %c0_i32_1 = arith.constant 0 : i32
    return %c0_i32, %c0_i32_0 : i32, i32
  }
  func.func @transform_12(%arg0: i32) -> (i32, i32) {
    %c0_i32 = arith.constant 0 : i32
    %c0_i32_0 = arith.constant 0 : i32
    %c0_i32_1 = arith.constant 0 : i32
    return %c0_i32, %c0_i32_0 : i32, i32
  }
  func.func @transform_13(%arg0: i32) -> (i32, i32) {
    %c0_i32 = arith.constant 0 : i32
    %c0_i32_0 = arith.constant 0 : i32
    %c0_i32_1 = arith.constant 0 : i32
    return %c0_i32, %c0_i32_0 : i32, i32
  }
  func.func @transform_14(%arg0: i32) -> (i32, i32, i32) {
    %c0_i32 = arith.constant 0 : i32
    %c0_i32_0 = arith.constant 0 : i32
    %c0_i32_1 = arith.constant 0 : i32
    %c0_i32_2 = arith.constant 0 : i32
    return %c0_i32, %c0_i32_0, %c0_i32_1 : i32, i32, i32
  }
  func.func @transform_15(%arg0: i32) -> (i32, i32) {
    %c0_i32 = arith.constant 0 : i32
    %c0_i32_0 = arith.constant 0 : i32
    %c0_i32_1 = arith.constant 0 : i32
    return %c0_i32, %c0_i32_0 : i32, i32
  }
  func.func @transform_16(%arg0: i32) -> (i32, i32, i32) {
    %c0_i32 = arith.constant 0 : i32
    %c0_i32_0 = arith.constant 0 : i32
    %c0_i32_1 = arith.constant 0 : i32
    %c0_i32_2 = arith.constant 0 : i32
    return %c0_i32, %c0_i32_0, %c0_i32_1 : i32, i32, i32
  }
  func.func @transform_17(%arg0: i32) -> (i32, i32) {
    %c0_i32 = arith.constant 0 : i32
    %c0_i32_0 = arith.constant 0 : i32
    %c0_i32_1 = arith.constant 0 : i32
    return %c0_i32, %c0_i32_0 : i32, i32
  }
  func.func @transform_18(%arg0: i32) -> (i32, i32, i32) {
    %c0_i32 = arith.constant 0 : i32
    %c0_i32_0 = arith.constant 0 : i32
    %c0_i32_1 = arith.constant 0 : i32
    %c0_i32_2 = arith.constant 0 : i32
    return %c0_i32, %c0_i32_0, %c0_i32_1 : i32, i32, i32
  }
  func.func @transform_19(%arg0: i32) -> (i32, i32) {
    %c0_i32 = arith.constant 0 : i32
    %c0_i32_0 = arith.constant 0 : i32
    %c0_i32_1 = arith.constant 0 : i32
    return %c0_i32, %c0_i32_0 : i32, i32
  }
  func.func @transform_20(%arg0: i32) -> (i32, i32, i32) {
    %c0_i32 = arith.constant 0 : i32
    %c0_i32_0 = arith.constant 0 : i32
    %c0_i32_1 = arith.constant 0 : i32
    %c0_i32_2 = arith.constant 0 : i32
    return %c0_i32, %c0_i32_0, %c0_i32_1 : i32, i32, i32
  }
  func.func @transform_21(%arg0: i32) -> (i32, i32) {
    %c0_i32 = arith.constant 0 : i32
    %c0_i32_0 = arith.constant 0 : i32
    %c0_i32_1 = arith.constant 0 : i32
    return %c0_i32, %c0_i32_0 : i32, i32
  }
  func.func @transform_22(%arg0: i32) -> (i32, i32) {
    %c0_i32 = arith.constant 0 : i32
    %c0_i32_0 = arith.constant 0 : i32
    %c0_i32_1 = arith.constant 0 : i32
    return %c0_i32, %c0_i32_0 : i32, i32
  }
  func.func @transform_23(%arg0: i32) -> (i32, i32) {
    %c0_i32 = arith.constant 0 : i32
    %c0_i32_0 = arith.constant 0 : i32
    %c0_i32_1 = arith.constant 0 : i32
    return %c0_i32, %c0_i32_0 : i32, i32
  }
  func.func @transform_24(%arg0: i32) -> (i32, i32, i32) {
    %c0_i32 = arith.constant 0 : i32
    %c0_i32_0 = arith.constant 0 : i32
    %c0_i32_1 = arith.constant 0 : i32
    %c0_i32_2 = arith.constant 0 : i32
    return %c0_i32, %c0_i32_0, %c0_i32_1 : i32, i32, i32
  }
  func.func @transform_25(%arg0: i32) -> (i32, i32, i32) {
    %c0_i32 = arith.constant 0 : i32
    %c0_i32_0 = arith.constant 0 : i32
    %c0_i32_1 = arith.constant 0 : i32
    %c0_i32_2 = arith.constant 0 : i32
    return %c0_i32, %c0_i32_0, %c0_i32_1 : i32, i32, i32
  }
  func.func @transform_26(%arg0: i32) -> (i32, i32, i32) {
    %c0_i32 = arith.constant 0 : i32
    %c0_i32_0 = arith.constant 0 : i32
    %c0_i32_1 = arith.constant 0 : i32
    %c0_i32_2 = arith.constant 0 : i32
    return %c0_i32, %c0_i32_0, %c0_i32_1 : i32, i32, i32
  }
  func.func @transform_27(%arg0: i32) -> (i32, i32) {
    %c0_i32 = arith.constant 0 : i32
    %c0_i32_0 = arith.constant 0 : i32
    %c0_i32_1 = arith.constant 0 : i32
    return %c0_i32, %c0_i32_0 : i32, i32
  }
  func.func @transform_28(%arg0: i32) -> (i32, i32) {
    %c0_i32 = arith.constant 0 : i32
    %c0_i32_0 = arith.constant 0 : i32
    %c0_i32_1 = arith.constant 0 : i32
    return %c0_i32, %c0_i32_0 : i32, i32
  }
  func.func @transform_29(%arg0: i32) -> (i32, i32, i32) {
    %c0_i32 = arith.constant 0 : i32
    %c0_i32_0 = arith.constant 0 : i32
    %c0_i32_1 = arith.constant 0 : i32
    %c0_i32_2 = arith.constant 0 : i32
    return %c0_i32, %c0_i32_0, %c0_i32_1 : i32, i32, i32
  }
  func.func @transform_30(%arg0: i32) -> (i32, i32) {
    %c0_i32 = arith.constant 0 : i32
    %c0_i32_0 = arith.constant 0 : i32
    %c0_i32_1 = arith.constant 0 : i32
    return %c0_i32, %c0_i32_0 : i32, i32
  }
  func.func @transform_31(%arg0: i32) -> (i32, i32, i32) {
    %c0_i32 = arith.constant 0 : i32
    %c0_i32_0 = arith.constant 0 : i32
    %c0_i32_1 = arith.constant 0 : i32
    %c0_i32_2 = arith.constant 0 : i32
    return %c0_i32, %c0_i32_0, %c0_i32_1 : i32, i32, i32
  }
  func.func @transform_32(%arg0: i32) -> (i32, i32) {
    %c0_i32 = arith.constant 0 : i32
    %c0_i32_0 = arith.constant 0 : i32
    %c0_i32_1 = arith.constant 0 : i32
    return %c0_i32, %c0_i32_0 : i32, i32
  }
  func.func @transform_33(%arg0: i32) -> (i32, i32, i32) {
    %c0_i32 = arith.constant 0 : i32
    %c0_i32_0 = arith.constant 0 : i32
    %c0_i32_1 = arith.constant 0 : i32
    %c0_i32_2 = arith.constant 0 : i32
    return %c0_i32, %c0_i32_0, %c0_i32_1 : i32, i32, i32
  }
  func.func @transform_34(%arg0: i32) -> (i32, i32) {
    %c0_i32 = arith.constant 0 : i32
    %c0_i32_0 = arith.constant 0 : i32
    %c0_i32_1 = arith.constant 0 : i32
    return %c0_i32, %c0_i32_0 : i32, i32
  }
  func.func @transform_35(%arg0: i32) -> (i32, i32) {
    %c0_i32 = arith.constant 0 : i32
    %c0_i32_0 = arith.constant 0 : i32
    %c0_i32_1 = arith.constant 0 : i32
    return %c0_i32, %c0_i32_0 : i32, i32
  }
  func.func @transform_36(%arg0: i32) -> (i32, i32) {
    %c0_i32 = arith.constant 0 : i32
    %c0_i32_0 = arith.constant 0 : i32
    %c0_i32_1 = arith.constant 0 : i32
    return %c0_i32, %c0_i32_0 : i32, i32
  }
  func.func @transform_37(%arg0: i32) -> (i32, i32) {
    %c0_i32 = arith.constant 0 : i32
    %c0_i32_0 = arith.constant 0 : i32
    %c0_i32_1 = arith.constant 0 : i32
    return %c0_i32, %c0_i32_0 : i32, i32
  }
  func.func @transform_38(%arg0: i32) -> (i32, i32) {
    %c0_i32 = arith.constant 0 : i32
    %c0_i32_0 = arith.constant 0 : i32
    %c0_i32_1 = arith.constant 0 : i32
    return %c0_i32, %c0_i32_0 : i32, i32
  }
  func.func @transform_39(%arg0: i32) -> (i32, i32) {
    %c0_i32 = arith.constant 0 : i32
    %c0_i32_0 = arith.constant 0 : i32
    %c0_i32_1 = arith.constant 0 : i32
    return %c0_i32, %c0_i32_0 : i32, i32
  }
  func.func @transform_40(%arg0: i32) -> (i32, i32) {
    %c0_i32 = arith.constant 0 : i32
    %c0_i32_0 = arith.constant 0 : i32
    %c0_i32_1 = arith.constant 0 : i32
    return %c0_i32, %c0_i32_0 : i32, i32
  }
}

</mosaic_0001>

<bundles_post_ra>
// kernel: rvqvae_group_forward.1
= control target key start
LH: loop header
LB: loop body
LE: loop exit
PB: predicated region body
PF: predicated region fallthrough
CT: control target
= control target key end

     0   :  { %s16513_s6 = smov 1   ;;  %s16514_s10 = smov 2   ;;  %s18832_s0 = inlined_call_operand.smem [shape: u32[41], index: -1, kind: input, shape index: {}] }
   0x1   :  { %s16610_s5 = sld [smem:[%s18832_s0]]   ;;  %s16515_s14 = smov 3  }
   0x2   :  { %s16615_s9 = sld [smem:[%s18832_s0 + %s16513_s6]]   ;;  %s16516_s18 = smov 4  }
   0x3   :  { %s16620_s13 = sld [smem:[%s18832_s0 + %s16514_s10]]   ;;  %s16517_s22 = smov 5  }
   0x4   :  { %s16625_s17 = sld [smem:[%s18832_s0 + %s16515_s14]]   ;;  %s16518_s26 = smov 6  }
   0x5   :  { %s16630_s21 = sld [smem:[%s18832_s0 + %s16516_s18]]   ;;  %s16519_s30 = smov 7  }
   0x6   :  { %s16635_s25 = sld [smem:[%s18832_s0 + %s16517_s22]]   ;;  %s16520_s4 = smov 8  }
   0x7   :  { %18862 = sst [smem:[#allocation64_spill]] %s16610_s5  ;;  %s16521_s10 = smov 9  }
   0x8   :  { %s16640_s29 = sld [smem:[%s18832_s0 + %s16518_s26]]   ;;  %s16522_s15 = smov 10  }
   0x9   :  { %18863 = sst [smem:[#allocation65_spill]] %s16620_s13  ;;  %s16523_s20 = smov 11  }
   0xa   :  { %s16645_s3 = sld [smem:[%s18832_s0 + %s16519_s30]]   ;;  %s16524_s26 = smov 12  }
   0xb   :  { %18864 = sst [smem:[#allocation66_spill]] %s16630_s21  ;;  %s16525_s1 = smov 13  }
   0xc   :  { %s16650_s8 = sld [smem:[%s18832_s0 + %s16520_s4]]   ;;  %s16526_s7 = smov 14  }
   0xd   :  { %s16655_s14 = sld [smem:[%s18832_s0 + %s16521_s10]]   ;;  %s16528_s22 = smov 16  }
   0xe   :  { %18865 = sst [smem:[#allocation67_spill]] %s16640_s29  ;;  %s16529_s28 = smov 17  }
   0xf   :  { %s16660_s19 = sld [smem:[%s18832_s0 + %s16522_s15]]   ;;  %s16527_s15 = smov 15  }
  0x10   :  { %18866 = sst [smem:[#allocation68_spill]] %s16645_s3 }
  0x11   :  { %s16665_s24 = sld [smem:[%s18832_s0 + %s16523_s20]]  }
  0x12   :  { %18867 = sst [smem:[#allocation69_spill]] %s16650_s8 }
  0x13   :  { %s16670_s30 = sld [smem:[%s18832_s0 + %s16524_s26]]  }
  0x14   :  { %s16675_s6 = sld [smem:[%s18832_s0 + %s16525_s1]]  }
  0x15   :  { %18868 = sst [smem:[#allocation70_spill]] %s16660_s19 }
  0x16   :  { %s16680_s12 = sld [smem:[%s18832_s0 + %s16526_s7]]   ;;  %s16530_s7 = smov 18  }
  0x17   :  { %s16685_s20 = sld [smem:[%s18832_s0 + %s16527_s15]]   ;;  %s16531_s15 = smov 19  }
  0x18   :  { %s16690_s27 = sld [smem:[%s18832_s0 + %s16528_s22]]   ;;  %s16532_s22 = smov 20  }
  0x19   :  { %18869 = sst [smem:[#allocation71_spill]] %s16670_s30 }
  0x1a   :  { %18870 = sst [smem:[#allocation72_spill]] %s16675_s6 }
  0x1b   :  { %s16695_s4 = sld [smem:[%s18832_s0 + %s16529_s28]]   ;;  %s16533_s28 = smov 21  }
  0x1c   :  { %18871 = sst [smem:[#allocation73_spill]] %s16680_s12 }
  0x1d   :  { %s16700_s6 = sld [smem:[%s18832_s0 + %s16530_s7]]   ;;  %s16534_s7 = smov 22  }
  0x1e   :  { %18872 = sst [smem:[#allocation74_spill]] %s16690_s27 }
  0x1f   :  { %s16705_s30 = sld [smem:[%s18832_s0 + %s16531_s15]]   ;;  %s16535_s15 = smov 23  }
  0x20   :  { %s16710_s8 = sld [smem:[%s18832_s0 + %s16532_s22]]   ;;  %s16536_s22 = smov 24  }
  0x21   :  { %18873 = sst [smem:[#allocation75_spill]] %s16695_s4 }
  0x22   :  { %s16715_s27 = sld [smem:[%s18832_s0 + %s16533_s28]]   ;;  %s16537_s28 = smov 25  }
  0x23   :  { %s16720_s3 = sld [smem:[%s18832_s0 + %s16534_s7]]   ;;  %s16538_s7 = smov 26  }
  0x24   :  { %s16730_s4 = sld [smem:[%s18832_s0 + %s16536_s22]]   ;;  %s16540_s22 = smov 28  }
  0x25   :  { %18874 = sst [smem:[#allocation76_spill]] %s16705_s30 }
  0x26   :  { %s16725_s30 = sld [smem:[%s18832_s0 + %s16535_s15]]   ;;  %s16539_s15 = smov 27  }
  0x27   :  { %s16740_s12 = sld [smem:[%s18832_s0 + %s16538_s7]]   ;;  %s16542_s7 = smov 30  }
  0x28   :  { %18875 = sst [smem:[#allocation77_spill]] %s16715_s27 }
  0x29   :  { %s16735_s27 = sld [smem:[%s18832_s0 + %s16537_s28]]   ;;  %s16541_s28 = smov 29  }
  0x2a   :  { %s16750_s19 = sld [smem:[%s18832_s0 + %s16540_s22]]   ;;  %s16544_s22 = smov 32  }
  0x2b   :  { %s16760_s29 = sld [smem:[%s18832_s0 + %s16542_s7]]   ;;  %s16546_s7 = smov 34  }
  0x2c   :  { %18876 = sst [smem:[#allocation78_spill]] %s16725_s30 }
  0x2d   :  { %s16745_s30 = sld [smem:[%s18832_s0 + %s16539_s15]]   ;;  %s16543_s15 = smov 31  }
  0x2e   :  { %s16780_s21 = sld [smem:[%s18832_s0 + %s16546_s7]]   ;;  %s16550_s7 = smov 38  }
  0x2f   :  { %18877 = sst [smem:[#allocation79_spill]] %s16735_s27 }
  0x30   :  { %18879 = sst [smem:[#allocation81_spill]] %s16750_s19 }
  0x31   :  { %s16755_s27 = sld [smem:[%s18832_s0 + %s16541_s28]]   ;;  %s16545_s28 = smov 33  }
  0x32   :  { %s16770_s19 = sld [smem:[%s18832_s0 + %s16544_s22]]   ;;  %s16548_s22 = smov 36  }
  0x33   :  { %18878 = sst [smem:[#allocation80_spill]] %s16745_s30 }
  0x34   :  { %s16765_s30 = sld [smem:[%s18832_s0 + %s16543_s15]]   ;;  %s16547_s15 = smov 35  }
  0x35   :  { %18883 = sst [smem:[#allocation85_spill]] %s16780_s21 }
  0x36   :  { %s16790_s13 = sld [smem:[%s18832_s0 + %s16548_s22]]   ;;  %s16552_s22 = smov 40  }
  0x37   :  { %18880 = sst [smem:[#allocation82_spill]] %s16755_s27 }
  0x38   :  { %s16775_s27 = sld [smem:[%s18832_s0 + %s16545_s28]]   ;;  %s16549_s28 = smov 37  }
  0x39   :  { %s16800_s21 = sld [smem:[%s18832_s0 + %s16550_s7]]  }
  0x3a   :  { %18881 = sst [smem:[#allocation83_spill]] %s16765_s30 }
  0x3b   :  { %s16785_s30 = sld [smem:[%s18832_s0 + %s16547_s15]]   ;;  %s16551_s15 = smov 39  }
  0x3c   :  { %s16810_s5 = sld [smem:[%s18832_s0 + %s16552_s22]]  }
  0x3e   :  { %18882 = sst [smem:[#allocation84_spill]] %s16775_s27 }
  0x3f   :  { %s16795_s27 = sld [smem:[%s18832_s0 + %s16549_s28]]  }
  0x41   :  { %18884 = sst [smem:[#allocation86_spill]] %s16785_s30 }
  0x42   :  { %s16805_s30 = sld [smem:[%s18832_s0 + %s16551_s15]]  }
  0x43   :  { %87 = vsyncpa [#allocation3], 0 }
  0x44   :  { %88 = vsyncpa [#allocation6], 0 }
  0x45   :  { %89 = vsyncpa [#allocation9], 0 }
  0x46   :  { %90 = vsyncpa [#allocation12], 0 }
  0x47   :  { %91 = vsyncpa [#allocation15], 0 }
  0x48   :  { %92 = vsyncpa [#allocation18], 0 }
  0x49   :  { %93 = vsyncpa [#allocation21], 0 }
  0x4a   :  { %94 = vsyncpa [#allocation24], 0 }
  0x4b   :  { %95 = vsyncpa [#allocation27], 0 }
  0x4c   :  { %96 = vsyncpa [#allocation30], 0 }
  0x4d   :  { %97 = vsyncpa [#allocation33], 0 }
  0x4e   :  { %98 = vsyncpa [#allocation36], 0 }
  0x4f   :  { %99 = vsyncpa [#allocation39], 0 }
  0x50   :  { %100 = vsyncpa [#allocation42], 0 }
  0x51   :  { %101 = vsyncpa [#allocation45], 0 }
  0x52   :  { %102 = vsyncpa [#allocation4], 0  ;;  %s16553_s0 = smov [#allocation5]   ;;  %s16554_s1 = smov [#allocation8]  }
  0x53   :  { %s121_s28 = sshll.u32 %s16553_s0, 4  ;;  %s141_s2 = sshll.u32 %s16554_s1, 4  ;;  %s122_s28 = int_to_ptr.vmem [resolvable:$true] %s121_s28  ;;  %s142_s2 = int_to_ptr.vmem [resolvable:$true] %s141_s2 }
  0x54   :  { %s15821_s7 = scalar_lea.hbm %s16615_s9, 48 }
  0x55   :  { %p15822_p0 = scmp.ne.s32.totalorder %s16615_s9, %s15821_s7  ;;  %p15825_p1 = scmp.lt.u32.totalorder %s15821_s7, %s16615_s9 }
  0x57   :  { %p15827_p2 = pnand %p15825_p1, %p15822_p0 }
  0x59   :  { %15830 = shalt.err (!%p15827_p2)
}
  0x5a   :  { %s15831_s10 = scalar_lea.vmem %s122_s28, 48  ;;  %s15835_s11 = scalar_lea.vmem %s122_s28, 64 }
  0x5b   :  { %p15832_p3 = scmp.ne.s32.totalorder %s122_s28, %s15831_s10  ;;  %p15836_p4 = scmp.lt.s32.totalorder %s122_s28, %s122_s28 }
  0x5c   :  { %p15837_p5 = scmp.lt.s32.totalorder %s15835_s11, %s15831_s10 }
  0x5e   :  { %p15838_p6 = por %p15837_p5, %p15836_p4 }
  0x60   :  { %p15839_p7 = pnand %p15838_p6, %p15832_p3 }
  0x62   :  { %15842 = shalt.err (!%p15839_p7)
}
  0x63   :  { %124 = dma.hbm_to_vmem [thread:$0]  %s16615_s9, 48, %s122_s28, [#allocation6]  }
  0x64   :  { %s15843_s15 = scalar_lea.hbm %s16625_s17, 48 }
  0x65   :  { %p15844_p8 = scmp.ne.s32.totalorder %s16625_s17, %s15843_s15  ;;  %p15847_p9 = scmp.lt.u32.totalorder %s15843_s15, %s16625_s17 }
  0x67   :  { %p15849_p10 = pnand %p15847_p9, %p15844_p8 }
  0x69   :  { %15852 = shalt.err (!%p15849_p10)
}
  0x6a   :  { %s15853_s16 = scalar_lea.vmem %s142_s2, 48  ;;  %s15857_s18 = scalar_lea.vmem %s142_s2, 64 }
  0x6b   :  { %p15854_p11 = scmp.ne.s32.totalorder %s142_s2, %s15853_s16  ;;  %p15858_p12 = scmp.lt.s32.totalorder %s142_s2, %s142_s2 }
  0x6c   :  { %p15859_p13 = scmp.lt.s32.totalorder %s15857_s18, %s15853_s16 }
  0x6e   :  { %p15860_p0 = por %p15859_p13, %p15858_p12 }
  0x70   :  { %p15861_p1 = pnand %p15860_p0, %p15854_p11 }
  0x72   :  { %15864 = shalt.err (!%p15861_p1)
}
  0x73   :  { %144 = dma.hbm_to_vmem [thread:$0]  %s16625_s17, 48, %s142_s2, [#allocation9]  }
  0x74   :  { %s16555_s22 = smov [#allocation11]   ;;  %s16556_s23 = smov [#allocation14]  }
  0x75   :  { %s161_s9 = sshll.u32 %s16555_s22, 4  ;;  %s185_s26 = sshll.u32 %s16556_s23, 4  ;;  %s162_s9 = int_to_ptr.vmem [resolvable:$true] %s161_s9  ;;  %s186_s26 = int_to_ptr.vmem [resolvable:$true] %s185_s26 }
  0x76   :  { %s15865_s0 = scalar_lea.hbm %s16635_s25, 48 }
  0x77   :  { %p15866_p2 = scmp.ne.s32.totalorder %s16635_s25, %s15865_s0  ;;  %p15869_p3 = scmp.lt.u32.totalorder %s15865_s0, %s16635_s25 }
  0x79   :  { %p15871_p4 = pnand %p15869_p3, %p15866_p2 }
  0x7b   :  { %15874 = shalt.err (!%p15871_p4)
}
  0x7c   :  { %s15875_s28 = scalar_lea.vmem %s162_s9, 48  ;;  %s15879_s1 = scalar_lea.vmem %s162_s9, 64 }
  0x7d   :  { %p15876_p5 = scmp.ne.s32.totalorder %s162_s9, %s15875_s28  ;;  %p15880_p6 = scmp.lt.s32.totalorder %s162_s9, %s162_s9 }
  0x7e   :  { %p15881_p7 = scmp.lt.s32.totalorder %s15879_s1, %s15875_s28 }
  0x80   :  { %p15882_p8 = por %p15881_p7, %p15880_p6 }
  0x82   :  { %p15883_p9 = pnand %p15882_p8, %p15876_p5 }
  0x84   :  { %15886 = shalt.err (!%p15883_p9)
}
  0x85   :  { %164 = dma.hbm_to_vmem [thread:$0]  %s16635_s25, 48, %s162_s9, [#allocation12]  }
  0x86   :  { %s15887_s17 = scalar_lea.hbm %s16655_s14, 128 }
  0x87   :  { %p15888_p10 = scmp.ne.s32.totalorder %s16655_s14, %s15887_s17  ;;  %p15891_p11 = scmp.lt.u32.totalorder %s15887_s17, %s16655_s14 }
  0x89   :  { %p15893_p12 = pnand %p15891_p11, %p15888_p10 }
  0x8b   :  { %15896 = shalt.err (!%p15893_p12)
}
  0x8c   :  { %s15897_s2 = scalar_lea.vmem %s186_s26, 128  ;;  %p15902_p0 = scmp.lt.s32.totalorder %s186_s26, %s186_s26 }
  0x8d   :  { %p15898_p13 = scmp.ne.s32.totalorder %s186_s26, %s15897_s2  ;;  %p15903_p1 = scmp.lt.s32.totalorder %s15897_s2, %s15897_s2 }
  0x8f   :  { %p15904_p2 = por %p15903_p1, %p15902_p0 }
  0x91   :  { %p15905_p3 = pnand %p15904_p2, %p15898_p13 }
  0x93   :  { %15908 = shalt.err (!%p15905_p3)
}
  0x94   :  { %188 = dma.hbm_to_vmem [thread:$0]  %s16655_s14, 128, %s186_s26, [#allocation15]  }
  0x95   :  { %s16557_s7 = smov [#allocation17]   ;;  %s16558_s25 = smov [#allocation20]  }
  0x96   :  { %s207_s10 = sshll.u32 %s16557_s7, 4  ;;  %s233_s11 = sshll.u32 %s16558_s25, 4  ;;  %s208_s10 = int_to_ptr.vmem [resolvable:$true] %s207_s10  ;;  %s234_s11 = int_to_ptr.vmem [resolvable:$true] %s233_s11 }
  0x97   :  { %s15909_s15 = scalar_lea.hbm %s16665_s24, 64 }
  0x98   :  { %p15910_p4 = scmp.ne.s32.totalorder %s16665_s24, %s15909_s15  ;;  %p15913_p5 = scmp.lt.u32.totalorder %s15909_s15, %s16665_s24 }
  0x9a   :  { %p15915_p6 = pnand %p15913_p5, %p15910_p4 }
  0x9c   :  { %15918 = shalt.err (!%p15915_p6)
}
  0x9d   :  { %s15919_s16 = scalar_lea.vmem %s208_s10, 64  ;;  %p15924_p8 = scmp.lt.s32.totalorder %s208_s10, %s208_s10 }
  0x9e   :  { %p15920_p7 = scmp.ne.s32.totalorder %s208_s10, %s15919_s16  ;;  %p15925_p9 = scmp.lt.s32.totalorder %s15919_s16, %s15919_s16 }
  0xa0   :  { %p15926_p10 = por %p15925_p9, %p15924_p8 }
  0xa2   :  { %p15927_p11 = pnand %p15926_p10, %p15920_p7 }
  0xa4   :  { %15930 = shalt.err (!%p15927_p11)
}
  0xa5   :  { %210 = dma.hbm_to_vmem [thread:$0]  %s16665_s24, 64, %s208_s10, [#allocation18]  }
  0xa6   :  { %s15931_s14 = scalar_lea.hbm %s16685_s20, 32 }
  0xa7   :  { %p15932_p12 = scmp.ne.s32.totalorder %s16685_s20, %s15931_s14  ;;  %p15935_p13 = scmp.lt.u32.totalorder %s15931_s14, %s16685_s20 }
  0xa9   :  { %p15937_p0 = pnand %p15935_p13, %p15932_p12 }
  0xab   :  { %15940 = shalt.err (!%p15937_p0)
}
  0xac   :  { %s15941_s18 = scalar_lea.vmem %s234_s11, 32  ;;  %p15946_p2 = scmp.lt.s32.totalorder %s234_s11, %s234_s11 }
  0xad   :  { %p15942_p1 = scmp.ne.s32.totalorder %s234_s11, %s15941_s18  ;;  %p15947_p3 = scmp.lt.s32.totalorder %s15941_s18, %s15941_s18 }
  0xaf   :  { %p15948_p4 = por %p15947_p3, %p15946_p2 }
  0xb1   :  { %p15949_p5 = pnand %p15948_p4, %p15942_p1 }
  0xb3   :  { %15952 = shalt.err (!%p15949_p5)
}
  0xb4   :  { %236 = dma.hbm_to_vmem [thread:$0]  %s16685_s20, 32, %s234_s11, [#allocation21]  }
  0xb5   :  { %s16559_s22 = smov [#allocation23]   ;;  %s16560_s24 = smov [#allocation26]  }
  0xb6   :  { %s254_s9 = sshll.u32 %s16559_s22, 4  ;;  %s276_s23 = sshll.u32 %s16560_s24, 4  ;;  %s255_s9 = int_to_ptr.vmem [resolvable:$true] %s254_s9  ;;  %s16836_s23 = int_to_ptr.vmem [resolvable:$true] %s276_s23 }
  0xb7   :  { %s15953_s26 = scalar_lea.hbm %s16700_s6, 49152 }
  0xb8   :  { %p15954_p6 = scmp.ne.s32.totalorder %s16700_s6, %s15953_s26  ;;  %p15957_p7 = scmp.lt.u32.totalorder %s15953_s26, %s16700_s6 }
  0xba   :  { %p15959_p8 = pnand %p15957_p7, %p15954_p6 }
  0xbc   :  { %15962 = shalt.err (!%p15959_p8)
}
  0xbd   :  { %s15963_s0 = scalar_lea.vmem %s255_s9, 49152  ;;  %p15968_p10 = scmp.lt.s32.totalorder %s255_s9, %s255_s9 }
  0xbe   :  { %p15964_p9 = scmp.ne.s32.totalorder %s255_s9, %s15963_s0  ;;  %p15969_p11 = scmp.lt.s32.totalorder %s15963_s0, %s15963_s0 }
  0xc0   :  { %p15970_p12 = por %p15969_p11, %p15968_p10 }
  0xc2   :  { %p15971_p13 = pnand %p15970_p12, %p15964_p9 }
  0xc4   :  { %15974 = shalt.err (!%p15971_p13)
}
  0xc5   :  { %s16561_s20 = smov 128   ;;  %s16562_s28 = smov 8  }
  0xc6   :  { %260 = dma.hbm_to_vmem [thread:$0]  %s16700_s6, 49152, %s255_s9, [#allocation24], %s16561_s20, %s16561_s20, %s16562_s28  }
  0xc7   :  { %s15975_s1 = scalar_lea.hbm %s16710_s8, 16384 }
  0xc8   :  { %p15976_p0 = scmp.ne.s32.totalorder %s16710_s8, %s15975_s1  ;;  %p15979_p1 = scmp.lt.u32.totalorder %s15975_s1, %s16710_s8 }
  0xca   :  { %p15981_p2 = pnand %p15979_p1, %p15976_p0 }
  0xcc   :  { %15984 = shalt.err (!%p15981_p2)
}
  0xcd   :  { %s15985_s17 = scalar_lea.vmem %s16836_s23, 16384  ;;  %p15990_p4 = scmp.lt.s32.totalorder %s16836_s23, %s16836_s23 }
  0xce   :  { %p15986_p3 = scmp.ne.s32.totalorder %s16836_s23, %s15985_s17  ;;  %p15991_p5 = scmp.lt.s32.totalorder %s15985_s17, %s15985_s17 }
  0xd0   :  { %p15992_p6 = por %p15991_p5, %p15990_p4 }
  0xd2   :  { %p15993_p7 = pnand %p15992_p6, %p15986_p3 }
  0xd4   :  { %15996 = shalt.err (!%p15993_p7)
}
  0xd5   :  { %282 = dma.hbm_to_vmem [thread:$0]  %s16710_s8, 16384, %s16836_s23, [#allocation27], %s16561_s20, %s16561_s20, %s16562_s28  }
  0xd6   :  { %s16563_s6 = smov [#allocation29]   ;;  %s16564_s7 = smov [#allocation32]  }
  0xd7   :  { %s298_s2 = sshll.u32 %s16563_s6, 4  ;;  %s320_s10 = sshll.u32 %s16564_s7, 4  ;;  %s299_s2 = int_to_ptr.vmem [resolvable:$true] %s298_s2  ;;  %s16857_s10 = int_to_ptr.vmem [resolvable:$true] %s320_s10 }
  0xd8   :  { %s15997_s25 = scalar_lea.hbm %s16720_s3, 6144 }
  0xd9   :  { %p15998_p8 = scmp.ne.s32.totalorder %s16720_s3, %s15997_s25  ;;  %p16001_p9 = scmp.lt.u32.totalorder %s15997_s25, %s16720_s3 }
  0xdb   :  { %p16003_p10 = pnand %p16001_p9, %p15998_p8 }
  0xdd   :  { %16006 = shalt.err (!%p16003_p10)
}
  0xde   :  { %s16007_s11 = scalar_lea.vmem %s299_s2, 6144  ;;  %p16012_p12 = scmp.lt.s32.totalorder %s299_s2, %s299_s2 }
  0xdf   :  { %p16008_p11 = scmp.ne.s32.totalorder %s299_s2, %s16007_s11  ;;  %p16013_p13 = scmp.lt.s32.totalorder %s16007_s11, %s16007_s11 }
  0xe1   :  { %p16014_p0 = por %p16013_p13, %p16012_p12 }
  0xe3   :  { %p16015_p1 = pnand %p16014_p0, %p16008_p11 }
  0xe5   :  { %16018 = shalt.err (!%p16015_p1)
}
  0xe6   :  { %s16565_s8 = smov 64   ;;  %s16566_s15 = smov 4  }
  0xe7   :  { %304 = dma.hbm_to_vmem [thread:$0]  %s16720_s3, 6144, %s299_s2, [#allocation30], %s16565_s8, %s16565_s8, %s16566_s15  }
  0xe8   :  { %s16019_s16 = scalar_lea.hbm %s16730_s4, 8192 }
  0xe9   :  { %p16020_p2 = scmp.ne.s32.totalorder %s16730_s4, %s16019_s16  ;;  %p16023_p3 = scmp.lt.u32.totalorder %s16019_s16, %s16730_s4 }
  0xeb   :  { %p16025_p4 = pnand %p16023_p3, %p16020_p2 }
  0xed   :  { %16028 = shalt.err (!%p16025_p4)
}
  0xee   :  { %s16029_s14 = scalar_lea.vmem %s16857_s10, 8192  ;;  %p16034_p6 = scmp.lt.s32.totalorder %s16857_s10, %s16857_s10 }
  0xef   :  { %p16030_p5 = scmp.ne.s32.totalorder %s16857_s10, %s16029_s14  ;;  %p16035_p7 = scmp.lt.s32.totalorder %s16029_s14, %s16029_s14 }
  0xf1   :  { %p16036_p8 = por %p16035_p7, %p16034_p6 }
  0xf3   :  { %p16037_p9 = pnand %p16036_p8, %p16030_p5 }
  0xf5   :  { %16040 = shalt.err (!%p16037_p9)
}
  0xf6   :  { %s16567_s18 = smov 256   ;;  %s16568_s3 = smov 16  }
  0xf7   :  { %326 = dma.hbm_to_vmem [thread:$0]  %s16730_s4, 8192, %s16857_s10, [#allocation33], %s16567_s18, %s16567_s18, %s16568_s3  }
  0xf8   :  { %s16569_s22 = smov [#allocation35]   ;;  %s16041_s24 = scalar_lea.hbm %s16740_s12, 64 }
  0xf9   :  { %s344_s9 = sshll.u32 %s16569_s22, 4  ;;  %p16042_p10 = scmp.ne.s32.totalorder %s16740_s12, %s16041_s24  ;;  %s345_s9 = int_to_ptr.vmem [resolvable:$true] %s344_s9 }
  0xfa   :  { %p16045_p11 = scmp.lt.u32.totalorder %s16041_s24, %s16740_s12 }
  0xfc   :  { %p16047_p12 = pnand %p16045_p11, %p16042_p10 }
  0xfe   :  { %16050 = shalt.err (!%p16047_p12)
}
  0xff   :  { %s16051_s23 = scalar_lea.vmem %s345_s9, 64  ;;  %p16056_p0 = scmp.lt.s32.totalorder %s345_s9, %s345_s9 }
 0x100   :  { %p16052_p13 = scmp.ne.s32.totalorder %s345_s9, %s16051_s23  ;;  %p16057_p1 = scmp.lt.s32.totalorder %s16051_s23, %s16051_s23 }
 0x102   :  { %p16058_p2 = por %p16057_p1, %p16056_p0 }
 0x104   :  { %p16059_p3 = pnand %p16058_p2, %p16052_p13 }
 0x106   :  { %16062 = shalt.err (!%p16059_p3)
}
 0x107   :  { %s16570_s26 = smov 32   ;;  %s16571_s4 = smov 2  }
 0x108   :  { %350 = dma.hbm_to_vmem [thread:$0]  %s16740_s12, 64, %s345_s9, [#allocation36], %s16570_s26, %s16570_s26, %s16571_s4  }
 0x109   :  { %s16572_s0 = smov [#allocation38]   ;;  %s16573_s17 = smov [#allocation41]  }
 0x10a   :  { %s371_s1 = sshll.u32 %s16572_s0, 4  ;;  %s393_s6 = sshll.u32 %s16573_s17, 4  ;;  %s372_s1 = int_to_ptr.vmem [resolvable:$true] %s371_s1  ;;  %s394_s6 = int_to_ptr.vmem [resolvable:$true] %s393_s6 }
 0x10b   :  { %s16063_s2 = scalar_lea.hbm %s16760_s29, 64 }
 0x10c   :  { %p16064_p4 = scmp.ne.s32.totalorder %s16760_s29, %s16063_s2  ;;  %p16067_p5 = scmp.lt.u32.totalorder %s16063_s2, %s16760_s29 }
 0x10e   :  { %p16069_p6 = pnand %p16067_p5, %p16064_p4 }
 0x110   :  { %16072 = shalt.err (!%p16069_p6)
}
 0x111   :  { %s16073_s7 = scalar_lea.vmem %s372_s1, 64  ;;  %p16078_p8 = scmp.lt.s32.totalorder %s372_s1, %s372_s1 }
 0x112   :  { %p16074_p7 = scmp.ne.s32.totalorder %s372_s1, %s16073_s7  ;;  %p16079_p9 = scmp.lt.s32.totalorder %s16073_s7, %s16073_s7 }
 0x114   :  { %p16080_p10 = por %p16079_p9, %p16078_p8 }
 0x116   :  { %p16081_p11 = pnand %p16080_p10, %p16074_p7 }
 0x118   :  { %16084 = shalt.err (!%p16081_p11)
}
 0x119   :  { %374 = dma.hbm_to_vmem [thread:$0]  %s16760_s29, 64, %s372_s1, [#allocation39]  }
 0x11a   :  { %s16085_s12 = scalar_lea.hbm %s16770_s19, 64 }
 0x11b   :  { %p16086_p12 = scmp.ne.s32.totalorder %s16770_s19, %s16085_s12  ;;  %p16089_p13 = scmp.lt.u32.totalorder %s16085_s12, %s16770_s19 }
 0x11d   :  { %p16091_p0 = pnand %p16089_p13, %p16086_p12 }
 0x11f   :  { %16094 = shalt.err (!%p16091_p0)
}
 0x120   :  { %s16095_s10 = scalar_lea.vmem %s394_s6, 64  ;;  %p16100_p2 = scmp.lt.s32.totalorder %s394_s6, %s394_s6 }
 0x121   :  { %p16096_p1 = scmp.ne.s32.totalorder %s394_s6, %s16095_s10  ;;  %p16101_p3 = scmp.lt.s32.totalorder %s16095_s10, %s16095_s10 }
 0x123   :  { %p16102_p4 = por %p16101_p3, %p16100_p2 }
 0x125   :  { %p16103_p5 = pnand %p16102_p4, %p16096_p1 }
 0x127   :  { %16106 = shalt.err (!%p16103_p5)
}
 0x128   :  { %396 = dma.hbm_to_vmem [thread:$0]  %s16770_s19, 64, %s394_s6, [#allocation42]  }
 0x129   :  { %s16574_s25 = smov [#allocation44]   ;;  %s16575_s11 = smov [#allocation2]  }
 0x12a   :  { %s417_s29 = sshll.u32 %s16574_s25, 4  ;;  %s108_s16 = sshll.u32 %s16575_s11, 4  ;;  %s418_s29 = int_to_ptr.vmem [resolvable:$true] %s417_s29  ;;  %s109_s16 = int_to_ptr.vmem [resolvable:$true] %s108_s16 }
 0x12b   :  { %s16107_s14 = scalar_lea.hbm %s16790_s13, 16 }
 0x12c   :  { %p16108_p6 = scmp.ne.s32.totalorder %s16790_s13, %s16107_s14  ;;  %p16111_p7 = scmp.lt.u32.totalorder %s16107_s14, %s16790_s13 }
 0x12e   :  { %p16113_p8 = pnand %p16111_p7, %p16108_p6 }
 0x130   :  { %16116 = shalt.err (!%p16113_p8)
}
 0x131   :  { %s16117_s18 = scalar_lea.vmem %s418_s29, 16  ;;  %s16121_s3 = scalar_lea.vmem %s418_s29, 32 }
 0x132   :  { %p16118_p9 = scmp.ne.s32.totalorder %s418_s29, %s16117_s18  ;;  %p16122_p10 = scmp.lt.s32.totalorder %s418_s29, %s418_s29 }
 0x133   :  { %p16123_p11 = scmp.lt.s32.totalorder %s16121_s3, %s16117_s18 }
 0x135   :  { %p16124_p12 = por %p16123_p11, %p16122_p10 }
 0x137   :  { %p16125_p13 = pnand %p16124_p12, %p16118_p9 }
 0x139   :  { %16128 = shalt.err (!%p16125_p13)
}
 0x13a   :  { %s18885_s19 = sld [smem:[#allocation64_spill]] }
 0x13b   :  { %420 = dma.hbm_to_vmem [thread:$0]  %s16790_s13, 16, %s418_s29, [#allocation45]  }
 0x140   :  { %s16129_s22 = scalar_lea.hbm %s18885_s19, 1536 }
 0x141   :  { %p16130_p0 = scmp.ne.s32.totalorder %s18885_s19, %s16129_s22  ;;  %p16133_p1 = scmp.lt.u32.totalorder %s16129_s22, %s18885_s19 }
 0x143   :  { %p16135_p2 = pnand %p16133_p1, %p16130_p0 }
 0x145   :  { %16138 = shalt.err (!%p16135_p2)
}
 0x146   :  { %s16139_s9 = scalar_lea.vmem %s109_s16, 1536  ;;  %p16144_p4 = scmp.lt.s32.totalorder %s109_s16, %s109_s16 }
 0x147   :  { %p16140_p3 = scmp.ne.s32.totalorder %s109_s16, %s16139_s9  ;;  %p16145_p5 = scmp.lt.s32.totalorder %s16139_s9, %s16139_s9 }
 0x149   :  { %p16146_p6 = por %p16145_p5, %p16144_p4 }
 0x14b   :  { %p16147_p7 = pnand %p16146_p6, %p16140_p3 }
 0x14d   :  { %16150 = shalt.err (!%p16147_p7)
}
 0x14e   :  { %s16576_s24 = smov 384   ;;  %s18886_s23 = sld [smem:[#allocation65_spill]] }
 0x14f   :  { %s16577_s26 = smov 24   ;;  %s16578_s13 = smov [#allocation7]  }
 0x150   :  { %114 = dma.hbm_to_vmem [thread:$0]  %s18885_s19, 1536, %s109_s16, [#allocation3], %s16576_s24, %s16576_s24, %s16577_s26  }
 0x151   :  { %s131_s4 = sshll.u32 %s16578_s13, 4  ;;  %s16579_s0 = smov [#allocation10]   ;;  %s132_s4 = int_to_ptr.vmem [resolvable:$true] %s131_s4 }
 0x152   :  { %s151_s1 = sshll.u32 %s16579_s0, 4  ;;  %s152_s1 = int_to_ptr.vmem [resolvable:$true] %s151_s1 }
 0x154   :  { %s16151_s17 = scalar_lea.hbm %s18886_s23, 48 }
 0x155   :  { %p16152_p8 = scmp.ne.s32.totalorder %s18886_s23, %s16151_s17  ;;  %p16155_p9 = scmp.lt.u32.totalorder %s16151_s17, %s18886_s23 }
 0x157   :  { %p16157_p10 = pnand %p16155_p9, %p16152_p8 }
 0x159   :  { %16160 = shalt.err (!%p16157_p10)
}
 0x15a   :  { %s16161_s6 = scalar_lea.vmem %s132_s4, 48  ;;  %s16165_s2 = scalar_lea.vmem %s132_s4, 64 }
 0x15b   :  { %p16162_p11 = scmp.ne.s32.totalorder %s132_s4, %s16161_s6  ;;  %p16166_p12 = scmp.lt.s32.totalorder %s132_s4, %s132_s4 }
 0x15c   :  { %p16167_p13 = scmp.lt.s32.totalorder %s16165_s2, %s16161_s6 }
 0x15e   :  { %p16168_p0 = por %p16167_p13, %p16166_p12 }
 0x160   :  { %p16169_p1 = pnand %p16168_p0, %p16162_p11 }
 0x162   :  { %16172 = shalt.err (!%p16169_p1)
}
 0x163   :  { %s18887_s7 = sld [smem:[#allocation66_spill]] }
 0x164   :  { %134 = dma.hbm_to_vmem [thread:$0]  %s18886_s23, 48, %s132_s4, [#allocation6]  }
 0x169   :  { %s16173_s12 = scalar_lea.hbm %s18887_s7, 48 }
 0x16a   :  { %p16174_p2 = scmp.ne.s32.totalorder %s18887_s7, %s16173_s12  ;;  %p16177_p3 = scmp.lt.u32.totalorder %s16173_s12, %s18887_s7 }
 0x16c   :  { %p16179_p4 = pnand %p16177_p3, %p16174_p2 }
 0x16e   :  { %16182 = shalt.err (!%p16179_p4)
}
 0x16f   :  { %s16183_s10 = scalar_lea.vmem %s152_s1, 48  ;;  %s16187_s25 = scalar_lea.vmem %s152_s1, 64 }
 0x170   :  { %p16184_p5 = scmp.ne.s32.totalorder %s152_s1, %s16183_s10  ;;  %p16188_p6 = scmp.lt.s32.totalorder %s152_s1, %s152_s1 }
 0x171   :  { %p16189_p7 = scmp.lt.s32.totalorder %s16187_s25, %s16183_s10 }
 0x173   :  { %p16190_p8 = por %p16189_p7, %p16188_p6 }
 0x175   :  { %p16191_p9 = pnand %p16190_p8, %p16184_p5 }
 0x177   :  { %16194 = shalt.err (!%p16191_p9)
}
 0x178   :  { %s18888_s29 = sld [smem:[#allocation67_spill]]  ;;  %s16580_s11 = smov [#allocation13]  }
 0x179   :  { %154 = dma.hbm_to_vmem [thread:$0]  %s18887_s7, 48, %s152_s1, [#allocation9]  }
 0x17a   :  { %s171_s16 = sshll.u32 %s16580_s11, 4  ;;  %s16581_s14 = smov [#allocation16]   ;;  %s172_s16 = int_to_ptr.vmem [resolvable:$true] %s171_s16 }
 0x17b   :  { %s194_s18 = sshll.u32 %s16581_s14, 4  ;;  %s195_s18 = int_to_ptr.vmem [resolvable:$true] %s194_s18 }
 0x17e   :  { %s16195_s3 = scalar_lea.hbm %s18888_s29, 48 }
 0x17f   :  { %p16196_p10 = scmp.ne.s32.totalorder %s18888_s29, %s16195_s3  ;;  %p16199_p11 = scmp.lt.u32.totalorder %s16195_s3, %s18888_s29 }
 0x181   :  { %p16201_p12 = pnand %p16199_p11, %p16196_p10 }
 0x183   :  { %16204 = shalt.err (!%p16201_p12)
}
 0x184   :  { %s16205_s19 = scalar_lea.vmem %s172_s16, 48  ;;  %s16209_s22 = scalar_lea.vmem %s172_s16, 64 }
 0x185   :  { %p16206_p13 = scmp.ne.s32.totalorder %s172_s16, %s16205_s19  ;;  %p16210_p0 = scmp.lt.s32.totalorder %s172_s16, %s172_s16 }
 0x186   :  { %p16211_p1 = scmp.lt.s32.totalorder %s16209_s22, %s16205_s19 }
 0x188   :  { %p16212_p2 = por %p16211_p1, %p16210_p0 }
 0x18a   :  { %p16213_p3 = pnand %p16212_p2, %p16206_p13 }
 0x18c   :  { %16216 = shalt.err (!%p16213_p3)
}
 0x18d   :  { %s18889_s9 = sld [smem:[#allocation70_spill]] }
 0x18e   :  { %174 = dma.hbm_to_vmem [thread:$0]  %s18888_s29, 48, %s172_s16, [#allocation12]  }
 0x193   :  { %s16217_s23 = scalar_lea.hbm %s18889_s9, 128 }
 0x194   :  { %p16218_p4 = scmp.ne.s32.totalorder %s18889_s9, %s16217_s23  ;;  %p16221_p5 = scmp.lt.u32.totalorder %s16217_s23, %s18889_s9 }
 0x196   :  { %p16223_p6 = pnand %p16221_p5, %p16218_p4 }
 0x198   :  { %16226 = shalt.err (!%p16223_p6)
}
 0x199   :  { %s16227_s13 = scalar_lea.vmem %s195_s18, 128  ;;  %p16232_p8 = scmp.lt.s32.totalorder %s195_s18, %s195_s18 }
 0x19a   :  { %p16228_p7 = scmp.ne.s32.totalorder %s195_s18, %s16227_s13  ;;  %p16233_p9 = scmp.lt.s32.totalorder %s16227_s13, %s16227_s13 }
 0x19c   :  { %p16234_p10 = por %p16233_p9, %p16232_p8 }
 0x19e   :  { %p16235_p11 = pnand %p16234_p10, %p16228_p7 }
 0x1a0   :  { %16238 = shalt.err (!%p16235_p11)
}
 0x1a1   :  { %s18890_s4 = sld [smem:[#allocation73_spill]]  ;;  %s16582_s0 = smov [#allocation19]  }
 0x1a2   :  { %200 = dma.hbm_to_vmem [thread:$0]  %s18889_s9, 128, %s195_s18, [#allocation15], %s16565_s8, %s16565_s8, %s16566_s15  }
 0x1a3   :  { %s220_s1 = sshll.u32 %s16582_s0, 4  ;;  %s16583_s17 = smov [#allocation22]   ;;  %s221_s1 = int_to_ptr.vmem [resolvable:$true] %s220_s1 }
 0x1a4   :  { %s245_s6 = sshll.u32 %s16583_s17, 4  ;;  %s246_s6 = int_to_ptr.vmem [resolvable:$true] %s245_s6 }
 0x1a7   :  { %s16239_s2 = scalar_lea.hbm %s18890_s4, 12672 }
 0x1a8   :  { %p16240_p12 = scmp.ne.s32.totalorder %s18890_s4, %s16239_s2  ;;  %p16243_p13 = scmp.lt.u32.totalorder %s16239_s2, %s18890_s4 }
 0x1aa   :  { %p16245_p0 = pnand %p16243_p13, %p16240_p12 }
 0x1ac   :  { %16248 = shalt.err (!%p16245_p0)
}
 0x1ad   :  { %s16249_s7 = scalar_lea.vmem %s221_s1, 12672  ;;  %p16254_p2 = scmp.lt.s32.totalorder %s221_s1, %s221_s1 }
 0x1ae   :  { %p16250_p1 = scmp.ne.s32.totalorder %s221_s1, %s16249_s7  ;;  %p16255_p3 = scmp.lt.s32.totalorder %s16249_s7, %s16249_s7 }
 0x1b0   :  { %p16256_p4 = por %p16255_p3, %p16254_p2 }
 0x1b2   :  { %p16257_p5 = pnand %p16256_p4, %p16250_p1 }
 0x1b4   :  { %16260 = shalt.err (!%p16257_p5)
}
 0x1b5   :  { %s18891_s12 = sld [smem:[#allocation75_spill]] }
 0x1b6   :  { %226 = dma.hbm_to_vmem [thread:$0]  %s18890_s4, 12672, %s221_s1, [#allocation18], %s16561_s20, %s16561_s20, %s16562_s28  }
 0x1bb   :  { %s16261_s10 = scalar_lea.hbm %s18891_s12, 64 }
 0x1bc   :  { %p16262_p6 = scmp.ne.s32.totalorder %s18891_s12, %s16261_s10  ;;  %p16265_p7 = scmp.lt.u32.totalorder %s16261_s10, %s18891_s12 }
 0x1be   :  { %p16267_p8 = pnand %p16265_p7, %p16262_p6 }
 0x1c0   :  { %16270 = shalt.err (!%p16267_p8)
}
 0x1c1   :  { %s16271_s25 = scalar_lea.vmem %s246_s6, 64  ;;  %p16276_p10 = scmp.lt.s32.totalorder %s246_s6, %s246_s6 }
 0x1c2   :  { %p16272_p9 = scmp.ne.s32.totalorder %s246_s6, %s16271_s25  ;;  %p16277_p11 = scmp.lt.s32.totalorder %s16271_s25, %s16271_s25 }
 0x1c4   :  { %p16278_p12 = por %p16277_p11, %p16276_p10 }
 0x1c6   :  { %p16279_p13 = pnand %p16278_p12, %p16272_p9 }
 0x1c8   :  { %16282 = shalt.err (!%p16279_p13)
}
 0x1c9   :  { %s18892_s29 = sld [smem:[#allocation76_spill]]  ;;  %s16584_s11 = smov [#allocation25]  }
 0x1ca   :  { %248 = dma.hbm_to_vmem [thread:$0]  %s18891_s12, 64, %s246_s6, [#allocation21]  }
 0x1cb   :  { %s267_s16 = sshll.u32 %s16584_s11, 4  ;;  %s16585_s14 = smov [#allocation28]   ;;  %s268_s16 = int_to_ptr.vmem [resolvable:$true] %s267_s16 }
 0x1cc   :  { %s289_s18 = sshll.u32 %s16585_s14, 4  ;;  %s290_s18 = int_to_ptr.vmem [resolvable:$true] %s289_s18 }
 0x1cf   :  { %s16283_s3 = scalar_lea.hbm %s18892_s29, 128 }
 0x1d0   :  { %p16284_p0 = scmp.ne.s32.totalorder %s18892_s29, %s16283_s3  ;;  %p16287_p1 = scmp.lt.u32.totalorder %s16283_s3, %s18892_s29 }
 0x1d2   :  { %p16289_p2 = pnand %p16287_p1, %p16284_p0 }
 0x1d4   :  { %16292 = shalt.err (!%p16289_p2)
}
 0x1d5   :  { %s16293_s19 = scalar_lea.vmem %s268_s16, 128  ;;  %p16298_p4 = scmp.lt.s32.totalorder %s268_s16, %s268_s16 }
 0x1d6   :  { %p16294_p3 = scmp.ne.s32.totalorder %s268_s16, %s16293_s19  ;;  %p16299_p5 = scmp.lt.s32.totalorder %s16293_s19, %s16293_s19 }
 0x1d8   :  { %p16300_p6 = por %p16299_p5, %p16298_p4 }
 0x1da   :  { %p16301_p7 = pnand %p16300_p6, %p16294_p3 }
 0x1dc   :  { %16304 = shalt.err (!%p16301_p7)
}
 0x1dd   :  { %s18893_s22 = sld [smem:[#allocation77_spill]] }
 0x1de   :  { %270 = dma.hbm_to_vmem [thread:$0]  %s18892_s29, 128, %s268_s16, [#allocation24]  }
 0x1e3   :  { %s16305_s9 = scalar_lea.hbm %s18893_s22, 128 }
 0x1e4   :  { %p16306_p8 = scmp.ne.s32.totalorder %s18893_s22, %s16305_s9  ;;  %p16309_p9 = scmp.lt.u32.totalorder %s16305_s9, %s18893_s22 }
 0x1e6   :  { %p16311_p10 = pnand %p16309_p9, %p16306_p8 }
 0x1e8   :  { %16314 = shalt.err (!%p16311_p10)
}
 0x1e9   :  { %s16315_s23 = scalar_lea.vmem %s290_s18, 128  ;;  %p16320_p12 = scmp.lt.s32.totalorder %s290_s18, %s290_s18 }
 0x1ea   :  { %p16316_p11 = scmp.ne.s32.totalorder %s290_s18, %s16315_s23  ;;  %p16321_p13 = scmp.lt.s32.totalorder %s16315_s23, %s16315_s23 }
 0x1ec   :  { %p16322_p0 = por %p16321_p13, %p16320_p12 }
 0x1ee   :  { %p16323_p1 = pnand %p16322_p0, %p16316_p11 }
 0x1f0   :  { %16326 = shalt.err (!%p16323_p1)
}
 0x1f1   :  { %s18894_s13 = sld [smem:[#allocation78_spill]]  ;;  %s16586_s4 = smov [#allocation31]  }
 0x1f2   :  { %292 = dma.hbm_to_vmem [thread:$0]  %s18893_s22, 128, %s290_s18, [#allocation27]  }
 0x1f3   :  { %s311_s0 = sshll.u32 %s16586_s4, 4  ;;  %s16587_s1 = smov [#allocation34]   ;;  %s312_s0 = int_to_ptr.vmem [resolvable:$true] %s311_s0 }
 0x1f4   :  { %s332_s17 = sshll.u32 %s16587_s1, 4  ;;  %s333_s17 = int_to_ptr.vmem [resolvable:$true] %s332_s17 }
 0x1f7   :  { %s16327_s6 = scalar_lea.hbm %s18894_s13, 16 }
 0x1f8   :  { %p16328_p2 = scmp.ne.s32.totalorder %s18894_s13, %s16327_s6  ;;  %p16331_p3 = scmp.lt.u32.totalorder %s16327_s6, %s18894_s13 }
 0x1fa   :  { %p16333_p4 = pnand %p16331_p3, %p16328_p2 }
 0x1fc   :  { %16336 = shalt.err (!%p16333_p4)
}
 0x1fd   :  { %s16337_s2 = scalar_lea.vmem %s312_s0, 16  ;;  %s16341_s7 = scalar_lea.vmem %s312_s0, 32 }
 0x1fe   :  { %p16338_p5 = scmp.ne.s32.totalorder %s312_s0, %s16337_s2  ;;  %p16342_p6 = scmp.lt.s32.totalorder %s312_s0, %s312_s0 }
 0x1ff   :  { %p16343_p7 = scmp.lt.s32.totalorder %s16341_s7, %s16337_s2 }
 0x201   :  { %p16344_p8 = por %p16343_p7, %p16342_p6 }
 0x203   :  { %p16345_p9 = pnand %p16344_p8, %p16338_p5 }
 0x205   :  { %16348 = shalt.err (!%p16345_p9)
}
 0x206   :  { %s18895_s12 = sld [smem:[#allocation79_spill]] }
 0x207   :  { %314 = dma.hbm_to_vmem [thread:$0]  %s18894_s13, 16, %s312_s0, [#allocation30]  }
 0x20c   :  { %s16349_s10 = scalar_lea.hbm %s18895_s12, 8192 }
 0x20d   :  { %p16350_p10 = scmp.ne.s32.totalorder %s18895_s12, %s16349_s10  ;;  %p16353_p11 = scmp.lt.u32.totalorder %s16349_s10, %s18895_s12 }
 0x20f   :  { %p16355_p12 = pnand %p16353_p11, %p16350_p10 }
 0x211   :  { %16358 = shalt.err (!%p16355_p12)
}
 0x212   :  { %s16359_s25 = scalar_lea.vmem %s333_s17, 8192  ;;  %p16364_p0 = scmp.lt.s32.totalorder %s333_s17, %s333_s17 }
 0x213   :  { %p16360_p13 = scmp.ne.s32.totalorder %s333_s17, %s16359_s25  ;;  %p16365_p1 = scmp.lt.s32.totalorder %s16359_s25, %s16359_s25 }
 0x215   :  { %p16366_p2 = por %p16365_p1, %p16364_p0 }
 0x217   :  { %p16367_p3 = pnand %p16366_p2, %p16360_p13 }
 0x219   :  { %16370 = shalt.err (!%p16367_p3)
}
 0x21a   :  { %s18896_s29 = sld [smem:[#allocation81_spill]]  ;;  %s16588_s11 = smov [#allocation37]  }
 0x21b   :  { %338 = dma.hbm_to_vmem [thread:$0]  %s18895_s12, 8192, %s333_s17, [#allocation33], %s16561_s20, %s16561_s20, %s16562_s28  }
 0x21c   :  { %s359_s16 = sshll.u32 %s16588_s11, 4  ;;  %s16589_s14 = smov [#allocation40]   ;;  %s360_s16 = int_to_ptr.vmem [resolvable:$true] %s359_s16 }
 0x21d   :  { %s380_s18 = sshll.u32 %s16589_s14, 4  ;;  %s381_s18 = int_to_ptr.vmem [resolvable:$true] %s380_s18 }
 0x220   :  { %s16371_s3 = scalar_lea.hbm %s18896_s29, 16 }
 0x221   :  { %p16372_p4 = scmp.ne.s32.totalorder %s18896_s29, %s16371_s3  ;;  %p16375_p5 = scmp.lt.u32.totalorder %s16371_s3, %s18896_s29 }
 0x223   :  { %p16377_p6 = pnand %p16375_p5, %p16372_p4 }
 0x225   :  { %16380 = shalt.err (!%p16377_p6)
}
 0x226   :  { %s16381_s19 = scalar_lea.vmem %s360_s16, 16  ;;  %s16385_s22 = scalar_lea.vmem %s360_s16, 32 }
 0x227   :  { %p16382_p7 = scmp.ne.s32.totalorder %s360_s16, %s16381_s19  ;;  %p16386_p8 = scmp.lt.s32.totalorder %s360_s16, %s360_s16 }
 0x228   :  { %p16387_p9 = scmp.lt.s32.totalorder %s16385_s22, %s16381_s19 }
 0x22a   :  { %p16388_p10 = por %p16387_p9, %p16386_p8 }
 0x22c   :  { %p16389_p11 = pnand %p16388_p10, %p16382_p7 }
 0x22e   :  { %16392 = shalt.err (!%p16389_p11)
}
 0x22f   :  { %s18897_s20 = sld [smem:[#allocation83_spill]] }
 0x230   :  { %362 = dma.hbm_to_vmem [thread:$0]  %s18896_s29, 16, %s360_s16, [#allocation36]  }
 0x235   :  { %s16393_s28 = scalar_lea.hbm %s18897_s20, 2048 }
 0x236   :  { %p16394_p12 = scmp.ne.s32.totalorder %s18897_s20, %s16393_s28  ;;  %p16397_p13 = scmp.lt.u32.totalorder %s16393_s28, %s18897_s20 }
 0x238   :  { %p16399_p0 = pnand %p16397_p13, %p16394_p12 }
 0x23a   :  { %16402 = shalt.err (!%p16399_p0)
}
 0x23b   :  { %s16403_s9 = scalar_lea.vmem %s381_s18, 2048  ;;  %p16408_p2 = scmp.lt.s32.totalorder %s381_s18, %s381_s18 }
 0x23c   :  { %p16404_p1 = scmp.ne.s32.totalorder %s381_s18, %s16403_s9  ;;  %p16409_p3 = scmp.lt.s32.totalorder %s16403_s9, %s16403_s9 }
 0x23e   :  { %p16410_p4 = por %p16409_p3, %p16408_p2 }
 0x240   :  { %p16411_p5 = pnand %p16410_p4, %p16404_p1 }
 0x242   :  { %16414 = shalt.err (!%p16411_p5)
}
 0x243   :  { %s18898_s23 = sld [smem:[#allocation85_spill]]  ;;  %s16590_s13 = smov [#allocation43]  }
 0x244   :  { %386 = dma.hbm_to_vmem [thread:$0]  %s18897_s20, 2048, %s381_s18, [#allocation39], %s16565_s8, %s16565_s8, %s16566_s15  }
 0x245   :  { %s405_s4 = sshll.u32 %s16590_s13, 4  ;;  %s16591_s0 = smov [#allocation46]   ;;  %s406_s4 = int_to_ptr.vmem [resolvable:$true] %s405_s4 }
 0x246   :  { %s429_s1 = sshll.u32 %s16591_s0, 4  ;;  %s430_s1 = int_to_ptr.vmem [resolvable:$true] %s429_s1 }
 0x249   :  { %s16415_s17 = scalar_lea.hbm %s18898_s23, 32 }
 0x24a   :  { %p16416_p6 = scmp.ne.s32.totalorder %s18898_s23, %s16415_s17  ;;  %p16419_p7 = scmp.lt.u32.totalorder %s16415_s17, %s18898_s23 }
 0x24c   :  { %p16421_p8 = pnand %p16419_p7, %p16416_p6 }
 0x24e   :  { %16424 = shalt.err (!%p16421_p8)
}
 0x24f   :  { %s16425_s6 = scalar_lea.vmem %s406_s4, 32  ;;  %p16430_p10 = scmp.lt.s32.totalorder %s406_s4, %s406_s4 }
 0x250   :  { %p16426_p9 = scmp.ne.s32.totalorder %s406_s4, %s16425_s6  ;;  %p16431_p11 = scmp.lt.s32.totalorder %s16425_s6, %s16425_s6 }
 0x252   :  { %p16432_p12 = por %p16431_p11, %p16430_p10 }
 0x254   :  { %p16433_p13 = pnand %p16432_p12, %p16426_p9 }
 0x256   :  { %16436 = shalt.err (!%p16433_p13)
}
 0x257   :  { %408 = dma.hbm_to_vmem [thread:$0]  %s18898_s23, 32, %s406_s4, [#allocation42]  }
 0x258   :  { %s16437_s15 = scalar_lea.hbm %s16800_s21, 48 }
 0x259   :  { %p16438_p0 = scmp.ne.s32.totalorder %s16800_s21, %s16437_s15  ;;  %p16441_p1 = scmp.lt.u32.totalorder %s16437_s15, %s16800_s21 }
 0x25b   :  { %p16443_p2 = pnand %p16441_p1, %p16438_p0 }
 0x25d   :  { %16446 = shalt.err (!%p16443_p2)
}
 0x25e   :  { %s16447_s2 = scalar_lea.vmem %s430_s1, 48  ;;  %s16451_s7 = scalar_lea.vmem %s430_s1, 64 }
 0x25f   :  { %p16448_p3 = scmp.ne.s32.totalorder %s430_s1, %s16447_s2  ;;  %p16452_p4 = scmp.lt.s32.totalorder %s430_s1, %s430_s1 }
 0x260   :  { %p16453_p5 = scmp.lt.s32.totalorder %s16451_s7, %s16447_s2 }
 0x262   :  { %p16454_p6 = por %p16453_p5, %p16452_p4 }
 0x264   :  { %p16455_p7 = pnand %p16454_p6, %p16448_p3 }
 0x266   :  { %16458 = shalt.err (!%p16455_p7)
}
 0x267   :  { %432 = dma.hbm_to_vmem [thread:$0]  %s16800_s21, 48, %s430_s1, [#allocation45]  }
 0x268   :  { %16481 = dma.done.wait [#allocation3], 1536  }
 0x269   :  { %16482 = vsyncadd [#allocation3], 4294965760 }
 0x26a   :  { %16483 = dma.done.wait [#allocation6], 96  }
 0x26b   :  { %16484 = vsyncadd [#allocation6], 4294967200 }
 0x26c   :  { %16485 = dma.done.wait [#allocation9], 96  }
 0x26d   :  { %16486 = vsyncadd [#allocation9], 4294967200 }
 0x26e   :  { %16487 = dma.done.wait [#allocation12], 96  }
 0x26f   :  { %16488 = vsyncadd [#allocation12], 4294967200 }
 0x270   :  { %16489 = dma.done.wait [#allocation15], 256  }
 0x271   :  { %16490 = vsyncadd [#allocation15], 4294967040 }
 0x272   :  { %16491 = dma.done.wait [#allocation18], 12736  }
 0x273   :  { %16492 = vsyncadd [#allocation18], 4294954560 }
 0x274   :  { %16493 = dma.done.wait [#allocation21], 96  }
 0x275   :  { %16494 = vsyncadd [#allocation21], 4294967200 }
 0x276   :  { %16495 = dma.done.wait [#allocation24], 49280  }
 0x277   :  { %16496 = vsyncadd [#allocation24], 4294918016 }
 0x278   :  { %16497 = dma.done.wait [#allocation27], 16512  }
 0x279   :  { %16498 = vsyncadd [#allocation27], 4294950784 }
 0x27a   :  { %16499 = dma.done.wait [#allocation30], 6160  }
 0x27b   :  { %16500 = vsyncadd [#allocation30], 4294961136 }
 0x27c   :  { %16501 = dma.done.wait [#allocation33], 16384  }
 0x27d   :  { %16502 = vsyncadd [#allocation33], 4294950912 }
 0x27e   :  { %16503 = dma.done.wait [#allocation36], 80  }
 0x27f   :  { %16504 = vsyncadd [#allocation36], 4294967216 }
 0x280   :  { %16505 = dma.done.wait [#allocation39], 2112  }
 0x281   :  { %16506 = vsyncadd [#allocation39], 4294965184 }
 0x282   :  { %16507 = dma.done.wait [#allocation42], 96  }
 0x283   :  { %16508 = vsyncadd [#allocation42], 4294967200 }
 0x284   :  { %16509 = dma.done.wait [#allocation45], 64  }
 0x285   :  { %16510 = vsyncadd [#allocation45], 4294967232  ;;  %s18899_s21 = sld [smem:[#allocation68_spill]]  ;;  %v18858_v0 = vmov 3   ;;  %v16968_v1 = vld [vmem:[#allocation2 + $0x30] sm:$0xff]  ;;  %v16971_v2 = vld [vmem:[#allocation2] sm:$0xff]  ;;  %v18855_v49 = vlaneseq }
 0x286   :  { %14189 = vset.pattern.permute.xlu1 %v18858_v0  ;;  %14188 = vset.pattern.permute.xlu0 %v18858_v0  ;;  %v16974_v3 = vld [vmem:[#allocation2 + $0x48] sm:$0xff]  ;;  %v16976_v4 = vld [vmem:[#allocation2 + $0x18] sm:$0xff]  ;;  %v18856_v18 = vmov 5   ;;  %v16594_v26 = vmov 0   ;;  %vm969_vm0 = vcmask 1042432   ;;  %vm970_vm1 = vcmask 1043456  }
 0x287   :  { %627 = vperm.xlu1 %14189, %v16968_v1   ;;  %617 = vperm.xlu0 %14188, %v16971_v2   ;;  %v14264_v5 = vld [vmem:[#allocation19 + $0x10c] ss:$8 sps:$4 sm:$0xff]   ;;  %v14266_v6 = vld [vmem:[#allocation19 + $0x108] ss:$8 sps:$4 sm:$0xff]   ;;  %v14267_v8 = vld [vmem:[#allocation19 + $0x11c] ss:$8 sps:$4 sm:$0xff]  }
 0x288   :  { %979 = vmatprep.subr.bf16.mxu0 %v14264_v5  ;;  %v14269_v10 = vld [vmem:[#allocation19 + $0x118] ss:$8 sps:$4 sm:$0xff]   ;;  %v14270_v11 = vld [vmem:[#allocation19 + $0x12c] ss:$8 sps:$4 sm:$0xff]   ;;  %v14272_v14 = vld [vmem:[#allocation19 + $0x128] ss:$8 sps:$4 sm:$0xff]   ;;  %2059 = vmatprep.mubr.bf16.mxu1 %v16594_v26 }
 0x289   :  { %980 = vmatpush1.bf16.msra.mxu0 %v14266_v6  ;;  %v14273_v15 = vld [vmem:[#allocation19 + $0x13c] ss:$8 sps:$4 sm:$0xff]   ;;  %v14275_v16 = vld [vmem:[#allocation19 + $0x138] ss:$8 sps:$4 sm:$0xff]   ;;  %v14276_v17 = vld [vmem:[#allocation19 + $0x14c] ss:$8 sps:$4 sm:$0xff]  }
 0x28a   :  { %981 = vmatprep.subr.bf16.mxu0 %v14267_v8  ;;  %v14278_v19 = vld [vmem:[#allocation19 + $0x148] ss:$8 sps:$4 sm:$0xff]   ;;  %v14279_v20 = vld [vmem:[#allocation19 + $0x15c] ss:$8 sps:$4 sm:$0xff]   ;;  %v14281_v21 = vld [vmem:[#allocation19 + $0x158] ss:$8 sps:$4 sm:$0xff]  }
 0x28b   :  { %632 = vperm.xlu1 %14189, %v16974_v3   ;;  %v522_v7 = vld [vmem:[%s18899_s21 + $0x8] sm:$0xff]  ;;  %622 = vperm.xlu0 %14188, %v16976_v4   ;;  %v521_v9 = vld [vmem:[%s18899_s21] sm:$0xff]  ;;  %v524_v12 = vld [vmem:[%s18899_s21 + $0x18] sm:$0xff]  ;;  %v16595_v42 = vmov 65535   ;;  %v16996_v50 = vshrl.u32 %v18855_v49, 7  ;;  %vm962_vm4 = vcmask 56320  }
 0x28c   :  { %v523_v13 = vld [vmem:[%s18899_s21 + $0x10] sm:$0xff]  ;;  %v14282_v22 = vld [vmem:[#allocation19 + $0x16c] ss:$8 sps:$4 sm:$0xff]   ;;  %v14287_v25 = vld [vmem:[#allocation19 + $0x178] ss:$8 sps:$4 sm:$0xff]   ;;  %v971_v43 = vsel %vm969_vm0, 4294967295, %v16595_v42 }
 0x28d   :  { %982 = vmatpush1.bf16.msra.mxu0 %v14269_v10  ;;  %v14284_v23 = vld [vmem:[#allocation19 + $0x168] ss:$8 sps:$4 sm:$0xff]   ;;  %v14285_v24 = vld [vmem:[#allocation19 + $0x17c] ss:$8 sps:$4 sm:$0xff]   ;;  %v14288_v27 = vld [vmem:[#allocation19 + $0x18c] ss:$8 sps:$4 sm:$0xff]  }
 0x28e   :  { %983 = vmatprep.subr.bf16.mxu0 %v14270_v11  ;;  %v14290_v28 = vld [vmem:[#allocation19 + $0x188] ss:$8 sps:$4 sm:$0xff]   ;;  %v14291_v29 = vld [vmem:[#allocation19 + $0x19c] ss:$8 sps:$4 sm:$0xff]   ;;  %v14293_v30 = vld [vmem:[#allocation19 + $0x198] ss:$8 sps:$4 sm:$0xff]  }
 0x28f   :  { %693 = vperm.xlu1 %14189, %v522_v7   ;;  %688 = vperm.xlu0 %14188, %v521_v9   ;;  %v14294_v31 = vld [vmem:[#allocation19 + $0x1ac] ss:$8 sps:$4 sm:$0xff]   ;;  %v14296_v32 = vld [vmem:[#allocation19 + $0x1a8] ss:$8 sps:$4 sm:$0xff]   ;;  %v14297_v33 = vld [vmem:[#allocation19 + $0x1bc] ss:$8 sps:$4 sm:$0xff]  }
 0x290   :  { %v14299_v34 = vld [vmem:[#allocation19 + $0x1b8] ss:$8 sps:$4 sm:$0xff]   ;;  %v14300_v35 = vld [vmem:[#allocation19 + $0x1cc] ss:$8 sps:$4 sm:$0xff]   ;;  %v14302_v36 = vld [vmem:[#allocation19 + $0x1c8] ss:$8 sps:$4 sm:$0xff]  }
 0x291   :  { %984 = vmatpush1.bf16.msra.mxu0 %v14272_v14  ;;  %v14303_v37 = vld [vmem:[#allocation19 + $0x1dc] ss:$8 sps:$4 sm:$0xff]   ;;  %v14305_v38 = vld [vmem:[#allocation19 + $0x1d8] ss:$8 sps:$4 sm:$0xff]   ;;  %v14306_v39 = vld [vmem:[#allocation19 + $0x1ec] ss:$8 sps:$4 sm:$0xff]  }
 0x292   :  { %985 = vmatprep.subr.bf16.mxu0 %v14273_v15  ;;  %v16987_v40 = vld [vmem:[#allocation19 + $0x208] sm:$0xff]  ;;  %v14309_v44 = vld [vmem:[#allocation19 + $0x1fc] ss:$8 sps:$4 sm:$0xff]   ;;  %v14311_v46 = vld [vmem:[#allocation19 + $0x1f8] ss:$8 sps:$4 sm:$0xff]   ;;  %v16992_v47 = vsel %vm970_vm1, %v971_v43, 0 }
 0x293   :  { %703 = vperm.xlu1 %14189, %v524_v12   ;;  %698 = vperm.xlu0 %14188, %v523_v13   ;;  %v14308_v41 = vld [vmem:[#allocation19 + $0x1e8] ss:$8 sps:$4 sm:$0xff]   ;;  %v12267_v45 = vcombine.high %v16987_v40, %v16987_v40  ;;  %v540_v51 = vld [vmem:[#allocation5] sm:$0x7]  ;;  %v16999_v52 = vsub.s32 0, %v16996_v50  ;;  %v17002_v53 = vsub.s32 1, %v16996_v50 }
 0x294   :  { %v17005_v54 = vsub.s32 2, %v16996_v50  ;;  %v569_v55 = vld [vmem:[#allocation7] sm:$0x7]  ;;  %v535_v57 = vld [vmem:[#allocation2 + $0x38] sm:$0xff]  ;;  %v530_v59 = vld [vmem:[#allocation2 + $0x10] sm:$0xff]  ;;  %vm673_vm2 = vcmp.lt.s32.totalorder %v16996_v50, 1 }
 0x295   :  { %986 = vmatpush1.bf16.msra.mxu0 %v14275_v16  ;;  %v977_v48 = vand.u32 %v12267_v45, %v16992_v47  ;;  %v545_v56 = vrot.slane %v540_v51, %v16999_v52  ;;  %v536_v58 = vld [vmem:[#allocation2 + $0x40] sm:$0xff]  ;;  %v549_v60 = vrot.slane %v540_v51, %v17002_v53  ;;  %v598_v62 = vld [vmem:[#allocation8] sm:$0x7]  ;;  %v574_v63 = vrot.slane %v569_v55, %v16999_v52  ;;  %v539_v10 = vld [vmem:[#allocation2 + $0x58] sm:$0xff]  ;;  %s18902_s12 = sld [smem:[#allocation74_spill]]  ;;  %s18903_s10 = sld [smem:[#allocation69_spill]] }
 0x296   :  { %987 = vmatprep.subr.bf16.mxu0 %v14276_v17  ;;  %v553_v61 = vrot.slane %v540_v51, %v17005_v54  ;;  %v529_v11 = vld [vmem:[#allocation2 + $0x8] sm:$0xff]  ;;  %v532_v14 = vld [vmem:[#allocation2 + $0x20] sm:$0xff]  ;;  %v582_v17 = vrot.slane %v569_v55, %v17005_v54  ;;  %vm1380_vm3 = vcmp.lt.s32.totalorder %v16996_v50, 7  ;;  %v14322_v49 = vld [vmem:[#allocation19 + $0x24] ss:$8 sps:$4 sm:$0xff]   ;;  %vm1969_vm5 = vcmp.lt.s32.totalorder %v16996_v50, 6 }
 0x297   :  { %14191 = vset.pattern.permute.xlu1 %v18856_v18  ;;  %14190 = vset.pattern.permute.xlu0 %v18856_v18  ;;  %v563_v5 = vmul.f32 %v545_v56, %v16968_v1  ;;  %v557_v6 = vmul.f32 %v545_v56, %v16971_v2  ;;  %v566_v15 = vmul.f32 %v545_v56, %v16974_v3  ;;  %vm2023_vm6 = vcmask 261120   ;;  %s18908_s25 = sld [smem:[#allocation80_spill]]  ;;  %s18909_s29 = sld [smem:[#allocation82_spill]] }
 0x298   :  { %1398 = vperm.xlu1 %14191, %v522_v7   ;;  %1394 = vperm.xlu0 %14190, %v521_v9   ;;  %v564_v7 = vmul.f32 %v549_v60, %v535_v57  ;;  %v565_v8 = vmul.f32 %v553_v61, %v536_v58  ;;  %v538_v9 = vld [vmem:[#allocation2 + $0x50] sm:$0xff]  ;;  %v560_v16 = vmul.f32 %v545_v56, %v16976_v4  ;;  %vm4183_vm7 = vcmp.lt.s32.totalorder %v16996_v50, 3  ;;  %s18910_s11 = sld [smem:[#allocation71_spill]]  ;;  %s18911_s16 = sld [smem:[#allocation84_spill]] }
 0x299   :  { %988 = vmatpush1.bf16.msra.mxu0 %v14278_v19  ;;  %v559_v19 = vmul.f32 %v553_v61, %v530_v59  ;;  %v603_v1 = vrot.slane %v598_v62, %v16999_v52  ;;  %v607_v2 = vrot.slane %v598_v62, %v17002_v53  ;;  %v568_v4 = vmul.f32 %v553_v61, %v539_v10  ;;  %s18912_s14 = sld [smem:[#allocation72_spill]]  ;;  %s18913_s18 = sld [smem:[#allocation86_spill]] }
 0x29a   :  { %989 = vmatprep.subr.bf16.mxu0 %v14279_v20  ;;  %v611_v20 = vrot.slane %v598_v62, %v17005_v54  ;;  %v12266_v57 = vcombine.low %v16987_v40, %v16987_v40  ;;  %vm4204_vm8 = vcmp.lt.s32.totalorder %v16996_v50, 5  ;;  %vm5300_vm9 = vcmask 130048  }
 0x29b   :  { %vm8969_vm10 = vcmask 1048064   ;;  %vm8945_vm11 = vcmask 523264  }
 0x29c   :  { %1402 = vperm.xlu1 %14191, %v523_v13   ;;  %1406 = vperm.xlu0 %14190, %v524_v12   ;;  %v578_v12 = vrot.slane %v569_v55, %v17002_v53  ;;  %v533_v13 = vld [vmem:[#allocation2 + $0x28] sm:$0xff] }
 0x29d   :  { %990 = vmatpush1.bf16.msra.mxu0 %v14281_v21  ;;  %v558_v21 = vmul.f32 %v549_v60, %v529_v11 }
 0x29e   :  { %991 = vmatprep.subr.bf16.mxu0 %v14282_v22  ;;  %v592_v22 = vadd.f32 %v574_v63, %v563_v5 }
 0x2a1   :  { %992 = vmatpush1.bf16.msra.mxu0 %v14284_v23  ;;  %v586_v23 = vadd.f32 %v574_v63, %v557_v6 }
 0x2a2   :  { %993 = vmatprep.subr.bf16.mxu0 %v14285_v24  ;;  %v593_v24 = vadd.f32 %v578_v12, %v564_v7 }
 0x2a5   :  { %994 = vmatpush1.bf16.msra.mxu0 %v14287_v25  ;;  %v594_v25 = vadd.f32 %v582_v17, %v565_v8 }
 0x2a6   :  { %995 = vmatprep.subr.bf16.mxu0 %v14288_v27 }
 0x2a9   :  { %996 = vmatpush1.bf16.msra.mxu0 %v14290_v28 }
 0x2aa   :  { %997 = vmatprep.subr.bf16.mxu0 %v14291_v29 }
 0x2ad   :  { %998 = vmatpush1.bf16.msra.mxu0 %v14293_v30  ;;  %v567_v30 = vmul.f32 %v549_v60, %v538_v9 }
 0x2ae   :  { %999 = vmatprep.subr.bf16.mxu0 %v14294_v31 }
 0x2af   :  { %v596_v45 = vadd.f32 %v578_v12, %v567_v30 }
 0x2b1   :  { %1000 = vmatpush1.bf16.msra.mxu0 %v14296_v32  ;;  %v588_v32 = vadd.f32 %v582_v17, %v559_v19 }
 0x2b2   :  { %1001 = vmatprep.subr.bf16.mxu0 %v14297_v33  ;;  %v562_v33 = vmul.f32 %v553_v61, %v533_v13 }
 0x2b4   :  { %v591_v55 = vadd.f32 %v582_v17, %v562_v33 }
 0x2b5   :  { %1002 = vmatpush1.bf16.msra.mxu0 %v14299_v34  ;;  %v561_v34 = vmul.f32 %v549_v60, %v532_v14 }
 0x2b6   :  { %1003 = vmatprep.subr.bf16.mxu0 %v14300_v35 }
 0x2b7   :  { %v590_v56 = vadd.f32 %v578_v12, %v561_v34 }
 0x2b9   :  { %1004 = vmatpush1.bf16.msra.mxu0 %v14302_v36 }
 0x2ba   :  { %1005 = vmatprep.subr.bf16.mxu0 %v14303_v37 }
 0x2bd   :  { %1006 = vmatpush1.bf16.msra.mxu0 %v14305_v38  ;;  %v587_v38 = vadd.f32 %v578_v12, %v558_v21 }
 0x2be   :  { %1007 = vmatprep.subr.bf16.mxu0 %v14306_v39  ;;  %v595_v39 = vadd.f32 %v574_v63, %v566_v15 }
 0x2c1   :  { %1008 = vmatpush1.bf16.msra.mxu0 %v14308_v41  ;;  %v589_v41 = vadd.f32 %v574_v63, %v560_v16 }
 0x2c2   :  { %1009 = vmatprep.subr.bf16.mxu0 %v14309_v44 }
 0x2c5   :  { %1010 = vmatpush1.bf16.msra.mxu0 %v14311_v46  ;;  %v597_v46 = vadd.f32 %v582_v17, %v568_v4 }
 0x2c6   :  { %1032 = vmatprep.subr.bf16.mxu0 %v977_v48 }
 0x306   :  { %v628_v27 = vpop.permute.xlu1 %627  ;;  %v618_v3 = vpop.permute.xlu0 %617 }
 0x307   :  { %v641_v28 = vmul.f32 %v628_v27, %v603_v1  ;;  %v643_v29 = vmul.f32 %v628_v27, %v611_v20  ;;  %v642_v31 = vmul.f32 %v628_v27, %v607_v2  ;;  %v635_v35 = vmul.f32 %v618_v3, %v603_v1 }
 0x308   :  { %v636_v36 = vmul.f32 %v618_v3, %v607_v2  ;;  %v637_v37 = vmul.f32 %v618_v3, %v611_v20 }
 0x309   :  { %v17022_v43 = vsub.f32 %v592_v22, %v641_v28  ;;  %v17024_v44 = vsub.f32 %v594_v25, %v643_v29  ;;  %v17026_v51 = vsub.f32 %v593_v24, %v642_v31  ;;  %v17030_v58 = vsub.f32 %v586_v23, %v635_v35 }
 0x30a   :  { %v633_v42 = vpop.permute.xlu1 %632  ;;  %v623_v48 = vpop.permute.xlu0 %622  ;;  %v17032_v59 = vsub.f32 %v588_v32, %v637_v37  ;;  %v17034_v61 = vsub.f32 %v587_v38, %v636_v36 }
 0x30b   :  { %v644_v60 = vmul.f32 %v633_v42, %v603_v1  ;;  %v646_v62 = vmul.f32 %v633_v42, %v611_v20  ;;  %v638_v63 = vmul.f32 %v623_v48, %v603_v1  ;;  %v639_v5 = vmul.f32 %v623_v48, %v607_v2 }
 0x30c   :  { %v640_v6 = vmul.f32 %v623_v48, %v611_v20  ;;  %v665_v8 = vrot.slane %v17022_v43, 7  ;;  %v1374_v9 = vrot.slane %v17022_v43, 1  ;;  %v1376_v10 = vrot.slane %v17024_v44, 1 }
 0x30d   :  { %v17041_v40 = vsub.f32 %v595_v39, %v644_v60  ;;  %v645_v12 = vmul.f32 %v633_v42, %v607_v2  ;;  %v17045_v13 = vsub.f32 %v597_v46, %v646_v62  ;;  %v650_v14 = vsub.f32 %v589_v41, %v638_v63  ;;  %v14316_v41 = vld [vmem:[#allocation19 + $0x4] ss:$8 sps:$4 sm:$0xff]  }
 0x30e   :  { %v17036_v7 = vpop.permute.xlu1 %693  ;;  %v17043_v11 = vpop.permute.xlu0 %688  ;;  %v17047_v15 = vsub.f32 %v591_v55, %v640_v6  ;;  %v659_v16 = vrot.slane %v17030_v58, 7  ;;  %v661_v17 = vrot.slane %v17032_v59, 7  ;;  %v1368_v19 = vrot.slane %v17030_v58, 1 }
 0x30f   :  { %v668_v1 = vrot.slane %v17041_v40, 7  ;;  %v670_v20 = vrot.slane %v17045_v13, 7  ;;  %v662_v21 = vrot.slane %v650_v14, 7  ;;  %v17055_v23 = vsub.f32 %v590_v56, %v639_v5 }
 0x310   :  { %v664_v22 = vrot.slane %v17047_v15, 7  ;;  %v1370_v24 = vrot.slane %v17032_v59, 1  ;;  %v1371_v27 = vrot.slane %v650_v14, 1  ;;  %v1373_v28 = vrot.slane %v17047_v15, 1 }
 0x311   :  { %v683_v25 = vsel %vm673_vm2, %v668_v1, %v659_v16  ;;  %v17065_v3 = vsub.f32 %v596_v45, %v645_v12  ;;  %v685_v30 = vsel %vm673_vm2, %v670_v20, %v661_v17  ;;  %v680_v4 = vsel %vm673_vm2, %v659_v16, %v662_v21 }
 0x312   :  { %v17057_v2 = vpop.permute.xlu1 %703  ;;  %v17063_v29 = vpop.permute.xlu0 %698  ;;  %v682_v31 = vsel %vm673_vm2, %v661_v17, %v664_v22  ;;  %v1384_v32 = vsel %vm1380_vm3, %v1371_v27, %v1374_v9  ;;  %v1386_v33 = vsel %vm1380_vm3, %v1373_v28, %v1376_v10  ;;  %v1387_v34 = vsel %vm1380_vm3, %v1368_v19, %v1371_v27 }
 0x313   :  { %v1389_v35 = vsel %vm1380_vm3, %v1370_v24, %v1373_v28  ;;  %v758_v36 = vpack.c.bf16 %v17055_v23, %v17034_v61  ;;  %v757_v37 = vpack.c.bf16 %v650_v14, %v17030_v58  ;;  %v761_v38 = vpack.c.bf16 %v17065_v3, %v17026_v51 }
 0x314   :  { %v974_v39 = vand.u32 %v12266_v57, %v16992_v47  ;;  %v667_v42 = vrot.slane %v17024_v44, 7  ;;  %v760_v46 = vpack.c.bf16 %v17041_v40, %v17022_v43  ;;  %v1375_v48 = vrot.slane %v17026_v51, 1 }
 0x315   :  { %1011 = vmatprep.mubr.bf16.mxu0 %v758_v36  ;;  %v1372_v55 = vrot.slane %v17055_v23, 1  ;;  %v17105_v60 = vmul.f32 %v17043_v11, %v683_v25  ;;  %v17108_v57 = vmul.f32 %v17036_v7, %v680_v4  ;;  %v674_v62 = vsel %vm673_vm2, %v665_v8, %v668_v1 }
 0x316   :  { %1012 = vmatmul.mubr.bf16.vlgmr.msra.gmra.mrb[0].mxu0 %v757_v37  ;;  %v677_v63 = vsel %vm673_vm2, %v662_v21, %v665_v8  ;;  %v1377_v5 = vrot.slane %v17041_v40, 1  ;;  %v1369_v6 = vrot.slane %v17034_v61, 1  ;;  %v1378_v14 = vrot.slane %v17065_v3, 1 }
 0x317   :  { %v17096_v45 = vpop.permute.xlu1 %1398  ;;  %v17102_v56 = vpop.permute.xlu0 %1394  ;;  %1021 = vmatprep.mubr.bf16.mxu0 %v761_v38  ;;  %1033 = vmatpush1.bf16.msra.mxu0 %v974_v39  ;;  %v718_v12 = vpack.c.bf16 %v17108_v57, %v17105_v60  ;;  %v17120_v16 = vmul.f32 %v17063_v29, %v677_v63  ;;  %v17123_v17 = vmul.f32 %v17057_v2, %v674_v62  ;;  %v1379_v27 = vrot.slane %v17045_v13, 1  ;;  %v14370_v60 = vld [vmem:[#allocation19 + $0x230] ss:$8 sps:$4 sm:$0xff]   ;;  %v14375_v57 = vld [vmem:[#allocation19 + $0x244] ss:$8 sps:$4 sm:$0xff]  }
 0x318   :  { %1262 = vmatprep.subr.bf16.mxu0 %v14316_v41  ;;  %v17126_v8 = vmul.f32 %v17043_v11, %v685_v30  ;;  %v17129_v40 = vmul.f32 %v17036_v7, %v682_v31  ;;  %v676_v1 = vsel %vm673_vm2, %v667_v42, %v670_v20  ;;  %v679_v21 = vsel %vm673_vm2, %v664_v22, %v667_v42 }
 0x319   :  { %v1385_v25 = vsel %vm1380_vm3, %v1372_v55, %v1375_v48  ;;  %v721_v30 = vpack.c.bf16 %v17123_v17, %v17120_v16  ;;  %v17143_v4 = vmul.f32 %v17063_v29, %v679_v21  ;;  %v17146_v31 = vmul.f32 %v17057_v2, %v676_v1  ;;  %v14378_v16 = vld [vmem:[#allocation19 + $0x254] ss:$8 sps:$4 sm:$0xff]   ;;  %v14376_v17 = vld [vmem:[#allocation19 + $0x250] ss:$8 sps:$4 sm:$0xff]  }
 0x31a   :  { %v720_v22 = vpack.c.bf16 %v17129_v40, %v17126_v8  ;;  %v1388_v36 = vsel %vm1380_vm3, %v1369_v6, %v1372_v55  ;;  %v17155_v37 = vmul.f32 %v17096_v45, %v1385_v25  ;;  %v17158_v38 = vmul.f32 %v17102_v56, %v1387_v34  ;;  %v14381_v8 = vld [vmem:[#allocation19 + $0x264] ss:$8 sps:$4 sm:$0xff]   ;;  %v14379_v40 = vld [vmem:[#allocation19 + $0x260] ss:$8 sps:$4 sm:$0xff]  }
 0x31b   :  { %v17138_v28 = vpop.permute.xlu1 %1402  ;;  %v17148_v20 = vpop.permute.xlu0 %1406  ;;  %v723_v39 = vpack.c.bf16 %v17146_v31, %v17143_v4  ;;  %v17163_v41 = vmul.f32 %v17102_v56, %v1388_v36  ;;  %v17166_v42 = vmul.f32 %v17096_v45, %v1384_v32  ;;  %v1382_v62 = vsel %vm1380_vm3, %v1375_v48, %v1378_v14  ;;  %v14385_v4 = vld [vmem:[#allocation19 + $0x280] ss:$8 sps:$4 sm:$0xff]   ;;  %v14390_v31 = vld [vmem:[#allocation19 + $0x294] ss:$8 sps:$4 sm:$0xff]  }
 0x31c   :  { %v1391_v55 = vsel %vm1380_vm3, %v1378_v14, %v1369_v6  ;;  %v17173_v63 = vmul.f32 %v17138_v28, %v1382_v62  ;;  %v1381_v34 = vsel %vm1380_vm3, %v1374_v9, %v1377_v5  ;;  %v1390_v32 = vsel %vm1380_vm3, %v1377_v5, %v1368_v19  ;;  %v14314_v62 = vld [vmem:[#allocation19] ss:$8 sps:$4 sm:$0xff]  }
 0x31d   :  { %v1422_v48 = vpack.c.bf16 %v17155_v37, %v17163_v41  ;;  %v1421_v6 = vpack.c.bf16 %v17166_v42, %v17158_v38  ;;  %v17188_v14 = vmul.f32 %v17148_v20, %v1391_v55  ;;  %v17191_v43 = vmul.f32 %v17138_v28, %v1381_v34  ;;  %v14319_v55 = vld [vmem:[#allocation19 + $0x14] ss:$8 sps:$4 sm:$0xff]   ;;  %v14393_v37 = vld [vmem:[#allocation19 + $0x2a4] ss:$8 sps:$4 sm:$0xff]   ;;  %v14391_v41 = vld [vmem:[#allocation19 + $0x2a0] ss:$8 sps:$4 sm:$0xff]  }
 0x31e   :  { %1022 = vmatmul.mubr.bf16.gmra.mrb[4].mxu0 %v760_v46  ;;  %v17195_v58 = vmul.f32 %v17148_v20, %v1390_v32  ;;  %v17198_v9 = vmul.f32 %v17102_v56, %v1389_v35  ;;  %v17201_v19 = vmul.f32 %v17096_v45, %v1386_v33  ;;  %v1383_v46 = vsel %vm1380_vm3, %v1376_v10, %v1379_v27  ;;  %v14331_v35 = vld [vmem:[#allocation19 + $0x54] ss:$8 sps:$4 sm:$0xff]   ;;  %v1752_v38 = vld [vmem:[#allocation20] sm:$0x3] }
 0x31f   :  { %1064 = vmatprep.mubr.bf16.mxu0 %v16594_v26  ;;  %v1425_v5 = vpack.c.bf16 %v17188_v14, %v17173_v63  ;;  %v1392_v1 = vsel %vm1380_vm3, %v1379_v27, %v1370_v24  ;;  %v17214_v21 = vmul.f32 %v17138_v28, %v1383_v46  ;;  %v669_v10 = vrot.slane %v17065_v3, 7 }
 0x320   :  { %v1424_v33 = vpack.c.bf16 %v17195_v58, %v17191_v43  ;;  %v17221_v25 = vmul.f32 %v17148_v20, %v1392_v1  ;;  %v663_v36 = vrot.slane %v17055_v23, 7  ;;  %v759_v27 = vpack.c.bf16 %v17047_v15, %v17032_v59  ;;  %v14317_v1 = vld [vmem:[#allocation19 + $0x10] ss:$8 sps:$4 sm:$0xff]   ;;  %v14320_v15 = vld [vmem:[#allocation19 + $0x20] ss:$8 sps:$4 sm:$0xff]  }
 0x321   :  { %v660_v34 = vrot.slane %v17034_v61, 7  ;;  %v762_v18 = vpack.c.bf16 %v17045_v13, %v17024_v44  ;;  %v14335_v44 = vld [vmem:[#allocation19 + $0x70] ss:$8 sps:$4 sm:$0xff]   ;;  %v14340_v13 = vld [vmem:[#allocation19 + $0x84] ss:$8 sps:$4 sm:$0xff]   ;;  %v1757_v42 = vrot.slane %v1752_v38, %v16999_v52  ;;  %v1761_v63 = vrot.slane %v1752_v38, %v17002_v53 }
 0x322   :  { %v14364_v23 = vld [vmem:[#allocation19 + $0x210] ss:$8 sps:$4 sm:$0xff]  }
 0x323   :  { %v681_v32 = vsel %vm673_vm2, %v660_v34, %v663_v36  ;;  %v684_v46 = vsel %vm673_vm2, %v669_v10, %v660_v34  ;;  %v14328_v34 = vld [vmem:[#allocation19 + $0x44] ss:$8 sps:$4 sm:$0xff]  }
 0x324   :  { %v707_v59 = vmul.f32 %v17043_v11, %v684_v46  ;;  %v710_v61 = vmul.f32 %v17036_v7, %v681_v32  ;;  %v14329_v32 = vld [vmem:[#allocation19 + $0x50] ss:$8 sps:$4 sm:$0xff]   ;;  %v14334_v46 = vld [vmem:[#allocation19 + $0x64] ss:$8 sps:$4 sm:$0xff]  }
 0x326   :  { %12268 = vmatmul.mubr.msk.bf16.vlgmr.msra.gmra.mrb[0].mxu0 %vm962_vm4, %v759_v27  ;;  %v14325_v27 = vld [vmem:[#allocation19 + $0x34] ss:$8 sps:$4 sm:$0xff]   ;;  %v719_v24 = vpack.c.bf16 %v710_v61, %v707_v59  ;;  %v14341_v59 = vld [vmem:[#allocation19 + $0x90] ss:$8 sps:$4 sm:$0xff]   ;;  %v14346_v61 = vld [vmem:[#allocation19 + $0xa4] ss:$8 sps:$4 sm:$0xff]  }
 0x327   :  { %1263 = vmatpush1.bf16.msra.mxu0 %v14314_v62  ;;  %1074 = vmatprep.mubr.bf16.mxu0 %v16594_v26  ;;  %v14323_v62 = vld [vmem:[#allocation19 + $0x30] ss:$8 sps:$4 sm:$0xff]  }
 0x328   :  { %1264 = vmatprep.subr.bf16.mxu0 %v14319_v55  ;;  %v14326_v55 = vld [vmem:[#allocation19 + $0x40] ss:$8 sps:$4 sm:$0xff]  }
 0x32b   :  { %1265 = vmatpush1.bf16.msra.mxu0 %v14317_v1  ;;  %v14337_v1 = vld [vmem:[#allocation19 + $0x74] ss:$8 sps:$4 sm:$0xff]  }
 0x32c   :  { %1266 = vmatprep.subr.bf16.mxu0 %v14322_v49  ;;  %v14332_v49 = vld [vmem:[#allocation19 + $0x60] ss:$8 sps:$4 sm:$0xff]  }
 0x32e   :  { %12269 = vmatmul.mubr.msk.bf16.gmra.mrb[4].mxu0 %vm962_vm4, %v762_v18  ;;  %v14338_v18 = vld [vmem:[#allocation19 + $0x80] ss:$8 sps:$4 sm:$0xff]  }
 0x32f   :  { %1267 = vmatpush1.bf16.msra.mxu0 %v14320_v15  ;;  %1294 = vmatprep.mubr.bf16.mxu0 %v719_v24  ;;  %v14343_v24 = vld [vmem:[#allocation19 + $0x94] ss:$8 sps:$4 sm:$0xff]   ;;  %v14344_v15 = vld [vmem:[#allocation19 + $0xa0] ss:$8 sps:$4 sm:$0xff]  }
 0x330   :  { %1268 = vmatprep.subr.bf16.mxu0 %v14325_v27  ;;  %v14347_v27 = vld [vmem:[#allocation19 + $0xb0] ss:$8 sps:$4 sm:$0xff]  }
 0x333   :  { %1269 = vmatpush1.bf16.msra.mxu0 %v14323_v62  ;;  %v14352_v62 = vld [vmem:[#allocation19 + $0xc4] ss:$8 sps:$4 sm:$0xff]  }
 0x334   :  { %1270 = vmatprep.subr.bf16.mxu0 %v14328_v34  ;;  %v18860_v34 = vmov 6  }
 0x335   :  { %14192 = vset.pattern.permute.xlu1 %v18860_v34  ;;  %14193 = vset.pattern.permute.xlu0 %v18860_v34 }
 0x337   :  { %1271 = vmatpush1.bf16.msra.mxu0 %v14326_v55  ;;  %v15814_v55 = vld [vmem:[%s18899_s21] sm:$0xff] }
 0x338   :  { %1272 = vmatprep.subr.bf16.mxu0 %v14331_v35  ;;  %v14349_v35 = vld [vmem:[#allocation19 + $0xb4] ss:$8 sps:$4 sm:$0xff]   ;;  %1979 = vperm.xlu1 %14192, %v15814_v55  }
 0x33b   :  { %1273 = vmatpush1.bf16.msra.mxu0 %v14329_v32  ;;  %v14350_v32 = vld [vmem:[#allocation19 + $0xc0] ss:$8 sps:$4 sm:$0xff]  }
 0x33c   :  { %1274 = vmatprep.subr.bf16.mxu0 %v14334_v46  ;;  %v14355_v46 = vld [vmem:[#allocation19 + $0xd4] ss:$8 sps:$4 sm:$0xff]  }
 0x33f   :  { %1275 = vmatpush1.bf16.msra.mxu0 %v14332_v49  ;;  %v15815_v49 = vld [vmem:[%s18899_s21 + $0x8] sm:$0xff] }
 0x340   :  { %1276 = vmatprep.subr.bf16.mxu0 %v14337_v1  ;;  %1983 = vperm.xlu0 %14193, %v15815_v49   ;;  %v15816_v1 = vld [vmem:[%s18899_s21 + $0x10] sm:$0xff] }
 0x341   :  { %1987 = vperm.xlu1 %14192, %v15816_v1   ;;  %v14366_v1 = vld [vmem:[#allocation19 + $0x214] ss:$8 sps:$4 sm:$0xff]  }
 0x343   :  { %1277 = vmatpush1.bf16.msra.mxu0 %v14335_v44  ;;  %v14353_v44 = vld [vmem:[#allocation19 + $0xd0] ss:$8 sps:$4 sm:$0xff]  }
 0x344   :  { %1278 = vmatprep.subr.bf16.mxu0 %v14340_v13  ;;  %v14358_v13 = vld [vmem:[#allocation19 + $0xe4] ss:$8 sps:$4 sm:$0xff]   ;;  %14194 = vset.pattern.permute.xlu0 %v18858_v0 }
 0x347   :  { %1279 = vmatpush1.bf16.msra.mxu0 %v14338_v18  ;;  %v756_v18 = vld [vmem:[#allocation19 + $0x100] sm:$0xff] }
 0x348   :  { %1280 = vmatprep.subr.bf16.mxu0 %v14343_v24  ;;  %v15817_v24 = vld [vmem:[%s18899_s21 + $0x18] sm:$0xff] }
 0x349   :  { %1991 = vperm.xlu1 %14192, %v15817_v24   ;;  %v14394_v24 = vld [vmem:[#allocation19 + $0x2b0] ss:$8 sps:$4 sm:$0xff]  }
 0x34b   :  { %1281 = vmatpush1.bf16.msra.mxu0 %v14341_v59  ;;  %v14356_v59 = vld [vmem:[#allocation19 + $0xe0] ss:$8 sps:$4 sm:$0xff]  }
 0x34c   :  { %1282 = vmatprep.subr.bf16.mxu0 %v14346_v61  ;;  %v666_v61 = vrot.slane %v17026_v51, 7 }
 0x34d   :  { %14195 = vset.pattern.permute.xlu1 %v18858_v0 }
 0x34e   :  { %v678_v55 = vsel %vm673_vm2, %v663_v36, %v666_v61  ;;  %v14369_v36 = vld [vmem:[#allocation19 + $0x224] ss:$8 sps:$4 sm:$0xff]  }
 0x34f   :  { %1283 = vmatpush1.bf16.msra.mxu0 %v14344_v15  ;;  %v14361_v15 = vld [vmem:[#allocation19 + $0xf4] ss:$8 sps:$4 sm:$0xff]  }
 0x350   :  { %1284 = vmatprep.subr.bf16.mxu0 %v14349_v35  ;;  %v12303_v35 = vcombine.high %v756_v18, %v756_v18 }
 0x352   :  { %v1260_v51 = vand.u32 %v12303_v35, %v16992_v47  ;;  %v14400_v35 = vld [vmem:[#allocation19 + $0x2d0] ss:$8 sps:$4 sm:$0xff]  }
 0x353   :  { %1285 = vmatpush1.bf16.msra.mxu0 %v14347_v27  ;;  %v14359_v27 = vld [vmem:[#allocation19 + $0xf0] ss:$8 sps:$4 sm:$0xff]  }
 0x354   :  { %1286 = vmatprep.subr.bf16.mxu0 %v14352_v62  ;;  %v675_v62 = vsel %vm673_vm2, %v666_v61, %v669_v10  ;;  %v14397_v61 = vld [vmem:[#allocation19 + $0x2c0] ss:$8 sps:$4 sm:$0xff]  }
 0x355   :  { %v716_v49 = vmul.f32 %v17057_v2, %v675_v62  ;;  %v14403_v62 = vld [vmem:[#allocation19 + $0x2e0] ss:$8 sps:$4 sm:$0xff]  }
 0x357   :  { %1287 = vmatpush1.bf16.msra.mxu0 %v14350_v32  ;;  %v12302_v32 = vcombine.low %v756_v18, %v756_v18  ;;  %v14387_v18 = vld [vmem:[#allocation19 + $0x284] ss:$8 sps:$4 sm:$0xff]  }
 0x358   :  { %1288 = vmatprep.subr.bf16.mxu0 %v14355_v46  ;;  %v713_v46 = vmul.f32 %v17063_v29, %v678_v55  ;;  %v14408_v55 = vld [vmem:[#allocation19 + $0x2f4] ss:$8 sps:$4 sm:$0xff]  }
 0x359   :  { %v1257_v3 = vand.u32 %v12302_v32, %v16992_v47  ;;  %v1460_v32 = vld [vmem:[#allocation19 + $0x310] sm:$0xff] }
 0x35a   :  { %v722_v10 = vpack.c.bf16 %v716_v49, %v713_v46  ;;  %v14411_v46 = vld [vmem:[#allocation19 + $0x304] ss:$8 sps:$4 sm:$0xff]   ;;  %v12339_v49 = vcombine.high %v1460_v32, %v1460_v32 }
 0x35b   :  { %1289 = vmatpush1.bf16.msra.mxu0 %v14353_v44  ;;  %v14367_v44 = vld [vmem:[#allocation19 + $0x220] ss:$8 sps:$4 sm:$0xff]  }
 0x35c   :  { %1290 = vmatprep.subr.bf16.mxu0 %v14358_v13  ;;  %v14372_v13 = vld [vmem:[#allocation19 + $0x234] ss:$8 sps:$4 sm:$0xff]  }
 0x35f   :  { %1291 = vmatpush1.bf16.msra.mxu0 %v14356_v59  ;;  %v14399_v59 = vld [vmem:[#allocation19 + $0x2c4] ss:$8 sps:$4 sm:$0xff]  }
 0x360   :  { %1292 = vmatprep.subr.bf16.mxu0 %v14361_v15  ;;  %v14402_v15 = vld [vmem:[#allocation19 + $0x2d4] ss:$8 sps:$4 sm:$0xff]  }
 0x363   :  { %1293 = vmatpush1.bf16.msra.mxu0 %v14359_v27  ;;  %v14405_v27 = vld [vmem:[#allocation19 + $0x2e4] ss:$8 sps:$4 sm:$0xff]  }
 0x364   :  { %1315 = vmatprep.subr.bf16.mxu0 %v1260_v51  ;;  %v14406_v51 = vld [vmem:[#allocation19 + $0x2f0] ss:$8 sps:$4 sm:$0xff]  }
 0x366   :  { %1295 = vmatmul.mubr.bf16.vlgmr.msra.gmra.mrb[0].mxu0 %v718_v12  ;;  %v14373_v12 = vld [vmem:[#allocation19 + $0x240] ss:$8 sps:$4 sm:$0xff]  }
 0x367   :  { %1304 = vmatprep.mubr.bf16.mxu0 %v722_v10  ;;  %1316 = vmatpush1.bf16.msra.mxu0 %v1257_v3  ;;  %v12338_v3 = vcombine.low %v1460_v32, %v1460_v32  ;;  %v1636_v10 = vand.u32 %v12339_v49, %v16992_v47 }
 0x368   :  { %1638 = vmatprep.subr.bf16.mxu0 %v14366_v1  ;;  %v14409_v1 = vld [vmem:[#allocation19 + $0x300] ss:$8 sps:$4 sm:$0xff]  }
 0x36e   :  { %1305 = vmatmul.mubr.bf16.gmra.mrb[4].mxu0 %v721_v30  ;;  %v14384_v30 = vld [vmem:[#allocation19 + $0x274] ss:$8 sps:$4 sm:$0xff]  }
 0x36f   :  { %1347 = vmatprep.mubr.bf16.mxu0 %v16594_v26 }
 0x376   :  { %12304 = vmatmul.mubr.msk.bf16.vlgmr.msra.gmra.mrb[0].mxu0 %vm962_vm4, %v720_v22  ;;  %v14382_v22 = vld [vmem:[#allocation19 + $0x270] ss:$8 sps:$4 sm:$0xff]  }
 0x377   :  { %1639 = vmatpush1.bf16.msra.mxu0 %v14364_v23  ;;  %1357 = vmatprep.mubr.bf16.mxu0 %v16594_v26  ;;  %v1633_v23 = vand.u32 %v12338_v3, %v16992_v47  ;;  %v18901_v47 = vpack.c.bf16 %v17221_v25, %v17214_v21 }
 0x378   :  { %1640 = vmatprep.subr.bf16.mxu0 %v14369_v36  ;;  %v18900_v36 = vpack.c.bf16 %v17201_v19, %v17198_v9 }
 0x37b   :  { %1641 = vmatpush1.bf16.msra.mxu0 %v14367_v44 }
 0x37c   :  { %1642 = vmatprep.subr.bf16.mxu0 %v14372_v13 }
 0x37e   :  { %12305 = vmatmul.mubr.msk.bf16.gmra.mrb[4].mxu0 %vm962_vm4, %v723_v39  ;;  %v14388_v39 = vld [vmem:[#allocation19 + $0x290] ss:$8 sps:$4 sm:$0xff]  }
 0x37f   :  { %1643 = vmatpush1.bf16.msra.mxu0 %v14370_v60  ;;  %1670 = vmatprep.mubr.bf16.mxu0 %v1422_v48  ;;  %v14396_v48 = vld [vmem:[#allocation19 + $0x2b4] ss:$8 sps:$4 sm:$0xff]  }
 0x380   :  { %1644 = vmatprep.subr.bf16.mxu0 %v14375_v57 }
 0x383   :  { %1645 = vmatpush1.bf16.msra.mxu0 %v14373_v12 }
 0x384   :  { %1646 = vmatprep.subr.bf16.mxu0 %v14378_v16 }
 0x387   :  { %1647 = vmatpush1.bf16.msra.mxu0 %v14376_v17 }
 0x388   :  { %1648 = vmatprep.subr.bf16.mxu0 %v14381_v8 }
 0x38b   :  { %1649 = vmatpush1.bf16.msra.mxu0 %v14379_v40 }
 0x38c   :  { %1650 = vmatprep.subr.bf16.mxu0 %v14384_v30 }
 0x38f   :  { %1651 = vmatpush1.bf16.msra.mxu0 %v14382_v22 }
 0x390   :  { %1652 = vmatprep.subr.bf16.mxu0 %v14387_v18 }
 0x393   :  { %1653 = vmatpush1.bf16.msra.mxu0 %v14385_v4 }
 0x394   :  { %1654 = vmatprep.subr.bf16.mxu0 %v14390_v31 }
 0x397   :  { %1655 = vmatpush1.bf16.msra.mxu0 %v14388_v39 }
 0x398   :  { %1656 = vmatprep.subr.bf16.mxu0 %v14393_v37 }
 0x39b   :  { %1657 = vmatpush1.bf16.msra.mxu0 %v14391_v41 }
 0x39c   :  { %1658 = vmatprep.subr.bf16.mxu0 %v14396_v48 }
 0x39f   :  { %1659 = vmatpush1.bf16.msra.mxu0 %v14394_v24 }
 0x3a0   :  { %1660 = vmatprep.subr.bf16.mxu0 %v14399_v59 }
 0x3a3   :  { %1661 = vmatpush1.bf16.msra.mxu0 %v14397_v61 }
 0x3a4   :  { %1662 = vmatprep.subr.bf16.mxu0 %v14402_v15 }
 0x3a7   :  { %1663 = vmatpush1.bf16.msra.mxu0 %v14400_v35 }
 0x3a8   :  { %1664 = vmatprep.subr.bf16.mxu0 %v14405_v27 }
 0x3ab   :  { %1665 = vmatpush1.bf16.msra.mxu0 %v14403_v62 }
 0x3ac   :  { %1666 = vmatprep.subr.bf16.mxu0 %v14408_v55 }
 0x3af   :  { %1667 = vmatpush1.bf16.msra.mxu0 %v14406_v51 }
 0x3b0   :  { %1668 = vmatprep.subr.bf16.mxu0 %v14411_v46 }
 0x3b3   :  { %1669 = vmatpush1.bf16.msra.mxu0 %v14409_v1 }
 0x3b4   :  { %1691 = vmatprep.subr.bf16.mxu0 %v1636_v10 }
 0x3b6   :  { %1671 = vmatmul.mubr.bf16.vlgmr.msra.gmra.mrb[0].mxu0 %v1421_v6 }
 0x3b7   :  { %1680 = vmatprep.mubr.bf16.mxu0 %v1425_v5  ;;  %1692 = vmatpush1.bf16.msra.mxu0 %v1633_v23  ;;  %v1980_v21 = vpop.permute.xlu1 %1979 }
 0x3be   :  { %1681 = vmatmul.mubr.bf16.gmra.mrb[4].mxu0 %v1424_v33 }
 0x3bf   :  { %1723 = vmatprep.mubr.bf16.mxu0 %v16594_v26 }
 0x3c0   :  { %v1988_v51 = vpop.permute.xlu1 %1987 }
 0x3c6   :  { %12340 = vmatmul.mubr.msk.bf16.vlgmr.msra.gmra.mrb[0].mxu0 %vm962_vm4, %v18900_v36 }
 0x3c7   :  { %1733 = vmatprep.mubr.bf16.mxu0 %v16594_v26 }
 0x3ce   :  { %12341 = vmatmul.mubr.msk.bf16.gmra.mrb[4].mxu0 %vm962_vm4, %v18901_v47 }
 0x499   :  { %v1725_v6 = vpop.f32.mrb[0].mxu0 }
 0x49a   :  { %v1764_v14 = vadd.f32 %v1757_v42, %v1725_v6  ;;  %v1727_v43 = vpop.f32.mrb[1].mxu0 }
 0x49b   :  { %v1765_v58 = vadd.f32 %v1761_v63, %v1727_v43  ;;  %v1729_v5 = vpop.f32.mrb[2].mxu0 }
 0x49c   :  { %v17308_v9 = vmax.f32 %v1764_v14, 0.0  ;;  %v1766_v19 = vadd.f32 %v1757_v42, %v1729_v5  ;;  %v1731_v33 = vpop.f32.mrb[3].mxu0  ;;  %v1984_v5 = vpop.permute.xlu0 %1983 }
 0x49d   :  { %v17310_v44 = vmax.f32 %v1765_v58, 0.0  ;;  %v1767_v13 = vadd.f32 %v1761_v63, %v1731_v33 }
 0x49e   :  { %v1937_v25 = vrot.slane %v17308_v9, 1  ;;  %v17314_v60 = vmax.f32 %v1766_v19, 0.0  ;;  %v1961_v57 = vrot.slane %v17308_v9, 2  ;;  %v1913_v12 = vrot.slane %v17308_v9, 7 }
 0x49f   :  { %v1938_v16 = vrot.slane %v17310_v44, 1  ;;  %v17319_v17 = vmax.f32 %v1767_v13, 0.0  ;;  %v1962_v8 = vrot.slane %v17310_v44, 2  ;;  %v1914_v40 = vrot.slane %v17310_v44, 7 }
 0x4a0   :  { %v1939_v30 = vrot.slane %v17314_v60, 1  ;;  %v1963_v22 = vrot.slane %v17314_v60, 2  ;;  %v1915_v18 = vrot.slane %v17314_v60, 7  ;;  %v2004_v4 = vpack.c.bf16 %v17314_v60, %v17308_v9  ;;  %v14417_v9 = vld [vmem:[%s18902_s12 + $0x4] ss:$8 sps:$4 sm:$0xff]  }
 0x4a1   :  { %v1940_v31 = vrot.slane %v17319_v17, 1  ;;  %v1735_v39 = vpop.f32.mrb[4].mxu0  ;;  %v1964_v37 = vrot.slane %v17319_v17, 2  ;;  %v1916_v41 = vrot.slane %v17319_v17, 7  ;;  %v2005_v48 = vpack.c.bf16 %v17319_v17, %v17310_v44  ;;  %v14415_v44 = vld [vmem:[%s18902_s12] ss:$8 sps:$4 sm:$0xff]  }
 0x4a2   :  { %v1768_v24 = vadd.f32 %v1757_v42, %v1735_v39  ;;  %v1974_v59 = vsel %vm1969_vm5, %v1961_v57, %v1963_v22  ;;  %v1737_v61 = vpop.f32.mrb[5].mxu0  ;;  %v1925_v15 = vsel %vm673_vm2, %v1913_v12, %v1915_v18  ;;  %v17347_v35 = vsel %vm1380_vm3, %v1937_v25, %v1939_v30  ;;  %v14418_v60 = vld [vmem:[%s18902_s12 + $0x10] ss:$8 sps:$4 sm:$0xff]   ;;  %v14423_v17 = vld [vmem:[%s18902_s12 + $0x24] ss:$8 sps:$4 sm:$0xff]  }
 0x4a3   :  { %v1975_v27 = vsel %vm1969_vm5, %v1962_v8, %v1964_v37  ;;  %v17351_v62 = vmul.f32 %v1980_v21, %v1974_v59  ;;  %v1769_v55 = vadd.f32 %v1761_v63, %v1737_v61  ;;  %v1739_v32 = vpop.f32.mrb[6].mxu0  ;;  %v1926_v46 = vsel %vm673_vm2, %v1914_v40, %v1916_v41 }
 0x4a4   :  { %v17355_v49 = vmax.f32 %v1768_v24, 0.0  ;;  %v17357_v1 = vmul.f32 %v1980_v21, %v1975_v27  ;;  %v1770_v3 = vadd.f32 %v1757_v42, %v1739_v32  ;;  %v1741_v10 = vpop.f32.mrb[7].mxu0  ;;  %v1932_v23 = vmul.f32 %v1926_v46, %v17036_v7  ;;  %v1992_v32 = vpop.permute.xlu1 %1991 }
 0x4a5   :  { %v17360_v36 = vmax.f32 %v1769_v55, 0.0  ;;  %v1771_v47 = vadd.f32 %v1761_v63, %v1741_v10  ;;  %v1931_v38 = vmul.f32 %v1925_v15, %v17036_v7  ;;  %v1950_v6 = vsel %vm1380_vm3, %v1938_v16, %v1940_v31 }
 0x4a6   :  { %v1917_v14 = vrot.slane %v17355_v49, 7  ;;  %v1941_v43 = vrot.slane %v17355_v49, 1  ;;  %v17371_v42 = vmax.f32 %v1770_v3, 0.0  ;;  %v1965_v58 = vrot.slane %v17355_v49, 2 }
 0x4a7   :  { %v1918_v63 = vrot.slane %v17360_v36, 7  ;;  %v1942_v19 = vrot.slane %v17360_v36, 1  ;;  %v17376_v33 = vmax.f32 %v1771_v47, 0.0  ;;  %v1966_v13 = vrot.slane %v17360_v36, 2 }
 0x4a8   :  { %v1943_v21 = vrot.slane %v17371_v42, 1  ;;  %v1967_v39 = vrot.slane %v17371_v42, 2  ;;  %v1972_v24 = vsel %vm1969_vm5, %v1963_v22, %v1965_v58  ;;  %v1919_v59 = vrot.slane %v17371_v42, 7 }
 0x4a9   :  { %v1944_v61 = vrot.slane %v17376_v33, 1  ;;  %v1968_v15 = vrot.slane %v17376_v33, 2  ;;  %v1973_v27 = vsel %vm1969_vm5, %v1964_v37, %v1966_v13  ;;  %v17388_v55 = vmul.f32 %v1984_v5, %v1972_v24 }
 0x4aa   :  { %v1970_v46 = vsel %vm1969_vm5, %v1965_v58, %v1967_v39  ;;  %v17392_v3 = vmul.f32 %v1984_v5, %v1973_v27  ;;  %v1976_v22 = vsel %vm1969_vm5, %v1967_v39, %v1961_v57  ;;  %v1920_v10 = vrot.slane %v17376_v33, 7 }
 0x4ab   :  { %v1971_v47 = vsel %vm1969_vm5, %v1966_v13, %v1968_v15  ;;  %v17399_v0 = vmul.f32 %v1988_v51, %v1970_v46  ;;  %v2008_v37 = vpack.c.bf16 %v17388_v55, %v17351_v62  ;;  %v1977_v24 = vsel %vm1969_vm5, %v1968_v15, %v1962_v8  ;;  %v14424_v62 = vld [vmem:[%s18902_s12 + $0x30] ss:$8 sps:$4 sm:$0xff]   ;;  %v14432_v55 = vld [vmem:[%s18902_s12 + $0x54] ss:$8 sps:$4 sm:$0xff]  }
 0x4ac   :  { %v17405_v34 = vmul.f32 %v1988_v51, %v1971_v47  ;;  %v2009_v58 = vpack.c.bf16 %v17392_v3, %v17357_v1  ;;  %v17409_v5 = vmul.f32 %v1992_v32, %v1976_v22  ;;  %v2001_v57 = vmul.f32 %v1992_v32, %v1977_v24 }
 0x4ad   :  { %v1928_v39 = vsel %vm673_vm2, %v1920_v10, %v1914_v40  ;;  %v1927_v13 = vsel %vm673_vm2, %v1919_v59, %v1913_v12  ;;  %v1922_v27 = vsel %vm673_vm2, %v1918_v63, %v1920_v10  ;;  %v1924_v8 = vsel %vm673_vm2, %v1916_v41, %v1918_v63 }
 0x4ae   :  { %v2016_v51 = vpack.c.bf16 %v17409_v5, %v17399_v0  ;;  %v2017_v1 = vpack.c.bf16 %v2001_v57, %v17405_v34  ;;  %v1930_v15 = vmul.f32 %v1928_v39, %v17043_v11  ;;  %v1929_v40 = vmul.f32 %v1927_v13, %v17043_v11  ;;  %v14433_v13 = vld [vmem:[%s18902_s12 + $0x60] ss:$8 sps:$4 sm:$0xff]  }
 0x4af   :  { %v1934_v32 = vmul.f32 %v1924_v8, %v17063_v29  ;;  %v1936_v46 = vmul.f32 %v1922_v27, %v17057_v2  ;;  %v1921_v12 = vsel %vm673_vm2, %v1917_v14, %v1919_v59  ;;  %v1923_v41 = vsel %vm673_vm2, %v1915_v18, %v1917_v14  ;;  %v14438_v27 = vld [vmem:[%s18902_s12 + $0x74] ss:$8 sps:$4 sm:$0xff]   ;;  %v14436_v8 = vld [vmem:[%s18902_s12 + $0x70] ss:$8 sps:$4 sm:$0xff]  }
 0x4b0   :  { %v2003_v63 = vpack.c.bf16 %v1932_v23, %v1930_v15  ;;  %v2002_v0 = vpack.c.bf16 %v1931_v38, %v1929_v40  ;;  %v1933_v34 = vmul.f32 %v1923_v41, %v17063_v29  ;;  %v1935_v3 = vmul.f32 %v1921_v12, %v17057_v2  ;;  %v14444_v15 = vld [vmem:[%s18902_s12 + $0x94] ss:$8 sps:$4 sm:$0xff]   ;;  %v14442_v40 = vld [vmem:[%s18902_s12 + $0x90] ss:$8 sps:$4 sm:$0xff]  }
 0x4b1   :  { %v2011_v22 = vpack.c.bf16 %v1936_v46, %v1934_v32  ;;  %v2013_v10 = vpack.c.bf16 %v17376_v33, %v17360_v36  ;;  %v2012_v47 = vpack.c.bf16 %v17371_v42, %v17355_v49  ;;  %v1948_v59 = vsel %vm1380_vm3, %v1940_v31, %v1942_v19  ;;  %v14447_v32 = vld [vmem:[%s18902_s12 + $0xa4] ss:$8 sps:$4 sm:$0xff]   ;;  %v14445_v46 = vld [vmem:[%s18902_s12 + $0xa0] ss:$8 sps:$4 sm:$0xff]   ;;  %v14450_v12 = vld [vmem:[%s18902_s12 + $0xb4] ss:$8 sps:$4 sm:$0xff]  }
 0x4b2   :  { %2027 = vmatprep.subr.bf16.mxu1 %v2003_v63  ;;  %v2010_v18 = vpack.c.bf16 %v1935_v3, %v1933_v34  ;;  %v1954_v23 = vmul.f32 %v1950_v6, %v17102_v56  ;;  %v1956_v38 = vmul.f32 %v1948_v59, %v17096_v45  ;;  %v1947_v36 = vsel %vm1380_vm3, %v1939_v30, %v1941_v43  ;;  %v14448_v41 = vld [vmem:[%s18902_s12 + $0xb0] ss:$8 sps:$4 sm:$0xff]   ;;  %v14453_v63 = vld [vmem:[%s18902_s12 + $0xc4] ss:$8 sps:$4 sm:$0xff]   ;;  %v14456_v34 = vld [vmem:[%s18902_s12 + $0xd4] ss:$8 sps:$4 sm:$0xff]  }
 0x4b3   :  { %2028 = vmatpush1.bf16.msra.mxu1 %v2002_v0  ;;  %v1953_v14 = vmul.f32 %v17347_v35, %v17102_v56  ;;  %v1955_v42 = vmul.f32 %v1947_v36, %v17096_v45  ;;  %v1946_v31 = vsel %vm1380_vm3, %v1942_v19, %v1944_v61  ;;  %v1952_v6 = vsel %vm1380_vm3, %v1944_v61, %v1938_v16  ;;  %v14414_v16 = vld [vmem:[#allocation16] sm:$0xff]   ;;  %v14454_v3 = vld [vmem:[%s18902_s12 + $0xd0] ss:$8 sps:$4 sm:$0xff]   ;;  %v14462_v59 = vld [vmem:[%s18902_s12 + $0xf4] ss:$8 sps:$4 sm:$0xff]  }
 0x4b4   :  { %2029 = vmatprep.subr.bf16.mxu1 %v2011_v22  ;;  %v2007_v33 = vpack.c.bf16 %v1956_v38, %v1954_v23  ;;  %v1958_v24 = vmul.f32 %v1946_v31, %v17138_v28  ;;  %v1960_v30 = vmul.f32 %v1952_v6, %v17148_v20  ;;  %v1945_v35 = vsel %vm1380_vm3, %v1941_v43, %v1943_v21  ;;  %v14429_v43 = vld [vmem:[%s18902_s12 + $0x44] ss:$8 sps:$4 sm:$0xff]   ;;  %v14451_v0 = vld [vmem:[%s18902_s12 + $0xc0] ss:$8 sps:$4 sm:$0xff]  }
 0x4b5   :  { %v2006_v5 = vpack.c.bf16 %v1955_v42, %v1953_v14  ;;  %v1951_v19 = vsel %vm1380_vm3, %v1943_v21, %v1937_v25  ;;  %v1957_v57 = vmul.f32 %v1945_v35, %v17138_v28  ;;  %v14420_v25 = vld [vmem:[%s18902_s12 + $0x14] ss:$8 sps:$4 sm:$0xff]   ;;  %v14427_v21 = vld [vmem:[%s18902_s12 + $0x40] ss:$8 sps:$4 sm:$0xff]   ;;  %v14459_v22 = vld [vmem:[%s18902_s12 + $0xe4] ss:$8 sps:$4 sm:$0xff]  }
 0x4b6   :  { %v2015_v61 = vpack.c.bf16 %v1960_v30, %v1958_v24  ;;  %v1959_v39 = vmul.f32 %v1951_v19, %v17148_v20  ;;  %v14463_v6 = vld [vmem:[%s18902_s12 + $0x100] ss:$8 sps:$4 sm:$0xff]   ;;  %v14466_v24 = vld [vmem:[%s18902_s12 + $0x110] ss:$8 sps:$4 sm:$0xff]   ;;  %v14471_v35 = vld [vmem:[%s18902_s12 + $0x124] ss:$8 sps:$4 sm:$0xff]  }
 0x4b7   :  { %2030 = vmatpush1.bf16.msra.mxu1 %v2010_v18  ;;  %v14465_v18 = vld [vmem:[%s18902_s12 + $0x104] ss:$8 sps:$4 sm:$0xff]  }
 0x4b8   :  { %2070 = vmatprep.subr.bf16.mxu1 %v2005_v48  ;;  %v2014_v49 = vpack.c.bf16 %v1959_v39, %v1957_v57  ;;  %v14426_v48 = vld [vmem:[%s18902_s12 + $0x34] ss:$8 sps:$4 sm:$0xff]  }
 0x4ba   :  { %12343 = vmatmul.mubr.msk.bf16.vlgmr.msra.gmra.mrb[0].mxu1 %vm2023_vm6, %v14414_v16 }
 0x4bb   :  { %2071 = vmatpush1.bf16.msra.mxu1 %v2004_v4  ;;  %2102 = vmatprep.mubr.bf16.mxu1 %v16594_v26  ;;  %v14421_v4 = vld [vmem:[%s18902_s12 + $0x20] ss:$8 sps:$4 sm:$0xff]  }
 0x4bc   :  { %2072 = vmatprep.subr.bf16.mxu1 %v2013_v10  ;;  %v14457_v10 = vld [vmem:[%s18902_s12 + $0xe0] ss:$8 sps:$4 sm:$0xff]  }
 0x4bf   :  { %2073 = vmatpush1.bf16.msra.mxu1 %v2012_v47  ;;  %v14460_v47 = vld [vmem:[%s18902_s12 + $0xf0] ss:$8 sps:$4 sm:$0xff]  }
 0x4c0   :  { %2113 = vmatprep.subr.bf16.mxu1 %v2007_v33  ;;  %v14468_v33 = vld [vmem:[%s18902_s12 + $0x114] ss:$8 sps:$4 sm:$0xff]  }
 0x4c2   :  { %12344 = vmatmul.mubr.msk.bf16.vlgmr.msra.gmra.mrb[4].mxu1 %vm2023_vm6, %v14414_v16 }
 0x4c3   :  { %2114 = vmatpush1.bf16.msra.mxu1 %v2006_v5  ;;  %2145 = vmatprep.mubr.bf16.mxu1 %v16594_v26 }
 0x4c4   :  { %2115 = vmatprep.subr.bf16.mxu1 %v2015_v61  ;;  %v14469_v61 = vld [vmem:[%s18902_s12 + $0x120] ss:$8 sps:$4 sm:$0xff]  }
 0x4c7   :  { %2116 = vmatpush1.bf16.msra.mxu1 %v2014_v49  ;;  %v14474_v49 = vld [vmem:[%s18902_s12 + $0x134] ss:$8 sps:$4 sm:$0xff]  }
 0x4c8   :  { %2156 = vmatprep.subr.bf16.mxu1 %v2009_v58  ;;  %v14435_v58 = vld [vmem:[%s18902_s12 + $0x64] ss:$8 sps:$4 sm:$0xff]  }
 0x4ca   :  { %12345 = vmatmul.mubr.msk.bf16.vlgmr.msra.gmra.mrb[8].mxu1 %vm2023_vm6, %v14414_v16 }
 0x4cb   :  { %2157 = vmatpush1.bf16.msra.mxu1 %v2008_v37  ;;  %2188 = vmatprep.mubr.bf16.mxu1 %v16594_v26  ;;  %v14430_v37 = vld [vmem:[%s18902_s12 + $0x50] ss:$8 sps:$4 sm:$0xff]  }
 0x4cc   :  { %2158 = vmatprep.subr.bf16.mxu1 %v2017_v1  ;;  %v14439_v1 = vld [vmem:[%s18902_s12 + $0x80] ss:$8 sps:$4 sm:$0xff]  }
 0x4cf   :  { %2159 = vmatpush1.bf16.msra.mxu1 %v2016_v51  ;;  %v14441_v51 = vld [vmem:[%s18902_s12 + $0x84] ss:$8 sps:$4 sm:$0xff]  }
 0x4d0   :  { %2866 = vmatprep.subr.bf16.mxu1 %v14417_v9  ;;  %v14472_v9 = vld [vmem:[%s18902_s12 + $0x130] ss:$8 sps:$4 sm:$0xff]  }
 0x4d2   :  { %12346 = vmatmul.mubr.msk.bf16.vlgmr.msra.gmra.mrb[12].mxu1 %vm2023_vm6, %v14414_v16 }
 0x4d3   :  { %2867 = vmatpush1.bf16.msra.mxu1 %v14415_v44 }
 0x4d4   :  { %2868 = vmatprep.subr.bf16.mxu1 %v14420_v25  ;;  %v14477_v25 = vld [vmem:[%s18902_s12 + $0x144] ss:$8 sps:$4 sm:$0xff]  }
 0x4d7   :  { %2869 = vmatpush1.bf16.msra.mxu1 %v14418_v60 }
 0x4d8   :  { %2870 = vmatprep.subr.bf16.mxu1 %v14423_v17 }
 0x4db   :  { %2871 = vmatpush1.bf16.msra.mxu1 %v14421_v4 }
 0x4dc   :  { %2872 = vmatprep.subr.bf16.mxu1 %v14426_v48 }
 0x4df   :  { %2873 = vmatpush1.bf16.msra.mxu1 %v14424_v62  ;;  %v14475_v62 = vld [vmem:[%s18902_s12 + $0x140] ss:$8 sps:$4 sm:$0xff]  }
 0x4e0   :  { %2874 = vmatprep.subr.bf16.mxu1 %v14429_v43 }
 0x4e3   :  { %2875 = vmatpush1.bf16.msra.mxu1 %v14427_v21  ;;  %v14480_v21 = vld [vmem:[%s18902_s12 + $0x154] ss:$8 sps:$4 sm:$0xff]  }
 0x4e4   :  { %2876 = vmatprep.subr.bf16.mxu1 %v14432_v55  ;;  %v14478_v55 = vld [vmem:[%s18902_s12 + $0x150] ss:$8 sps:$4 sm:$0xff]  }
 0x4e7   :  { %2877 = vmatpush1.bf16.msra.mxu1 %v14430_v37 }
 0x4e8   :  { %2878 = vmatprep.subr.bf16.mxu1 %v14435_v58  ;;  %v14483_v58 = vld [vmem:[%s18902_s12 + $0x164] ss:$8 sps:$4 sm:$0xff]  }
 0x4eb   :  { %2879 = vmatpush1.bf16.msra.mxu1 %v14433_v13 }
 0x4ec   :  { %2880 = vmatprep.subr.bf16.mxu1 %v14438_v27 }
 0x4ef   :  { %2881 = vmatpush1.bf16.msra.mxu1 %v14436_v8 }
 0x4f0   :  { %2882 = vmatprep.subr.bf16.mxu1 %v14441_v51 }
 0x4f3   :  { %2883 = vmatpush1.bf16.msra.mxu1 %v14439_v1  ;;  %v14481_v1 = vld [vmem:[%s18902_s12 + $0x160] ss:$8 sps:$4 sm:$0xff]  }
 0x4f4   :  { %2884 = vmatprep.subr.bf16.mxu1 %v14444_v15 }
 0x4f7   :  { %2885 = vmatpush1.bf16.msra.mxu1 %v14442_v40  ;;  %v14486_v40 = vld [vmem:[%s18902_s12 + $0x174] ss:$8 sps:$4 sm:$0xff]  }
 0x4f8   :  { %2886 = vmatprep.subr.bf16.mxu1 %v14447_v32  ;;  %v14484_v32 = vld [vmem:[%s18902_s12 + $0x170] ss:$8 sps:$4 sm:$0xff]  }
 0x4fb   :  { %2887 = vmatpush1.bf16.msra.mxu1 %v14445_v46  ;;  %v14489_v46 = vld [vmem:[%s18902_s12 + $0x184] ss:$8 sps:$4 sm:$0xff]  }
 0x4fc   :  { %2888 = vmatprep.subr.bf16.mxu1 %v14450_v12  ;;  %v14487_v12 = vld [vmem:[%s18902_s12 + $0x180] ss:$8 sps:$4 sm:$0xff]  }
 0x4ff   :  { %2889 = vmatpush1.bf16.msra.mxu1 %v14448_v41  ;;  %v14492_v41 = vld [vmem:[%s18902_s12 + $0x194] ss:$8 sps:$4 sm:$0xff]  }
 0x500   :  { %2890 = vmatprep.subr.bf16.mxu1 %v14453_v63  ;;  %v14490_v63 = vld [vmem:[%s18902_s12 + $0x190] ss:$8 sps:$4 sm:$0xff]  }
 0x503   :  { %2891 = vmatpush1.bf16.msra.mxu1 %v14451_v0  ;;  %v14495_v0 = vld [vmem:[%s18902_s12 + $0x1a4] ss:$8 sps:$4 sm:$0xff]  }
 0x504   :  { %2892 = vmatprep.subr.bf16.mxu1 %v14456_v34  ;;  %v14493_v34 = vld [vmem:[%s18902_s12 + $0x1a0] ss:$8 sps:$4 sm:$0xff]  }
 0x507   :  { %2893 = vmatpush1.bf16.msra.mxu1 %v14454_v3  ;;  %v14498_v3 = vld [vmem:[%s18902_s12 + $0x1b4] ss:$8 sps:$4 sm:$0xff]  }
 0x508   :  { %2894 = vmatprep.subr.bf16.mxu1 %v14459_v22  ;;  %v14496_v22 = vld [vmem:[%s18902_s12 + $0x1b0] ss:$8 sps:$4 sm:$0xff]  }
 0x50b   :  { %2895 = vmatpush1.bf16.msra.mxu1 %v14457_v10  ;;  %v14501_v10 = vld [vmem:[%s18902_s12 + $0x1c4] ss:$8 sps:$4 sm:$0xff]  }
 0x50c   :  { %2896 = vmatprep.subr.bf16.mxu1 %v14462_v59  ;;  %v14504_v59 = vld [vmem:[%s18902_s12 + $0x1d4] ss:$8 sps:$4 sm:$0xff]  }
 0x50f   :  { %2897 = vmatpush1.bf16.msra.mxu1 %v14460_v47  ;;  %v14499_v47 = vld [vmem:[%s18902_s12 + $0x1c0] ss:$8 sps:$4 sm:$0xff]  }
 0x510   :  { %2909 = vmatprep.subr.bf16.mxu1 %v14465_v18  ;;  %v14502_v18 = vld [vmem:[%s18902_s12 + $0x1d0] ss:$8 sps:$4 sm:$0xff]  }
 0x58d   :  { %v2061_v23 = vpop.f32.mrb[0].mxu1 }
 0x58e   :  { %v2063_v38 = vpop.f32.mrb[1].mxu1 }
 0x58f   :  { %v2065_v36 = vpop.f32.mrb[2].mxu1 }
 0x590   :  { %v2199_v14 = vpack.c.bf16 %v2065_v36, %v2061_v23  ;;  %v2067_v42 = vpop.f32.mrb[3].mxu1  ;;  %v14507_v23 = vld [vmem:[%s18902_s12 + $0x1e4] ss:$8 sps:$4 sm:$0xff]   ;;  %v14510_v36 = vld [vmem:[%s18902_s12 + $0x1f4] ss:$8 sps:$4 sm:$0xff]  }
 0x591   :  { %v2200_v31 = vpack.c.bf16 %v2067_v42, %v2063_v38  ;;  %v14505_v38 = vld [vmem:[%s18902_s12 + $0x1e0] ss:$8 sps:$4 sm:$0xff]   ;;  %v14513_v42 = vld [vmem:[%s18902_s12 + $0x204] ss:$8 sps:$4 sm:$0xff]  }
 0x593   :  { %2898 = vmatprep.mubr.bf16.mxu1 %v2200_v31  ;;  %v14511_v31 = vld [vmem:[%s18902_s12 + $0x200] ss:$8 sps:$4 sm:$0xff]  }
 0x594   :  { %2899 = vmatmul.mubr.bf16.vlgmr.msra.gmra.mrb[16].mxu1 %v2199_v14  ;;  %v14508_v14 = vld [vmem:[%s18902_s12 + $0x1f0] ss:$8 sps:$4 sm:$0xff]  }
 0x595   :  { %2910 = vmatpush1.bf16.msra.mxu1 %v14463_v6  ;;  %v17525_v30 = vpop.f32.mrb[4].mxu1  ;;  %v14516_v6 = vld [vmem:[%s18902_s12 + $0x214] ss:$8 sps:$4 sm:$0xff]  }
 0x596   :  { %2911 = vmatprep.subr.bf16.mxu1 %v14468_v33  ;;  %v2106_v5 = vpop.f32.mrb[5].mxu1  ;;  %v17590_v33 = vld [vmem:[%s18903_s10 + $0x8] sm:$0xff] }
 0x597   :  { %v17528_v19 = vpop.f32.mrb[6].mxu1  ;;  %3153 = vperm.xlu1 %14195, %v17590_v33  }
 0x598   :  { %v2201_v57 = vpack.c.bf16 %v17528_v19, %v17525_v30  ;;  %v2110_v16 = vpop.f32.mrb[7].mxu1  ;;  %v14610_v30 = vld [vmem:[#allocation23 + $0x10] ss:$8 sps:$4 sm:$0xff]  }
 0x599   :  { %2912 = vmatpush1.bf16.msra.mxu1 %v14466_v24  ;;  %v2202_v39 = vpack.c.bf16 %v2110_v16, %v2106_v5  ;;  %v17593_v24 = vld [vmem:[%s18903_s10] sm:$0xff]  ;;  %v14514_v5 = vld [vmem:[%s18902_s12 + $0x210] ss:$8 sps:$4 sm:$0xff]  }
 0x59a   :  { %2913 = vmatprep.subr.bf16.mxu1 %v14471_v35  ;;  %v14607_v35 = vld [vmem:[#allocation23] ss:$8 sps:$4 sm:$0xff]   ;;  %v14609_v16 = vld [vmem:[#allocation23 + $0x4] ss:$8 sps:$4 sm:$0xff]   ;;  %3148 = vperm.xlu0 %14194, %v17593_v24  }
 0x59b   :  { %2941 = vmatprep.mubr.bf16.mxu1 %v2202_v39  ;;  %v14519_v39 = vld [vmem:[%s18902_s12 + $0x224] ss:$8 sps:$4 sm:$0xff]   ;;  %3685 = vmatprep.subr.bf16.mxu0 %v14609_v16  ;;  %v14517_v19 = vld [vmem:[%s18902_s12 + $0x220] ss:$8 sps:$4 sm:$0xff]  }
 0x59c   :  { %3686 = vmatpush1.bf16.msra.mxu0 %v14607_v35  ;;  %v14639_v35 = vld [vmem:[#allocation23 + $0xa4] ss:$8 sps:$4 sm:$0xff]   ;;  %v14637_v16 = vld [vmem:[#allocation23 + $0xa0] ss:$8 sps:$4 sm:$0xff]  }
 0x59d   :  { %2914 = vmatpush1.bf16.msra.mxu1 %v14469_v61  ;;  %v17535_v44 = vpop.f32.mrb[8].mxu1  ;;  %v14612_v61 = vld [vmem:[#allocation23 + $0x14] ss:$8 sps:$4 sm:$0xff]  }
 0x59e   :  { %2915 = vmatprep.subr.bf16.mxu1 %v14474_v49  ;;  %v17538_v60 = vpop.f32.mrb[9].mxu1  ;;  %3687 = vmatprep.subr.bf16.mxu0 %v14612_v61  ;;  %v14522_v49 = vld [vmem:[%s18902_s12 + $0x234] ss:$8 sps:$4 sm:$0xff]   ;;  %v14544_v61 = vld [vmem:[%s18902_s12 + $0x2b0] ss:$8 sps:$4 sm:$0xff]  }
 0x59f   :  { %v17540_v17 = vpop.f32.mrb[10].mxu1 }
 0x5a0   :  { %v2203_v4 = vpack.c.bf16 %v17540_v17, %v17535_v44  ;;  %v17544_v48 = vpop.f32.mrb[11].mxu1  ;;  %3688 = vmatpush1.bf16.msra.mxu0 %v14610_v30  ;;  %v14549_v30 = vld [vmem:[%s18902_s12 + $0x2c4] ss:$8 sps:$4 sm:$0xff]   ;;  %v14568_v44 = vld [vmem:[%s18902_s12 + $0x330] ss:$8 sps:$4 sm:$0xff]  }
 0x5a1   :  { %2916 = vmatpush1.bf16.msra.mxu1 %v14472_v9  ;;  %v2204_v43 = vpack.c.bf16 %v17544_v48, %v17538_v60  ;;  %v18904_v9 = vmov 5   ;;  %v14520_v60 = vld [vmem:[%s18902_s12 + $0x230] ss:$8 sps:$4 sm:$0xff]   ;;  %v14618_v48 = vld [vmem:[#allocation23 + $0x34] ss:$8 sps:$4 sm:$0xff]  }
 0x5a2   :  { %2917 = vmatprep.subr.bf16.mxu1 %v14477_v25  ;;  %14196 = vset.pattern.permute.xlu1 %v18904_v9  ;;  %v14613_v25 = vld [vmem:[#allocation23 + $0x20] ss:$8 sps:$4 sm:$0xff]  }
 0x5a3   :  { %14197 = vset.pattern.permute.xlu0 %v18904_v9  ;;  %3169 = vperm.xlu1 %14196, %v17593_v24   ;;  %v14573_v17 = vld [vmem:[%s18902_s12 + $0x344] ss:$8 sps:$4 sm:$0xff]  }
 0x5a4   :  { %3173 = vperm.xlu0 %14197, %v17590_v33  }
 0x5a5   :  { %2918 = vmatpush1.bf16.msra.mxu1 %v14475_v62  ;;  %v17551_v37 = vpop.f32.mrb[12].mxu1  ;;  %v14525_v62 = vld [vmem:[%s18902_s12 + $0x244] ss:$8 sps:$4 sm:$0xff]  }
 0x5a6   :  { %2919 = vmatprep.subr.bf16.mxu1 %v14480_v21  ;;  %v17554_v13 = vpop.f32.mrb[13].mxu1  ;;  %v14523_v21 = vld [vmem:[%s18902_s12 + $0x240] ss:$8 sps:$4 sm:$0xff]  }
 0x5a7   :  { %v17556_v27 = vpop.f32.mrb[14].mxu1 }
 0x5a8   :  { %v2205_v8 = vpack.c.bf16 %v17556_v27, %v17551_v37  ;;  %v17560_v51 = vpop.f32.mrb[15].mxu1 }
 0x5a9   :  { %2920 = vmatpush1.bf16.msra.mxu1 %v14478_v55  ;;  %v2206_v15 = vpack.c.bf16 %v17560_v51, %v17554_v13  ;;  %v14621_v55 = vld [vmem:[#allocation23 + $0x44] ss:$8 sps:$4 sm:$0xff]  }
 0x5aa   :  { %2921 = vmatprep.subr.bf16.mxu1 %v14483_v58  ;;  %v14528_v58 = vld [vmem:[%s18902_s12 + $0x254] ss:$8 sps:$4 sm:$0xff]   ;;  %v14574_v51 = vld [vmem:[%s18902_s12 + $0x350] ss:$8 sps:$4 sm:$0xff]  }
 0x5ab   :  { %v14576_v13 = vld [vmem:[%s18902_s12 + $0x354] ss:$8 sps:$4 sm:$0xff]  }
 0x5ad   :  { %2922 = vmatpush1.bf16.msra.mxu1 %v14481_v1  ;;  %v14619_v1 = vld [vmem:[#allocation23 + $0x40] ss:$8 sps:$4 sm:$0xff]  }
 0x5ae   :  { %2923 = vmatprep.subr.bf16.mxu1 %v14486_v40  ;;  %v14526_v40 = vld [vmem:[%s18902_s12 + $0x250] ss:$8 sps:$4 sm:$0xff]  }
 0x5b1   :  { %2924 = vmatpush1.bf16.msra.mxu1 %v14484_v32  ;;  %v14624_v32 = vld [vmem:[#allocation23 + $0x54] ss:$8 sps:$4 sm:$0xff]  }
 0x5b2   :  { %2925 = vmatprep.subr.bf16.mxu1 %v14489_v46  ;;  %v14531_v46 = vld [vmem:[%s18902_s12 + $0x264] ss:$8 sps:$4 sm:$0xff]  }
 0x5b5   :  { %2926 = vmatpush1.bf16.msra.mxu1 %v14487_v12  ;;  %v14622_v12 = vld [vmem:[#allocation23 + $0x50] ss:$8 sps:$4 sm:$0xff]  }
 0x5b6   :  { %2927 = vmatprep.subr.bf16.mxu1 %v14492_v41  ;;  %v14529_v41 = vld [vmem:[%s18902_s12 + $0x260] ss:$8 sps:$4 sm:$0xff]  }
 0x5b9   :  { %2928 = vmatpush1.bf16.msra.mxu1 %v14490_v63  ;;  %v14627_v63 = vld [vmem:[#allocation23 + $0x64] ss:$8 sps:$4 sm:$0xff]  }
 0x5ba   :  { %2929 = vmatprep.subr.bf16.mxu1 %v14495_v0  ;;  %v14534_v0 = vld [vmem:[%s18902_s12 + $0x274] ss:$8 sps:$4 sm:$0xff]  }
 0x5bd   :  { %2930 = vmatpush1.bf16.msra.mxu1 %v14493_v34  ;;  %v14625_v34 = vld [vmem:[#allocation23 + $0x60] ss:$8 sps:$4 sm:$0xff]  }
 0x5be   :  { %2931 = vmatprep.subr.bf16.mxu1 %v14498_v3  ;;  %v14532_v3 = vld [vmem:[%s18902_s12 + $0x270] ss:$8 sps:$4 sm:$0xff]  }
 0x5c1   :  { %2932 = vmatpush1.bf16.msra.mxu1 %v14496_v22  ;;  %v14630_v22 = vld [vmem:[#allocation23 + $0x74] ss:$8 sps:$4 sm:$0xff]  }
 0x5c2   :  { %2933 = vmatprep.subr.bf16.mxu1 %v14501_v10  ;;  %v14537_v10 = vld [vmem:[%s18902_s12 + $0x284] ss:$8 sps:$4 sm:$0xff]  }
 0x5c5   :  { %2934 = vmatpush1.bf16.msra.mxu1 %v14499_v47  ;;  %v14628_v47 = vld [vmem:[#allocation23 + $0x70] ss:$8 sps:$4 sm:$0xff]  }
 0x5c6   :  { %2935 = vmatprep.subr.bf16.mxu1 %v14504_v59  ;;  %v14535_v59 = vld [vmem:[%s18902_s12 + $0x280] ss:$8 sps:$4 sm:$0xff]  }
 0x5c9   :  { %2936 = vmatpush1.bf16.msra.mxu1 %v14502_v18  ;;  %v14633_v18 = vld [vmem:[#allocation23 + $0x84] ss:$8 sps:$4 sm:$0xff]  }
 0x5ca   :  { %2937 = vmatprep.subr.bf16.mxu1 %v14507_v23  ;;  %v14540_v23 = vld [vmem:[%s18902_s12 + $0x294] ss:$8 sps:$4 sm:$0xff]  }
 0x5cd   :  { %2938 = vmatpush1.bf16.msra.mxu1 %v14505_v38  ;;  %v14631_v38 = vld [vmem:[#allocation23 + $0x80] ss:$8 sps:$4 sm:$0xff]  }
 0x5ce   :  { %2939 = vmatprep.subr.bf16.mxu1 %v14510_v36  ;;  %v14538_v36 = vld [vmem:[%s18902_s12 + $0x290] ss:$8 sps:$4 sm:$0xff]  }
 0x5d1   :  { %2940 = vmatpush1.bf16.msra.mxu1 %v14508_v14  ;;  %v14636_v14 = vld [vmem:[#allocation23 + $0x94] ss:$8 sps:$4 sm:$0xff]  }
 0x5d2   :  { %2952 = vmatprep.subr.bf16.mxu1 %v14513_v42  ;;  %v14543_v42 = vld [vmem:[%s18902_s12 + $0x2a4] ss:$8 sps:$4 sm:$0xff]  }
 0x5d4   :  { %2942 = vmatmul.mubr.bf16.vlgmr.msra.gmra.mrb[16].mxu1 %v2201_v57  ;;  %v14615_v57 = vld [vmem:[#allocation23 + $0x24] ss:$8 sps:$4 sm:$0xff]  }
 0x5d5   :  { %2953 = vmatpush1.bf16.msra.mxu1 %v14511_v31  ;;  %2984 = vmatprep.mubr.bf16.mxu1 %v2204_v43  ;;  %v14616_v43 = vld [vmem:[#allocation23 + $0x30] ss:$8 sps:$4 sm:$0xff]  }
 0x5d6   :  { %2954 = vmatprep.subr.bf16.mxu1 %v14516_v6  ;;  %3689 = vmatprep.subr.bf16.mxu0 %v14615_v57  ;;  %v14634_v31 = vld [vmem:[#allocation23 + $0x90] ss:$8 sps:$4 sm:$0xff]  }
 0x5d7   :  { %3690 = vmatpush1.bf16.msra.mxu0 %v14613_v25  ;;  %v14541_v6 = vld [vmem:[%s18902_s12 + $0x2a0] ss:$8 sps:$4 sm:$0xff]   ;;  %v14552_v25 = vld [vmem:[%s18902_s12 + $0x2d4] ss:$8 sps:$4 sm:$0xff]  }
 0x5d8   :  { %3691 = vmatprep.subr.bf16.mxu0 %v14618_v48  ;;  %v14547_v57 = vld [vmem:[%s18902_s12 + $0x2c0] ss:$8 sps:$4 sm:$0xff]   ;;  %v14550_v48 = vld [vmem:[%s18902_s12 + $0x2d0] ss:$8 sps:$4 sm:$0xff]  }
 0x5d9   :  { %2955 = vmatpush1.bf16.msra.mxu1 %v14514_v5  ;;  %v14546_v5 = vld [vmem:[%s18902_s12 + $0x2b4] ss:$8 sps:$4 sm:$0xff]  }
 0x5da   :  { %2956 = vmatprep.subr.bf16.mxu1 %v14519_v39  ;;  %v14642_v39 = vld [vmem:[#allocation23 + $0xb4] ss:$8 sps:$4 sm:$0xff]  }
 0x5db   :  { %3692 = vmatpush1.bf16.msra.mxu0 %v14616_v43  ;;  %v14553_v43 = vld [vmem:[%s18902_s12 + $0x2e0] ss:$8 sps:$4 sm:$0xff]  }
 0x5dc   :  { %3693 = vmatprep.subr.bf16.mxu0 %v14621_v55  ;;  %v14556_v55 = vld [vmem:[%s18902_s12 + $0x2f0] ss:$8 sps:$4 sm:$0xff]  }
 0x5dd   :  { %2957 = vmatpush1.bf16.msra.mxu1 %v14517_v19  ;;  %v14640_v19 = vld [vmem:[#allocation23 + $0xb0] ss:$8 sps:$4 sm:$0xff]  }
 0x5de   :  { %2958 = vmatprep.subr.bf16.mxu1 %v14522_v49  ;;  %v14645_v49 = vld [vmem:[#allocation23 + $0xc4] ss:$8 sps:$4 sm:$0xff]  }
 0x5df   :  { %3694 = vmatpush1.bf16.msra.mxu0 %v14619_v1  ;;  %v14559_v1 = vld [vmem:[%s18902_s12 + $0x300] ss:$8 sps:$4 sm:$0xff]  }
 0x5e0   :  { %3695 = vmatprep.subr.bf16.mxu0 %v14624_v32  ;;  %v14562_v32 = vld [vmem:[%s18902_s12 + $0x310] ss:$8 sps:$4 sm:$0xff]  }
 0x5e1   :  { %2959 = vmatpush1.bf16.msra.mxu1 %v14520_v60  ;;  %v14643_v60 = vld [vmem:[#allocation23 + $0xc0] ss:$8 sps:$4 sm:$0xff]  }
 0x5e2   :  { %2960 = vmatprep.subr.bf16.mxu1 %v14525_v62  ;;  %v14555_v62 = vld [vmem:[%s18902_s12 + $0x2e4] ss:$8 sps:$4 sm:$0xff]  }
 0x5e3   :  { %3696 = vmatpush1.bf16.msra.mxu0 %v14622_v12  ;;  %v14565_v12 = vld [vmem:[%s18902_s12 + $0x320] ss:$8 sps:$4 sm:$0xff]  }
 0x5e4   :  { %3697 = vmatprep.subr.bf16.mxu0 %v14627_v63  ;;  %v14577_v63 = vld [vmem:[%s18902_s12 + $0x360] ss:$8 sps:$4 sm:$0xff]  }
 0x5e5   :  { %2961 = vmatpush1.bf16.msra.mxu1 %v14523_v21  ;;  %v14558_v21 = vld [vmem:[%s18902_s12 + $0x2f4] ss:$8 sps:$4 sm:$0xff]  }
 0x5e6   :  { %2962 = vmatprep.subr.bf16.mxu1 %v14528_v58  ;;  %v14561_v58 = vld [vmem:[%s18902_s12 + $0x304] ss:$8 sps:$4 sm:$0xff]  }
 0x5e7   :  { %3698 = vmatpush1.bf16.msra.mxu0 %v14625_v34  ;;  %v14580_v34 = vld [vmem:[%s18902_s12 + $0x370] ss:$8 sps:$4 sm:$0xff]  }
 0x5e8   :  { %3699 = vmatprep.subr.bf16.mxu0 %v14630_v22  ;;  %v14583_v22 = vld [vmem:[%s18902_s12 + $0x380] ss:$8 sps:$4 sm:$0xff]  }
 0x5e9   :  { %2963 = vmatpush1.bf16.msra.mxu1 %v14526_v40  ;;  %v14564_v40 = vld [vmem:[%s18902_s12 + $0x314] ss:$8 sps:$4 sm:$0xff]  }
 0x5ea   :  { %2964 = vmatprep.subr.bf16.mxu1 %v14531_v46  ;;  %v14567_v46 = vld [vmem:[%s18902_s12 + $0x324] ss:$8 sps:$4 sm:$0xff]  }
 0x5eb   :  { %3700 = vmatpush1.bf16.msra.mxu0 %v14628_v47  ;;  %v14586_v47 = vld [vmem:[%s18902_s12 + $0x390] ss:$8 sps:$4 sm:$0xff]  }
 0x5ec   :  { %3701 = vmatprep.subr.bf16.mxu0 %v14633_v18  ;;  %v14589_v18 = vld [vmem:[%s18902_s12 + $0x3a0] ss:$8 sps:$4 sm:$0xff]  }
 0x5ed   :  { %2965 = vmatpush1.bf16.msra.mxu1 %v14529_v41  ;;  %v14570_v41 = vld [vmem:[%s18902_s12 + $0x334] ss:$8 sps:$4 sm:$0xff]  }
 0x5ee   :  { %2966 = vmatprep.subr.bf16.mxu1 %v14534_v0  ;;  %v14582_v0 = vld [vmem:[%s18902_s12 + $0x374] ss:$8 sps:$4 sm:$0xff]  }
 0x5ef   :  { %3702 = vmatpush1.bf16.msra.mxu0 %v14631_v38  ;;  %v14592_v38 = vld [vmem:[%s18902_s12 + $0x3b0] ss:$8 sps:$4 sm:$0xff]  }
 0x5f0   :  { %3703 = vmatprep.subr.bf16.mxu0 %v14636_v14  ;;  %v14595_v14 = vld [vmem:[%s18902_s12 + $0x3c0] ss:$8 sps:$4 sm:$0xff]  }
 0x5f1   :  { %2967 = vmatpush1.bf16.msra.mxu1 %v14532_v3  ;;  %v14585_v3 = vld [vmem:[%s18902_s12 + $0x384] ss:$8 sps:$4 sm:$0xff]  }
 0x5f2   :  { %2968 = vmatprep.subr.bf16.mxu1 %v14537_v10  ;;  %v14588_v10 = vld [vmem:[%s18902_s12 + $0x394] ss:$8 sps:$4 sm:$0xff]  }
 0x5f3   :  { %3704 = vmatpush1.bf16.msra.mxu0 %v14634_v31  ;;  %v14598_v31 = vld [vmem:[%s18902_s12 + $0x3d0] ss:$8 sps:$4 sm:$0xff]  }
 0x5f4   :  { %3705 = vmatprep.subr.bf16.mxu0 %v14639_v35  ;;  %v14601_v35 = vld [vmem:[%s18902_s12 + $0x3e0] ss:$8 sps:$4 sm:$0xff]  }
 0x5f5   :  { %2969 = vmatpush1.bf16.msra.mxu1 %v14535_v59  ;;  %v14591_v59 = vld [vmem:[%s18902_s12 + $0x3a4] ss:$8 sps:$4 sm:$0xff]  }
 0x5f6   :  { %2970 = vmatprep.subr.bf16.mxu1 %v14540_v23  ;;  %v14594_v23 = vld [vmem:[%s18902_s12 + $0x3b4] ss:$8 sps:$4 sm:$0xff]  }
 0x5f7   :  { %3706 = vmatpush1.bf16.msra.mxu0 %v14637_v16  ;;  %v14604_v16 = vld [vmem:[%s18902_s12 + $0x3f0] ss:$8 sps:$4 sm:$0xff]  }
 0x5f8   :  { %3707 = vmatprep.subr.bf16.mxu0 %v14642_v39  ;;  %v14648_v39 = vld [vmem:[#allocation23 + $0xd4] ss:$8 sps:$4 sm:$0xff]  }
 0x5f9   :  { %2971 = vmatpush1.bf16.msra.mxu1 %v14538_v36  ;;  %v14597_v36 = vld [vmem:[%s18902_s12 + $0x3c4] ss:$8 sps:$4 sm:$0xff]  }
 0x5fa   :  { %2972 = vmatprep.subr.bf16.mxu1 %v14543_v42  ;;  %v14600_v42 = vld [vmem:[%s18902_s12 + $0x3d4] ss:$8 sps:$4 sm:$0xff]  }
 0x5fb   :  { %3708 = vmatpush1.bf16.msra.mxu0 %v14640_v19  ;;  %v14649_v19 = vld [vmem:[#allocation23 + $0xe0] ss:$8 sps:$4 sm:$0xff]  }
 0x5fc   :  { %3709 = vmatprep.subr.bf16.mxu0 %v14645_v49  ;;  %v14652_v49 = vld [vmem:[#allocation23 + $0xf0] ss:$8 sps:$4 sm:$0xff]  }
 0x5fd   :  { %2973 = vmatpush1.bf16.msra.mxu1 %v14541_v6  ;;  %v14603_v6 = vld [vmem:[%s18902_s12 + $0x3e4] ss:$8 sps:$4 sm:$0xff]  }
 0x5fe   :  { %2974 = vmatprep.subr.bf16.mxu1 %v14546_v5  ;;  %v14606_v5 = vld [vmem:[%s18902_s12 + $0x3f4] ss:$8 sps:$4 sm:$0xff]  }
 0x5ff   :  { %3710 = vmatpush1.bf16.msra.mxu0 %v14643_v60  ;;  %v1780_v60 = vld [vmem:[#allocation22] sm:$0xf] }
 0x600   :  { %3711 = vmatprep.subr.bf16.mxu0 %v14648_v39  ;;  %v2215_v37 = vrot.slane %v1780_v60, %v17005_v54 }
 0x601   :  { %2975 = vmatpush1.bf16.msra.mxu1 %v14544_v61  ;;  %v14646_v61 = vld [vmem:[#allocation23 + $0xd0] ss:$8 sps:$4 sm:$0xff]  }
 0x602   :  { %2976 = vmatprep.subr.bf16.mxu1 %v14549_v30  ;;  %v14651_v30 = vld [vmem:[#allocation23 + $0xe4] ss:$8 sps:$4 sm:$0xff]  }
 0x603   :  { %3712 = vmatpush1.bf16.msra.mxu0 %v14646_v61 }
 0x604   :  { %3713 = vmatprep.subr.bf16.mxu0 %v14651_v30 }
 0x605   :  { %2977 = vmatpush1.bf16.msra.mxu1 %v14547_v57  ;;  %v14654_v57 = vld [vmem:[#allocation23 + $0xf4] ss:$8 sps:$4 sm:$0xff]  }
 0x606   :  { %2978 = vmatprep.subr.bf16.mxu1 %v14552_v25  ;;  %v14657_v25 = vld [vmem:[#allocation23 + $0x104] ss:$8 sps:$4 sm:$0xff]  }
 0x607   :  { %3714 = vmatpush1.bf16.msra.mxu0 %v14649_v19 }
 0x608   :  { %3715 = vmatprep.subr.bf16.mxu0 %v14654_v57 }
 0x609   :  { %2979 = vmatpush1.bf16.msra.mxu1 %v14550_v48  ;;  %v2211_v48 = vrot.slane %v1780_v60, %v16999_v52 }
 0x60a   :  { %2980 = vmatprep.subr.bf16.mxu1 %v14555_v62 }
 0x60b   :  { %3716 = vmatpush1.bf16.msra.mxu0 %v14652_v49  ;;  %v2221_v27 = vrot.slane %v2211_v48, %v16999_v52  ;;  %v14655_v49 = vld [vmem:[#allocation23 + $0x100] ss:$8 sps:$4 sm:$0xff]   ;;  %v14660_v48 = vld [vmem:[#allocation23 + $0x114] ss:$8 sps:$4 sm:$0xff]  }
 0x60c   :  { %3728 = vmatprep.subr.bf16.mxu0 %v14657_v25 }
 0x60d   :  { %2981 = vmatpush1.bf16.msra.mxu1 %v14553_v43 }
 0x60e   :  { %2982 = vmatprep.subr.bf16.mxu1 %v14558_v21 }
 0x611   :  { %2983 = vmatpush1.bf16.msra.mxu1 %v14556_v55 }
 0x612   :  { %2995 = vmatprep.subr.bf16.mxu1 %v14561_v58 }
 0x614   :  { %2985 = vmatmul.mubr.bf16.vlgmr.msra.gmra.mrb[16].mxu1 %v2203_v4  ;;  %v14571_v4 = vld [vmem:[%s18902_s12 + $0x340] ss:$8 sps:$4 sm:$0xff]  }
 0x615   :  { %2996 = vmatpush1.bf16.msra.mxu1 %v14559_v1  ;;  %3027 = vmatprep.mubr.bf16.mxu1 %v2206_v15  ;;  %v14579_v15 = vld [vmem:[%s18902_s12 + $0x364] ss:$8 sps:$4 sm:$0xff]  }
 0x616   :  { %2997 = vmatprep.subr.bf16.mxu1 %v14564_v40  ;;  %v17679_v1 = vpop.permute.xlu1 %3153 }
 0x619   :  { %2998 = vmatpush1.bf16.msra.mxu1 %v14562_v32 }
 0x61a   :  { %2999 = vmatprep.subr.bf16.mxu1 %v14567_v46 }
 0x61d   :  { %3000 = vmatpush1.bf16.msra.mxu1 %v14565_v12  ;;  %v17686_v12 = vpop.permute.xlu0 %3148 }
 0x61e   :  { %3001 = vmatprep.subr.bf16.mxu1 %v14570_v41 }
 0x621   :  { %3002 = vmatpush1.bf16.msra.mxu1 %v14568_v44 }
 0x622   :  { %3003 = vmatprep.subr.bf16.mxu1 %v14573_v17 }
 0x625   :  { %3004 = vmatpush1.bf16.msra.mxu1 %v14571_v4 }
 0x626   :  { %3005 = vmatprep.subr.bf16.mxu1 %v14576_v13 }
 0x629   :  { %3006 = vmatpush1.bf16.msra.mxu1 %v14574_v51 }
 0x62a   :  { %3007 = vmatprep.subr.bf16.mxu1 %v14579_v15 }
 0x62d   :  { %3008 = vmatpush1.bf16.msra.mxu1 %v14577_v63 }
 0x62e   :  { %3009 = vmatprep.subr.bf16.mxu1 %v14582_v0 }
 0x631   :  { %3010 = vmatpush1.bf16.msra.mxu1 %v14580_v34 }
 0x632   :  { %3011 = vmatprep.subr.bf16.mxu1 %v14585_v3 }
 0x635   :  { %3012 = vmatpush1.bf16.msra.mxu1 %v14583_v22 }
 0x636   :  { %3013 = vmatprep.subr.bf16.mxu1 %v14588_v10 }
 0x639   :  { %3014 = vmatpush1.bf16.msra.mxu1 %v14586_v47 }
 0x63a   :  { %3015 = vmatprep.subr.bf16.mxu1 %v14591_v59 }
 0x63d   :  { %3016 = vmatpush1.bf16.msra.mxu1 %v14589_v18  ;;  %v17705_v18 = vpop.permute.xlu1 %3169 }
 0x63e   :  { %3017 = vmatprep.subr.bf16.mxu1 %v14594_v23  ;;  %v17707_v23 = vpop.permute.xlu0 %3173 }
 0x641   :  { %3018 = vmatpush1.bf16.msra.mxu1 %v14592_v38 }
 0x642   :  { %3019 = vmatprep.subr.bf16.mxu1 %v14597_v36 }
 0x645   :  { %3020 = vmatpush1.bf16.msra.mxu1 %v14595_v14 }
 0x646   :  { %3021 = vmatprep.subr.bf16.mxu1 %v14600_v42 }
 0x649   :  { %3022 = vmatpush1.bf16.msra.mxu1 %v14598_v31 }
 0x64a   :  { %3023 = vmatprep.subr.bf16.mxu1 %v14603_v6 }
 0x64d   :  { %3024 = vmatpush1.bf16.msra.mxu1 %v14601_v35 }
 0x64e   :  { %3025 = vmatprep.subr.bf16.mxu1 %v14606_v5 }
 0x651   :  { %3026 = vmatpush1.bf16.msra.mxu1 %v14604_v16 }
 0x654   :  { %3028 = vmatmul.mubr.bf16.vlgmr.msra.gmra.mrb[16].mxu1 %v2205_v8  ;;  %v2225_v8 = vrot.slane %v2215_v37, %v16999_v52 }
 0x727   :  { %v3029_v62 = vpop.f32.mrb[16].mxu1 }
 0x728   :  { %v17675_v43 = vadd.f32 %v3029_v62, %v2221_v27  ;;  %v3031_v21 = vpop.f32.mrb[17].mxu1  ;;  %v14751_v62 = vld [vmem:[#allocation26] ss:$8 sps:$4 sm:$0xff]  }
 0x729   :  { %v17677_v55 = vadd.f32 %v3031_v21, %v2225_v8  ;;  %v3033_v58 = vpop.f32.mrb[18].mxu1  ;;  %v14753_v21 = vld [vmem:[#allocation26 + $0x4] ss:$8 sps:$4 sm:$0xff]  }
 0x72a   :  { %v17682_v40 = vmax.f32 %v17675_v43, 0.0  ;;  %v17684_v32 = vadd.f32 %v3033_v58, %v2221_v27  ;;  %v3035_v46 = vpop.f32.mrb[19].mxu1  ;;  %v14658_v58 = vld [vmem:[#allocation23 + $0x110] ss:$8 sps:$4 sm:$0xff]   ;;  %4031 = vmatprep.subr.bf16.mxu1 %v14753_v21  ;;  %v14684_v21 = vld [vmem:[#allocation23 + $0x194] ss:$8 sps:$4 sm:$0xff]  }
 0x72b   :  { %v3135_v41 = vmax.f32 %v17677_v55, 0.0  ;;  %v17689_v44 = vadd.f32 %v3035_v46, %v2225_v8  ;;  %v14756_v46 = vld [vmem:[#allocation26 + $0x14] ss:$8 sps:$4 sm:$0xff]   ;;  %4032 = vmatpush1.bf16.msra.mxu1 %v14751_v62  ;;  %v14679_v62 = vld [vmem:[#allocation23 + $0x180] ss:$8 sps:$4 sm:$0xff]  }
 0x72c   :  { %v17692_v17 = vmax.f32 %v17684_v32, 0.0  ;;  %v3138_v4 = vrot.slane %v17682_v40, 7  ;;  %v3160_v51 = vrot.slane %v17682_v40, 1  ;;  %4033 = vmatprep.subr.bf16.mxu1 %v14756_v46  ;;  %v14780_v46 = vld [vmem:[#allocation26 + $0x94] ss:$8 sps:$4 sm:$0xff]  }
 0x72d   :  { %v3137_v13 = vmax.f32 %v17689_v44, 0.0  ;;  %v3139_v34 = vrot.slane %v3135_v41, 7  ;;  %v3161_v3 = vrot.slane %v3135_v41, 1 }
 0x72e   :  { %v3140_v15 = vrot.slane %v17692_v17, 7  ;;  %v3162_v63 = vrot.slane %v17692_v17, 1  ;;  %v3182_v0 = vpack.c.bf16 %v17692_v17, %v17682_v40  ;;  %v14720_v40 = vld [vmem:[#allocation23 + $0x254] ss:$8 sps:$4 sm:$0xff]   ;;  %v14718_v17 = vld [vmem:[#allocation23 + $0x250] ss:$8 sps:$4 sm:$0xff]  }
 0x72f   :  { %v3141_v22 = vrot.slane %v3137_v13, 7  ;;  %v3163_v10 = vrot.slane %v3137_v13, 1  ;;  %v3183_v27 = vpack.c.bf16 %v3137_v13, %v3135_v41  ;;  %v14666_v41 = vld [vmem:[#allocation23 + $0x134] ss:$8 sps:$4 sm:$0xff]   ;;  %v14757_v13 = vld [vmem:[#allocation26 + $0x20] ss:$8 sps:$4 sm:$0xff]  }
 0x730   :  { %v3142_v47 = vsel %vm673_vm2, %v3138_v4, %v3140_v15  ;;  %v3144_v59 = vsel %vm673_vm2, %v3140_v15, %v3138_v4  ;;  %v3164_v38 = vsel %vm1380_vm3, %v3160_v51, %v3162_v63  ;;  %v3166_v36 = vsel %vm1380_vm3, %v3162_v63, %v3160_v51  ;;  %v14663_v4 = vld [vmem:[#allocation23 + $0x124] ss:$8 sps:$4 sm:$0xff]   ;;  %v14754_v51 = vld [vmem:[#allocation26 + $0x10] ss:$8 sps:$4 sm:$0xff]  }
 0x731   :  { %v3158_v14 = vmul.f32 %v17679_v1, %v3142_v47  ;;  %v3156_v42 = vmul.f32 %v17686_v12, %v3144_v59  ;;  %v3143_v31 = vsel %vm673_vm2, %v3139_v34, %v3141_v22  ;;  %v3145_v6 = vsel %vm673_vm2, %v3141_v22, %v3139_v34  ;;  %v14759_v15 = vld [vmem:[#allocation26 + $0x24] ss:$8 sps:$4 sm:$0xff]   ;;  %v14661_v63 = vld [vmem:[#allocation23 + $0x120] ss:$8 sps:$4 sm:$0xff]   ;;  %4034 = vmatpush1.bf16.msra.mxu1 %v14754_v51  ;;  %v14762_v34 = vld [vmem:[#allocation26 + $0x34] ss:$8 sps:$4 sm:$0xff]  }
 0x732   :  { %v3157_v35 = vmul.f32 %v17686_v12, %v3145_v6  ;;  %v3159_v5 = vmul.f32 %v17679_v1, %v3143_v31  ;;  %v3165_v16 = vsel %vm1380_vm3, %v3161_v3, %v3163_v10  ;;  %v3167_v61 = vsel %vm1380_vm3, %v3163_v10, %v3161_v3  ;;  %4035 = vmatprep.subr.bf16.mxu1 %v14759_v15  ;;  %v14664_v3 = vld [vmem:[#allocation23 + $0x130] ss:$8 sps:$4 sm:$0xff]   ;;  %v14669_v22 = vld [vmem:[#allocation23 + $0x144] ss:$8 sps:$4 sm:$0xff]   ;;  %v14667_v59 = vld [vmem:[#allocation23 + $0x140] ss:$8 sps:$4 sm:$0xff]  }
 0x733   :  { %v17726_v39 = vmul.f32 %v17705_v18, %v3165_v16  ;;  %v17729_v30 = vmul.f32 %v17707_v23, %v3167_v61  ;;  %v17732_v19 = vmul.f32 %v17705_v18, %v3164_v38  ;;  %v17735_v25 = vmul.f32 %v17707_v23, %v3166_v36  ;;  %v14760_v10 = vld [vmem:[#allocation26 + $0x30] ss:$8 sps:$4 sm:$0xff]   ;;  %v14765_v47 = vld [vmem:[#allocation26 + $0x44] ss:$8 sps:$4 sm:$0xff]   ;;  %v14763_v36 = vld [vmem:[#allocation26 + $0x40] ss:$8 sps:$4 sm:$0xff]  }
 0x734   :  { %v3181_v57 = vpack.c.bf16 %v3159_v5, %v3157_v35  ;;  %v3180_v60 = vpack.c.bf16 %v3158_v14, %v3156_v42  ;;  %v14672_v38 = vld [vmem:[#allocation23 + $0x154] ss:$8 sps:$4 sm:$0xff]   ;;  %v14670_v42 = vld [vmem:[#allocation23 + $0x150] ss:$8 sps:$4 sm:$0xff]   ;;  %v14675_v31 = vld [vmem:[#allocation23 + $0x164] ss:$8 sps:$4 sm:$0xff]  }
 0x735   :  { %v3185_v37 = vpack.c.bf16 %v17729_v30, %v17726_v39  ;;  %v3184_v8 = vpack.c.bf16 %v17735_v25, %v17732_v19  ;;  %4036 = vmatpush1.bf16.msra.mxu1 %v14757_v13  ;;  %v14768_v14 = vld [vmem:[#allocation26 + $0x54] ss:$8 sps:$4 sm:$0xff]   ;;  %v14766_v6 = vld [vmem:[#allocation26 + $0x50] ss:$8 sps:$4 sm:$0xff]   ;;  %v14771_v35 = vld [vmem:[#allocation26 + $0x64] ss:$8 sps:$4 sm:$0xff]  }
 0x736   :  { %3717 = vmatprep.mubr.bf16.mxu0 %v3181_v57  ;;  %4037 = vmatprep.subr.bf16.mxu1 %v14762_v34  ;;  %v14673_v5 = vld [vmem:[#allocation23 + $0x160] ss:$8 sps:$4 sm:$0xff]   ;;  %v14678_v16 = vld [vmem:[#allocation23 + $0x174] ss:$8 sps:$4 sm:$0xff]   ;;  %v14687_v51 = vld [vmem:[#allocation23 + $0x1a4] ss:$8 sps:$4 sm:$0xff]  }
 0x737   :  { %3718 = vmatmul.mubr.bf16.vlgmr.msra.gmra.mrb[8].mxu0 %v3180_v60  ;;  %v14769_v61 = vld [vmem:[#allocation26 + $0x60] ss:$8 sps:$4 sm:$0xff]   ;;  %v14774_v57 = vld [vmem:[#allocation26 + $0x74] ss:$8 sps:$4 sm:$0xff]   ;;  %v14778_v15 = vld [vmem:[#allocation26 + $0x90] ss:$8 sps:$4 sm:$0xff]  }
 0x738   :  { %3729 = vmatpush1.bf16.msra.mxu0 %v14655_v49  ;;  %3760 = vmatprep.mubr.bf16.mxu0 %v3183_v27  ;;  %v14676_v49 = vld [vmem:[#allocation23 + $0x170] ss:$8 sps:$4 sm:$0xff]   ;;  %v14681_v60 = vld [vmem:[#allocation23 + $0x184] ss:$8 sps:$4 sm:$0xff]   ;;  %v14690_v13 = vld [vmem:[#allocation23 + $0x1b4] ss:$8 sps:$4 sm:$0xff]  }
 0x739   :  { %3730 = vmatprep.subr.bf16.mxu0 %v14660_v48  ;;  %4038 = vmatpush1.bf16.msra.mxu1 %v14760_v10  ;;  %v14772_v48 = vld [vmem:[#allocation26 + $0x70] ss:$8 sps:$4 sm:$0xff]   ;;  %v14777_v27 = vld [vmem:[#allocation26 + $0x84] ss:$8 sps:$4 sm:$0xff]   ;;  %v14781_v34 = vld [vmem:[#allocation26 + $0xa0] ss:$8 sps:$4 sm:$0xff]  }
 0x73a   :  { %4039 = vmatprep.subr.bf16.mxu1 %v14765_v47  ;;  %v14693_v10 = vld [vmem:[#allocation23 + $0x1c4] ss:$8 sps:$4 sm:$0xff]   ;;  %v14784_v47 = vld [vmem:[#allocation26 + $0xb0] ss:$8 sps:$4 sm:$0xff]   ;;  %v14726_v30 = vld [vmem:[#allocation23 + $0x274] ss:$8 sps:$4 sm:$0xff]  }
 0x73b   :  { %v14721_v39 = vld [vmem:[#allocation23 + $0x260] ss:$8 sps:$4 sm:$0xff]   ;;  %v18905_v19 = vmov 6   ;;  %v18906_v25 = vmov 3  }
 0x73c   :  { %3731 = vmatpush1.bf16.msra.mxu0 %v14658_v58  ;;  %v14775_v58 = vld [vmem:[#allocation26 + $0x80] ss:$8 sps:$4 sm:$0xff]  }
 0x73d   :  { %3732 = vmatprep.subr.bf16.mxu0 %v14663_v4  ;;  %4040 = vmatpush1.bf16.msra.mxu1 %v14763_v36  ;;  %v14682_v4 = vld [vmem:[#allocation23 + $0x190] ss:$8 sps:$4 sm:$0xff]   ;;  %v14696_v36 = vld [vmem:[#allocation23 + $0x1d4] ss:$8 sps:$4 sm:$0xff]  }
 0x73e   :  { %4041 = vmatprep.subr.bf16.mxu1 %v14768_v14  ;;  %v14787_v14 = vld [vmem:[#allocation26 + $0xc0] ss:$8 sps:$4 sm:$0xff]  }
 0x740   :  { %3733 = vmatpush1.bf16.msra.mxu0 %v14661_v63  ;;  %v14783_v63 = vld [vmem:[#allocation26 + $0xa4] ss:$8 sps:$4 sm:$0xff]  }
 0x741   :  { %3734 = vmatprep.subr.bf16.mxu0 %v14666_v41  ;;  %4042 = vmatpush1.bf16.msra.mxu1 %v14766_v6  ;;  %v14685_v41 = vld [vmem:[#allocation23 + $0x1a0] ss:$8 sps:$4 sm:$0xff]   ;;  %v14699_v6 = vld [vmem:[#allocation23 + $0x1e4] ss:$8 sps:$4 sm:$0xff]  }
 0x742   :  { %4043 = vmatprep.subr.bf16.mxu1 %v14771_v35  ;;  %v14790_v35 = vld [vmem:[#allocation26 + $0xd0] ss:$8 sps:$4 sm:$0xff]  }
 0x744   :  { %3735 = vmatpush1.bf16.msra.mxu0 %v14664_v3  ;;  %v14786_v3 = vld [vmem:[#allocation26 + $0xb4] ss:$8 sps:$4 sm:$0xff]  }
 0x745   :  { %3736 = vmatprep.subr.bf16.mxu0 %v14669_v22  ;;  %4044 = vmatpush1.bf16.msra.mxu1 %v14769_v61  ;;  %v14688_v22 = vld [vmem:[#allocation23 + $0x1b0] ss:$8 sps:$4 sm:$0xff]  }
 0x746   :  { %4045 = vmatprep.subr.bf16.mxu1 %v14774_v57  ;;  %v14700_v61 = vld [vmem:[#allocation23 + $0x1f0] ss:$8 sps:$4 sm:$0xff]   ;;  %v14705_v57 = vld [vmem:[#allocation23 + $0x204] ss:$8 sps:$4 sm:$0xff]  }
 0x748   :  { %3737 = vmatpush1.bf16.msra.mxu0 %v14667_v59  ;;  %v14789_v59 = vld [vmem:[#allocation26 + $0xc4] ss:$8 sps:$4 sm:$0xff]  }
 0x749   :  { %3738 = vmatprep.subr.bf16.mxu0 %v14672_v38  ;;  %4046 = vmatpush1.bf16.msra.mxu1 %v14772_v48  ;;  %v14691_v38 = vld [vmem:[#allocation23 + $0x1c0] ss:$8 sps:$4 sm:$0xff]   ;;  %v14706_v48 = vld [vmem:[#allocation23 + $0x210] ss:$8 sps:$4 sm:$0xff]  }
 0x74a   :  { %4047 = vmatprep.subr.bf16.mxu1 %v14777_v27  ;;  %v14711_v27 = vld [vmem:[#allocation23 + $0x224] ss:$8 sps:$4 sm:$0xff]  }
 0x74c   :  { %3739 = vmatpush1.bf16.msra.mxu0 %v14670_v42  ;;  %v14792_v42 = vld [vmem:[#allocation26 + $0xd4] ss:$8 sps:$4 sm:$0xff]  }
 0x74d   :  { %3740 = vmatprep.subr.bf16.mxu0 %v14675_v31  ;;  %4048 = vmatpush1.bf16.msra.mxu1 %v14775_v58  ;;  %v14694_v31 = vld [vmem:[#allocation23 + $0x1d0] ss:$8 sps:$4 sm:$0xff]  }
 0x74e   :  { %4049 = vmatprep.subr.bf16.mxu1 %v14780_v46  ;;  %v14712_v58 = vld [vmem:[#allocation23 + $0x230] ss:$8 sps:$4 sm:$0xff]   ;;  %v14717_v46 = vld [vmem:[#allocation23 + $0x244] ss:$8 sps:$4 sm:$0xff]  }
 0x750   :  { %3741 = vmatpush1.bf16.msra.mxu0 %v14673_v5  ;;  %v14697_v5 = vld [vmem:[#allocation23 + $0x1e0] ss:$8 sps:$4 sm:$0xff]  }
 0x751   :  { %3742 = vmatprep.subr.bf16.mxu0 %v14678_v16  ;;  %4050 = vmatpush1.bf16.msra.mxu1 %v14778_v15  ;;  %v14702_v16 = vld [vmem:[#allocation23 + $0x1f4] ss:$8 sps:$4 sm:$0xff]   ;;  %v14727_v15 = vld [vmem:[#allocation23 + $0x280] ss:$8 sps:$4 sm:$0xff]  }
 0x752   :  { %4051 = vmatprep.subr.bf16.mxu1 %v14783_v63  ;;  %v14732_v63 = vld [vmem:[#allocation23 + $0x294] ss:$8 sps:$4 sm:$0xff]  }
 0x754   :  { %3743 = vmatpush1.bf16.msra.mxu0 %v14676_v49  ;;  %v14703_v49 = vld [vmem:[#allocation23 + $0x200] ss:$8 sps:$4 sm:$0xff]  }
 0x755   :  { %3744 = vmatprep.subr.bf16.mxu0 %v14681_v60  ;;  %4052 = vmatpush1.bf16.msra.mxu1 %v14781_v34  ;;  %v14708_v60 = vld [vmem:[#allocation23 + $0x214] ss:$8 sps:$4 sm:$0xff]   ;;  %v14733_v34 = vld [vmem:[#allocation23 + $0x2a0] ss:$8 sps:$4 sm:$0xff]  }
 0x756   :  { %4053 = vmatprep.subr.bf16.mxu1 %v14786_v3  ;;  %v14738_v3 = vld [vmem:[#allocation23 + $0x2b4] ss:$8 sps:$4 sm:$0xff]  }
 0x758   :  { %3745 = vmatpush1.bf16.msra.mxu0 %v14679_v62  ;;  %v14709_v62 = vld [vmem:[#allocation23 + $0x220] ss:$8 sps:$4 sm:$0xff]  }
 0x759   :  { %3746 = vmatprep.subr.bf16.mxu0 %v14684_v21  ;;  %4054 = vmatpush1.bf16.msra.mxu1 %v14784_v47  ;;  %v14714_v21 = vld [vmem:[#allocation23 + $0x234] ss:$8 sps:$4 sm:$0xff]   ;;  %v14739_v47 = vld [vmem:[#allocation23 + $0x2c0] ss:$8 sps:$4 sm:$0xff]  }
 0x75a   :  { %4055 = vmatprep.subr.bf16.mxu1 %v14789_v59  ;;  %v14744_v59 = vld [vmem:[#allocation23 + $0x2d4] ss:$8 sps:$4 sm:$0xff]  }
 0x75c   :  { %3747 = vmatpush1.bf16.msra.mxu0 %v14682_v4  ;;  %v14715_v4 = vld [vmem:[#allocation23 + $0x240] ss:$8 sps:$4 sm:$0xff]  }
 0x75d   :  { %3748 = vmatprep.subr.bf16.mxu0 %v14687_v51  ;;  %4056 = vmatpush1.bf16.msra.mxu1 %v14787_v14  ;;  %v14729_v51 = vld [vmem:[#allocation23 + $0x284] ss:$8 sps:$4 sm:$0xff]   ;;  %v14745_v14 = vld [vmem:[#allocation23 + $0x2e0] ss:$8 sps:$4 sm:$0xff]  }
 0x75e   :  { %4057 = vmatprep.subr.bf16.mxu1 %v14792_v42  ;;  %v14750_v42 = vld [vmem:[#allocation23 + $0x2f4] ss:$8 sps:$4 sm:$0xff]  }
 0x760   :  { %3749 = vmatpush1.bf16.msra.mxu0 %v14685_v41  ;;  %v14730_v41 = vld [vmem:[#allocation23 + $0x290] ss:$8 sps:$4 sm:$0xff]  }
 0x761   :  { %3750 = vmatprep.subr.bf16.mxu0 %v14690_v13  ;;  %4058 = vmatpush1.bf16.msra.mxu1 %v14790_v35  ;;  %v14735_v13 = vld [vmem:[#allocation23 + $0x2a4] ss:$8 sps:$4 sm:$0xff]  }
 0x762   :  { %v14795_v35 = vld [vmem:[#allocation26 + $0xe4] ss:$8 sps:$4 sm:$0xff]  }
 0x763   :  { %4059 = vmatprep.subr.bf16.mxu1 %v14795_v35  ;;  %v14820_v35 = vld [vmem:[#allocation23 + $0x370] ss:$8 sps:$4 sm:$0xff]  }
 0x764   :  { %3751 = vmatpush1.bf16.msra.mxu0 %v14688_v22  ;;  %v14736_v22 = vld [vmem:[#allocation23 + $0x2b0] ss:$8 sps:$4 sm:$0xff]  }
 0x765   :  { %3752 = vmatprep.subr.bf16.mxu0 %v14693_v10  ;;  %v14741_v10 = vld [vmem:[#allocation23 + $0x2c4] ss:$8 sps:$4 sm:$0xff]  }
 0x768   :  { %3753 = vmatpush1.bf16.msra.mxu0 %v14691_v38  ;;  %v14742_v38 = vld [vmem:[#allocation23 + $0x2d0] ss:$8 sps:$4 sm:$0xff]  }
 0x769   :  { %3754 = vmatprep.subr.bf16.mxu0 %v14696_v36  ;;  %v14747_v36 = vld [vmem:[#allocation23 + $0x2e4] ss:$8 sps:$4 sm:$0xff]  }
 0x76c   :  { %3755 = vmatpush1.bf16.msra.mxu0 %v14694_v31  ;;  %v14748_v31 = vld [vmem:[#allocation23 + $0x2f0] ss:$8 sps:$4 sm:$0xff]  }
 0x76d   :  { %3756 = vmatprep.subr.bf16.mxu0 %v14699_v6  ;;  %v14793_v6 = vld [vmem:[#allocation26 + $0xe0] ss:$8 sps:$4 sm:$0xff]  }
 0x76e   :  { %4060 = vmatpush1.bf16.msra.mxu1 %v14793_v6  ;;  %v14822_v6 = vld [vmem:[#allocation23 + $0x374] ss:$8 sps:$4 sm:$0xff]  }
 0x770   :  { %3757 = vmatpush1.bf16.msra.mxu0 %v14697_v5  ;;  %v14798_v5 = vld [vmem:[#allocation26 + $0xf4] ss:$8 sps:$4 sm:$0xff]  }
 0x771   :  { %3758 = vmatprep.subr.bf16.mxu0 %v14702_v16  ;;  %v14796_v16 = vld [vmem:[#allocation26 + $0xf0] ss:$8 sps:$4 sm:$0xff]   ;;  %4061 = vmatprep.subr.bf16.mxu1 %v14798_v5  ;;  %v14825_v5 = vld [vmem:[#allocation23 + $0x384] ss:$8 sps:$4 sm:$0xff]  }
 0x772   :  { %4062 = vmatpush1.bf16.msra.mxu1 %v14796_v16  ;;  %v14823_v16 = vld [vmem:[#allocation23 + $0x380] ss:$8 sps:$4 sm:$0xff]  }
 0x774   :  { %3759 = vmatpush1.bf16.msra.mxu0 %v14700_v61  ;;  %v16597_v61 = vmov 1  }
 0x775   :  { %3771 = vmatprep.subr.bf16.mxu0 %v14705_v57  ;;  %14198 = vset.pattern.permute.xlu1 %v16597_v61  ;;  %v14801_v57 = vld [vmem:[#allocation23 + $0x304] ss:$8 sps:$4 sm:$0xff]  }
 0x776   :  { %4189 = vperm.xlu1 %14198, %v17593_v24   ;;  %4725 = vmatprep.subr.bf16.mxu1 %v14801_v57  ;;  %v14826_v57 = vld [vmem:[#allocation23 + $0x390] ss:$8 sps:$4 sm:$0xff]  }
 0x777   :  { %3761 = vmatmul.mubr.bf16.vlgmr.msra.gmra.mrb[8].mxu0 %v3182_v0  ;;  %v14723_v0 = vld [vmem:[#allocation23 + $0x264] ss:$8 sps:$4 sm:$0xff]  }
 0x778   :  { %3772 = vmatpush1.bf16.msra.mxu0 %v14703_v49  ;;  %3803 = vmatprep.mubr.bf16.mxu0 %v3185_v37  ;;  %v14724_v37 = vld [vmem:[#allocation23 + $0x270] ss:$8 sps:$4 sm:$0xff]   ;;  %v16598_v49 = vmov 7  }
 0x779   :  { %3773 = vmatprep.subr.bf16.mxu0 %v14708_v60  ;;  %14199 = vset.pattern.permute.xlu0 %v16598_v49  ;;  %v3193_v60 = vsub.s32 4, %v16996_v50 }
 0x77a   :  { %4210 = vperm.xlu0 %14199, %v17593_v24   ;;  %4193 = vperm.xlu1 %14198, %v17590_v33  }
 0x77c   :  { %3774 = vmatpush1.bf16.msra.mxu0 %v14706_v48 }
 0x77d   :  { %3775 = vmatprep.subr.bf16.mxu0 %v14711_v27 }
 0x77e   :  { %14202 = vset.pattern.permute.xlu0 %v18905_v19  ;;  %14200 = vset.pattern.permute.xlu1 %v16598_v49 }
 0x77f   :  { %5285 = vperm.xlu0 %14202, %v17590_v33   ;;  %4214 = vperm.xlu1 %14200, %v17590_v33  }
 0x780   :  { %3776 = vmatpush1.bf16.msra.mxu0 %v14709_v62 }
 0x781   :  { %3777 = vmatprep.subr.bf16.mxu0 %v14714_v21 }
 0x783   :  { %14205 = vset.pattern.permute.xlu0 %v16597_v61  ;;  %14201 = vset.pattern.permute.xlu1 %v18905_v19  ;;  %v14828_v61 = vld [vmem:[#allocation23 + $0x394] ss:$8 sps:$4 sm:$0xff]   ;;  %v14831_v19 = vld [vmem:[#allocation23 + $0x3a4] ss:$8 sps:$4 sm:$0xff]  }
 0x784   :  { %3778 = vmatpush1.bf16.msra.mxu0 %v14712_v58  ;;  %5281 = vperm.xlu1 %14201, %v17593_v24  }
 0x785   :  { %3779 = vmatprep.subr.bf16.mxu0 %v14717_v46 }
 0x788   :  { %3780 = vmatpush1.bf16.msra.mxu0 %v14715_v4  ;;  %14203 = vset.pattern.permute.xlu1 %v18906_v25 }
 0x789   :  { %3781 = vmatprep.subr.bf16.mxu0 %v14720_v40 }
 0x78c   :  { %3782 = vmatpush1.bf16.msra.mxu0 %v14718_v17 }
 0x78d   :  { %3783 = vmatprep.subr.bf16.mxu0 %v14723_v0 }
 0x790   :  { %3784 = vmatpush1.bf16.msra.mxu0 %v14721_v39 }
 0x791   :  { %3785 = vmatprep.subr.bf16.mxu0 %v14726_v30 }
 0x794   :  { %3786 = vmatpush1.bf16.msra.mxu0 %v14724_v37 }
 0x795   :  { %3787 = vmatprep.subr.bf16.mxu0 %v14729_v51 }
 0x798   :  { %3788 = vmatpush1.bf16.msra.mxu0 %v14727_v15 }
 0x799   :  { %3789 = vmatprep.subr.bf16.mxu0 %v14732_v63 }
 0x79c   :  { %3790 = vmatpush1.bf16.msra.mxu0 %v14730_v41  ;;  %v14799_v41 = vld [vmem:[#allocation23 + $0x300] ss:$8 sps:$4 sm:$0xff]  }
 0x79d   :  { %3791 = vmatprep.subr.bf16.mxu0 %v14735_v13  ;;  %v14804_v13 = vld [vmem:[#allocation23 + $0x314] ss:$8 sps:$4 sm:$0xff]  }
 0x7a0   :  { %3792 = vmatpush1.bf16.msra.mxu0 %v14733_v34  ;;  %v14802_v34 = vld [vmem:[#allocation23 + $0x310] ss:$8 sps:$4 sm:$0xff]  }
 0x7a1   :  { %3793 = vmatprep.subr.bf16.mxu0 %v14738_v3  ;;  %v14807_v3 = vld [vmem:[#allocation23 + $0x324] ss:$8 sps:$4 sm:$0xff]  }
 0x7a4   :  { %3794 = vmatpush1.bf16.msra.mxu0 %v14736_v22  ;;  %v14805_v22 = vld [vmem:[#allocation23 + $0x320] ss:$8 sps:$4 sm:$0xff]  }
 0x7a5   :  { %3795 = vmatprep.subr.bf16.mxu0 %v14741_v10  ;;  %v14810_v10 = vld [vmem:[#allocation23 + $0x334] ss:$8 sps:$4 sm:$0xff]  }
 0x7a8   :  { %3796 = vmatpush1.bf16.msra.mxu0 %v14739_v47  ;;  %v14808_v47 = vld [vmem:[#allocation23 + $0x330] ss:$8 sps:$4 sm:$0xff]  }
 0x7a9   :  { %3797 = vmatprep.subr.bf16.mxu0 %v14744_v59  ;;  %v14813_v59 = vld [vmem:[#allocation23 + $0x344] ss:$8 sps:$4 sm:$0xff]  }
 0x7ac   :  { %3798 = vmatpush1.bf16.msra.mxu0 %v14742_v38  ;;  %v14811_v38 = vld [vmem:[#allocation23 + $0x340] ss:$8 sps:$4 sm:$0xff]  }
 0x7ad   :  { %3799 = vmatprep.subr.bf16.mxu0 %v14747_v36  ;;  %v14816_v36 = vld [vmem:[#allocation23 + $0x354] ss:$8 sps:$4 sm:$0xff]  }
 0x7b0   :  { %3800 = vmatpush1.bf16.msra.mxu0 %v14745_v14  ;;  %v14814_v14 = vld [vmem:[#allocation23 + $0x350] ss:$8 sps:$4 sm:$0xff]  }
 0x7b1   :  { %3801 = vmatprep.subr.bf16.mxu0 %v14750_v42  ;;  %v14819_v42 = vld [vmem:[#allocation23 + $0x364] ss:$8 sps:$4 sm:$0xff]  }
 0x7b4   :  { %3802 = vmatpush1.bf16.msra.mxu0 %v14748_v31  ;;  %v14817_v31 = vld [vmem:[#allocation23 + $0x360] ss:$8 sps:$4 sm:$0xff]  }
 0x7b7   :  { %3804 = vmatmul.mubr.bf16.vlgmr.msra.gmra.mrb[8].mxu0 %v3184_v8  ;;  %v17761_v8 = vld [vmem:[#allocation25] sm:$0xff] }
 0x7b8   :  { %v3190_v48 = vrot.slane %v17761_v8, %v16999_v52  ;;  %v3194_v27 = vrot.slane %v17761_v8, %v3193_v60 }
 0x7ba   :  { %v3200_v33 = vrot.slane %v3190_v48, %v16999_v52  ;;  %v3204_v62 = vrot.slane %v3194_v27, %v16999_v52  ;;  %v14829_v48 = vld [vmem:[#allocation23 + $0x3a0] ss:$8 sps:$4 sm:$0xff]   ;;  %v14834_v27 = vld [vmem:[#allocation23 + $0x3b4] ss:$8 sps:$4 sm:$0xff]  }
 0x88a   :  { %v3805_v21 = vpop.f32.mrb[8].mxu0 }
 0x88b   :  { %v13989_v58 = vadd.f32 %v3805_v21, %v3200_v33  ;;  %v3807_v24 = vpop.f32.mrb[9].mxu0  ;;  %v14837_v21 = vld [vmem:[#allocation23 + $0x3c4] ss:$8 sps:$4 sm:$0xff]  }
 0x88c   :  { %v13990_v46 = vadd.f32 %v3807_v24, %v3204_v62  ;;  %v3809_v4 = vpop.f32.mrb[10].mxu0  ;;  %v14840_v24 = vld [vmem:[#allocation23 + $0x3d4] ss:$8 sps:$4 sm:$0xff]  }
 0x88d   :  { %v13991_v40 = vadd.f32 %v3809_v4, %v3200_v33  ;;  %v3811_v17 = vpop.f32.mrb[11].mxu0  ;;  %v3814_v39 = vmax.f32 %v13989_v58, 0.0  ;;  %v14832_v33 = vld [vmem:[#allocation23 + $0x3b0] ss:$8 sps:$4 sm:$0xff]   ;;  %v14841_v4 = vld [vmem:[#allocation23 + $0x3e0] ss:$8 sps:$4 sm:$0xff]  }
 0x88e   :  { %v13992_v0 = vadd.f32 %v3811_v17, %v3204_v62  ;;  %v3815_v37 = vmax.f32 %v13990_v46, 0.0  ;;  %v14835_v62 = vld [vmem:[#allocation23 + $0x3c0] ss:$8 sps:$4 sm:$0xff]   ;;  %v14838_v58 = vld [vmem:[#allocation23 + $0x3d0] ss:$8 sps:$4 sm:$0xff]  }
 0x88f   :  { %v3816_v30 = vmax.f32 %v13991_v40, 0.0  ;;  %v14843_v46 = vld [vmem:[#allocation23 + $0x3e4] ss:$8 sps:$4 sm:$0xff]   ;;  %v14846_v40 = vld [vmem:[#allocation23 + $0x3f4] ss:$8 sps:$4 sm:$0xff]  }
 0x890   :  { %v3817_v51 = vmax.f32 %v13992_v0, 0.0  ;;  %v14844_v17 = vld [vmem:[#allocation23 + $0x3f0] ss:$8 sps:$4 sm:$0xff]   ;;  %v14849_v0 = vld [vmem:[#allocation23 + $0x404] ss:$8 sps:$4 sm:$0xff]  }
 0x891   :  { %v3818_v15 = vpack.c.bf16 %v3816_v30, %v3814_v39  ;;  %v17771_v39 = vld [vmem:[#allocation28] sm:$0xff] }
 0x892   :  { %v3819_v63 = vpack.c.bf16 %v3817_v51, %v3815_v37  ;;  %v3856_v30 = vrot.slane %v17771_v39, %v16999_v52  ;;  %v3860_v37 = vrot.slane %v17771_v39, %v3193_v60 }
 0x894   :  { %4063 = vmatprep.mubr.bf16.mxu1 %v3819_v63  ;;  %v3866_v51 = vrot.slane %v3856_v30, %v16999_v52  ;;  %v17780_v63 = vpop.permute.xlu1 %4189 }
 0x895   :  { %4064 = vmatmul.mubr.bf16.vlgmr.msra.gmra.mrb[20].mxu1 %v3818_v15  ;;  %v3870_v15 = vrot.slane %v3860_v37, %v16999_v52 }
 0x896   :  { %4726 = vmatpush1.bf16.msra.mxu1 %v14799_v41 }
 0x897   :  { %4727 = vmatprep.subr.bf16.mxu1 %v14804_v13 }
 0x89a   :  { %4728 = vmatpush1.bf16.msra.mxu1 %v14802_v34 }
 0x89b   :  { %4729 = vmatprep.subr.bf16.mxu1 %v14807_v3 }
 0x89e   :  { %4730 = vmatpush1.bf16.msra.mxu1 %v14805_v22 }
 0x89f   :  { %4731 = vmatprep.subr.bf16.mxu1 %v14810_v10 }
 0x8a2   :  { %4732 = vmatpush1.bf16.msra.mxu1 %v14808_v47 }
 0x8a3   :  { %4733 = vmatprep.subr.bf16.mxu1 %v14813_v59 }
 0x8a6   :  { %4734 = vmatpush1.bf16.msra.mxu1 %v14811_v38 }
 0x8a7   :  { %4735 = vmatprep.subr.bf16.mxu1 %v14816_v36  ;;  %v17788_v36 = vpop.permute.xlu1 %4193 }
 0x8aa   :  { %4736 = vmatpush1.bf16.msra.mxu1 %v14814_v14 }
 0x8ab   :  { %4737 = vmatprep.subr.bf16.mxu1 %v14819_v42 }
 0x8ae   :  { %4738 = vmatpush1.bf16.msra.mxu1 %v14817_v31 }
 0x8af   :  { %4739 = vmatprep.subr.bf16.mxu1 %v14822_v6 }
 0x8b2   :  { %4740 = vmatpush1.bf16.msra.mxu1 %v14820_v35 }
 0x8b3   :  { %4741 = vmatprep.subr.bf16.mxu1 %v14825_v5 }
 0x8b6   :  { %4742 = vmatpush1.bf16.msra.mxu1 %v14823_v16 }
 0x8b7   :  { %4743 = vmatprep.subr.bf16.mxu1 %v14828_v61 }
 0x8ba   :  { %4744 = vmatpush1.bf16.msra.mxu1 %v14826_v57 }
 0x8bb   :  { %4745 = vmatprep.subr.bf16.mxu1 %v14831_v19  ;;  %v17812_v19 = vpop.permute.xlu1 %4214 }
 0x8be   :  { %4746 = vmatpush1.bf16.msra.mxu1 %v14829_v48 }
 0x8bf   :  { %4747 = vmatprep.subr.bf16.mxu1 %v14834_v27 }
 0x8c2   :  { %4748 = vmatpush1.bf16.msra.mxu1 %v14832_v33 }
 0x8c3   :  { %4749 = vmatprep.subr.bf16.mxu1 %v14837_v21 }
 0x8c6   :  { %4750 = vmatpush1.bf16.msra.mxu1 %v14835_v62 }
 0x8c7   :  { %4751 = vmatprep.subr.bf16.mxu1 %v14840_v24  ;;  %v17822_v24 = vpop.permute.xlu0 %4210 }
 0x8ca   :  { %4752 = vmatpush1.bf16.msra.mxu1 %v14838_v58 }
 0x8cb   :  { %4753 = vmatprep.subr.bf16.mxu1 %v14843_v46 }
 0x8ce   :  { %4754 = vmatpush1.bf16.msra.mxu1 %v14841_v4 }
 0x8cf   :  { %4755 = vmatprep.subr.bf16.mxu1 %v14846_v40 }
 0x8d2   :  { %4756 = vmatpush1.bf16.msra.mxu1 %v14844_v17 }
 0x8d3   :  { %4768 = vmatprep.subr.bf16.mxu1 %v14849_v0 }
 0x968   :  { %v4065_v41 = vpop.f32.mrb[20].mxu1 }
 0x969   :  { %v4066_v13 = vadd.f32 %v4065_v41, %v3866_v51  ;;  %v4067_v34 = vpop.f32.mrb[21].mxu1 }
 0x96a   :  { %v4068_v3 = vadd.f32 %v4067_v34, %v3870_v15  ;;  %v4069_v22 = vpop.f32.mrb[22].mxu1 }
 0x96b   :  { %v17783_v10 = vadd.f32 %v17675_v43, %v4066_v13  ;;  %v4070_v47 = vadd.f32 %v4069_v22, %v3866_v51  ;;  %v4071_v59 = vpop.f32.mrb[23].mxu1 }
 0x96c   :  { %v17786_v38 = vadd.f32 %v17677_v55, %v4068_v3  ;;  %v4072_v60 = vadd.f32 %v4071_v59, %v3870_v15  ;;  %v14847_v59 = vld [vmem:[#allocation23 + $0x400] ss:$8 sps:$4 sm:$0xff]  }
 0x96d   :  { %v17791_v14 = vmax.f32 %v17783_v10, 0.0  ;;  %v17794_v42 = vadd.f32 %v17684_v32, %v4070_v47 }
 0x96e   :  { %v4176_v31 = vmax.f32 %v17786_v38, 0.0  ;;  %v17798_v6 = vadd.f32 %v17689_v44, %v4072_v60 }
 0x96f   :  { %v17801_v43 = vmax.f32 %v17794_v42, 0.0  ;;  %v4179_v55 = vrot.slane %v17791_v14, 5  ;;  %v4200_v32 = vrot.slane %v17791_v14, 3 }
 0x970   :  { %v4178_v35 = vmax.f32 %v17798_v6, 0.0  ;;  %v4180_v61 = vrot.slane %v4176_v31, 5  ;;  %v4201_v48 = vrot.slane %v4176_v31, 3 }
 0x971   :  { %v4181_v5 = vrot.slane %v17801_v43, 5  ;;  %v4202_v16 = vrot.slane %v17801_v43, 3  ;;  %v4223_v44 = vpack.c.bf16 %v17801_v43, %v17791_v14  ;;  %v14912_v14 = vld [vmem:[#allocation23 + $0x554] ss:$8 sps:$4 sm:$0xff]   ;;  %v14910_v43 = vld [vmem:[#allocation23 + $0x550] ss:$8 sps:$4 sm:$0xff]  }
 0x972   :  { %v4182_v57 = vrot.slane %v4178_v35, 5  ;;  %v4203_v27 = vrot.slane %v4178_v35, 3 }
 0x973   :  { %v4186_v33 = vsel %vm4183_vm7, %v4181_v5, %v4179_v55  ;;  %v4184_v62 = vsel %vm4183_vm7, %v4179_v55, %v4181_v5  ;;  %v4207_v21 = vsel %vm4204_vm8, %v4202_v16, %v4200_v32  ;;  %v4205_v58 = vsel %vm4204_vm8, %v4200_v32, %v4202_v16  ;;  %v14852_v55 = vld [vmem:[#allocation23 + $0x414] ss:$8 sps:$4 sm:$0xff]   ;;  %v14943_v32 = vld [vmem:[#allocation26 + $0x100] ss:$8 sps:$4 sm:$0xff]  }
 0x974   :  { %v4196_v46 = vmul.f32 %v17780_v63, %v4186_v33  ;;  %v4185_v4 = vsel %vm4183_vm7, %v4180_v61, %v4182_v57  ;;  %v4208_v40 = vsel %vm4204_vm8, %v4203_v27, %v4201_v48  ;;  %v17831_v0 = vmul.f32 %v17812_v19, %v4207_v21  ;;  %v14945_v16 = vld [vmem:[#allocation26 + $0x104] ss:$8 sps:$4 sm:$0xff]  }
 0x975   :  { %v4199_v17 = vmul.f32 %v17788_v36, %v4185_v4  ;;  %v17834_v30 = vmul.f32 %v17812_v19, %v4208_v40  ;;  %v4206_v37 = vsel %vm4204_vm8, %v4201_v48, %v4203_v27  ;;  %v4198_v51 = vmul.f32 %v17788_v36, %v4184_v62  ;;  %v14855_v48 = vld [vmem:[#allocation23 + $0x424] ss:$8 sps:$4 sm:$0xff]   ;;  %5071 = vmatprep.subr.bf16.mxu0 %v14945_v16  ;;  %v14946_v27 = vld [vmem:[#allocation26 + $0x110] ss:$8 sps:$4 sm:$0xff]   ;;  %v14858_v21 = vld [vmem:[#allocation23 + $0x434] ss:$8 sps:$4 sm:$0xff]  }
 0x976   :  { %v17840_v15 = vmul.f32 %v17822_v24, %v4205_v58  ;;  %v17843_v41 = vmul.f32 %v17822_v24, %v4206_v37  ;;  %v4187_v13 = vsel %vm4183_vm7, %v4182_v57, %v4180_v61  ;;  %v4224_v5 = vpack.c.bf16 %v4178_v35, %v4176_v31  ;;  %v14850_v61 = vld [vmem:[#allocation23 + $0x410] ss:$8 sps:$4 sm:$0xff]   ;;  %v14948_v57 = vld [vmem:[#allocation26 + $0x114] ss:$8 sps:$4 sm:$0xff]   ;;  %5072 = vmatpush1.bf16.msra.mxu0 %v14943_v32  ;;  %v14951_v33 = vld [vmem:[#allocation26 + $0x124] ss:$8 sps:$4 sm:$0xff]  }
 0x977   :  { %v4197_v34 = vmul.f32 %v17780_v63, %v4187_v13  ;;  %v4221_v60 = vpack.c.bf16 %v4198_v51, %v4196_v46  ;;  %5073 = vmatprep.subr.bf16.mxu0 %v14948_v57  ;;  %v14853_v62 = vld [vmem:[#allocation23 + $0x420] ss:$8 sps:$4 sm:$0xff]   ;;  %v14954_v35 = vld [vmem:[#allocation26 + $0x134] ss:$8 sps:$4 sm:$0xff]   ;;  %v14856_v58 = vld [vmem:[#allocation23 + $0x430] ss:$8 sps:$4 sm:$0xff]  }
 0x978   :  { %v4225_v3 = vpack.c.bf16 %v17831_v0, %v17840_v15  ;;  %v4226_v22 = vpack.c.bf16 %v17834_v30, %v17843_v41  ;;  %v14949_v31 = vld [vmem:[#allocation26 + $0x120] ss:$8 sps:$4 sm:$0xff]   ;;  %v14861_v46 = vld [vmem:[#allocation23 + $0x444] ss:$8 sps:$4 sm:$0xff]   ;;  %v14952_v4 = vld [vmem:[#allocation26 + $0x130] ss:$8 sps:$4 sm:$0xff]  }
 0x979   :  { %v4222_v47 = vpack.c.bf16 %v4199_v17, %v4197_v34  ;;  %v14957_v40 = vld [vmem:[#allocation26 + $0x144] ss:$8 sps:$4 sm:$0xff]   ;;  %v14859_v17 = vld [vmem:[#allocation23 + $0x440] ss:$8 sps:$4 sm:$0xff]   ;;  %v14960_v13 = vld [vmem:[#allocation26 + $0x154] ss:$8 sps:$4 sm:$0xff]  }
 0x97a   :  { %5074 = vmatpush1.bf16.msra.mxu0 %v14946_v27  ;;  %v14864_v37 = vld [vmem:[#allocation23 + $0x454] ss:$8 sps:$4 sm:$0xff]   ;;  %v14955_v51 = vld [vmem:[#allocation26 + $0x140] ss:$8 sps:$4 sm:$0xff]   ;;  %v14873_v57 = vld [vmem:[#allocation23 + $0x484] ss:$8 sps:$4 sm:$0xff]  }
 0x97b   :  { %4757 = vmatprep.mubr.bf16.mxu1 %v4222_v47  ;;  %5075 = vmatprep.subr.bf16.mxu0 %v14951_v33  ;;  %v14862_v34 = vld [vmem:[#allocation23 + $0x450] ss:$8 sps:$4 sm:$0xff]   ;;  %v14867_v47 = vld [vmem:[#allocation23 + $0x464] ss:$8 sps:$4 sm:$0xff]   ;;  %v14871_v33 = vld [vmem:[#allocation23 + $0x480] ss:$8 sps:$4 sm:$0xff]  }
 0x97c   :  { %4758 = vmatmul.mubr.bf16.vlgmr.msra.gmra.mrb[24].mxu1 %v4221_v60  ;;  %v14963_v60 = vld [vmem:[#allocation26 + $0x164] ss:$8 sps:$4 sm:$0xff]   ;;  %v14961_v32 = vld [vmem:[#allocation26 + $0x160] ss:$8 sps:$4 sm:$0xff]   ;;  %v14966_v16 = vld [vmem:[#allocation26 + $0x174] ss:$8 sps:$4 sm:$0xff]  }
 0x97d   :  { %4769 = vmatpush1.bf16.msra.mxu1 %v14847_v59  ;;  %4800 = vmatprep.mubr.bf16.mxu1 %v4224_v5  ;;  %v14958_v59 = vld [vmem:[#allocation26 + $0x150] ss:$8 sps:$4 sm:$0xff]   ;;  %v14870_v5 = vld [vmem:[#allocation23 + $0x474] ss:$8 sps:$4 sm:$0xff]  }
 0x97e   :  { %4770 = vmatprep.subr.bf16.mxu1 %v14852_v55  ;;  %5076 = vmatpush1.bf16.msra.mxu0 %v14949_v31  ;;  %v14865_v55 = vld [vmem:[#allocation23 + $0x460] ss:$8 sps:$4 sm:$0xff]   ;;  %v14969_v27 = vld [vmem:[#allocation26 + $0x184] ss:$8 sps:$4 sm:$0xff]   ;;  %v14972_v31 = vld [vmem:[#allocation26 + $0x194] ss:$8 sps:$4 sm:$0xff]  }
 0x97f   :  { %5077 = vmatprep.subr.bf16.mxu0 %v14954_v35  ;;  %v14874_v35 = vld [vmem:[#allocation23 + $0x490] ss:$8 sps:$4 sm:$0xff]   ;;  %v14913_v30 = vld [vmem:[#allocation23 + $0x560] ss:$8 sps:$4 sm:$0xff]   ;;  %v14918_v41 = vld [vmem:[#allocation23 + $0x574] ss:$8 sps:$4 sm:$0xff]  }
 0x981   :  { %4771 = vmatpush1.bf16.msra.mxu1 %v14850_v61  ;;  %v14868_v61 = vld [vmem:[#allocation23 + $0x470] ss:$8 sps:$4 sm:$0xff]  }
 0x982   :  { %4772 = vmatprep.subr.bf16.mxu1 %v14855_v48  ;;  %5078 = vmatpush1.bf16.msra.mxu0 %v14952_v4  ;;  %v14964_v48 = vld [vmem:[#allocation26 + $0x170] ss:$8 sps:$4 sm:$0xff]   ;;  %v14975_v4 = vld [vmem:[#allocation26 + $0x1a4] ss:$8 sps:$4 sm:$0xff]  }
 0x983   :  { %5079 = vmatprep.subr.bf16.mxu0 %v14957_v40  ;;  %v14877_v40 = vld [vmem:[#allocation23 + $0x4a0] ss:$8 sps:$4 sm:$0xff]  }
 0x985   :  { %4773 = vmatpush1.bf16.msra.mxu1 %v14853_v62  ;;  %v14876_v62 = vld [vmem:[#allocation23 + $0x494] ss:$8 sps:$4 sm:$0xff]  }
 0x986   :  { %4774 = vmatprep.subr.bf16.mxu1 %v14858_v21  ;;  %5080 = vmatpush1.bf16.msra.mxu0 %v14955_v51  ;;  %v14967_v21 = vld [vmem:[#allocation26 + $0x180] ss:$8 sps:$4 sm:$0xff]   ;;  %v14978_v51 = vld [vmem:[#allocation26 + $0x1b4] ss:$8 sps:$4 sm:$0xff]  }
 0x987   :  { %5081 = vmatprep.subr.bf16.mxu0 %v14960_v13  ;;  %v14880_v13 = vld [vmem:[#allocation23 + $0x4b0] ss:$8 sps:$4 sm:$0xff]  }
 0x989   :  { %4775 = vmatpush1.bf16.msra.mxu1 %v14856_v58  ;;  %v14879_v58 = vld [vmem:[#allocation23 + $0x4a4] ss:$8 sps:$4 sm:$0xff]  }
 0x98a   :  { %4776 = vmatprep.subr.bf16.mxu1 %v14861_v46  ;;  %5082 = vmatpush1.bf16.msra.mxu0 %v14958_v59  ;;  %v14970_v46 = vld [vmem:[#allocation26 + $0x190] ss:$8 sps:$4 sm:$0xff]   ;;  %v14981_v59 = vld [vmem:[#allocation26 + $0x1c4] ss:$8 sps:$4 sm:$0xff]  }
 0x98b   :  { %5083 = vmatprep.subr.bf16.mxu0 %v14963_v60  ;;  %v14883_v60 = vld [vmem:[#allocation23 + $0x4c0] ss:$8 sps:$4 sm:$0xff]  }
 0x98d   :  { %4777 = vmatpush1.bf16.msra.mxu1 %v14859_v17  ;;  %v14882_v17 = vld [vmem:[#allocation23 + $0x4b4] ss:$8 sps:$4 sm:$0xff]  }
 0x98e   :  { %4778 = vmatprep.subr.bf16.mxu1 %v14864_v37  ;;  %5084 = vmatpush1.bf16.msra.mxu0 %v14961_v32  ;;  %v14973_v37 = vld [vmem:[#allocation26 + $0x1a0] ss:$8 sps:$4 sm:$0xff]   ;;  %v14984_v32 = vld [vmem:[#allocation26 + $0x1d4] ss:$8 sps:$4 sm:$0xff]  }
 0x98f   :  { %5085 = vmatprep.subr.bf16.mxu0 %v14966_v16  ;;  %v14886_v16 = vld [vmem:[#allocation23 + $0x4d0] ss:$8 sps:$4 sm:$0xff]  }
 0x991   :  { %4779 = vmatpush1.bf16.msra.mxu1 %v14862_v34  ;;  %v14885_v34 = vld [vmem:[#allocation23 + $0x4c4] ss:$8 sps:$4 sm:$0xff]  }
 0x992   :  { %4780 = vmatprep.subr.bf16.mxu1 %v14867_v47  ;;  %5086 = vmatpush1.bf16.msra.mxu0 %v14964_v48  ;;  %v14976_v47 = vld [vmem:[#allocation26 + $0x1b0] ss:$8 sps:$4 sm:$0xff]  }
 0x993   :  { %5087 = vmatprep.subr.bf16.mxu0 %v14969_v27  ;;  %v14889_v48 = vld [vmem:[#allocation23 + $0x4e0] ss:$8 sps:$4 sm:$0xff]   ;;  %v14894_v27 = vld [vmem:[#allocation23 + $0x4f4] ss:$8 sps:$4 sm:$0xff]  }
 0x995   :  { %4781 = vmatpush1.bf16.msra.mxu1 %v14865_v55  ;;  %v14888_v55 = vld [vmem:[#allocation23 + $0x4d4] ss:$8 sps:$4 sm:$0xff]  }
 0x996   :  { %4782 = vmatprep.subr.bf16.mxu1 %v14870_v5  ;;  %5088 = vmatpush1.bf16.msra.mxu0 %v14967_v21  ;;  %v14979_v5 = vld [vmem:[#allocation26 + $0x1c0] ss:$8 sps:$4 sm:$0xff]  }
 0x997   :  { %5089 = vmatprep.subr.bf16.mxu0 %v14972_v31  ;;  %v14895_v21 = vld [vmem:[#allocation23 + $0x500] ss:$8 sps:$4 sm:$0xff]   ;;  %v14900_v31 = vld [vmem:[#allocation23 + $0x514] ss:$8 sps:$4 sm:$0xff]  }
 0x999   :  { %4783 = vmatpush1.bf16.msra.mxu1 %v14868_v61  ;;  %v14891_v61 = vld [vmem:[#allocation23 + $0x4e4] ss:$8 sps:$4 sm:$0xff]  }
 0x99a   :  { %4784 = vmatprep.subr.bf16.mxu1 %v14873_v57  ;;  %5090 = vmatpush1.bf16.msra.mxu0 %v14970_v46  ;;  %v14982_v57 = vld [vmem:[#allocation26 + $0x1d0] ss:$8 sps:$4 sm:$0xff]  }
 0x99b   :  { %5091 = vmatprep.subr.bf16.mxu0 %v14975_v4  ;;  %v14901_v46 = vld [vmem:[#allocation23 + $0x520] ss:$8 sps:$4 sm:$0xff]   ;;  %v14906_v4 = vld [vmem:[#allocation23 + $0x534] ss:$8 sps:$4 sm:$0xff]  }
 0x99d   :  { %4785 = vmatpush1.bf16.msra.mxu1 %v14871_v33  ;;  %v14892_v33 = vld [vmem:[#allocation23 + $0x4f0] ss:$8 sps:$4 sm:$0xff]  }
 0x99e   :  { %4786 = vmatprep.subr.bf16.mxu1 %v14876_v62  ;;  %5092 = vmatpush1.bf16.msra.mxu0 %v14973_v37  ;;  %v14897_v62 = vld [vmem:[#allocation23 + $0x504] ss:$8 sps:$4 sm:$0xff]   ;;  %v14907_v37 = vld [vmem:[#allocation23 + $0x540] ss:$8 sps:$4 sm:$0xff]  }
 0x99f   :  { %5093 = vmatprep.subr.bf16.mxu0 %v14978_v51  ;;  %v14921_v51 = vld [vmem:[#allocation23 + $0x584] ss:$8 sps:$4 sm:$0xff]  }
 0x9a1   :  { %4787 = vmatpush1.bf16.msra.mxu1 %v14874_v35  ;;  %v14898_v35 = vld [vmem:[#allocation23 + $0x510] ss:$8 sps:$4 sm:$0xff]  }
 0x9a2   :  { %4788 = vmatprep.subr.bf16.mxu1 %v14879_v58  ;;  %5094 = vmatpush1.bf16.msra.mxu0 %v14976_v47  ;;  %v14903_v58 = vld [vmem:[#allocation23 + $0x524] ss:$8 sps:$4 sm:$0xff]   ;;  %v14922_v47 = vld [vmem:[#allocation23 + $0x590] ss:$8 sps:$4 sm:$0xff]  }
 0x9a3   :  { %5095 = vmatprep.subr.bf16.mxu0 %v14981_v59  ;;  %v14927_v59 = vld [vmem:[#allocation23 + $0x5a4] ss:$8 sps:$4 sm:$0xff]  }
 0x9a5   :  { %4789 = vmatpush1.bf16.msra.mxu1 %v14877_v40  ;;  %v14904_v40 = vld [vmem:[#allocation23 + $0x530] ss:$8 sps:$4 sm:$0xff]  }
 0x9a6   :  { %4790 = vmatprep.subr.bf16.mxu1 %v14882_v17  ;;  %5096 = vmatpush1.bf16.msra.mxu0 %v14979_v5  ;;  %v14909_v17 = vld [vmem:[#allocation23 + $0x544] ss:$8 sps:$4 sm:$0xff]   ;;  %v14928_v5 = vld [vmem:[#allocation23 + $0x5b0] ss:$8 sps:$4 sm:$0xff]  }
 0x9a7   :  { %5097 = vmatprep.subr.bf16.mxu0 %v14984_v32  ;;  %v14933_v32 = vld [vmem:[#allocation23 + $0x5c4] ss:$8 sps:$4 sm:$0xff]  }
 0x9a9   :  { %4791 = vmatpush1.bf16.msra.mxu1 %v14880_v13  ;;  %v14919_v13 = vld [vmem:[#allocation23 + $0x580] ss:$8 sps:$4 sm:$0xff]  }
 0x9aa   :  { %4792 = vmatprep.subr.bf16.mxu1 %v14885_v34  ;;  %5098 = vmatpush1.bf16.msra.mxu0 %v14982_v57  ;;  %v14924_v34 = vld [vmem:[#allocation23 + $0x594] ss:$8 sps:$4 sm:$0xff]   ;;  %v14934_v57 = vld [vmem:[#allocation23 + $0x5d0] ss:$8 sps:$4 sm:$0xff]  }
 0x9ad   :  { %4793 = vmatpush1.bf16.msra.mxu1 %v14883_v60  ;;  %v14925_v60 = vld [vmem:[#allocation23 + $0x5a0] ss:$8 sps:$4 sm:$0xff]  }
 0x9ae   :  { %4794 = vmatprep.subr.bf16.mxu1 %v14888_v55  ;;  %v14930_v55 = vld [vmem:[#allocation23 + $0x5b4] ss:$8 sps:$4 sm:$0xff]  }
 0x9b1   :  { %4795 = vmatpush1.bf16.msra.mxu1 %v14886_v16  ;;  %v14931_v16 = vld [vmem:[#allocation23 + $0x5c0] ss:$8 sps:$4 sm:$0xff]  }
 0x9b2   :  { %4796 = vmatprep.subr.bf16.mxu1 %v14891_v61  ;;  %v14936_v61 = vld [vmem:[#allocation23 + $0x5d4] ss:$8 sps:$4 sm:$0xff]  }
 0x9b5   :  { %4797 = vmatpush1.bf16.msra.mxu1 %v14889_v48  ;;  %v14939_v48 = vld [vmem:[#allocation23 + $0x5e4] ss:$8 sps:$4 sm:$0xff]  }
 0x9b6   :  { %4798 = vmatprep.subr.bf16.mxu1 %v14894_v27  ;;  %v14937_v27 = vld [vmem:[#allocation23 + $0x5e0] ss:$8 sps:$4 sm:$0xff]  }
 0x9b9   :  { %4799 = vmatpush1.bf16.msra.mxu1 %v14892_v33  ;;  %v14942_v33 = vld [vmem:[#allocation23 + $0x5f4] ss:$8 sps:$4 sm:$0xff]  }
 0x9ba   :  { %4811 = vmatprep.subr.bf16.mxu1 %v14897_v62  ;;  %v14940_v62 = vld [vmem:[#allocation23 + $0x5f0] ss:$8 sps:$4 sm:$0xff]  }
 0x9bc   :  { %4801 = vmatmul.mubr.bf16.vlgmr.msra.gmra.mrb[24].mxu1 %v4223_v44  ;;  %v14915_v44 = vld [vmem:[#allocation23 + $0x564] ss:$8 sps:$4 sm:$0xff]  }
 0x9bd   :  { %4812 = vmatpush1.bf16.msra.mxu1 %v14895_v21  ;;  %4843 = vmatprep.mubr.bf16.mxu1 %v4226_v22  ;;  %v14916_v22 = vld [vmem:[#allocation23 + $0x570] ss:$8 sps:$4 sm:$0xff]  }
 0x9be   :  { %4813 = vmatprep.subr.bf16.mxu1 %v14900_v31  ;;  %v14985_v21 = vld [vmem:[#allocation26 + $0x1e0] ss:$8 sps:$4 sm:$0xff]   ;;  %v14987_v31 = vld [vmem:[#allocation26 + $0x1e4] ss:$8 sps:$4 sm:$0xff]  }
 0x9bf   :  { %5099 = vmatprep.subr.bf16.mxu0 %v14987_v31 }
 0x9c0   :  { %5100 = vmatpush1.bf16.msra.mxu0 %v14985_v21 }
 0x9c1   :  { %4814 = vmatpush1.bf16.msra.mxu1 %v14898_v35  ;;  %v14990_v35 = vld [vmem:[#allocation26 + $0x1f4] ss:$8 sps:$4 sm:$0xff]  }
 0x9c2   :  { %4815 = vmatprep.subr.bf16.mxu1 %v14903_v58  ;;  %v14988_v58 = vld [vmem:[#allocation26 + $0x1f0] ss:$8 sps:$4 sm:$0xff]   ;;  %5101 = vmatprep.subr.bf16.mxu0 %v14990_v35 }
 0x9c4   :  { %5102 = vmatpush1.bf16.msra.mxu0 %v14988_v58 }
 0x9c5   :  { %4816 = vmatpush1.bf16.msra.mxu1 %v14901_v46  ;;  %v4233_v46 = vsub.s32 5, %v16996_v50 }
 0x9c6   :  { %4817 = vmatprep.subr.bf16.mxu1 %v14906_v4  ;;  %v4230_v4 = vrot.slane %v17761_v8, %v17002_v53 }
 0x9c8   :  { %v4240_v0 = vrot.slane %v4230_v4, %v17002_v53 }
 0x9c9   :  { %4818 = vmatpush1.bf16.msra.mxu1 %v14904_v40  ;;  %v4234_v40 = vrot.slane %v17761_v8, %v4233_v46  ;;  %v4896_v8 = vrot.slane %v17771_v39, %v17002_v53 }
 0x9ca   :  { %4819 = vmatprep.subr.bf16.mxu1 %v14909_v17 }
 0x9cb   :  { %v4244_v15 = vrot.slane %v4234_v40, %v17002_v53 }
 0x9cd   :  { %4820 = vmatpush1.bf16.msra.mxu1 %v14907_v37 }
 0x9ce   :  { %4821 = vmatprep.subr.bf16.mxu1 %v14912_v14 }
 0x9d1   :  { %4822 = vmatpush1.bf16.msra.mxu1 %v14910_v43 }
 0x9d2   :  { %4823 = vmatprep.subr.bf16.mxu1 %v14915_v44 }
 0x9d5   :  { %4824 = vmatpush1.bf16.msra.mxu1 %v14913_v30 }
 0x9d6   :  { %4825 = vmatprep.subr.bf16.mxu1 %v14918_v41 }
 0x9d9   :  { %4826 = vmatpush1.bf16.msra.mxu1 %v14916_v22 }
 0x9da   :  { %4827 = vmatprep.subr.bf16.mxu1 %v14921_v51 }
 0x9dd   :  { %4828 = vmatpush1.bf16.msra.mxu1 %v14919_v13 }
 0x9de   :  { %4829 = vmatprep.subr.bf16.mxu1 %v14924_v34 }
 0x9e1   :  { %4830 = vmatpush1.bf16.msra.mxu1 %v14922_v47 }
 0x9e2   :  { %4831 = vmatprep.subr.bf16.mxu1 %v14927_v59 }
 0x9e5   :  { %4832 = vmatpush1.bf16.msra.mxu1 %v14925_v60  ;;  %v4900_v60 = vrot.slane %v17771_v39, %v4233_v46 }
 0x9e6   :  { %4833 = vmatprep.subr.bf16.mxu1 %v14930_v55  ;;  %v4906_v55 = vrot.slane %v4896_v8, %v17002_v53 }
 0x9e9   :  { %4834 = vmatpush1.bf16.msra.mxu1 %v14928_v5  ;;  %v4910_v5 = vrot.slane %v4900_v60, %v17002_v53 }
 0x9ea   :  { %4835 = vmatprep.subr.bf16.mxu1 %v14933_v32 }
 0x9ed   :  { %4836 = vmatpush1.bf16.msra.mxu1 %v14931_v16 }
 0x9ee   :  { %4837 = vmatprep.subr.bf16.mxu1 %v14936_v61 }
 0x9f1   :  { %4838 = vmatpush1.bf16.msra.mxu1 %v14934_v57 }
 0x9f2   :  { %4839 = vmatprep.subr.bf16.mxu1 %v14939_v48 }
 0x9f5   :  { %4840 = vmatpush1.bf16.msra.mxu1 %v14937_v27 }
 0x9f6   :  { %4841 = vmatprep.subr.bf16.mxu1 %v14942_v33 }
 0x9f9   :  { %4842 = vmatpush1.bf16.msra.mxu1 %v14940_v62 }
 0x9fc   :  { %4844 = vmatmul.mubr.bf16.vlgmr.msra.gmra.mrb[24].mxu1 %v4225_v3 }
 0x9fd   :  { %5336 = vmatprep.mubr.bf16.mxu1 %v16594_v26 }
 0xacf   :  { %v4845_v3 = vpop.f32.mrb[24].mxu1 }
 0xad0   :  { %v13993_v17 = vadd.f32 %v4845_v3, %v4240_v0  ;;  %v4847_v37 = vpop.f32.mrb[25].mxu1 }
 0xad1   :  { %v13994_v14 = vadd.f32 %v4847_v37, %v4244_v15  ;;  %v4849_v43 = vpop.f32.mrb[26].mxu1  ;;  %v5282_v37 = vpop.permute.xlu1 %5281 }
 0xad2   :  { %v13995_v44 = vadd.f32 %v4849_v43, %v4240_v0  ;;  %v4851_v30 = vpop.f32.mrb[27].mxu1  ;;  %v4854_v22 = vmax.f32 %v13993_v17, 0.0 }
 0xad3   :  { %v13996_v41 = vadd.f32 %v4851_v30, %v4244_v15  ;;  %v4855_v13 = vmax.f32 %v13994_v14, 0.0  ;;  %v5286_v14 = vpop.permute.xlu0 %5285 }
 0xad4   :  { %v4856_v51 = vmax.f32 %v13995_v44, 0.0 }
 0xad5   :  { %v4857_v34 = vmax.f32 %v13996_v41, 0.0 }
 0xad6   :  { %v4858_v47 = vpack.c.bf16 %v4856_v51, %v4854_v22 }
 0xad7   :  { %v4859_v59 = vpack.c.bf16 %v4857_v34, %v4855_v13 }
 0xad9   :  { %5103 = vmatprep.mubr.bf16.mxu0 %v4859_v59 }
 0xada   :  { %5104 = vmatmul.mubr.bf16.vlgmr.msra.gmra.mrb[12].mxu0 %v4858_v47 }
 0xadb   :  { %5377 = vmatprep.mubr.bf16.mxu0 %v16594_v26 }
 0xbad   :  { %v5105_v32 = vpop.f32.mrb[12].mxu0 }
 0xbae   :  { %v5106_v16 = vadd.f32 %v5105_v32, %v4906_v55  ;;  %v5107_v61 = vpop.f32.mrb[13].mxu0 }
 0xbaf   :  { %v5108_v57 = vadd.f32 %v5107_v61, %v4910_v5  ;;  %v5109_v48 = vpop.f32.mrb[14].mxu0 }
 0xbb0   :  { %v5114_v27 = vadd.f32 %v5106_v16, %v17783_v10  ;;  %v5110_v33 = vadd.f32 %v5109_v48, %v4906_v55  ;;  %v5111_v62 = vpop.f32.mrb[15].mxu0  ;;  %v5247_v55 = vld [vmem:[#allocation17] sm:$0xf] }
 0xbb1   :  { %v5115_v21 = vadd.f32 %v5108_v57, %v17786_v38  ;;  %v5112_v31 = vadd.f32 %v5111_v62, %v4910_v5 }
 0xbb2   :  { %v5248_v35 = vrot.slane %v5114_v27, 7  ;;  %v5260_v58 = vrot.slane %v5114_v27, 1  ;;  %v5116_v39 = vadd.f32 %v5110_v33, %v17794_v42  ;;  %v5272_v46 = vrot.slane %v5114_v27, 2 }
 0xbb3   :  { %v5249_v4 = vrot.slane %v5115_v21, 7  ;;  %v5261_v40 = vrot.slane %v5115_v21, 1  ;;  %v5117_v0 = vadd.f32 %v5112_v31, %v17798_v6  ;;  %v5273_v15 = vrot.slane %v5115_v21, 2 }
 0xbb4   :  { %v5250_v3 = vrot.slane %v5116_v39, 7  ;;  %v5262_v17 = vrot.slane %v5116_v39, 1  ;;  %v5274_v10 = vrot.slane %v5116_v39, 2  ;;  %v5294_v43 = vpack.c.bf16 %v5116_v39, %v5114_v27 }
 0xbb5   :  { %v5251_v44 = vrot.slane %v5117_v0, 7  ;;  %v5263_v38 = vrot.slane %v5117_v0, 1  ;;  %v5275_v30 = vrot.slane %v5117_v0, 2  ;;  %v5295_v41 = vpack.c.bf16 %v5117_v0, %v5115_v21 }
 0xbb6   :  { %v5276_v22 = vsel %vm1969_vm5, %v5272_v46, %v5274_v10  ;;  %v5278_v42 = vsel %vm1969_vm5, %v5274_v10, %v5272_v46  ;;  %v5252_v6 = vsel %vm673_vm2, %v5248_v35, %v5250_v3  ;;  %v5254_v51 = vsel %vm673_vm2, %v5250_v3, %v5248_v35  ;;  %v14996_v10 = vld [vmem:[%s18902_s12 + $0x414] ss:$8 sps:$4 sm:$0xff]  }
 0xbb7   :  { %v5277_v13 = vsel %vm1969_vm5, %v5273_v15, %v5275_v30  ;;  %v5288_v34 = vmul.f32 %v5282_v37, %v5276_v22  ;;  %v5279_v47 = vsel %vm1969_vm5, %v5275_v30, %v5273_v15  ;;  %v5290_v59 = vmul.f32 %v5286_v14, %v5278_v42  ;;  %5345 = vmatprep.subr.bf16.mxu0 %v5295_v41  ;;  %v15000_v30 = vld [vmem:[%s18902_s12 + $0x430] ss:$8 sps:$4 sm:$0xff]   ;;  %v15005_v41 = vld [vmem:[%s18902_s12 + $0x444] ss:$8 sps:$4 sm:$0xff]   ;;  %v15003_v22 = vld [vmem:[%s18902_s12 + $0x440] ss:$8 sps:$4 sm:$0xff]  }
 0xbb8   :  { %v5289_v8 = vmul.f32 %v5282_v37, %v5277_v13  ;;  %v5291_v60 = vmul.f32 %v5286_v14, %v5279_v47  ;;  %5346 = vmatpush1.bf16.msra.mxu0 %v5294_v43  ;;  %v5253_v5 = vsel %vm673_vm2, %v5249_v4, %v5251_v44  ;;  %v5255_v32 = vsel %vm673_vm2, %v5251_v44, %v5249_v4  ;;  %v14994_v14 = vld [vmem:[%s18902_s12 + $0x410] ss:$8 sps:$4 sm:$0xff]   ;;  %v14999_v43 = vld [vmem:[%s18902_s12 + $0x424] ss:$8 sps:$4 sm:$0xff]   ;;  %v14997_v44 = vld [vmem:[%s18902_s12 + $0x420] ss:$8 sps:$4 sm:$0xff]  }
 0xbb9   :  { %v5298_v16 = vpack.c.bf16 %v5290_v59, %v5288_v34  ;;  %v5257_v61 = vmul.f32 %v5255_v32, %v17686_v12  ;;  %v5259_v57 = vmul.f32 %v5253_v5, %v17679_v1  ;;  %v5265_v48 = vsel %vm1380_vm3, %v5261_v40, %v5263_v38  ;;  %v15008_v42 = vld [vmem:[%s18902_s12 + $0x454] ss:$8 sps:$4 sm:$0xff]   ;;  %v15009_v13 = vld [vmem:[%s18902_s12 + $0x460] ss:$8 sps:$4 sm:$0xff]   ;;  %v15012_v47 = vld [vmem:[%s18902_s12 + $0x470] ss:$8 sps:$4 sm:$0xff]  }
 0xbba   :  { %v5299_v27 = vpack.c.bf16 %v5291_v60, %v5289_v8  ;;  %v5267_v33 = vsel %vm1380_vm3, %v5263_v38, %v5261_v40  ;;  %v5269_v62 = vmul.f32 %v5265_v48, %v17705_v18  ;;  %v5256_v21 = vmul.f32 %v5254_v51, %v17686_v12  ;;  %v15002_v38 = vld [vmem:[%s18902_s12 + $0x434] ss:$8 sps:$4 sm:$0xff]   ;;  %v15011_v51 = vld [vmem:[%s18902_s12 + $0x464] ss:$8 sps:$4 sm:$0xff]   ;;  %v15015_v8 = vld [vmem:[%s18902_s12 + $0x480] ss:$8 sps:$4 sm:$0xff]  }
 0xbbb   :  { %12860 = vmatmul.mubr.msk.bf16.vlgmr.msra.gmra.mrb[16].mxu0 %vm5300_vm9, %v5247_v55  ;;  %v5293_v31 = vpack.c.bf16 %v5259_v57, %v5257_v61  ;;  %v5271_v35 = vmul.f32 %v5267_v33, %v17707_v23  ;;  %v5258_v39 = vmul.f32 %v5252_v6, %v17679_v1  ;;  %v5264_v46 = vsel %vm1380_vm3, %v5260_v58, %v5262_v17  ;;  %v15006_v6 = vld [vmem:[%s18902_s12 + $0x450] ss:$8 sps:$4 sm:$0xff]   ;;  %v15014_v34 = vld [vmem:[%s18902_s12 + $0x474] ss:$8 sps:$4 sm:$0xff]   ;;  %v15017_v59 = vld [vmem:[%s18902_s12 + $0x484] ss:$8 sps:$4 sm:$0xff]  }
 0xbbc   :  { %v5266_v4 = vsel %vm1380_vm3, %v5262_v17, %v5260_v58  ;;  %v5268_v40 = vmul.f32 %v5264_v46, %v17705_v18  ;;  %5418 = vmatprep.mubr.bf16.mxu0 %v16594_v26  ;;  %v14993_v58 = vld [vmem:[%s18902_s12 + $0x404] ss:$8 sps:$4 sm:$0xff]   ;;  %v14991_v17 = vld [vmem:[%s18902_s12 + $0x400] ss:$8 sps:$4 sm:$0xff]   ;;  %v15020_v60 = vld [vmem:[%s18902_s12 + $0x494] ss:$8 sps:$4 sm:$0xff]  }
 0xbbd   :  { %5304 = vmatprep.subr.bf16.mxu1 %v5293_v31  ;;  %v5297_v0 = vpack.c.bf16 %v5271_v35, %v5269_v62  ;;  %v5292_v15 = vpack.c.bf16 %v5258_v39, %v5256_v21  ;;  %v5270_v3 = vmul.f32 %v5266_v4, %v17707_v23  ;;  %v15023_v5 = vld [vmem:[%s18902_s12 + $0x4a4] ss:$8 sps:$4 sm:$0xff]   ;;  %v15021_v32 = vld [vmem:[%s18902_s12 + $0x4a0] ss:$8 sps:$4 sm:$0xff]   ;;  %v15024_v61 = vld [vmem:[%s18902_s12 + $0x4b0] ss:$8 sps:$4 sm:$0xff]  }
 0xbbe   :  { %v15029_v57 = vld [vmem:[%s18902_s12 + $0x4c4] ss:$8 sps:$4 sm:$0xff]   ;;  %v15027_v48 = vld [vmem:[%s18902_s12 + $0x4c0] ss:$8 sps:$4 sm:$0xff]   ;;  %v15030_v33 = vld [vmem:[%s18902_s12 + $0x4d0] ss:$8 sps:$4 sm:$0xff]  }
 0xbbf   :  { %5386 = vmatprep.subr.bf16.mxu0 %v5297_v0  ;;  %5305 = vmatpush1.bf16.msra.mxu1 %v5292_v15  ;;  %v5296_v37 = vpack.c.bf16 %v5270_v3, %v5268_v40  ;;  %v15035_v62 = vld [vmem:[%s18902_s12 + $0x4e4] ss:$8 sps:$4 sm:$0xff]   ;;  %v15033_v21 = vld [vmem:[%s18902_s12 + $0x4e0] ss:$8 sps:$4 sm:$0xff]   ;;  %v15036_v31 = vld [vmem:[%s18902_s12 + $0x4f0] ss:$8 sps:$4 sm:$0xff]  }
 0xbc0   :  { %v15038_v35 = vld [vmem:[%s18902_s12 + $0x4f4] ss:$8 sps:$4 sm:$0xff]   ;;  %v15041_v39 = vld [vmem:[%s18902_s12 + $0x504] ss:$8 sps:$4 sm:$0xff]  }
 0xbc1   :  { %5387 = vmatpush1.bf16.msra.mxu0 %v5296_v37 }
 0xbc2   :  { %5427 = vmatprep.subr.bf16.mxu0 %v5299_v27  ;;  %12859 = vmatmul.mubr.msk.bf16.vlgmr.msra.gmra.mrb[28].mxu1 %vm5300_vm9, %v5247_v55  ;;  %v15032_v27 = vld [vmem:[%s18902_s12 + $0x4d4] ss:$8 sps:$4 sm:$0xff]  }
 0xbc4   :  { %12861 = vmatmul.mubr.msk.bf16.vlgmr.msra.gmra.mrb[20].mxu0 %vm5300_vm9, %v5247_v55 }
 0xbc5   :  { %5428 = vmatpush1.bf16.msra.mxu0 %v5298_v16  ;;  %5459 = vmatprep.mubr.bf16.mxu0 %v16594_v26  ;;  %v15026_v16 = vld [vmem:[%s18902_s12 + $0x4b4] ss:$8 sps:$4 sm:$0xff]  }
 0xbc6   :  { %6134 = vmatprep.subr.bf16.mxu0 %v14993_v58 }
 0xbcc   :  { %12862 = vmatmul.mubr.msk.bf16.vlgmr.msra.gmra.mrb[24].mxu0 %vm5300_vm9, %v5247_v55  ;;  %v15018_v55 = vld [vmem:[%s18902_s12 + $0x490] ss:$8 sps:$4 sm:$0xff]  }
 0xbcd   :  { %6135 = vmatpush1.bf16.msra.mxu0 %v14991_v17  ;;  %v15039_v17 = vld [vmem:[%s18902_s12 + $0x500] ss:$8 sps:$4 sm:$0xff]  }
 0xbce   :  { %6136 = vmatprep.subr.bf16.mxu0 %v14996_v10 }
 0xbd1   :  { %6137 = vmatpush1.bf16.msra.mxu0 %v14994_v14 }
 0xbd2   :  { %6138 = vmatprep.subr.bf16.mxu0 %v14999_v43 }
 0xbd5   :  { %6139 = vmatpush1.bf16.msra.mxu0 %v14997_v44 }
 0xbd6   :  { %6140 = vmatprep.subr.bf16.mxu0 %v15002_v38  ;;  %v15044_v38 = vld [vmem:[%s18902_s12 + $0x514] ss:$8 sps:$4 sm:$0xff]  }
 0xbd9   :  { %6141 = vmatpush1.bf16.msra.mxu0 %v15000_v30 }
 0xbda   :  { %6142 = vmatprep.subr.bf16.mxu0 %v15005_v41 }
 0xbdd   :  { %6143 = vmatpush1.bf16.msra.mxu0 %v15003_v22 }
 0xbde   :  { %6144 = vmatprep.subr.bf16.mxu0 %v15008_v42  ;;  %v15042_v42 = vld [vmem:[%s18902_s12 + $0x510] ss:$8 sps:$4 sm:$0xff]  }
 0xbe1   :  { %6145 = vmatpush1.bf16.msra.mxu0 %v15006_v6  ;;  %v15047_v6 = vld [vmem:[%s18902_s12 + $0x524] ss:$8 sps:$4 sm:$0xff]  }
 0xbe2   :  { %6146 = vmatprep.subr.bf16.mxu0 %v15011_v51  ;;  %v15045_v51 = vld [vmem:[%s18902_s12 + $0x520] ss:$8 sps:$4 sm:$0xff]  }
 0xbe5   :  { %6147 = vmatpush1.bf16.msra.mxu0 %v15009_v13  ;;  %v15050_v13 = vld [vmem:[%s18902_s12 + $0x534] ss:$8 sps:$4 sm:$0xff]  }
 0xbe6   :  { %6148 = vmatprep.subr.bf16.mxu0 %v15014_v34  ;;  %v15048_v34 = vld [vmem:[%s18902_s12 + $0x530] ss:$8 sps:$4 sm:$0xff]  }
 0xbe9   :  { %6149 = vmatpush1.bf16.msra.mxu0 %v15012_v47  ;;  %v15053_v47 = vld [vmem:[%s18902_s12 + $0x544] ss:$8 sps:$4 sm:$0xff]  }
 0xbea   :  { %6150 = vmatprep.subr.bf16.mxu0 %v15017_v59  ;;  %v15051_v59 = vld [vmem:[%s18902_s12 + $0x540] ss:$8 sps:$4 sm:$0xff]  }
 0xbed   :  { %6151 = vmatpush1.bf16.msra.mxu0 %v15015_v8  ;;  %v15056_v8 = vld [vmem:[%s18902_s12 + $0x554] ss:$8 sps:$4 sm:$0xff]  }
 0xbee   :  { %6152 = vmatprep.subr.bf16.mxu0 %v15020_v60 }
 0xbf1   :  { %6153 = vmatpush1.bf16.msra.mxu0 %v15018_v55  ;;  %v15054_v55 = vld [vmem:[%s18902_s12 + $0x550] ss:$8 sps:$4 sm:$0xff]  }
 0xbf2   :  { %6154 = vmatprep.subr.bf16.mxu0 %v15023_v5 }
 0xbf5   :  { %6155 = vmatpush1.bf16.msra.mxu0 %v15021_v32  ;;  %v15059_v32 = vld [vmem:[%s18902_s12 + $0x564] ss:$8 sps:$4 sm:$0xff]  }
 0xbf6   :  { %6156 = vmatprep.subr.bf16.mxu0 %v15026_v16 }
 0xbf9   :  { %6157 = vmatpush1.bf16.msra.mxu0 %v15024_v61 }
 0xbfa   :  { %6158 = vmatprep.subr.bf16.mxu0 %v15029_v57  ;;  %v15057_v57 = vld [vmem:[%s18902_s12 + $0x560] ss:$8 sps:$4 sm:$0xff]  }
 0xbfd   :  { %6159 = vmatpush1.bf16.msra.mxu0 %v15027_v48  ;;  %v15062_v48 = vld [vmem:[%s18902_s12 + $0x574] ss:$8 sps:$4 sm:$0xff]  }
 0xbfe   :  { %6160 = vmatprep.subr.bf16.mxu0 %v15032_v27  ;;  %v15060_v27 = vld [vmem:[%s18902_s12 + $0x570] ss:$8 sps:$4 sm:$0xff]  }
 0xc01   :  { %6161 = vmatpush1.bf16.msra.mxu0 %v15030_v33  ;;  %v15065_v33 = vld [vmem:[%s18902_s12 + $0x584] ss:$8 sps:$4 sm:$0xff]  }
 0xc02   :  { %6162 = vmatprep.subr.bf16.mxu0 %v15035_v62  ;;  %v15063_v62 = vld [vmem:[%s18902_s12 + $0x580] ss:$8 sps:$4 sm:$0xff]  }
 0xc05   :  { %6163 = vmatpush1.bf16.msra.mxu0 %v15033_v21  ;;  %v15068_v21 = vld [vmem:[%s18902_s12 + $0x594] ss:$8 sps:$4 sm:$0xff]  }
 0xc06   :  { %6164 = vmatprep.subr.bf16.mxu0 %v15038_v35  ;;  %v15071_v35 = vld [vmem:[%s18902_s12 + $0x5a4] ss:$8 sps:$4 sm:$0xff]  }
 0xc09   :  { %6165 = vmatpush1.bf16.msra.mxu0 %v15036_v31  ;;  %v15066_v31 = vld [vmem:[%s18902_s12 + $0x590] ss:$8 sps:$4 sm:$0xff]  }
 0xc0a   :  { %6175 = vmatprep.subr.bf16.mxu0 %v15041_v39  ;;  %v15069_v39 = vld [vmem:[%s18902_s12 + $0x5a0] ss:$8 sps:$4 sm:$0xff]  }
 0xc8e   :  { %v17949_v46 = vpop.f32.mrb[16].mxu0 }
 0xc8f   :  { %v5381_v4 = vpop.f32.mrb[17].mxu0 }
 0xc90   :  { %v5383_v40 = vpop.f32.mrb[18].mxu0  ;;  %v5471_v10 = vpack.c.bf16 %v5381_v4, %v5381_v4  ;;  %v15074_v4 = vld [vmem:[%s18902_s12 + $0x5b4] ss:$8 sps:$4 sm:$0xff]  }
 0xc91   :  { %v5384_v0 = vpop.f32.mrb[19].mxu0  ;;  %v15072_v40 = vld [vmem:[%s18902_s12 + $0x5b0] ss:$8 sps:$4 sm:$0xff]  }
 0xc92   :  { %v15077_v0 = vld [vmem:[%s18902_s12 + $0x5c4] ss:$8 sps:$4 sm:$0xff]  }
 0xc95   :  { %v5338_v15 = vpop.f32.mrb[28].mxu1 }
 0xc96   :  { %v5340_v3 = vpop.f32.mrb[29].mxu1  ;;  %v5468_v43 = vpack.c.bf16 %v5338_v15, %v5338_v15  ;;  %v15075_v15 = vld [vmem:[%s18902_s12 + $0x5c0] ss:$8 sps:$4 sm:$0xff]  }
 0xc97   :  { %v5469_v37 = vpack.c.bf16 %v5340_v3, %v5340_v3  ;;  %v5342_v58 = vpop.f32.mrb[30].mxu1  ;;  %v17952_v14 = vpop.f32.mrb[20].mxu0  ;;  %v15080_v3 = vld [vmem:[%s18902_s12 + $0x5d4] ss:$8 sps:$4 sm:$0xff]  }
 0xc98   :  { %v5343_v44 = vpop.f32.mrb[31].mxu1  ;;  %v17955_v30 = vpop.f32.mrb[21].mxu0  ;;  %v15083_v58 = vld [vmem:[%s18902_s12 + $0x5e4] ss:$8 sps:$4 sm:$0xff]  }
 0xc99   :  { %6166 = vmatprep.mubr.bf16.mxu0 %v5469_v37  ;;  %v5424_v41 = vpop.f32.mrb[22].mxu0  ;;  %v15078_v37 = vld [vmem:[%s18902_s12 + $0x5d0] ss:$8 sps:$4 sm:$0xff]   ;;  %v15089_v44 = vld [vmem:[%s18902_s12 + $0x604] ss:$8 sps:$4 sm:$0xff]  }
 0xc9a   :  { %6167 = vmatmul.mubr.bf16.vlgmr.msra.gmra.mrb[28].mxu0 %v5468_v43  ;;  %v5425_v22 = vpop.f32.mrb[23].mxu0  ;;  %v15084_v43 = vld [vmem:[%s18902_s12 + $0x5f0] ss:$8 sps:$4 sm:$0xff]   ;;  %v15087_v41 = vld [vmem:[%s18902_s12 + $0x600] ss:$8 sps:$4 sm:$0xff]  }
 0xc9b   :  { %6176 = vmatpush1.bf16.msra.mxu0 %v15039_v17  ;;  %6207 = vmatprep.mubr.bf16.mxu0 %v5471_v10  ;;  %v15081_v17 = vld [vmem:[%s18902_s12 + $0x5e0] ss:$8 sps:$4 sm:$0xff]   ;;  %v15086_v10 = vld [vmem:[%s18902_s12 + $0x5f4] ss:$8 sps:$4 sm:$0xff]   ;;  %v5473_v22 = vpack.c.bf16 %v17955_v30, %v17955_v30 }
 0xc9c   :  { %6177 = vmatprep.subr.bf16.mxu0 %v15044_v38  ;;  %v5470_v38 = vpack.c.bf16 %v17949_v46, %v17949_v46  ;;  %v15186_v46 = vld [vmem:[#allocation23 + $0x610] ss:$8 sps:$4 sm:$0xff]  }
 0xc9d   :  { %v15093_v30 = vld [vmem:[%s18902_s12 + $0x620] ss:$8 sps:$4 sm:$0xff]  }
 0xc9f   :  { %6178 = vmatpush1.bf16.msra.mxu0 %v15042_v42  ;;  %v17965_v60 = vpop.f32.mrb[24].mxu0  ;;  %v15092_v42 = vld [vmem:[%s18902_s12 + $0x614] ss:$8 sps:$4 sm:$0xff]  }
 0xca0   :  { %6179 = vmatprep.subr.bf16.mxu0 %v15047_v6  ;;  %v17968_v5 = vpop.f32.mrb[25].mxu0  ;;  %v527_v6 = vld [vmem:[#allocation14] sm:$0xff] }
 0xca1   :  { %v5465_v16 = vpop.f32.mrb[26].mxu0  ;;  %6401 = vperm.xlu1 %14203, %v527_v6   ;;  %7401 = vperm.xlu0 %14205, %v527_v6  }
 0xca2   :  { %v5466_v61 = vpop.f32.mrb[27].mxu0  ;;  %v15096_v16 = vld [vmem:[%s18902_s12 + $0x630] ss:$8 sps:$4 sm:$0xff]  }
 0xca3   :  { %6180 = vmatpush1.bf16.msra.mxu0 %v15045_v51  ;;  %v15183_v51 = vld [vmem:[#allocation23 + $0x600] ss:$8 sps:$4 sm:$0xff]   ;;  %v15194_v61 = vld [vmem:[#allocation23 + $0x634] ss:$8 sps:$4 sm:$0xff]  }
 0xca4   :  { %6181 = vmatprep.subr.bf16.mxu0 %v15050_v13  ;;  %v15185_v13 = vld [vmem:[#allocation23 + $0x604] ss:$8 sps:$4 sm:$0xff]  }
 0xca5   :  { %6918 = vmatprep.subr.bf16.mxu1 %v15185_v13  ;;  %14204 = vset.pattern.permute.xlu1 %v18904_v9  ;;  %v15099_v9 = vld [vmem:[%s18902_s12 + $0x640] ss:$8 sps:$4 sm:$0xff]  }
 0xca6   :  { %6919 = vmatpush1.bf16.msra.mxu1 %v15183_v51  ;;  %6409 = vperm.xlu1 %14204, %v527_v6   ;;  %v15122_v51 = vld [vmem:[%s18902_s12 + $0x6b4] ss:$8 sps:$4 sm:$0xff]  }
 0xca7   :  { %6182 = vmatpush1.bf16.msra.mxu0 %v15048_v34  ;;  %v15090_v34 = vld [vmem:[%s18902_s12 + $0x610] ss:$8 sps:$4 sm:$0xff]   ;;  %14262 = vset.pattern.permute.xlu0 %v18906_v25 }
 0xca8   :  { %6183 = vmatprep.subr.bf16.mxu0 %v15053_v47  ;;  %v15188_v47 = vld [vmem:[#allocation23 + $0x614] ss:$8 sps:$4 sm:$0xff]   ;;  %v15213_v13 = vld [vmem:[#allocation23 + $0x6a0] ss:$8 sps:$4 sm:$0xff]  }
 0xca9   :  { %6920 = vmatprep.subr.bf16.mxu1 %v15188_v47  ;;  %v15218_v47 = vld [vmem:[#allocation23 + $0x6b4] ss:$8 sps:$4 sm:$0xff]  }
 0xcaa   :  { %6921 = vmatpush1.bf16.msra.mxu1 %v15186_v46  ;;  %14206 = vset.pattern.permute.xlu1 %v16598_v49  ;;  %v15200_v49 = vld [vmem:[#allocation23 + $0x654] ss:$8 sps:$4 sm:$0xff]   ;;  %v15216_v46 = vld [vmem:[#allocation23 + $0x6b0] ss:$8 sps:$4 sm:$0xff]  }
 0xcab   :  { %6184 = vmatpush1.bf16.msra.mxu0 %v15051_v59  ;;  %v15095_v59 = vld [vmem:[%s18902_s12 + $0x624] ss:$8 sps:$4 sm:$0xff]   ;;  %7409 = vperm.xlu1 %14206, %v527_v6  }
 0xcac   :  { %6185 = vmatprep.subr.bf16.mxu0 %v15056_v8  ;;  %v15191_v8 = vld [vmem:[#allocation23 + $0x624] ss:$8 sps:$4 sm:$0xff]  }
 0xcad   :  { %6922 = vmatprep.subr.bf16.mxu1 %v15191_v8  ;;  %v15215_v6 = vld [vmem:[#allocation23 + $0x6a4] ss:$8 sps:$4 sm:$0xff]  }
 0xcae   :  { %v15221_v8 = vld [vmem:[#allocation23 + $0x6c4] ss:$8 sps:$4 sm:$0xff]  }
 0xcaf   :  { %6186 = vmatpush1.bf16.msra.mxu0 %v15054_v55  ;;  %v15098_v55 = vld [vmem:[%s18902_s12 + $0x634] ss:$8 sps:$4 sm:$0xff]   ;;  %14263 = vset.pattern.permute.xlu1 %v18906_v25 }
 0xcb0   :  { %6187 = vmatprep.subr.bf16.mxu0 %v15059_v32  ;;  %v15189_v32 = vld [vmem:[#allocation23 + $0x620] ss:$8 sps:$4 sm:$0xff]  }
 0xcb1   :  { %6923 = vmatpush1.bf16.msra.mxu1 %v15189_v32  ;;  %v15201_v25 = vld [vmem:[#allocation23 + $0x660] ss:$8 sps:$4 sm:$0xff]  }
 0xcb2   :  { %6924 = vmatprep.subr.bf16.mxu1 %v15194_v61  ;;  %v15219_v32 = vld [vmem:[#allocation23 + $0x6c0] ss:$8 sps:$4 sm:$0xff]  }
 0xcb3   :  { %6188 = vmatpush1.bf16.msra.mxu0 %v15057_v57  ;;  %v15101_v57 = vld [vmem:[%s18902_s12 + $0x644] ss:$8 sps:$4 sm:$0xff]  }
 0xcb4   :  { %6189 = vmatprep.subr.bf16.mxu0 %v15062_v48  ;;  %v15192_v48 = vld [vmem:[#allocation23 + $0x630] ss:$8 sps:$4 sm:$0xff]  }
 0xcb5   :  { %6925 = vmatpush1.bf16.msra.mxu1 %v15192_v48  ;;  %v15131_v61 = vld [vmem:[%s18902_s12 + $0x6e4] ss:$8 sps:$4 sm:$0xff]   ;;  %v15134_v48 = vld [vmem:[%s18902_s12 + $0x6f4] ss:$8 sps:$4 sm:$0xff]  }
 0xcb7   :  { %6190 = vmatpush1.bf16.msra.mxu0 %v15060_v27  ;;  %v15197_v27 = vld [vmem:[#allocation23 + $0x644] ss:$8 sps:$4 sm:$0xff]  }
 0xcb8   :  { %6191 = vmatprep.subr.bf16.mxu0 %v15065_v33  ;;  %v15104_v33 = vld [vmem:[%s18902_s12 + $0x654] ss:$8 sps:$4 sm:$0xff]   ;;  %6926 = vmatprep.subr.bf16.mxu1 %v15197_v27  ;;  %v15137_v27 = vld [vmem:[%s18902_s12 + $0x704] ss:$8 sps:$4 sm:$0xff]  }
 0xcbb   :  { %6192 = vmatpush1.bf16.msra.mxu0 %v15063_v62  ;;  %v15195_v62 = vld [vmem:[#allocation23 + $0x640] ss:$8 sps:$4 sm:$0xff]  }
 0xcbc   :  { %6193 = vmatprep.subr.bf16.mxu0 %v15068_v21  ;;  %v15102_v21 = vld [vmem:[%s18902_s12 + $0x650] ss:$8 sps:$4 sm:$0xff]   ;;  %6927 = vmatpush1.bf16.msra.mxu1 %v15195_v62  ;;  %v15135_v62 = vld [vmem:[%s18902_s12 + $0x700] ss:$8 sps:$4 sm:$0xff]  }
 0xcbd   :  { %6928 = vmatprep.subr.bf16.mxu1 %v15200_v49  ;;  %v15140_v49 = vld [vmem:[%s18902_s12 + $0x714] ss:$8 sps:$4 sm:$0xff]  }
 0xcbf   :  { %6194 = vmatpush1.bf16.msra.mxu0 %v15066_v31  ;;  %v15107_v31 = vld [vmem:[%s18902_s12 + $0x664] ss:$8 sps:$4 sm:$0xff]  }
 0xcc0   :  { %6195 = vmatprep.subr.bf16.mxu0 %v15071_v35  ;;  %v15198_v35 = vld [vmem:[#allocation23 + $0x650] ss:$8 sps:$4 sm:$0xff]  }
 0xcc1   :  { %6929 = vmatpush1.bf16.msra.mxu1 %v15198_v35  ;;  %v15143_v35 = vld [vmem:[%s18902_s12 + $0x724] ss:$8 sps:$4 sm:$0xff]  }
 0xcc3   :  { %6196 = vmatpush1.bf16.msra.mxu0 %v15069_v39  ;;  %v15105_v39 = vld [vmem:[%s18902_s12 + $0x660] ss:$8 sps:$4 sm:$0xff]  }
 0xcc4   :  { %6197 = vmatprep.subr.bf16.mxu0 %v15074_v4  ;;  %v15203_v4 = vld [vmem:[#allocation23 + $0x664] ss:$8 sps:$4 sm:$0xff]  }
 0xcc5   :  { %6930 = vmatprep.subr.bf16.mxu1 %v15203_v4  ;;  %v15149_v4 = vld [vmem:[%s18902_s12 + $0x744] ss:$8 sps:$4 sm:$0xff]  }
 0xcc6   :  { %6931 = vmatpush1.bf16.msra.mxu1 %v15201_v25  ;;  %v15152_v25 = vld [vmem:[%s18902_s12 + $0x754] ss:$8 sps:$4 sm:$0xff]  }
 0xcc7   :  { %6198 = vmatpush1.bf16.msra.mxu0 %v15072_v40  ;;  %v15110_v40 = vld [vmem:[%s18902_s12 + $0x674] ss:$8 sps:$4 sm:$0xff]  }
 0xcc8   :  { %6199 = vmatprep.subr.bf16.mxu0 %v15077_v0  ;;  %v15108_v0 = vld [vmem:[%s18902_s12 + $0x670] ss:$8 sps:$4 sm:$0xff]  }
 0xccb   :  { %6200 = vmatpush1.bf16.msra.mxu0 %v15075_v15  ;;  %v15206_v15 = vld [vmem:[#allocation23 + $0x674] ss:$8 sps:$4 sm:$0xff]  }
 0xccc   :  { %6201 = vmatprep.subr.bf16.mxu0 %v15080_v3  ;;  %v15113_v3 = vld [vmem:[%s18902_s12 + $0x684] ss:$8 sps:$4 sm:$0xff]   ;;  %6932 = vmatprep.subr.bf16.mxu1 %v15206_v15 }
 0xccd   :  { %v15155_v15 = vld [vmem:[%s18902_s12 + $0x764] ss:$8 sps:$4 sm:$0xff]  }
 0xccf   :  { %6202 = vmatpush1.bf16.msra.mxu0 %v15078_v37  ;;  %v15204_v37 = vld [vmem:[#allocation23 + $0x670] ss:$8 sps:$4 sm:$0xff]  }
 0xcd0   :  { %6203 = vmatprep.subr.bf16.mxu0 %v15083_v58  ;;  %v15111_v58 = vld [vmem:[%s18902_s12 + $0x680] ss:$8 sps:$4 sm:$0xff]   ;;  %6933 = vmatpush1.bf16.msra.mxu1 %v15204_v37  ;;  %v15158_v37 = vld [vmem:[%s18902_s12 + $0x774] ss:$8 sps:$4 sm:$0xff]  }
 0xcd3   :  { %6204 = vmatpush1.bf16.msra.mxu0 %v15081_v17  ;;  %v15209_v17 = vld [vmem:[#allocation23 + $0x684] ss:$8 sps:$4 sm:$0xff]  }
 0xcd4   :  { %6205 = vmatprep.subr.bf16.mxu0 %v15086_v10  ;;  %v15116_v10 = vld [vmem:[%s18902_s12 + $0x694] ss:$8 sps:$4 sm:$0xff]   ;;  %6934 = vmatprep.subr.bf16.mxu1 %v15209_v17  ;;  %v15161_v17 = vld [vmem:[%s18902_s12 + $0x784] ss:$8 sps:$4 sm:$0xff]  }
 0xcd7   :  { %6206 = vmatpush1.bf16.msra.mxu0 %v15084_v43  ;;  %v15207_v43 = vld [vmem:[#allocation23 + $0x680] ss:$8 sps:$4 sm:$0xff]  }
 0xcd8   :  { %6216 = vmatprep.subr.bf16.mxu0 %v15089_v44  ;;  %v15114_v44 = vld [vmem:[%s18902_s12 + $0x690] ss:$8 sps:$4 sm:$0xff]   ;;  %6935 = vmatpush1.bf16.msra.mxu1 %v15207_v43  ;;  %v15164_v43 = vld [vmem:[%s18902_s12 + $0x794] ss:$8 sps:$4 sm:$0xff]  }
 0xcda   :  { %6208 = vmatmul.mubr.bf16.vlgmr.msra.gmra.mrb[28].mxu0 %v5470_v38  ;;  %v15212_v38 = vld [vmem:[#allocation23 + $0x694] ss:$8 sps:$4 sm:$0xff]  }
 0xcdb   :  { %6217 = vmatpush1.bf16.msra.mxu0 %v15087_v41  ;;  %6248 = vmatprep.mubr.bf16.mxu0 %v5473_v22  ;;  %v15119_v41 = vld [vmem:[%s18902_s12 + $0x6a4] ss:$8 sps:$4 sm:$0xff]  }
 0xcdc   :  { %6218 = vmatprep.subr.bf16.mxu0 %v15092_v42  ;;  %v15210_v22 = vld [vmem:[#allocation23 + $0x690] ss:$8 sps:$4 sm:$0xff]   ;;  %6936 = vmatprep.subr.bf16.mxu1 %v15212_v38 }
 0xcdd   :  { %v15117_v42 = vld [vmem:[%s18902_s12 + $0x6a0] ss:$8 sps:$4 sm:$0xff]   ;;  %6937 = vmatpush1.bf16.msra.mxu1 %v15210_v22  ;;  %v15167_v38 = vld [vmem:[%s18902_s12 + $0x7a4] ss:$8 sps:$4 sm:$0xff]   ;;  %v15170_v22 = vld [vmem:[%s18902_s12 + $0x7b4] ss:$8 sps:$4 sm:$0xff]  }
 0xcde   :  { %6938 = vmatprep.subr.bf16.mxu1 %v15215_v6  ;;  %v15173_v6 = vld [vmem:[%s18902_s12 + $0x7c4] ss:$8 sps:$4 sm:$0xff]  }
 0xcdf   :  { %6219 = vmatpush1.bf16.msra.mxu0 %v15090_v34  ;;  %v15120_v34 = vld [vmem:[%s18902_s12 + $0x6b0] ss:$8 sps:$4 sm:$0xff]  }
 0xce0   :  { %6220 = vmatprep.subr.bf16.mxu0 %v15095_v59  ;;  %v15125_v59 = vld [vmem:[%s18902_s12 + $0x6c4] ss:$8 sps:$4 sm:$0xff]  }
 0xce1   :  { %6939 = vmatpush1.bf16.msra.mxu1 %v15213_v13  ;;  %v15176_v13 = vld [vmem:[%s18902_s12 + $0x7d4] ss:$8 sps:$4 sm:$0xff]  }
 0xce2   :  { %6940 = vmatprep.subr.bf16.mxu1 %v15218_v47  ;;  %v15179_v47 = vld [vmem:[%s18902_s12 + $0x7e4] ss:$8 sps:$4 sm:$0xff]  }
 0xce3   :  { %6221 = vmatpush1.bf16.msra.mxu0 %v15093_v30  ;;  %v15123_v30 = vld [vmem:[%s18902_s12 + $0x6c0] ss:$8 sps:$4 sm:$0xff]  }
 0xce4   :  { %6222 = vmatprep.subr.bf16.mxu0 %v15098_v55  ;;  %v15128_v55 = vld [vmem:[%s18902_s12 + $0x6d4] ss:$8 sps:$4 sm:$0xff]  }
 0xce5   :  { %6941 = vmatpush1.bf16.msra.mxu1 %v15216_v46  ;;  %v15182_v46 = vld [vmem:[%s18902_s12 + $0x7f4] ss:$8 sps:$4 sm:$0xff]  }
 0xce6   :  { %6942 = vmatprep.subr.bf16.mxu1 %v15221_v8  ;;  %v5474_v8 = vpack.c.bf16 %v17965_v60, %v17965_v60 }
 0xce7   :  { %6223 = vmatpush1.bf16.msra.mxu0 %v15096_v16  ;;  %v15126_v16 = vld [vmem:[%s18902_s12 + $0x6d0] ss:$8 sps:$4 sm:$0xff]  }
 0xce8   :  { %6224 = vmatprep.subr.bf16.mxu0 %v15101_v57  ;;  %v15129_v57 = vld [vmem:[%s18902_s12 + $0x6e0] ss:$8 sps:$4 sm:$0xff]  }
 0xce9   :  { %6943 = vmatpush1.bf16.msra.mxu1 %v15219_v32  ;;  %v15222_v32 = vld [vmem:[#allocation23 + $0x6d0] ss:$8 sps:$4 sm:$0xff]  }
 0xceb   :  { %6225 = vmatpush1.bf16.msra.mxu0 %v15099_v9  ;;  %v15132_v9 = vld [vmem:[%s18902_s12 + $0x6f0] ss:$8 sps:$4 sm:$0xff]  }
 0xcec   :  { %6226 = vmatprep.subr.bf16.mxu0 %v15104_v33  ;;  %v5472_v33 = vpack.c.bf16 %v17952_v14, %v17952_v14  ;;  %v15141_v14 = vld [vmem:[%s18902_s12 + $0x720] ss:$8 sps:$4 sm:$0xff]  }
 0xcef   :  { %6227 = vmatpush1.bf16.msra.mxu0 %v15102_v21  ;;  %v5475_v21 = vpack.c.bf16 %v17968_v5, %v17968_v5  ;;  %v15144_v5 = vld [vmem:[%s18902_s12 + $0x730] ss:$8 sps:$4 sm:$0xff]  }
 0xcf0   :  { %6228 = vmatprep.subr.bf16.mxu0 %v15107_v31  ;;  %v15138_v31 = vld [vmem:[%s18902_s12 + $0x710] ss:$8 sps:$4 sm:$0xff]  }
 0xcf3   :  { %6229 = vmatpush1.bf16.msra.mxu0 %v15105_v39  ;;  %v15146_v39 = vld [vmem:[%s18902_s12 + $0x734] ss:$8 sps:$4 sm:$0xff]  }
 0xcf4   :  { %6230 = vmatprep.subr.bf16.mxu0 %v15110_v40  ;;  %v15147_v40 = vld [vmem:[%s18902_s12 + $0x740] ss:$8 sps:$4 sm:$0xff]  }
 0xcf7   :  { %6231 = vmatpush1.bf16.msra.mxu0 %v15108_v0  ;;  %v15150_v0 = vld [vmem:[%s18902_s12 + $0x750] ss:$8 sps:$4 sm:$0xff]  }
 0xcf8   :  { %6232 = vmatprep.subr.bf16.mxu0 %v15113_v3  ;;  %v15153_v3 = vld [vmem:[%s18902_s12 + $0x760] ss:$8 sps:$4 sm:$0xff]  }
 0xcfb   :  { %6233 = vmatpush1.bf16.msra.mxu0 %v15111_v58  ;;  %v15156_v58 = vld [vmem:[%s18902_s12 + $0x770] ss:$8 sps:$4 sm:$0xff]  }
 0xcfc   :  { %6234 = vmatprep.subr.bf16.mxu0 %v15116_v10  ;;  %v15159_v10 = vld [vmem:[%s18902_s12 + $0x780] ss:$8 sps:$4 sm:$0xff]  }
 0xcff   :  { %6235 = vmatpush1.bf16.msra.mxu0 %v15114_v44  ;;  %v15162_v44 = vld [vmem:[%s18902_s12 + $0x790] ss:$8 sps:$4 sm:$0xff]  }
 0xd00   :  { %6236 = vmatprep.subr.bf16.mxu0 %v15119_v41  ;;  %v15165_v41 = vld [vmem:[%s18902_s12 + $0x7a0] ss:$8 sps:$4 sm:$0xff]  }
 0xd03   :  { %6237 = vmatpush1.bf16.msra.mxu0 %v15117_v42  ;;  %v15168_v42 = vld [vmem:[%s18902_s12 + $0x7b0] ss:$8 sps:$4 sm:$0xff]  }
 0xd04   :  { %6238 = vmatprep.subr.bf16.mxu0 %v15122_v51  ;;  %v15171_v51 = vld [vmem:[%s18902_s12 + $0x7c0] ss:$8 sps:$4 sm:$0xff]  }
 0xd07   :  { %6239 = vmatpush1.bf16.msra.mxu0 %v15120_v34  ;;  %v15174_v34 = vld [vmem:[%s18902_s12 + $0x7d0] ss:$8 sps:$4 sm:$0xff]  }
 0xd08   :  { %6240 = vmatprep.subr.bf16.mxu0 %v15125_v59  ;;  %v15177_v59 = vld [vmem:[%s18902_s12 + $0x7e0] ss:$8 sps:$4 sm:$0xff]  }
 0xd0b   :  { %6241 = vmatpush1.bf16.msra.mxu0 %v15123_v30  ;;  %v15180_v30 = vld [vmem:[%s18902_s12 + $0x7f0] ss:$8 sps:$4 sm:$0xff]  }
 0xd0c   :  { %6242 = vmatprep.subr.bf16.mxu0 %v15128_v55  ;;  %v15224_v55 = vld [vmem:[#allocation23 + $0x6d4] ss:$8 sps:$4 sm:$0xff]  }
 0xd0d   :  { %6944 = vmatprep.subr.bf16.mxu1 %v15224_v55  ;;  %v15252_v55 = vld [vmem:[#allocation23 + $0x770] ss:$8 sps:$4 sm:$0xff]  }
 0xd0e   :  { %6945 = vmatpush1.bf16.msra.mxu1 %v15222_v32  ;;  %v15257_v32 = vld [vmem:[#allocation23 + $0x784] ss:$8 sps:$4 sm:$0xff]  }
 0xd0f   :  { %6243 = vmatpush1.bf16.msra.mxu0 %v15126_v16  ;;  %v15227_v16 = vld [vmem:[#allocation23 + $0x6e4] ss:$8 sps:$4 sm:$0xff]  }
 0xd10   :  { %6244 = vmatprep.subr.bf16.mxu0 %v15131_v61  ;;  %v15225_v61 = vld [vmem:[#allocation23 + $0x6e0] ss:$8 sps:$4 sm:$0xff]   ;;  %6946 = vmatprep.subr.bf16.mxu1 %v15227_v16 }
 0xd11   :  { %v15255_v16 = vld [vmem:[#allocation23 + $0x780] ss:$8 sps:$4 sm:$0xff]  }
 0xd12   :  { %6947 = vmatpush1.bf16.msra.mxu1 %v15225_v61  ;;  %v15260_v61 = vld [vmem:[#allocation23 + $0x794] ss:$8 sps:$4 sm:$0xff]  }
 0xd13   :  { %6245 = vmatpush1.bf16.msra.mxu0 %v15129_v57  ;;  %v15230_v57 = vld [vmem:[#allocation23 + $0x6f4] ss:$8 sps:$4 sm:$0xff]  }
 0xd14   :  { %6246 = vmatprep.subr.bf16.mxu0 %v15134_v48  ;;  %v15228_v48 = vld [vmem:[#allocation23 + $0x6f0] ss:$8 sps:$4 sm:$0xff]   ;;  %6948 = vmatprep.subr.bf16.mxu1 %v15230_v57 }
 0xd15   :  { %v15258_v57 = vld [vmem:[#allocation23 + $0x790] ss:$8 sps:$4 sm:$0xff]  }
 0xd16   :  { %6949 = vmatpush1.bf16.msra.mxu1 %v15228_v48  ;;  %v15263_v48 = vld [vmem:[#allocation23 + $0x7a4] ss:$8 sps:$4 sm:$0xff]  }
 0xd17   :  { %6247 = vmatpush1.bf16.msra.mxu0 %v15132_v9  ;;  %v15233_v9 = vld [vmem:[#allocation23 + $0x704] ss:$8 sps:$4 sm:$0xff]  }
 0xd18   :  { %6257 = vmatprep.subr.bf16.mxu0 %v15137_v27  ;;  %6959 = vmatprep.subr.bf16.mxu1 %v15233_v9  ;;  %v18069_v27 = vsub.s32 3, %v16996_v50  ;;  %v15261_v9 = vld [vmem:[#allocation23 + $0x7a0] ss:$8 sps:$4 sm:$0xff]  }
 0xd1a   :  { %6249 = vmatmul.mubr.bf16.vlgmr.msra.gmra.mrb[28].mxu0 %v5472_v33  ;;  %v15818_v33 = vld [vmem:[#allocation22] sm:$0xf] }
 0xd1b   :  { %6258 = vmatpush1.bf16.msra.mxu0 %v15135_v62  ;;  %6289 = vmatprep.mubr.bf16.mxu0 %v5475_v21  ;;  %v5479_v60 = vrot.slane %v15818_v33, %v17002_v53  ;;  %v5483_v62 = vrot.slane %v15818_v33, %v18069_v27  ;;  %v15266_v33 = vld [vmem:[#allocation23 + $0x7b4] ss:$8 sps:$4 sm:$0xff]  }
 0xd1c   :  { %6259 = vmatprep.subr.bf16.mxu0 %v15140_v49 }
 0xd1d   :  { %v5489_v21 = vrot.slane %v5479_v60, %v17002_v53  ;;  %v5493_v49 = vrot.slane %v5483_v62, %v17002_v53  ;;  %v15264_v60 = vld [vmem:[#allocation23 + $0x7b0] ss:$8 sps:$4 sm:$0xff]   ;;  %v15269_v62 = vld [vmem:[#allocation23 + $0x7c4] ss:$8 sps:$4 sm:$0xff]  }
 0xd1f   :  { %6260 = vmatpush1.bf16.msra.mxu0 %v15138_v31 }
 0xd20   :  { %6261 = vmatprep.subr.bf16.mxu0 %v15143_v35 }
 0xd23   :  { %6262 = vmatpush1.bf16.msra.mxu0 %v15141_v14 }
 0xd24   :  { %6263 = vmatprep.subr.bf16.mxu0 %v15146_v39 }
 0xd27   :  { %6264 = vmatpush1.bf16.msra.mxu0 %v15144_v5 }
 0xd28   :  { %6265 = vmatprep.subr.bf16.mxu0 %v15149_v4 }
 0xd2b   :  { %6266 = vmatpush1.bf16.msra.mxu0 %v15147_v40 }
 0xd2c   :  { %6267 = vmatprep.subr.bf16.mxu0 %v15152_v25 }
 0xd2f   :  { %6268 = vmatpush1.bf16.msra.mxu0 %v15150_v0 }
 0xd30   :  { %6269 = vmatprep.subr.bf16.mxu0 %v15155_v15  ;;  %v18086_v15 = vpop.permute.xlu1 %6401 }
 0xd33   :  { %6270 = vmatpush1.bf16.msra.mxu0 %v15153_v3 }
 0xd34   :  { %6271 = vmatprep.subr.bf16.mxu0 %v15158_v37 }
 0xd37   :  { %6272 = vmatpush1.bf16.msra.mxu0 %v15156_v58 }
 0xd38   :  { %6273 = vmatprep.subr.bf16.mxu0 %v15161_v17 }
 0xd3b   :  { %6274 = vmatpush1.bf16.msra.mxu0 %v15159_v10  ;;  %v15231_v10 = vld [vmem:[#allocation23 + $0x700] ss:$8 sps:$4 sm:$0xff]  }
 0xd3c   :  { %6275 = vmatprep.subr.bf16.mxu0 %v15164_v43 }
 0xd3f   :  { %6276 = vmatpush1.bf16.msra.mxu0 %v15162_v44  ;;  %v15236_v44 = vld [vmem:[#allocation23 + $0x714] ss:$8 sps:$4 sm:$0xff]  }
 0xd40   :  { %6277 = vmatprep.subr.bf16.mxu0 %v15167_v38 }
 0xd43   :  { %6278 = vmatpush1.bf16.msra.mxu0 %v15165_v41  ;;  %v15234_v41 = vld [vmem:[#allocation23 + $0x710] ss:$8 sps:$4 sm:$0xff]  }
 0xd44   :  { %6279 = vmatprep.subr.bf16.mxu0 %v15170_v22  ;;  %v15239_v22 = vld [vmem:[#allocation23 + $0x724] ss:$8 sps:$4 sm:$0xff]  }
 0xd47   :  { %6280 = vmatpush1.bf16.msra.mxu0 %v15168_v42  ;;  %v15237_v42 = vld [vmem:[#allocation23 + $0x720] ss:$8 sps:$4 sm:$0xff]  }
 0xd48   :  { %6281 = vmatprep.subr.bf16.mxu0 %v15173_v6  ;;  %v15242_v6 = vld [vmem:[#allocation23 + $0x734] ss:$8 sps:$4 sm:$0xff]  }
 0xd4b   :  { %6282 = vmatpush1.bf16.msra.mxu0 %v15171_v51  ;;  %v15240_v51 = vld [vmem:[#allocation23 + $0x730] ss:$8 sps:$4 sm:$0xff]  }
 0xd4c   :  { %6283 = vmatprep.subr.bf16.mxu0 %v15176_v13  ;;  %v15245_v13 = vld [vmem:[#allocation23 + $0x744] ss:$8 sps:$4 sm:$0xff]  }
 0xd4f   :  { %6284 = vmatpush1.bf16.msra.mxu0 %v15174_v34  ;;  %v15243_v34 = vld [vmem:[#allocation23 + $0x740] ss:$8 sps:$4 sm:$0xff]  }
 0xd50   :  { %6285 = vmatprep.subr.bf16.mxu0 %v15179_v47  ;;  %v15248_v47 = vld [vmem:[#allocation23 + $0x754] ss:$8 sps:$4 sm:$0xff]  }
 0xd53   :  { %6286 = vmatpush1.bf16.msra.mxu0 %v15177_v59  ;;  %v15246_v59 = vld [vmem:[#allocation23 + $0x750] ss:$8 sps:$4 sm:$0xff]  }
 0xd54   :  { %6287 = vmatprep.subr.bf16.mxu0 %v15182_v46  ;;  %v15251_v46 = vld [vmem:[#allocation23 + $0x764] ss:$8 sps:$4 sm:$0xff]  }
 0xd57   :  { %6288 = vmatpush1.bf16.msra.mxu0 %v15180_v30  ;;  %v15249_v30 = vld [vmem:[#allocation23 + $0x760] ss:$8 sps:$4 sm:$0xff]  }
 0xd5a   :  { %6290 = vmatmul.mubr.bf16.vlgmr.msra.gmra.mrb[28].mxu0 %v5474_v8  ;;  %v15254_v8 = vld [vmem:[#allocation23 + $0x774] ss:$8 sps:$4 sm:$0xff]  }
 0xe2d   :  { %v6291_v31 = vpop.f32.mrb[28].mxu0 }
 0xe2e   :  { %v18075_v35 = vadd.f32 %v6291_v31, %v5489_v21  ;;  %v6293_v14 = vpop.f32.mrb[29].mxu0  ;;  %v15267_v21 = vld [vmem:[#allocation23 + $0x7c0] ss:$8 sps:$4 sm:$0xff]   ;;  %v15270_v31 = vld [vmem:[#allocation23 + $0x7d0] ss:$8 sps:$4 sm:$0xff]  }
 0xe2f   :  { %v18077_v39 = vadd.f32 %v6293_v14, %v5493_v49  ;;  %v6295_v5 = vpop.f32.mrb[30].mxu0  ;;  %v15272_v49 = vld [vmem:[#allocation23 + $0x7d4] ss:$8 sps:$4 sm:$0xff]   ;;  %v15275_v14 = vld [vmem:[#allocation23 + $0x7e4] ss:$8 sps:$4 sm:$0xff]  }
 0xe30   :  { %v18080_v4 = vmax.f32 %v18075_v35, 0.0  ;;  %v6296_v40 = vpop.f32.mrb[31].mxu0  ;;  %v15273_v5 = vld [vmem:[#allocation23 + $0x7e0] ss:$8 sps:$4 sm:$0xff]  }
 0xe31   :  { %v18083_v25 = vmax.f32 %v18077_v39, 0.0  ;;  %v15278_v40 = vld [vmem:[#allocation23 + $0x7f4] ss:$8 sps:$4 sm:$0xff]  }
 0xe32   :  { %v6397_v0 = vrot.slane %v18080_v4, 7 }
 0xe33   :  { %v6398_v3 = vrot.slane %v18083_v25, 7  ;;  %v6417_v38 = vpack.c.bf16 %v18083_v25, %v18083_v25 }
 0xe34   :  { %v6404_v37 = vmul.f32 %v18086_v15, %v6397_v0  ;;  %v6407_v0 = vrot.slane %v18083_v25, 1  ;;  %v15282_v25 = vld [vmem:[#allocation23 + $0x810] ss:$8 sps:$4 sm:$0xff]  }
 0xe35   :  { %v6405_v58 = vmul.f32 %v18086_v15, %v6398_v3  ;;  %v18094_v3 = vpop.permute.xlu1 %6409 }
 0xe36   :  { %v6414_v43 = vpack.c.bf16 %v6404_v37, %v6404_v37  ;;  %v15276_v37 = vld [vmem:[#allocation23 + $0x7f0] ss:$8 sps:$4 sm:$0xff]  }
 0xe37   :  { %v6415_v17 = vpack.c.bf16 %v6405_v58, %v6405_v58  ;;  %v15281_v58 = vld [vmem:[#allocation23 + $0x804] ss:$8 sps:$4 sm:$0xff]  }
 0xe39   :  { %6950 = vmatprep.mubr.bf16.mxu1 %v6415_v17  ;;  %v6413_v17 = vmul.f32 %v18094_v3, %v6407_v0  ;;  %v15324_v0 = vld [vmem:[#allocation23 + $0x8f0] ss:$8 sps:$4 sm:$0xff]  }
 0xe3a   :  { %6951 = vmatmul.mubr.bf16.vlgmr.msra.gmra.mrb[32].mxu1 %v6414_v43  ;;  %v6416_v43 = vpack.c.bf16 %v18080_v4, %v18080_v4 }
 0xe3b   :  { %6960 = vmatpush1.bf16.msra.mxu1 %v15231_v10  ;;  %6991 = vmatprep.mubr.bf16.mxu1 %v6417_v38  ;;  %v15279_v10 = vld [vmem:[#allocation23 + $0x800] ss:$8 sps:$4 sm:$0xff]   ;;  %v6419_v38 = vpack.c.bf16 %v6413_v17, %v6413_v17 }
 0xe3c   :  { %6961 = vmatprep.subr.bf16.mxu1 %v15236_v44  ;;  %v15284_v44 = vld [vmem:[#allocation23 + $0x814] ss:$8 sps:$4 sm:$0xff]   ;;  %v15327_v17 = vld [vmem:[#allocation26 + $0x200] ss:$8 sps:$4 sm:$0xff]  }
 0xe3f   :  { %6962 = vmatpush1.bf16.msra.mxu1 %v15234_v41  ;;  %v15287_v41 = vld [vmem:[#allocation23 + $0x824] ss:$8 sps:$4 sm:$0xff]  }
 0xe40   :  { %6963 = vmatprep.subr.bf16.mxu1 %v15239_v22  ;;  %v15285_v22 = vld [vmem:[#allocation23 + $0x820] ss:$8 sps:$4 sm:$0xff]  }
 0xe43   :  { %6964 = vmatpush1.bf16.msra.mxu1 %v15237_v42  ;;  %v15290_v42 = vld [vmem:[#allocation23 + $0x834] ss:$8 sps:$4 sm:$0xff]  }
 0xe44   :  { %6965 = vmatprep.subr.bf16.mxu1 %v15242_v6  ;;  %v15288_v6 = vld [vmem:[#allocation23 + $0x830] ss:$8 sps:$4 sm:$0xff]  }
 0xe47   :  { %6966 = vmatpush1.bf16.msra.mxu1 %v15240_v51  ;;  %v15293_v51 = vld [vmem:[#allocation23 + $0x844] ss:$8 sps:$4 sm:$0xff]  }
 0xe48   :  { %6967 = vmatprep.subr.bf16.mxu1 %v15245_v13  ;;  %v15291_v13 = vld [vmem:[#allocation23 + $0x840] ss:$8 sps:$4 sm:$0xff]  }
 0xe4b   :  { %6968 = vmatpush1.bf16.msra.mxu1 %v15243_v34  ;;  %v15296_v34 = vld [vmem:[#allocation23 + $0x854] ss:$8 sps:$4 sm:$0xff]  }
 0xe4c   :  { %6969 = vmatprep.subr.bf16.mxu1 %v15248_v47  ;;  %v15294_v47 = vld [vmem:[#allocation23 + $0x850] ss:$8 sps:$4 sm:$0xff]  }
 0xe4f   :  { %6970 = vmatpush1.bf16.msra.mxu1 %v15246_v59  ;;  %v15299_v59 = vld [vmem:[#allocation23 + $0x864] ss:$8 sps:$4 sm:$0xff]  }
 0xe50   :  { %6971 = vmatprep.subr.bf16.mxu1 %v15251_v46  ;;  %v15297_v46 = vld [vmem:[#allocation23 + $0x860] ss:$8 sps:$4 sm:$0xff]  }
 0xe53   :  { %6972 = vmatpush1.bf16.msra.mxu1 %v15249_v30  ;;  %v15302_v30 = vld [vmem:[#allocation23 + $0x874] ss:$8 sps:$4 sm:$0xff]  }
 0xe54   :  { %6973 = vmatprep.subr.bf16.mxu1 %v15254_v8  ;;  %v15300_v8 = vld [vmem:[#allocation23 + $0x870] ss:$8 sps:$4 sm:$0xff]  }
 0xe57   :  { %6974 = vmatpush1.bf16.msra.mxu1 %v15252_v55  ;;  %v15305_v55 = vld [vmem:[#allocation23 + $0x884] ss:$8 sps:$4 sm:$0xff]  }
 0xe58   :  { %6975 = vmatprep.subr.bf16.mxu1 %v15257_v32  ;;  %v15303_v32 = vld [vmem:[#allocation23 + $0x880] ss:$8 sps:$4 sm:$0xff]  }
 0xe5b   :  { %6976 = vmatpush1.bf16.msra.mxu1 %v15255_v16  ;;  %v15308_v16 = vld [vmem:[#allocation23 + $0x894] ss:$8 sps:$4 sm:$0xff]  }
 0xe5c   :  { %6977 = vmatprep.subr.bf16.mxu1 %v15260_v61  ;;  %v15306_v61 = vld [vmem:[#allocation23 + $0x890] ss:$8 sps:$4 sm:$0xff]  }
 0xe5f   :  { %6978 = vmatpush1.bf16.msra.mxu1 %v15258_v57  ;;  %v15311_v57 = vld [vmem:[#allocation23 + $0x8a4] ss:$8 sps:$4 sm:$0xff]  }
 0xe60   :  { %6979 = vmatprep.subr.bf16.mxu1 %v15263_v48  ;;  %v15309_v48 = vld [vmem:[#allocation23 + $0x8a0] ss:$8 sps:$4 sm:$0xff]  }
 0xe63   :  { %6980 = vmatpush1.bf16.msra.mxu1 %v15261_v9  ;;  %v15314_v9 = vld [vmem:[#allocation23 + $0x8b4] ss:$8 sps:$4 sm:$0xff]  }
 0xe64   :  { %6981 = vmatprep.subr.bf16.mxu1 %v15266_v33  ;;  %v15312_v33 = vld [vmem:[#allocation23 + $0x8b0] ss:$8 sps:$4 sm:$0xff]  }
 0xe67   :  { %6982 = vmatpush1.bf16.msra.mxu1 %v15264_v60  ;;  %v15317_v60 = vld [vmem:[#allocation23 + $0x8c4] ss:$8 sps:$4 sm:$0xff]  }
 0xe68   :  { %6983 = vmatprep.subr.bf16.mxu1 %v15269_v62  ;;  %v15315_v62 = vld [vmem:[#allocation23 + $0x8c0] ss:$8 sps:$4 sm:$0xff]  }
 0xe6b   :  { %6984 = vmatpush1.bf16.msra.mxu1 %v15267_v21  ;;  %v15320_v21 = vld [vmem:[#allocation23 + $0x8d4] ss:$8 sps:$4 sm:$0xff]  }
 0xe6c   :  { %6985 = vmatprep.subr.bf16.mxu1 %v15272_v49  ;;  %v15318_v49 = vld [vmem:[#allocation23 + $0x8d0] ss:$8 sps:$4 sm:$0xff]  }
 0xe6f   :  { %6986 = vmatpush1.bf16.msra.mxu1 %v15270_v31  ;;  %v15323_v31 = vld [vmem:[#allocation23 + $0x8e4] ss:$8 sps:$4 sm:$0xff]  }
 0xe70   :  { %6987 = vmatprep.subr.bf16.mxu1 %v15275_v14  ;;  %v15321_v14 = vld [vmem:[#allocation23 + $0x8e0] ss:$8 sps:$4 sm:$0xff]  }
 0xe73   :  { %6988 = vmatpush1.bf16.msra.mxu1 %v15273_v5  ;;  %v6406_v5 = vrot.slane %v18080_v4, 1  ;;  %v15333_v4 = vld [vmem:[#allocation26 + $0x220] ss:$8 sps:$4 sm:$0xff]  }
 0xe74   :  { %6989 = vmatprep.subr.bf16.mxu1 %v15278_v40  ;;  %v15326_v40 = vld [vmem:[#allocation23 + $0x8f4] ss:$8 sps:$4 sm:$0xff]  }
 0xe77   :  { %6990 = vmatpush1.bf16.msra.mxu1 %v15276_v37  ;;  %v6412_v37 = vmul.f32 %v18094_v3, %v6406_v5  ;;  %v15377_v5 = vld [vmem:[#allocation23 + $0x904] ss:$8 sps:$4 sm:$0xff]  }
 0xe78   :  { %7000 = vmatprep.subr.bf16.mxu1 %v15281_v58  ;;  %v15329_v58 = vld [vmem:[#allocation26 + $0x204] ss:$8 sps:$4 sm:$0xff]   ;;  %7918 = vmatprep.subr.bf16.mxu0 %v15377_v5 }
 0xe7a   :  { %6992 = vmatmul.mubr.bf16.vlgmr.msra.gmra.mrb[32].mxu1 %v6416_v43  ;;  %v15332_v43 = vld [vmem:[#allocation26 + $0x214] ss:$8 sps:$4 sm:$0xff]  }
 0xe7b   :  { %7001 = vmatpush1.bf16.msra.mxu1 %v15279_v10  ;;  %7032 = vmatprep.mubr.bf16.mxu1 %v6419_v38  ;;  %v6418_v10 = vpack.c.bf16 %v6412_v37, %v6412_v37  ;;  %v15335_v38 = vld [vmem:[#allocation26 + $0x224] ss:$8 sps:$4 sm:$0xff]  }
 0xe7c   :  { %7002 = vmatprep.subr.bf16.mxu1 %v15284_v44  ;;  %v15330_v44 = vld [vmem:[#allocation26 + $0x210] ss:$8 sps:$4 sm:$0xff]   ;;  %v15383_v37 = vld [vmem:[#allocation23 + $0x924] ss:$8 sps:$4 sm:$0xff]  }
 0xe7f   :  { %7003 = vmatpush1.bf16.msra.mxu1 %v15282_v25  ;;  %v15338_v25 = vld [vmem:[#allocation26 + $0x234] ss:$8 sps:$4 sm:$0xff]  }
 0xe80   :  { %7004 = vmatprep.subr.bf16.mxu1 %v15287_v41  ;;  %v15336_v41 = vld [vmem:[#allocation26 + $0x230] ss:$8 sps:$4 sm:$0xff]  }
 0xe83   :  { %7005 = vmatpush1.bf16.msra.mxu1 %v15285_v22  ;;  %v15341_v22 = vld [vmem:[#allocation26 + $0x244] ss:$8 sps:$4 sm:$0xff]  }
 0xe84   :  { %7006 = vmatprep.subr.bf16.mxu1 %v15290_v42  ;;  %v15339_v42 = vld [vmem:[#allocation26 + $0x240] ss:$8 sps:$4 sm:$0xff]  }
 0xe87   :  { %7007 = vmatpush1.bf16.msra.mxu1 %v15288_v6  ;;  %v15344_v6 = vld [vmem:[#allocation26 + $0x254] ss:$8 sps:$4 sm:$0xff]  }
 0xe88   :  { %7008 = vmatprep.subr.bf16.mxu1 %v15293_v51  ;;  %v15342_v51 = vld [vmem:[#allocation26 + $0x250] ss:$8 sps:$4 sm:$0xff]  }
 0xe8b   :  { %7009 = vmatpush1.bf16.msra.mxu1 %v15291_v13  ;;  %v15347_v13 = vld [vmem:[#allocation26 + $0x264] ss:$8 sps:$4 sm:$0xff]  }
 0xe8c   :  { %7010 = vmatprep.subr.bf16.mxu1 %v15296_v34  ;;  %v15345_v34 = vld [vmem:[#allocation26 + $0x260] ss:$8 sps:$4 sm:$0xff]  }
 0xe8f   :  { %7011 = vmatpush1.bf16.msra.mxu1 %v15294_v47  ;;  %v15350_v47 = vld [vmem:[#allocation26 + $0x274] ss:$8 sps:$4 sm:$0xff]  }
 0xe90   :  { %7012 = vmatprep.subr.bf16.mxu1 %v15299_v59  ;;  %v15348_v59 = vld [vmem:[#allocation26 + $0x270] ss:$8 sps:$4 sm:$0xff]  }
 0xe93   :  { %7013 = vmatpush1.bf16.msra.mxu1 %v15297_v46  ;;  %v15353_v46 = vld [vmem:[#allocation26 + $0x284] ss:$8 sps:$4 sm:$0xff]  }
 0xe94   :  { %7014 = vmatprep.subr.bf16.mxu1 %v15302_v30  ;;  %v15351_v30 = vld [vmem:[#allocation26 + $0x280] ss:$8 sps:$4 sm:$0xff]  }
 0xe97   :  { %7015 = vmatpush1.bf16.msra.mxu1 %v15300_v8  ;;  %v15356_v8 = vld [vmem:[#allocation26 + $0x294] ss:$8 sps:$4 sm:$0xff]  }
 0xe98   :  { %7016 = vmatprep.subr.bf16.mxu1 %v15305_v55  ;;  %v15354_v55 = vld [vmem:[#allocation26 + $0x290] ss:$8 sps:$4 sm:$0xff]  }
 0xe9b   :  { %7017 = vmatpush1.bf16.msra.mxu1 %v15303_v32  ;;  %v15359_v32 = vld [vmem:[#allocation26 + $0x2a4] ss:$8 sps:$4 sm:$0xff]  }
 0xe9c   :  { %7018 = vmatprep.subr.bf16.mxu1 %v15308_v16  ;;  %v15357_v16 = vld [vmem:[#allocation26 + $0x2a0] ss:$8 sps:$4 sm:$0xff]  }
 0xe9f   :  { %7019 = vmatpush1.bf16.msra.mxu1 %v15306_v61  ;;  %v15362_v61 = vld [vmem:[#allocation26 + $0x2b4] ss:$8 sps:$4 sm:$0xff]  }
 0xea0   :  { %7020 = vmatprep.subr.bf16.mxu1 %v15311_v57  ;;  %v15360_v57 = vld [vmem:[#allocation26 + $0x2b0] ss:$8 sps:$4 sm:$0xff]  }
 0xea3   :  { %7021 = vmatpush1.bf16.msra.mxu1 %v15309_v48  ;;  %v15365_v48 = vld [vmem:[#allocation26 + $0x2c4] ss:$8 sps:$4 sm:$0xff]  }
 0xea4   :  { %7022 = vmatprep.subr.bf16.mxu1 %v15314_v9  ;;  %v15363_v9 = vld [vmem:[#allocation26 + $0x2c0] ss:$8 sps:$4 sm:$0xff]  }
 0xea7   :  { %7023 = vmatpush1.bf16.msra.mxu1 %v15312_v33  ;;  %v15368_v33 = vld [vmem:[#allocation26 + $0x2d4] ss:$8 sps:$4 sm:$0xff]  }
 0xea8   :  { %7024 = vmatprep.subr.bf16.mxu1 %v15317_v60  ;;  %v15366_v60 = vld [vmem:[#allocation26 + $0x2d0] ss:$8 sps:$4 sm:$0xff]  }
 0xeab   :  { %7025 = vmatpush1.bf16.msra.mxu1 %v15315_v62  ;;  %v15371_v62 = vld [vmem:[#allocation26 + $0x2e4] ss:$8 sps:$4 sm:$0xff]  }
 0xeac   :  { %7026 = vmatprep.subr.bf16.mxu1 %v15320_v21  ;;  %v15369_v21 = vld [vmem:[#allocation26 + $0x2e0] ss:$8 sps:$4 sm:$0xff]  }
 0xeaf   :  { %7027 = vmatpush1.bf16.msra.mxu1 %v15318_v49  ;;  %v15374_v49 = vld [vmem:[#allocation26 + $0x2f4] ss:$8 sps:$4 sm:$0xff]  }
 0xeb0   :  { %7028 = vmatprep.subr.bf16.mxu1 %v15323_v31  ;;  %v15372_v31 = vld [vmem:[#allocation26 + $0x2f0] ss:$8 sps:$4 sm:$0xff]  }
 0xeb3   :  { %7029 = vmatpush1.bf16.msra.mxu1 %v15321_v14  ;;  %v15375_v14 = vld [vmem:[#allocation23 + $0x900] ss:$8 sps:$4 sm:$0xff]  }
 0xeb4   :  { %7030 = vmatprep.subr.bf16.mxu1 %v15326_v40  ;;  %v15380_v40 = vld [vmem:[#allocation23 + $0x914] ss:$8 sps:$4 sm:$0xff]   ;;  %7919 = vmatpush1.bf16.msra.mxu0 %v15375_v14 }
 0xeb5   :  { %7920 = vmatprep.subr.bf16.mxu0 %v15380_v40 }
 0xeb7   :  { %7031 = vmatpush1.bf16.msra.mxu1 %v15324_v0  ;;  %v15378_v0 = vld [vmem:[#allocation23 + $0x910] ss:$8 sps:$4 sm:$0xff]  }
 0xeb8   :  { %7256 = vmatprep.subr.bf16.mxu1 %v15329_v58  ;;  %7921 = vmatpush1.bf16.msra.mxu0 %v15378_v0  ;;  %v15381_v58 = vld [vmem:[#allocation23 + $0x920] ss:$8 sps:$4 sm:$0xff]  }
 0xeb9   :  { %7922 = vmatprep.subr.bf16.mxu0 %v15383_v37  ;;  %v15416_v37 = vld [vmem:[#allocation23 + $0x9d4] ss:$8 sps:$4 sm:$0xff]  }
 0xeba   :  { %7033 = vmatmul.mubr.bf16.vlgmr.msra.gmra.mrb[32].mxu1 %v6418_v10  ;;  %v15384_v10 = vld [vmem:[#allocation23 + $0x930] ss:$8 sps:$4 sm:$0xff]  }
 0xebb   :  { %7257 = vmatpush1.bf16.msra.mxu1 %v15327_v17  ;;  %v15386_v17 = vld [vmem:[#allocation23 + $0x934] ss:$8 sps:$4 sm:$0xff]  }
 0xebc   :  { %7258 = vmatprep.subr.bf16.mxu1 %v15332_v43  ;;  %7923 = vmatpush1.bf16.msra.mxu0 %v15381_v58  ;;  %v15389_v43 = vld [vmem:[#allocation23 + $0x944] ss:$8 sps:$4 sm:$0xff]   ;;  %v15414_v58 = vld [vmem:[#allocation23 + $0x9d0] ss:$8 sps:$4 sm:$0xff]  }
 0xebd   :  { %7924 = vmatprep.subr.bf16.mxu0 %v15386_v17  ;;  %v15419_v17 = vld [vmem:[#allocation23 + $0x9e4] ss:$8 sps:$4 sm:$0xff]  }
 0xebf   :  { %7259 = vmatpush1.bf16.msra.mxu1 %v15330_v44  ;;  %v15387_v44 = vld [vmem:[#allocation23 + $0x940] ss:$8 sps:$4 sm:$0xff]  }
 0xec0   :  { %7260 = vmatprep.subr.bf16.mxu1 %v15335_v38  ;;  %7925 = vmatpush1.bf16.msra.mxu0 %v15384_v10  ;;  %v15392_v38 = vld [vmem:[#allocation23 + $0x954] ss:$8 sps:$4 sm:$0xff]   ;;  %v15417_v10 = vld [vmem:[#allocation23 + $0x9e0] ss:$8 sps:$4 sm:$0xff]  }
 0xec1   :  { %7926 = vmatprep.subr.bf16.mxu0 %v15389_v43  ;;  %v15422_v43 = vld [vmem:[#allocation23 + $0x9f4] ss:$8 sps:$4 sm:$0xff]  }
 0xec3   :  { %7261 = vmatpush1.bf16.msra.mxu1 %v15333_v4  ;;  %v15390_v4 = vld [vmem:[#allocation23 + $0x950] ss:$8 sps:$4 sm:$0xff]  }
 0xec4   :  { %7262 = vmatprep.subr.bf16.mxu1 %v15338_v25  ;;  %7927 = vmatpush1.bf16.msra.mxu0 %v15387_v44  ;;  %v15395_v25 = vld [vmem:[#allocation23 + $0x964] ss:$8 sps:$4 sm:$0xff]   ;;  %v15420_v44 = vld [vmem:[#allocation23 + $0x9f0] ss:$8 sps:$4 sm:$0xff]  }
 0xec5   :  { %7928 = vmatprep.subr.bf16.mxu0 %v15392_v38  ;;  %v15425_v38 = vld [vmem:[#allocation23 + $0xa04] ss:$8 sps:$4 sm:$0xff]  }
 0xec7   :  { %7263 = vmatpush1.bf16.msra.mxu1 %v15336_v41  ;;  %v15393_v41 = vld [vmem:[#allocation23 + $0x960] ss:$8 sps:$4 sm:$0xff]  }
 0xec8   :  { %7264 = vmatprep.subr.bf16.mxu1 %v15341_v22  ;;  %7929 = vmatpush1.bf16.msra.mxu0 %v15390_v4  ;;  %v15398_v22 = vld [vmem:[#allocation23 + $0x974] ss:$8 sps:$4 sm:$0xff]   ;;  %v18109_v4 = vld [vmem:[#allocation28] sm:$0xff] }
 0xec9   :  { %7930 = vmatprep.subr.bf16.mxu0 %v15395_v25  ;;  %v7081_v25 = vrot.slane %v18109_v4, %v17005_v54 }
 0xecb   :  { %7265 = vmatpush1.bf16.msra.mxu1 %v15339_v42  ;;  %v15396_v42 = vld [vmem:[#allocation23 + $0x970] ss:$8 sps:$4 sm:$0xff]  }
 0xecc   :  { %7266 = vmatprep.subr.bf16.mxu1 %v15344_v6  ;;  %7931 = vmatpush1.bf16.msra.mxu0 %v15393_v41  ;;  %v15401_v6 = vld [vmem:[#allocation23 + $0x984] ss:$8 sps:$4 sm:$0xff]  }
 0xecd   :  { %7932 = vmatprep.subr.bf16.mxu0 %v15398_v22  ;;  %v7091_v22 = vrot.slane %v7081_v25, %v17005_v54  ;;  %v15533_v25 = vld [vmem:[#allocation26 + $0x344] ss:$8 sps:$4 sm:$0xff]  }
 0xecf   :  { %7267 = vmatpush1.bf16.msra.mxu1 %v15342_v51  ;;  %v15399_v51 = vld [vmem:[#allocation23 + $0x980] ss:$8 sps:$4 sm:$0xff]  }
 0xed0   :  { %7268 = vmatprep.subr.bf16.mxu1 %v15347_v13  ;;  %7933 = vmatpush1.bf16.msra.mxu0 %v15396_v42  ;;  %v15404_v13 = vld [vmem:[#allocation23 + $0x994] ss:$8 sps:$4 sm:$0xff]  }
 0xed1   :  { %7934 = vmatprep.subr.bf16.mxu0 %v15401_v6 }
 0xed3   :  { %7269 = vmatpush1.bf16.msra.mxu1 %v15345_v34  ;;  %v15402_v34 = vld [vmem:[#allocation23 + $0x990] ss:$8 sps:$4 sm:$0xff]  }
 0xed4   :  { %7270 = vmatprep.subr.bf16.mxu1 %v15350_v47  ;;  %7935 = vmatpush1.bf16.msra.mxu0 %v15399_v51  ;;  %v15407_v47 = vld [vmem:[#allocation23 + $0x9a4] ss:$8 sps:$4 sm:$0xff]  }
 0xed5   :  { %7936 = vmatprep.subr.bf16.mxu0 %v15404_v13 }
 0xed7   :  { %7271 = vmatpush1.bf16.msra.mxu1 %v15348_v59  ;;  %v15405_v59 = vld [vmem:[#allocation23 + $0x9a0] ss:$8 sps:$4 sm:$0xff]  }
 0xed8   :  { %7272 = vmatprep.subr.bf16.mxu1 %v15353_v46  ;;  %7937 = vmatpush1.bf16.msra.mxu0 %v15402_v34  ;;  %v15410_v46 = vld [vmem:[#allocation23 + $0x9b4] ss:$8 sps:$4 sm:$0xff]  }
 0xed9   :  { %7938 = vmatprep.subr.bf16.mxu0 %v15407_v47 }
 0xedb   :  { %7273 = vmatpush1.bf16.msra.mxu1 %v15351_v30  ;;  %v15408_v30 = vld [vmem:[#allocation23 + $0x9b0] ss:$8 sps:$4 sm:$0xff]  }
 0xedc   :  { %7274 = vmatprep.subr.bf16.mxu1 %v15356_v8  ;;  %7939 = vmatpush1.bf16.msra.mxu0 %v15405_v59  ;;  %v15413_v8 = vld [vmem:[#allocation23 + $0x9c4] ss:$8 sps:$4 sm:$0xff]  }
 0xedd   :  { %7940 = vmatprep.subr.bf16.mxu0 %v15410_v46 }
 0xedf   :  { %7275 = vmatpush1.bf16.msra.mxu1 %v15354_v55  ;;  %v15411_v55 = vld [vmem:[#allocation23 + $0x9c0] ss:$8 sps:$4 sm:$0xff]  }
 0xee0   :  { %7276 = vmatprep.subr.bf16.mxu1 %v15359_v32  ;;  %7941 = vmatpush1.bf16.msra.mxu0 %v15408_v30  ;;  %v6426_v32 = vsub.s32 6, %v16996_v50 }
 0xee1   :  { %7942 = vmatprep.subr.bf16.mxu0 %v15413_v8 }
 0xee2   :  { %v7085_v41 = vrot.slane %v18109_v4, %v6426_v32 }
 0xee3   :  { %7277 = vmatpush1.bf16.msra.mxu1 %v15357_v16  ;;  %v18102_v16 = vld [vmem:[#allocation25] sm:$0xff] }
 0xee4   :  { %7278 = vmatprep.subr.bf16.mxu1 %v15362_v61  ;;  %7943 = vmatpush1.bf16.msra.mxu0 %v15411_v55  ;;  %v6423_v61 = vrot.slane %v18102_v16, %v17005_v54  ;;  %v7095_v42 = vrot.slane %v7085_v41, %v17005_v54  ;;  %v15435_v41 = vld [vmem:[#allocation23 + $0xa40] ss:$8 sps:$4 sm:$0xff]  }
 0xee5   :  { %7944 = vmatprep.subr.bf16.mxu0 %v15416_v37  ;;  %v15429_v37 = vld [vmem:[#allocation23 + $0xa20] ss:$8 sps:$4 sm:$0xff]  }
 0xee7   :  { %7279 = vmatpush1.bf16.msra.mxu1 %v15360_v57  ;;  %v6427_v57 = vrot.slane %v18102_v16, %v6426_v32  ;;  %v18128_v32 = vpop.permute.xlu0 %7401 }
 0xee8   :  { %7280 = vmatprep.subr.bf16.mxu1 %v15365_v48  ;;  %v6433_v48 = vrot.slane %v6423_v61, %v17005_v54  ;;  %7945 = vmatpush1.bf16.msra.mxu0 %v15414_v58  ;;  %v15434_v58 = vld [vmem:[#allocation23 + $0xa34] ss:$8 sps:$4 sm:$0xff]  }
 0xee9   :  { %7946 = vmatprep.subr.bf16.mxu0 %v15419_v17  ;;  %v15525_v17 = vld [vmem:[#allocation26 + $0x320] ss:$8 sps:$4 sm:$0xff]  }
 0xeeb   :  { %7281 = vmatpush1.bf16.msra.mxu1 %v15363_v9  ;;  %v6437_v9 = vrot.slane %v6427_v57, %v17005_v54 }
 0xeec   :  { %7282 = vmatprep.subr.bf16.mxu1 %v15368_v33  ;;  %7947 = vmatpush1.bf16.msra.mxu0 %v15417_v10  ;;  %v15530_v10 = vld [vmem:[#allocation26 + $0x334] ss:$8 sps:$4 sm:$0xff]  }
 0xeed   :  { %7948 = vmatprep.subr.bf16.mxu0 %v15422_v43  ;;  %v15432_v43 = vld [vmem:[#allocation23 + $0xa30] ss:$8 sps:$4 sm:$0xff]  }
 0xeef   :  { %7283 = vmatpush1.bf16.msra.mxu1 %v15366_v60 }
 0xef0   :  { %7284 = vmatprep.subr.bf16.mxu1 %v15371_v62  ;;  %7949 = vmatpush1.bf16.msra.mxu0 %v15420_v44  ;;  %v15437_v44 = vld [vmem:[#allocation23 + $0xa44] ss:$8 sps:$4 sm:$0xff]  }
 0xef1   :  { %7959 = vmatprep.subr.bf16.mxu0 %v15425_v38  ;;  %v15528_v38 = vld [vmem:[#allocation26 + $0x330] ss:$8 sps:$4 sm:$0xff]  }
 0xef3   :  { %7285 = vmatpush1.bf16.msra.mxu1 %v15369_v21 }
 0xef4   :  { %7286 = vmatprep.subr.bf16.mxu1 %v15374_v49 }
 0xef7   :  { %7287 = vmatpush1.bf16.msra.mxu1 %v15372_v31 }
 0xf8d   :  { %v7034_v33 = vpop.f32.mrb[32].mxu1 }
 0xf8e   :  { %v13999_v60 = vadd.f32 %v7034_v33, %v6433_v48  ;;  %v7036_v62 = vpop.f32.mrb[33].mxu1  ;;  %v15423_v33 = vld [vmem:[#allocation23 + $0xa00] ss:$8 sps:$4 sm:$0xff]  }
 0xf8f   :  { %v14000_v21 = vadd.f32 %v7036_v62, %v6437_v9  ;;  %v7038_v49 = vpop.f32.mrb[34].mxu1 }
 0xf90   :  { %v7041_v31 = vmax.f32 %v13999_v60, 0.0  ;;  %v7039_v14 = vpop.f32.mrb[35].mxu1  ;;  %v15428_v60 = vld [vmem:[#allocation23 + $0xa14] ss:$8 sps:$4 sm:$0xff]  }
 0xf91   :  { %v7042_v5 = vmax.f32 %v14000_v21, 0.0  ;;  %v15519_v21 = vld [vmem:[#allocation26 + $0x300] ss:$8 sps:$4 sm:$0xff]   ;;  %v15521_v49 = vld [vmem:[#allocation26 + $0x304] ss:$8 sps:$4 sm:$0xff]  }
 0xf92   :  { %v7043_v0 = vpack.c.bf16 %v7041_v31, %v7041_v31  ;;  %v15426_v31 = vld [vmem:[#allocation23 + $0xa10] ss:$8 sps:$4 sm:$0xff]   ;;  %v15524_v14 = vld [vmem:[#allocation26 + $0x314] ss:$8 sps:$4 sm:$0xff]   ;;  %8256 = vmatprep.subr.bf16.mxu1 %v15521_v49 }
 0xf93   :  { %v7044_v40 = vpack.c.bf16 %v7042_v5, %v7042_v5  ;;  %v15431_v5 = vld [vmem:[#allocation23 + $0xa24] ss:$8 sps:$4 sm:$0xff]  }
 0xf94   :  { %v15548_v49 = vld [vmem:[#allocation26 + $0x394] ss:$8 sps:$4 sm:$0xff]  }
 0xf95   :  { %7288 = vmatprep.mubr.bf16.mxu1 %v7044_v40  ;;  %v15522_v40 = vld [vmem:[#allocation26 + $0x310] ss:$8 sps:$4 sm:$0xff]  }
 0xf96   :  { %7289 = vmatmul.mubr.bf16.vlgmr.msra.gmra.mrb[36].mxu1 %v7043_v0  ;;  %v15527_v0 = vld [vmem:[#allocation26 + $0x324] ss:$8 sps:$4 sm:$0xff]  }
 0xf97   :  { %8257 = vmatpush1.bf16.msra.mxu1 %v15519_v21  ;;  %v15543_v21 = vld [vmem:[#allocation26 + $0x380] ss:$8 sps:$4 sm:$0xff]  }
 0xf98   :  { %8258 = vmatprep.subr.bf16.mxu1 %v15524_v14  ;;  %v15455_v14 = vld [vmem:[#allocation23 + $0xaa4] ss:$8 sps:$4 sm:$0xff]  }
 0xf9b   :  { %8259 = vmatpush1.bf16.msra.mxu1 %v15522_v40  ;;  %v15551_v40 = vld [vmem:[#allocation26 + $0x3a4] ss:$8 sps:$4 sm:$0xff]  }
 0xf9c   :  { %8260 = vmatprep.subr.bf16.mxu1 %v15527_v0  ;;  %v15453_v0 = vld [vmem:[#allocation23 + $0xaa0] ss:$8 sps:$4 sm:$0xff]  }
 0xf9f   :  { %8261 = vmatpush1.bf16.msra.mxu1 %v15525_v17  ;;  %v15554_v17 = vld [vmem:[#allocation26 + $0x3b4] ss:$8 sps:$4 sm:$0xff]  }
 0xfa0   :  { %8262 = vmatprep.subr.bf16.mxu1 %v15530_v10  ;;  %v15456_v10 = vld [vmem:[#allocation23 + $0xab0] ss:$8 sps:$4 sm:$0xff]  }
 0xfa3   :  { %8263 = vmatpush1.bf16.msra.mxu1 %v15528_v38  ;;  %v15557_v38 = vld [vmem:[#allocation26 + $0x3c4] ss:$8 sps:$4 sm:$0xff]  }
 0xfa4   :  { %8264 = vmatprep.subr.bf16.mxu1 %v15533_v25  ;;  %v15459_v25 = vld [vmem:[#allocation23 + $0xac0] ss:$8 sps:$4 sm:$0xff]  }
0x1069   :  { %v7290_v6 = vpop.f32.mrb[36].mxu1 }
0x106a   :  { %v7291_v51 = vadd.f32 %v7290_v6, %v7091_v22  ;;  %v7292_v13 = vpop.f32.mrb[37].mxu1  ;;  %v15440_v22 = vld [vmem:[#allocation23 + $0xa54] ss:$8 sps:$4 sm:$0xff]  }
0x106b   :  { %v7293_v34 = vadd.f32 %v7292_v13, %v7095_v42  ;;  %v7294_v47 = vpop.f32.mrb[38].mxu1  ;;  %v15531_v42 = vld [vmem:[#allocation26 + $0x340] ss:$8 sps:$4 sm:$0xff]   ;;  %v15536_v6 = vld [vmem:[#allocation26 + $0x354] ss:$8 sps:$4 sm:$0xff]  }
0x106c   :  { %v18117_v59 = vadd.f32 %v18075_v35, %v7291_v51  ;;  %v7295_v46 = vpop.f32.mrb[39].mxu1  ;;  %v15438_v51 = vld [vmem:[#allocation23 + $0xa50] ss:$8 sps:$4 sm:$0xff]   ;;  %v15443_v13 = vld [vmem:[#allocation23 + $0xa64] ss:$8 sps:$4 sm:$0xff]   ;;  %8265 = vmatpush1.bf16.msra.mxu1 %v15531_v42 }
0x106d   :  { %v18120_v30 = vadd.f32 %v18077_v39, %v7293_v34  ;;  %v15534_v34 = vld [vmem:[#allocation26 + $0x350] ss:$8 sps:$4 sm:$0xff]   ;;  %8266 = vmatprep.subr.bf16.mxu1 %v15536_v6  ;;  %v15539_v47 = vld [vmem:[#allocation26 + $0x364] ss:$8 sps:$4 sm:$0xff]   ;;  %v15560_v42 = vld [vmem:[#allocation26 + $0x3d4] ss:$8 sps:$4 sm:$0xff]  }
0x106e   :  { %v18123_v8 = vmax.f32 %v18117_v59, 0.0  ;;  %v15441_v46 = vld [vmem:[#allocation23 + $0xa60] ss:$8 sps:$4 sm:$0xff]   ;;  %v15462_v6 = vld [vmem:[#allocation23 + $0xad0] ss:$8 sps:$4 sm:$0xff]  }
0x106f   :  { %v18126_v55 = vmax.f32 %v18120_v30, 0.0 }
0x1070   :  { %v7398_v61 = vrot.slane %v18123_v8, 5  ;;  %8267 = vmatpush1.bf16.msra.mxu1 %v15534_v34  ;;  %v15465_v34 = vld [vmem:[#allocation23 + $0xae0] ss:$8 sps:$4 sm:$0xff]  }
0x1071   :  { %v7399_v57 = vrot.slane %v18126_v55, 5  ;;  %v7417_v62 = vpack.c.bf16 %v18126_v55, %v18126_v55  ;;  %8268 = vmatprep.subr.bf16.mxu1 %v15539_v47  ;;  %v15470_v47 = vld [vmem:[#allocation23 + $0xaf4] ss:$8 sps:$4 sm:$0xff]  }
0x1072   :  { %v7404_v48 = vmul.f32 %v18128_v32, %v7398_v61  ;;  %v15446_v61 = vld [vmem:[#allocation23 + $0xa74] ss:$8 sps:$4 sm:$0xff]  }
0x1073   :  { %v7405_v35 = vmul.f32 %v18128_v32, %v7399_v57  ;;  %v15537_v57 = vld [vmem:[#allocation26 + $0x360] ss:$8 sps:$4 sm:$0xff]  }
0x1074   :  { %v7414_v39 = vpack.c.bf16 %v7404_v48, %v7404_v48  ;;  %v15542_v48 = vld [vmem:[#allocation26 + $0x374] ss:$8 sps:$4 sm:$0xff]   ;;  %8269 = vmatpush1.bf16.msra.mxu1 %v15537_v57  ;;  %v15468_v57 = vld [vmem:[#allocation23 + $0xaf0] ss:$8 sps:$4 sm:$0xff]  }
0x1075   :  { %v7415_v9 = vpack.c.bf16 %v7405_v35, %v7405_v35  ;;  %v15444_v35 = vld [vmem:[#allocation23 + $0xa70] ss:$8 sps:$4 sm:$0xff]   ;;  %8270 = vmatprep.subr.bf16.mxu1 %v15542_v48  ;;  %v15473_v48 = vld [vmem:[#allocation23 + $0xb04] ss:$8 sps:$4 sm:$0xff]  }
0x1077   :  { %7950 = vmatprep.mubr.bf16.mxu0 %v7415_v9  ;;  %v15449_v9 = vld [vmem:[#allocation23 + $0xa84] ss:$8 sps:$4 sm:$0xff]  }
0x1078   :  { %7951 = vmatmul.mubr.bf16.vlgmr.msra.gmra.mrb[32].mxu0 %v7414_v39  ;;  %v15545_v39 = vld [vmem:[#allocation26 + $0x384] ss:$8 sps:$4 sm:$0xff]  }
0x1079   :  { %7960 = vmatpush1.bf16.msra.mxu0 %v15423_v33  ;;  %7991 = vmatprep.mubr.bf16.mxu0 %v7417_v62  ;;  %v15540_v33 = vld [vmem:[#allocation26 + $0x370] ss:$8 sps:$4 sm:$0xff]   ;;  %v15452_v62 = vld [vmem:[#allocation23 + $0xa94] ss:$8 sps:$4 sm:$0xff]  }
0x107a   :  { %7961 = vmatprep.subr.bf16.mxu0 %v15428_v60  ;;  %v15447_v60 = vld [vmem:[#allocation23 + $0xa80] ss:$8 sps:$4 sm:$0xff]   ;;  %8271 = vmatpush1.bf16.msra.mxu1 %v15540_v33  ;;  %v7416_v33 = vpack.c.bf16 %v18123_v8, %v18123_v8 }
0x107b   :  { %8272 = vmatprep.subr.bf16.mxu1 %v15545_v39  ;;  %v15476_v39 = vld [vmem:[#allocation23 + $0xb14] ss:$8 sps:$4 sm:$0xff]  }
0x107d   :  { %7962 = vmatpush1.bf16.msra.mxu0 %v15426_v31  ;;  %v15450_v31 = vld [vmem:[#allocation23 + $0xa90] ss:$8 sps:$4 sm:$0xff]  }
0x107e   :  { %7963 = vmatprep.subr.bf16.mxu0 %v15431_v5  ;;  %8273 = vmatpush1.bf16.msra.mxu1 %v15543_v21  ;;  %v15546_v5 = vld [vmem:[#allocation26 + $0x390] ss:$8 sps:$4 sm:$0xff]  }
0x107f   :  { %8274 = vmatprep.subr.bf16.mxu1 %v15548_v49  ;;  %v15477_v21 = vld [vmem:[#allocation23 + $0xb20] ss:$8 sps:$4 sm:$0xff]   ;;  %v15482_v49 = vld [vmem:[#allocation23 + $0xb34] ss:$8 sps:$4 sm:$0xff]  }
0x1081   :  { %7964 = vmatpush1.bf16.msra.mxu0 %v15429_v37  ;;  %v15458_v37 = vld [vmem:[#allocation23 + $0xab4] ss:$8 sps:$4 sm:$0xff]  }
0x1082   :  { %7965 = vmatprep.subr.bf16.mxu0 %v15434_v58  ;;  %8275 = vmatpush1.bf16.msra.mxu1 %v15546_v5  ;;  %v15549_v58 = vld [vmem:[#allocation26 + $0x3a0] ss:$8 sps:$4 sm:$0xff]  }
0x1083   :  { %8276 = vmatprep.subr.bf16.mxu1 %v15551_v40  ;;  %v15483_v5 = vld [vmem:[#allocation23 + $0xb40] ss:$8 sps:$4 sm:$0xff]   ;;  %v15488_v40 = vld [vmem:[#allocation23 + $0xb54] ss:$8 sps:$4 sm:$0xff]  }
0x1085   :  { %7966 = vmatpush1.bf16.msra.mxu0 %v15432_v43  ;;  %v15461_v43 = vld [vmem:[#allocation23 + $0xac4] ss:$8 sps:$4 sm:$0xff]  }
0x1086   :  { %7967 = vmatprep.subr.bf16.mxu0 %v15437_v44  ;;  %8277 = vmatpush1.bf16.msra.mxu1 %v15549_v58  ;;  %v15552_v44 = vld [vmem:[#allocation26 + $0x3b0] ss:$8 sps:$4 sm:$0xff]  }
0x1087   :  { %8278 = vmatprep.subr.bf16.mxu1 %v15554_v17  ;;  %v15489_v58 = vld [vmem:[#allocation23 + $0xb60] ss:$8 sps:$4 sm:$0xff]   ;;  %v15494_v17 = vld [vmem:[#allocation23 + $0xb74] ss:$8 sps:$4 sm:$0xff]  }
0x1089   :  { %7968 = vmatpush1.bf16.msra.mxu0 %v15435_v41  ;;  %v15464_v41 = vld [vmem:[#allocation23 + $0xad4] ss:$8 sps:$4 sm:$0xff]  }
0x108a   :  { %7969 = vmatprep.subr.bf16.mxu0 %v15440_v22  ;;  %8279 = vmatpush1.bf16.msra.mxu1 %v15552_v44  ;;  %v15555_v22 = vld [vmem:[#allocation26 + $0x3c0] ss:$8 sps:$4 sm:$0xff]  }
0x108b   :  { %8280 = vmatprep.subr.bf16.mxu1 %v15557_v38  ;;  %v15495_v44 = vld [vmem:[#allocation23 + $0xb80] ss:$8 sps:$4 sm:$0xff]   ;;  %v15500_v38 = vld [vmem:[#allocation23 + $0xb94] ss:$8 sps:$4 sm:$0xff]  }
0x108d   :  { %7970 = vmatpush1.bf16.msra.mxu0 %v15438_v51  ;;  %v15467_v51 = vld [vmem:[#allocation23 + $0xae4] ss:$8 sps:$4 sm:$0xff]  }
0x108e   :  { %7971 = vmatprep.subr.bf16.mxu0 %v15443_v13  ;;  %8281 = vmatpush1.bf16.msra.mxu1 %v15555_v22  ;;  %v15558_v13 = vld [vmem:[#allocation26 + $0x3d0] ss:$8 sps:$4 sm:$0xff]  }
0x108f   :  { %8282 = vmatprep.subr.bf16.mxu1 %v15560_v42  ;;  %v15501_v22 = vld [vmem:[#allocation23 + $0xba0] ss:$8 sps:$4 sm:$0xff]   ;;  %v15506_v42 = vld [vmem:[#allocation23 + $0xbb4] ss:$8 sps:$4 sm:$0xff]  }
0x1091   :  { %7972 = vmatpush1.bf16.msra.mxu0 %v15441_v46  ;;  %v7407_v46 = vrot.slane %v18126_v55, 3  ;;  %v15474_v55 = vld [vmem:[#allocation23 + $0xb10] ss:$8 sps:$4 sm:$0xff]  }
0x1092   :  { %7973 = vmatprep.subr.bf16.mxu0 %v15446_v61  ;;  %8283 = vmatpush1.bf16.msra.mxu1 %v15558_v13  ;;  %v18137_v61 = vpop.permute.xlu1 %7409  ;;  %v15507_v13 = vld [vmem:[#allocation23 + $0xbc0] ss:$8 sps:$4 sm:$0xff]  }
0x1095   :  { %7974 = vmatpush1.bf16.msra.mxu0 %v15444_v35  ;;  %v7413_v35 = vmul.f32 %v18137_v61, %v7407_v46  ;;  %v15515_v46 = vld [vmem:[#allocation23 + $0xbe4] ss:$8 sps:$4 sm:$0xff]  }
0x1096   :  { %7975 = vmatprep.subr.bf16.mxu0 %v15449_v9  ;;  %v15471_v9 = vld [vmem:[#allocation23 + $0xb00] ss:$8 sps:$4 sm:$0xff]  }
0x1099   :  { %7976 = vmatpush1.bf16.msra.mxu0 %v15447_v60  ;;  %v7419_v60 = vpack.c.bf16 %v7413_v35, %v7413_v35  ;;  %v15518_v35 = vld [vmem:[#allocation23 + $0xbf4] ss:$8 sps:$4 sm:$0xff]  }
0x109a   :  { %7977 = vmatprep.subr.bf16.mxu0 %v15452_v62  ;;  %v15479_v62 = vld [vmem:[#allocation23 + $0xb24] ss:$8 sps:$4 sm:$0xff]  }
0x109d   :  { %7978 = vmatpush1.bf16.msra.mxu0 %v15450_v31  ;;  %v15480_v31 = vld [vmem:[#allocation23 + $0xb30] ss:$8 sps:$4 sm:$0xff]  }
0x109e   :  { %7979 = vmatprep.subr.bf16.mxu0 %v15455_v14  ;;  %v15485_v14 = vld [vmem:[#allocation23 + $0xb44] ss:$8 sps:$4 sm:$0xff]  }
0x10a1   :  { %7980 = vmatpush1.bf16.msra.mxu0 %v15453_v0  ;;  %v15486_v0 = vld [vmem:[#allocation23 + $0xb50] ss:$8 sps:$4 sm:$0xff]  }
0x10a2   :  { %7981 = vmatprep.subr.bf16.mxu0 %v15458_v37  ;;  %v15491_v37 = vld [vmem:[#allocation23 + $0xb64] ss:$8 sps:$4 sm:$0xff]  }
0x10a5   :  { %7982 = vmatpush1.bf16.msra.mxu0 %v15456_v10  ;;  %v15492_v10 = vld [vmem:[#allocation23 + $0xb70] ss:$8 sps:$4 sm:$0xff]  }
0x10a6   :  { %7983 = vmatprep.subr.bf16.mxu0 %v15461_v43  ;;  %v15497_v43 = vld [vmem:[#allocation23 + $0xb84] ss:$8 sps:$4 sm:$0xff]  }
0x10a9   :  { %7984 = vmatpush1.bf16.msra.mxu0 %v15459_v25  ;;  %v15498_v25 = vld [vmem:[#allocation23 + $0xb90] ss:$8 sps:$4 sm:$0xff]  }
0x10aa   :  { %7985 = vmatprep.subr.bf16.mxu0 %v15464_v41  ;;  %v15503_v41 = vld [vmem:[#allocation23 + $0xba4] ss:$8 sps:$4 sm:$0xff]  }
0x10ad   :  { %7986 = vmatpush1.bf16.msra.mxu0 %v15462_v6  ;;  %v15504_v6 = vld [vmem:[#allocation23 + $0xbb0] ss:$8 sps:$4 sm:$0xff]  }
0x10ae   :  { %7987 = vmatprep.subr.bf16.mxu0 %v15467_v51  ;;  %v15509_v51 = vld [vmem:[#allocation23 + $0xbc4] ss:$8 sps:$4 sm:$0xff]  }
0x10b1   :  { %7988 = vmatpush1.bf16.msra.mxu0 %v15465_v34  ;;  %v15512_v34 = vld [vmem:[#allocation23 + $0xbd4] ss:$8 sps:$4 sm:$0xff]  }
0x10b2   :  { %7989 = vmatprep.subr.bf16.mxu0 %v15470_v47  ;;  %v15510_v47 = vld [vmem:[#allocation23 + $0xbd0] ss:$8 sps:$4 sm:$0xff]  }
0x10b5   :  { %7990 = vmatpush1.bf16.msra.mxu0 %v15468_v57  ;;  %v15513_v57 = vld [vmem:[#allocation23 + $0xbe0] ss:$8 sps:$4 sm:$0xff]  }
0x10b6   :  { %8000 = vmatprep.subr.bf16.mxu0 %v15473_v48  ;;  %v7406_v48 = vrot.slane %v18123_v8, 3  ;;  %v7426_v8 = vsub.s32 7, %v16996_v50 }
0x10b8   :  { %7992 = vmatmul.mubr.bf16.vlgmr.msra.gmra.mrb[32].mxu0 %v7416_v33  ;;  %v7412_v33 = vmul.f32 %v18137_v61, %v7406_v48  ;;  %v15578_v48 = vld [vmem:[#allocation29 + $0x28] sm:$0xff]  }
0x10b9   :  { %8001 = vmatpush1.bf16.msra.mxu0 %v15471_v9  ;;  %8032 = vmatprep.mubr.bf16.mxu0 %v7419_v60  ;;  %v15516_v9 = vld [vmem:[#allocation23 + $0xbf0] ss:$8 sps:$4 sm:$0xff]   ;;  %v15563_v60 = vld [vmem:[#allocation26 + $0x3e4] ss:$8 sps:$4 sm:$0xff]  }
0x10ba   :  { %8002 = vmatprep.subr.bf16.mxu0 %v15476_v39  ;;  %v7418_v39 = vpack.c.bf16 %v7412_v33, %v7412_v33  ;;  %8284 = vmatprep.subr.bf16.mxu1 %v15563_v60  ;;  %v15581_v33 = vld [vmem:[#allocation29 + $0x78] sm:$0xff]   ;;  %v15583_v60 = vld [vmem:[#allocation29 + $0xc0] sm:$0xff]  }
0x10bd   :  { %8003 = vmatpush1.bf16.msra.mxu0 %v15474_v55  ;;  %v15561_v55 = vld [vmem:[#allocation26 + $0x3e0] ss:$8 sps:$4 sm:$0xff]  }
0x10be   :  { %8004 = vmatprep.subr.bf16.mxu0 %v15479_v62  ;;  %8285 = vmatpush1.bf16.msra.mxu1 %v15561_v55  ;;  %v15564_v62 = vld [vmem:[#allocation26 + $0x3f0] ss:$8 sps:$4 sm:$0xff]   ;;  %v8081_v55 = vrot.slane %v18109_v4, %v18069_v27 }
0x10c1   :  { %8005 = vmatpush1.bf16.msra.mxu0 %v15477_v21  ;;  %v15566_v21 = vld [vmem:[#allocation26 + $0x3f4] ss:$8 sps:$4 sm:$0xff]  }
0x10c2   :  { %8006 = vmatprep.subr.bf16.mxu0 %v15482_v49  ;;  %8286 = vmatprep.subr.bf16.mxu1 %v15566_v21  ;;  %v15567_v49 = vld [vmem:[#allocation29 + $0x40] sm:$0xff]   ;;  %v8091_v21 = vrot.slane %v8081_v55, %v18069_v27 }
0x10c3   :  { %8287 = vmatpush1.bf16.msra.mxu1 %v15564_v62  ;;  %v8085_v62 = vrot.slane %v18109_v4, %v7426_v8 }
0x10c4   :  { %13585 = vmatprep.subr.bf16.mxu1 %v15567_v49 }
0x10c5   :  { %8007 = vmatpush1.bf16.msra.mxu0 %v15480_v31  ;;  %v7423_v31 = vrot.slane %v18102_v16, %v18069_v27  ;;  %v8095_v49 = vrot.slane %v8085_v62, %v18069_v27  ;;  %v15601_v62 = vld [vmem:[#allocation29 + $0x148] sm:$0xff]  }
0x10c6   :  { %8008 = vmatprep.subr.bf16.mxu0 %v15485_v14  ;;  %v7427_v14 = vrot.slane %v18102_v16, %v7426_v8  ;;  %v15570_v16 = vld [vmem:[#allocation29 + $0x8] sm:$0xff]  }
0x10c9   :  { %8009 = vmatpush1.bf16.msra.mxu0 %v15483_v5  ;;  %v7433_v5 = vrot.slane %v7423_v31, %v18069_v27 }
0x10ca   :  { %8010 = vmatprep.subr.bf16.mxu0 %v15488_v40  ;;  %v7437_v40 = vrot.slane %v7427_v14, %v18069_v27 }
0x10cd   :  { %8011 = vmatpush1.bf16.msra.mxu0 %v15486_v0 }
0x10ce   :  { %8012 = vmatprep.subr.bf16.mxu0 %v15491_v37 }
0x10d1   :  { %8013 = vmatpush1.bf16.msra.mxu0 %v15489_v58 }
0x10d2   :  { %8014 = vmatprep.subr.bf16.mxu0 %v15494_v17 }
0x10d5   :  { %8015 = vmatpush1.bf16.msra.mxu0 %v15492_v10 }
0x10d6   :  { %8016 = vmatprep.subr.bf16.mxu0 %v15497_v43 }
0x10d9   :  { %8017 = vmatpush1.bf16.msra.mxu0 %v15495_v44 }
0x10da   :  { %8018 = vmatprep.subr.bf16.mxu0 %v15500_v38 }
0x10dd   :  { %8019 = vmatpush1.bf16.msra.mxu0 %v15498_v25 }
0x10de   :  { %8020 = vmatprep.subr.bf16.mxu0 %v15503_v41  ;;  %v15568_v41 = vld [vmem:[#allocation29] sm:$0xff]  }
0x10e1   :  { %8021 = vmatpush1.bf16.msra.mxu0 %v15501_v22 }
0x10e2   :  { %8022 = vmatprep.subr.bf16.mxu0 %v15506_v42  ;;  %v15569_v42 = vld [vmem:[#allocation29 + $0x48] sm:$0xff]  }
0x10e5   :  { %8023 = vmatpush1.bf16.msra.mxu0 %v15504_v6  ;;  %v15571_v6 = vld [vmem:[#allocation29 + $0x50] sm:$0xff]  }
0x10e6   :  { %8024 = vmatprep.subr.bf16.mxu0 %v15509_v51  ;;  %v15572_v51 = vld [vmem:[#allocation29 + $0x10] sm:$0xff]  }
0x10e9   :  { %8025 = vmatpush1.bf16.msra.mxu0 %v15507_v13  ;;  %v15573_v13 = vld [vmem:[#allocation29 + $0x58] sm:$0xff]  }
0x10ea   :  { %8026 = vmatprep.subr.bf16.mxu0 %v15512_v34  ;;  %v15574_v34 = vld [vmem:[#allocation29 + $0x18] sm:$0xff]  }
0x10ed   :  { %8027 = vmatpush1.bf16.msra.mxu0 %v15510_v47  ;;  %v15575_v47 = vld [vmem:[#allocation29 + $0x60] sm:$0xff]  }
0x10ee   :  { %8028 = vmatprep.subr.bf16.mxu0 %v15515_v46  ;;  %v15576_v46 = vld [vmem:[#allocation29 + $0x20] sm:$0xff]  }
0x10f1   :  { %8029 = vmatpush1.bf16.msra.mxu0 %v15513_v57  ;;  %v15577_v57 = vld [vmem:[#allocation29 + $0x68] sm:$0xff]  }
0x10f2   :  { %8030 = vmatprep.subr.bf16.mxu0 %v15518_v35  ;;  %v15579_v35 = vld [vmem:[#allocation29 + $0x70] sm:$0xff]  }
0x10f5   :  { %8031 = vmatpush1.bf16.msra.mxu0 %v15516_v9  ;;  %v15580_v9 = vld [vmem:[#allocation29 + $0x30] sm:$0xff]  }
0x10f8   :  { %8033 = vmatmul.mubr.bf16.vlgmr.msra.gmra.mrb[32].mxu0 %v7418_v39  ;;  %v15582_v39 = vld [vmem:[#allocation29 + $0x38] sm:$0xff]  }
0x11cb   :  { %v8034_v0 = vpop.f32.mrb[32].mxu0 }
0x11cc   :  { %v14001_v37 = vadd.f32 %v8034_v0, %v7433_v5  ;;  %v8036_v58 = vpop.f32.mrb[33].mxu0 }
0x11cd   :  { %v14002_v17 = vadd.f32 %v8036_v58, %v7437_v40  ;;  %v8038_v10 = vpop.f32.mrb[34].mxu0 }
0x11ce   :  { %v8041_v43 = vmax.f32 %v14001_v37, 0.0  ;;  %v8039_v44 = vpop.f32.mrb[35].mxu0 }
0x11cf   :  { %v8042_v38 = vmax.f32 %v14002_v17, 0.0 }
0x11d0   :  { %v8043_v22 = vpack.c.bf16 %v8041_v43, %v8041_v43 }
0x11d1   :  { %v8044_v25 = vpack.c.bf16 %v8042_v38, %v8042_v38  ;;  %v15584_v38 = vld [vmem:[#allocation29 + $0x80] sm:$0xff]  }
0x11d3   :  { %8288 = vmatprep.mubr.bf16.mxu1 %v8044_v25 }
0x11d4   :  { %8289 = vmatmul.mubr.bf16.vlgmr.msra.gmra.mrb[40].mxu1 %v8043_v22 }
0x11d5   :  { %13586 = vmatpush3.bf16.msra.mxu1 %v15568_v41  ;;  %v15585_v41 = vld [vmem:[#allocation29 + $0xc8] sm:$0xff]  }
0x11d6   :  { %13587 = vmatprep.subr.bf16.mxu1 %v15569_v42  ;;  %v15587_v42 = vld [vmem:[#allocation29 + $0xd0] sm:$0xff]  }
0x11d9   :  { %13588 = vmatpush3.bf16.msra.mxu1 %v15570_v16  ;;  %v15589_v16 = vld [vmem:[#allocation29 + $0xd8] sm:$0xff]  }
0x11da   :  { %13589 = vmatprep.subr.bf16.mxu1 %v15571_v6  ;;  %v15590_v6 = vld [vmem:[#allocation29 + $0x98] sm:$0xff]  }
0x11dd   :  { %13590 = vmatpush3.bf16.msra.mxu1 %v15572_v51  ;;  %v15591_v51 = vld [vmem:[#allocation29 + $0xe0] sm:$0xff]  }
0x11de   :  { %13591 = vmatprep.subr.bf16.mxu1 %v15573_v13  ;;  %v15592_v13 = vld [vmem:[#allocation29 + $0xa0] sm:$0xff]  }
0x11e1   :  { %13592 = vmatpush3.bf16.msra.mxu1 %v15574_v34  ;;  %v15593_v34 = vld [vmem:[#allocation29 + $0xe8] sm:$0xff]  }
0x11e2   :  { %13593 = vmatprep.subr.bf16.mxu1 %v15575_v47  ;;  %v15594_v47 = vld [vmem:[#allocation29 + $0xa8] sm:$0xff]  }
0x11e5   :  { %13594 = vmatpush3.bf16.msra.mxu1 %v15576_v46  ;;  %v15595_v46 = vld [vmem:[#allocation29 + $0xf0] sm:$0xff]  }
0x11e6   :  { %13595 = vmatprep.subr.bf16.mxu1 %v15577_v57  ;;  %v15596_v57 = vld [vmem:[#allocation29 + $0xb0] sm:$0xff]  }
0x11e9   :  { %13596 = vmatpush3.bf16.msra.mxu1 %v15578_v48  ;;  %v15597_v48 = vld [vmem:[#allocation29 + $0xf8] sm:$0xff]  }
0x11ea   :  { %13597 = vmatprep.subr.bf16.mxu1 %v15579_v35 }
0x11ed   :  { %13598 = vmatpush3.bf16.msra.mxu1 %v15580_v9  ;;  %v15598_v9 = vld [vmem:[#allocation29 + $0xb8] sm:$0xff]  }
0x11ee   :  { %13599 = vmatprep.subr.bf16.mxu1 %v15581_v33  ;;  %v15599_v33 = vld [vmem:[#allocation29 + $0x140] sm:$0xff]  }
0x11f1   :  { %13600 = vmatpush3.bf16.msra.mxu1 %v15582_v39 }
0x11f2   :  { %13607 = vmatprep.subr.bf16.mxu1 %v15583_v60  ;;  %v15600_v60 = vld [vmem:[#allocation29 + $0x100] sm:$0xff]  }
0x12a7   :  { %v8290_v31 = vpop.f32.mrb[40].mxu1 }
0x12a8   :  { %v8291_v14 = vadd.f32 %v8290_v31, %v8091_v21  ;;  %v8292_v5 = vpop.f32.mrb[41].mxu1  ;;  %v15603_v31 = vld [vmem:[#allocation29 + $0x150] sm:$0xff]  }
0x12a9   :  { %v8293_v40 = vadd.f32 %v8292_v5, %v8095_v49  ;;  %v8294_v0 = vpop.f32.mrb[42].mxu1  ;;  %v15602_v49 = vld [vmem:[#allocation29 + $0x108] sm:$0xff]   ;;  %v15605_v5 = vld [vmem:[#allocation29 + $0x158] sm:$0xff]  }
0x12aa   :  { %v18156_v37 = vadd.f32 %v8291_v14, %v18117_v59  ;;  %v8295_v58 = vpop.f32.mrb[43].mxu1  ;;  %v15586_v59 = vld [vmem:[#allocation29 + $0x88] sm:$0xff]   ;;  %v15604_v14 = vld [vmem:[#allocation29 + $0x110] sm:$0xff]   ;;  %v15607_v0 = vld [vmem:[#allocation29 + $0x160] sm:$0xff]  }
0x12ab   :  { %v8298_v17 = vadd.f32 %v8293_v40, %v18120_v30  ;;  %v15588_v30 = vld [vmem:[#allocation29 + $0x90] sm:$0xff]   ;;  %v15606_v40 = vld [vmem:[#allocation29 + $0x118] sm:$0xff]   ;;  %v15608_v58 = vld [vmem:[#allocation29 + $0x120] sm:$0xff]  }
0x12ac   :  { %v8396_v10 = vrot.slane %v18156_v37, 7  ;;  %v8406_v55 = vpack.c.bf16 %v18156_v37, %v18156_v37 }
0x12ad   :  { %v8397_v43 = vrot.slane %v8298_v17, 7  ;;  %v8407_v22 = vpack.c.bf16 %v8298_v17, %v8298_v17  ;;  %v8401_v35 = vrot.slane %v8298_v17, 1  ;;  %v15609_v17 = vld [vmem:[#allocation29 + $0x168] sm:$0xff]  }
0x12ae   :  { %v8398_v4 = vmul.f32 %v8396_v10, %v18086_v15  ;;  %v15610_v10 = vld [vmem:[#allocation29 + $0x128] sm:$0xff]  }
0x12af   :  { %v8399_v8 = vmul.f32 %v8397_v43, %v18086_v15  ;;  %v8403_v39 = vmul.f32 %v8401_v35, %v18094_v3  ;;  %v15611_v43 = vld [vmem:[#allocation29 + $0x170] sm:$0xff]  }
0x12b0   :  { %v8404_v25 = vpack.c.bf16 %v8398_v4, %v8398_v4  ;;  %v15612_v4 = vld [vmem:[#allocation29 + $0x130] sm:$0xff]  }
0x12b1   :  { %v8405_v44 = vpack.c.bf16 %v8399_v8, %v8399_v8  ;;  %v8409_v21 = vpack.c.bf16 %v8403_v39, %v8403_v39  ;;  %v8400_v8 = vrot.slane %v18156_v37, 1  ;;  %v8830_v37 = vld [vmem:[#allocation32 + $0x20] sm:$0xff]  ;;  %v8839_v39 = vld [vmem:[#allocation32 + $0x68] sm:$0xff] }
0x12b3   :  { %8736 = vmatprep.mubr.bf16.mxu1 %v8405_v44  ;;  %v15613_v44 = vld [vmem:[#allocation29 + $0x178] sm:$0xff]  }
0x12b4   :  { %8737 = vmatmul.mubr.bf16.vlgmr.msra.gmra.mrb[44].mxu1 %v8404_v25  ;;  %v8402_v25 = vmul.f32 %v8400_v8, %v18094_v3  ;;  %v8846_v8 = vld [vmem:[#allocation32 + $0xa0] sm:$0xff] }
0x12b5   :  { %13608 = vmatpush3.bf16.msra.mxu1 %v15584_v38  ;;  %8776 = vmatprep.mubr.bf16.mxu1 %v8407_v22  ;;  %v15614_v38 = vld [vmem:[#allocation29 + $0x138] sm:$0xff]   ;;  %v8827_v22 = vld [vmem:[#allocation32 + $0x8] sm:$0xff] }
0x12b6   :  { %13609 = vmatprep.subr.bf16.mxu1 %v15585_v41  ;;  %v8408_v41 = vpack.c.bf16 %v8402_v25, %v8402_v25  ;;  %v8853_v25 = vld [vmem:[#allocation32 + $0xd8] sm:$0xff] }
0x12b9   :  { %13610 = vmatpush3.bf16.msra.mxu1 %v15586_v59  ;;  %v8829_v59 = vld [vmem:[#allocation32 + $0x18] sm:$0xff] }
0x12ba   :  { %13611 = vmatprep.subr.bf16.mxu1 %v15587_v42  ;;  %v8826_v42 = vld [vmem:[#allocation32] sm:$0xff] }
0x12bd   :  { %13612 = vmatpush3.bf16.msra.mxu1 %v15588_v30  ;;  %v13857_v30 = vpack.c.bf16 %v8829_v59, %v8827_v22  ;;  %v8850_v59 = vld [vmem:[#allocation32 + $0xc0] sm:$0xff] }
0x12be   :  { %13613 = vmatprep.subr.bf16.mxu1 %v15589_v16  ;;  %v8828_v16 = vld [vmem:[#allocation32 + $0x10] sm:$0xff] }
0x12c1   :  { %13614 = vmatpush3.bf16.msra.mxu1 %v15590_v6  ;;  %v8831_v6 = vld [vmem:[#allocation32 + $0x28] sm:$0xff] }
0x12c2   :  { %13615 = vmatprep.subr.bf16.mxu1 %v15591_v51  ;;  %v8833_v51 = vld [vmem:[#allocation32 + $0x38] sm:$0xff] }
0x12c5   :  { %13616 = vmatpush3.bf16.msra.mxu1 %v15592_v13  ;;  %v13859_v13 = vpack.c.bf16 %v8828_v16, %v8826_v42  ;;  %v8852_v42 = vld [vmem:[#allocation32 + $0xd0] sm:$0xff]  ;;  %v8855_v16 = vld [vmem:[#allocation32 + $0xe8] sm:$0xff] }
0x12c6   :  { %13617 = vmatprep.subr.bf16.mxu1 %v15593_v34  ;;  %v13861_v34 = vpack.c.bf16 %v8833_v51, %v8831_v6  ;;  %v8857_v6 = vld [vmem:[#allocation32 + $0xf8] sm:$0xff] }
0x12c7   :  { %v13885_v51 = vpack.c.bf16 %v8857_v6, %v8855_v16  ;;  %v18907_v6 = vlaneseq }
0x12c9   :  { %13618 = vmatpush3.bf16.msra.mxu1 %v15594_v47  ;;  %v8832_v47 = vld [vmem:[#allocation32 + $0x30] sm:$0xff] }
0x12ca   :  { %13619 = vmatprep.subr.bf16.mxu1 %v15595_v46  ;;  %v8835_v46 = vld [vmem:[#allocation32 + $0x48] sm:$0xff] }
0x12cd   :  { %13620 = vmatpush3.bf16.msra.mxu1 %v15596_v57  ;;  %v8837_v57 = vld [vmem:[#allocation32 + $0x58] sm:$0xff] }
0x12ce   :  { %13621 = vmatprep.subr.bf16.mxu1 %v15597_v48  ;;  %v13863_v48 = vpack.c.bf16 %v8832_v47, %v8830_v37  ;;  %v13865_v35 = vpack.c.bf16 %v8837_v57, %v8835_v46  ;;  %v16599_v47 = vmov 0.0  }
0x12d1   :  { %13622 = vmatpush3.bf16.msra.mxu1 %v15598_v9  ;;  %v8834_v9 = vld [vmem:[#allocation32 + $0x40] sm:$0xff] }
0x12d2   :  { %13629 = vmatprep.subr.bf16.mxu1 %v15599_v33  ;;  %v8836_v33 = vld [vmem:[#allocation32 + $0x50] sm:$0xff] }
0x12d4   :  { %8777 = vmatmul.mubr.bf16.vlgmr.msra.gmra.mrb[48].mxu1 %v8406_v55  ;;  %v13867_v55 = vpack.c.bf16 %v8836_v33, %v8834_v9  ;;  %v13247_v33 = vld [vmem:[#allocation31] ss:$0 sm:$0xff] }
0x12d5   :  { %13630 = vmatpush3.bf16.msra.mxu1 %v15600_v60  ;;  %8816 = vmatprep.mubr.bf16.mxu1 %v8409_v21  ;;  %v8841_v60 = vld [vmem:[#allocation32 + $0x78] sm:$0xff]  ;;  %v8838_v21 = vld [vmem:[#allocation32 + $0x60] sm:$0xff] }
0x12d6   :  { %13631 = vmatprep.subr.bf16.mxu1 %v15601_v62  ;;  %v13869_v62 = vpack.c.bf16 %v8841_v60, %v8839_v39 }
0x12d9   :  { %13632 = vmatpush3.bf16.msra.mxu1 %v15602_v49  ;;  %v8840_v49 = vld [vmem:[#allocation32 + $0x70] sm:$0xff] }
0x12da   :  { %13633 = vmatprep.subr.bf16.mxu1 %v15603_v31  ;;  %v8843_v31 = vld [vmem:[#allocation32 + $0x88] sm:$0xff] }
0x12dd   :  { %13634 = vmatpush3.bf16.msra.mxu1 %v15604_v14  ;;  %v8845_v14 = vld [vmem:[#allocation32 + $0x98] sm:$0xff] }
0x12de   :  { %13635 = vmatprep.subr.bf16.mxu1 %v15605_v5  ;;  %v13871_v5 = vpack.c.bf16 %v8840_v49, %v8838_v21 }
0x12e1   :  { %13636 = vmatpush3.bf16.msra.mxu1 %v15606_v40  ;;  %v13873_v40 = vpack.c.bf16 %v8845_v14, %v8843_v31 }
0x12e2   :  { %13637 = vmatprep.subr.bf16.mxu1 %v15607_v0  ;;  %v8842_v0 = vld [vmem:[#allocation32 + $0x80] sm:$0xff] }
0x12e5   :  { %13638 = vmatpush3.bf16.msra.mxu1 %v15608_v58  ;;  %v8844_v58 = vld [vmem:[#allocation32 + $0x90] sm:$0xff] }
0x12e6   :  { %13639 = vmatprep.subr.bf16.mxu1 %v15609_v17  ;;  %v8847_v17 = vld [vmem:[#allocation32 + $0xa8] sm:$0xff] }
0x12e9   :  { %13640 = vmatpush3.bf16.msra.mxu1 %v15610_v10  ;;  %v8849_v10 = vld [vmem:[#allocation32 + $0xb8] sm:$0xff] }
0x12ea   :  { %13641 = vmatprep.subr.bf16.mxu1 %v15611_v43  ;;  %v13875_v43 = vpack.c.bf16 %v8844_v58, %v8842_v0 }
0x12ed   :  { %13642 = vmatpush3.bf16.msra.mxu1 %v15612_v4  ;;  %v13877_v4 = vpack.c.bf16 %v8849_v10, %v8847_v17  ;;  %v8929_v10 = vld [vmem:[#allocation35] sm:$0x3] }
0x12ee   :  { %13643 = vmatprep.subr.bf16.mxu1 %v15613_v44  ;;  %v8848_v44 = vld [vmem:[#allocation32 + $0xb0] sm:$0xff] }
0x12f1   :  { %13644 = vmatpush3.bf16.msra.mxu1 %v15614_v38  ;;  %v8851_v38 = vld [vmem:[#allocation32 + $0xc8] sm:$0xff] }
0x12f2   :  { %13858 = vmatprep.subr.bf16.mxu1 %v13857_v30  ;;  %v13881_v22 = vpack.c.bf16 %v8853_v25, %v8851_v38  ;;  %v13883_v30 = vpack.c.bf16 %v8852_v42, %v8850_v59 }
0x12f4   :  { %8817 = vmatmul.mubr.bf16.vlgmr.msra.gmra.mrb[52].mxu1 %v8408_v41  ;;  %v13879_v41 = vpack.c.bf16 %v8848_v44, %v8846_v8  ;;  %v8940_v8 = vrot.slane %v8929_v10, %v17002_v53 }
0x12f5   :  { %13860 = vmatpush1.bf16.msra.mxu1 %v13859_v13  ;;  %v8854_v13 = vld [vmem:[#allocation32 + $0xe0] sm:$0xff]  ;;  %8922 = vmatprep.mubr.f32.mxu1 %v16599_v47 }
0x12f6   :  { %13862 = vmatprep.subr.bf16.mxu1 %v13861_v34  ;;  %v8856_v34 = vld [vmem:[#allocation32 + $0xf0] sm:$0xff] }
0x12f7   :  { %v13887_v37 = vpack.c.bf16 %v8856_v34, %v8854_v13 }
0x12f9   :  { %13864 = vmatpush1.bf16.msra.mxu1 %v13863_v48 }
0x12fa   :  { %13866 = vmatprep.subr.bf16.mxu1 %v13865_v35 }
0x12fd   :  { %13868 = vmatpush1.bf16.msra.mxu1 %v13867_v55 }
0x12fe   :  { %13870 = vmatprep.subr.bf16.mxu1 %v13869_v62 }
0x1301   :  { %13872 = vmatpush1.bf16.msra.mxu1 %v13871_v5 }
0x1302   :  { %13874 = vmatprep.subr.bf16.mxu1 %v13873_v40 }
0x1305   :  { %13876 = vmatpush1.bf16.msra.mxu1 %v13875_v43  ;;  %v8936_v43 = vrot.slane %v8929_v10, %v16999_v52 }
0x1306   :  { %13878 = vmatprep.subr.bf16.mxu1 %v13877_v4 }
0x1309   :  { %13880 = vmatpush1.bf16.msra.mxu1 %v13879_v41 }
0x130a   :  { %13882 = vmatprep.subr.bf16.mxu1 %v13881_v22 }
0x130d   :  { %13884 = vmatpush1.bf16.msra.mxu1 %v13883_v30 }
0x130e   :  { %13886 = vmatprep.subr.bf16.mxu1 %v13885_v51  ;;  %v18179_v51 = vand.u32 127, %v18907_v6 }
0x1311   :  { %13888 = vmatpush1.bf16.msra.mxu1 %v13887_v37 }
0x1387   :  { %v13601_v46 = vpop.f32.mrb[44].mxu1 }
0x1388   :  { %v13602_v57 = vpop.f32.mrb[45].mxu1 }
0x1389   :  { %v13603_v48 = vadd.f32 %v13602_v57, %v13601_v46  ;;  %v13604_v35 = vpop.f32.mrb[46].mxu1 }
0x138a   :  { %v13605_v9 = vpop.f32.mrb[47].mxu1 }
0x138b   :  { %v8739_v55 = vadd.f32 %v13603_v48, %v13247_v33 }
0x13a7   :  { %v13623_v39 = vpop.f32.mrb[48].mxu1 }
0x13a8   :  { %v13624_v60 = vpop.f32.mrb[49].mxu1 }
0x13a9   :  { %v13625_v62 = vadd.f32 %v13624_v60, %v13623_v39  ;;  %v13626_v21 = vpop.f32.mrb[50].mxu1 }
0x13aa   :  { %v13627_v49 = vpop.f32.mrb[51].mxu1 }
0x13ab   :  { %v8779_v31 = vadd.f32 %v13625_v62, %v8739_v55 }
0x13c7   :  { %v13645_v14 = vpop.f32.mrb[52].mxu1 }
0x13c8   :  { %v13646_v5 = vpop.f32.mrb[53].mxu1 }
0x13c9   :  { %v13647_v40 = vadd.f32 %v13646_v5, %v13645_v14  ;;  %v13648_v0 = vpop.f32.mrb[54].mxu1 }
0x13ca   :  { %v13649_v58 = vpop.f32.mrb[55].mxu1 }
0x13cb   :  { %v18168_v17 = vadd.f32 %v13647_v40, %v8779_v31 }
0x13cd   :  { %8923 = vmatmul.mubr.f32.vlgmr.msra.gmra.mrb[56].mxu1 %v18168_v17 }
0x13ce   :  { %9321 = vmatprep.mubr.f32.mxu1 %v16599_v47 }
0x14a0   :  { %v8924_v4 = vpop.f32.mrb[56].mxu1 }
0x14a1   :  { %v8930_v44 = vmul.f32 2.0, %v8924_v4  ;;  %v8926_v38 = vpop.f32.mrb[57].mxu1 }
0x14a2   :  { %v8931_v25 = vmul.f32 2.0, %v8926_v38 }
0x14a3   :  { %v8943_v41 = vsub.f32 %v8936_v43, %v8930_v44 }
0x14a4   :  { %v8944_v22 = vsub.f32 %v8940_v8, %v8931_v25 }
0x14a5   :  { %v8970_v59 = vsel %vm8969_vm10, %v8943_v41, inf  ;;  %v8946_v16 = vsel %vm8945_vm11, %v8943_v41, inf }
0x14a6   :  { %8971 = vmin.xlane.f32.xlu0 %v8970_v59  ;;  %v9018_v42 = vsel %vm8969_vm10, %v8944_v22, inf  ;;  %v8995_v30 = vsel %vm8945_vm11, %v8944_v22, inf }
0x14a7   :  { %9019 = vmin.xlane.f32.xlu1 %v9018_v42 }
0x14ab   :  { %8996 = vmin.xlane.f32.xlu1 %v8995_v30 }
0x14af   :  { %8947 = vmin.xlane.f32.xlu1 %v8946_v16 }
0x14bc   :  { %8974 = vrot.lane.b32.xlu0 %v18179_v51, %s16565_s8 }
0x1533   :  { %v8972_v13 = vpop.xlane.xlu0 %8971 }
0x1534   :  { %v9020_v34 = vpop.xlane.xlu1 %9019  ;;  %vm8973_vm12 = vcmp.le.f32.partialorder %v8943_v41, %v8972_v13 }
0x1535   :  { %vm9021_vm13 = vcmp.le.f32.partialorder %v8944_v22, %v9020_v34 }
0x1537   :  { %v18183_v37 = vpop.permute.xlu0 %8974 }
0x1538   :  { %v8997_v46 = vpop.xlane.xlu1 %8996  ;;  %v9022_v57 = vsel %vm9021_vm13, %v18183_v37, 64  ;;  %v8976_v48 = vsel %vm8973_vm12, %v18183_v37, 64 }
0x1539   :  { %vm8998_vm14 = vcmp.le.f32.partialorder %v8944_v22, %v8997_v46  ;;  %v9023_v35 = vsel %vm8969_vm10, %v9022_v57, 2147483647  ;;  %v8977_v9 = vsel %vm8969_vm10, %v8976_v48, 2147483647  ;;  %v9067_v46 = vld [vmem:[#allocation34 + $0x80] sm:$0xff]  ;;  %v9068_v57 = vld [vmem:[#allocation34 + $0x88] sm:$0xff] }
0x153a   :  { %v8999_v33 = vsel %vm8998_vm14, %v18179_v51, 64  ;;  %v9025_v39 = vshra.s32 %v9023_v35, 16  ;;  %v8979_v62 = vshra.s32 %v8977_v9, 16  ;;  %v9024_v10 = vand.u32 65535, %v9023_v35  ;;  %v9051_v48 = vld [vmem:[#allocation34] sm:$0xff] }
0x153b   :  { %v9000_v21 = vsel %vm8945_vm11, %v8999_v33, 2147483647  ;;  %v8978_v8 = vand.u32 65535, %v8977_v9  ;;  %v13889_v35 = vpack.c.bf16 %v9068_v57, %v9067_v46  ;;  %v9052_v9 = vld [vmem:[#allocation34 + $0x8] sm:$0xff]  ;;  %v9069_v33 = vld [vmem:[#allocation34 + $0x90] sm:$0xff]  ;;  %v9078_v46 = vld [vmem:[#allocation34 + $0xd8] sm:$0xff] }
0x153c   :  { %v8948_v60 = vpop.xlane.xlu1 %8947  ;;  %v9027_v55 = vcvt.s32.f32 %v9025_v39  ;;  %v8981_v31 = vcvt.s32.f32 %v8979_v62  ;;  %v9002_v14 = vshra.s32 %v9000_v21, 16  ;;  %v9026_v4 = vcvt.s32.f32 %v9024_v10  ;;  %v9070_v39 = vld [vmem:[#allocation34 + $0x98] sm:$0xff]  ;;  %v9053_v62 = vld [vmem:[#allocation34 + $0x10] sm:$0xff] }
0x153d   :  { %vm8949_vm15 = vcmp.le.f32.partialorder %v8943_v41, %v8948_v60  ;;  %v8980_v25 = vcvt.s32.f32 %v8978_v8  ;;  %v9001_v16 = vand.u32 65535, %v9000_v21  ;;  %v13891_v60 = vpack.c.bf16 %v9052_v9, %v9051_v48  ;;  %v9054_v21 = vld [vmem:[#allocation34 + $0x18] sm:$0xff]  ;;  %13890 = vmatprep.subr.bf16.mxu0 %v13889_v35  ;;  %v9061_v35 = vld [vmem:[#allocation34 + $0x50] sm:$0xff] }
0x153e   :  { %v8950_v49 = vsel %vm8949_vm15, %v18179_v51, 64  ;;  %9028 = vmin.xlane.f32.xlu1 %v9027_v55  ;;  %v9004_v40 = vcvt.s32.f32 %v9002_v14  ;;  %v13895_v14 = vpack.c.bf16 %v9054_v21, %v9053_v62  ;;  %v9074_v10 = vld [vmem:[#allocation34 + $0xb8] sm:$0xff]  ;;  %v9063_v62 = vld [vmem:[#allocation34 + $0x60] sm:$0xff]  ;;  %v9064_v21 = vld [vmem:[#allocation34 + $0x68] sm:$0xff] }
0x153f   :  { %v8951_v5 = vsel %vm8945_vm11, %v8950_v49, 2147483647  ;;  %v9003_v13 = vcvt.s32.f32 %v9001_v16  ;;  %v9071_v49 = vld [vmem:[#allocation34 + $0xa0] sm:$0xff]  ;;  %13892 = vmatpush3.bf16.msra.mxu0 %v13891_v60  ;;  %v9062_v9 = vld [vmem:[#allocation34 + $0x58] sm:$0xff] }
0x1540   :  { %v8953_v0 = vshra.s32 %v8951_v5, 16  ;;  %v8952_v59 = vand.u32 65535, %v8951_v5  ;;  %v13911_v60 = vpack.c.bf16 %v9062_v9, %v9061_v35  ;;  %v9230_v35 = vld [vmem:[#allocation32 + $0x128] sm:$0xff]  ;;  %v9232_v9 = vld [vmem:[#allocation32 + $0x138] sm:$0xff] }
0x1542   :  { %8982 = vmin.xlane.f32.xlu1 %v8981_v31  ;;  %v8955_v58 = vcvt.s32.f32 %v8953_v0  ;;  %v8954_v30 = vcvt.s32.f32 %v8952_v59  ;;  %v9056_v0 = vld [vmem:[#allocation34 + $0x28] sm:$0xff] }
0x1543   :  { %v9076_v59 = vld [vmem:[#allocation34 + $0xc8] sm:$0xff] }
0x1546   :  { %9005 = vmin.xlane.f32.xlu1 %v9004_v40 }
0x154a   :  { %8956 = vmin.xlane.f32.xlu1 %v8955_v58 }
0x15cb   :  { %v18193_v43 = vpop.xlane.xlu1 %9028 }
0x15cc   :  { %vm9030_vm0 = vcmp.eq.f32.partialorder %v9027_v55, %v18193_v43  ;;  %v13893_v55 = vpack.c.bf16 %v9070_v39, %v9069_v33  ;;  %v9079_v33 = vld [vmem:[#allocation34 + $0xe0] sm:$0xff]  ;;  %v9080_v39 = vld [vmem:[#allocation34 + $0xe8] sm:$0xff] }
0x15cd   :  { %v9031_v44 = vsel %vm9030_vm0, %v9026_v4, inf }
0x15ce   :  { %9032 = vmin.xlane.f32.xlu0 %v9031_v44  ;;  %13894 = vmatprep.subr.bf16.mxu0 %v13893_v55  ;;  %v9057_v44 = vld [vmem:[#allocation34 + $0x30] sm:$0xff]  ;;  %v13913_v55 = vpack.c.bf16 %v9080_v39, %v9079_v33 }
0x15cf   :  { %v18196_v38 = vpop.xlane.xlu1 %8982  ;;  %13896 = vmatpush3.bf16.msra.mxu0 %v13895_v14 }
0x15d0   :  { %vm8984_vm5 = vcmp.eq.f32.partialorder %v8981_v31, %v18196_v38  ;;  %v9072_v31 = vld [vmem:[#allocation34 + $0xa8] sm:$0xff] }
0x15d1   :  { %v8985_v41 = vsel %vm8984_vm5, %v8980_v25, inf  ;;  %v13897_v5 = vpack.c.bf16 %v9072_v31, %v9071_v49  ;;  %v9058_v25 = vld [vmem:[#allocation34 + $0x38] sm:$0xff]  ;;  %v13915_v49 = vpack.c.bf16 %v9064_v21, %v9063_v62  ;;  %v9035_v31 = vcvt.f32.s32 %v18193_v43  ;;  %v9226_v43 = vld [vmem:[#allocation32 + $0x108] sm:$0xff]  ;;  %v9231_v62 = vld [vmem:[#allocation32 + $0x130] sm:$0xff] }
0x15d2   :  { %8986 = vmin.xlane.f32.xlu1 %v8985_v41  ;;  %v9075_v41 = vld [vmem:[#allocation34 + $0xc0] sm:$0xff]  ;;  %v9234_v21 = vld [vmem:[#allocation32 + $0x148] sm:$0xff] }
0x15d3   :  { %v18199_v22 = vpop.xlane.xlu1 %9005  ;;  %13898 = vmatprep.subr.bf16.mxu0 %v13897_v5  ;;  %v13905_v16 = vpack.c.bf16 %v9076_v59, %v9075_v41  ;;  %v9081_v5 = vld [vmem:[#allocation34 + $0xf0] sm:$0xff] }
0x15d4   :  { %vm9007_vm12 = vcmp.eq.f32.partialorder %v9004_v40, %v18199_v22  ;;  %v9055_v40 = vld [vmem:[#allocation34 + $0x20] sm:$0xff] }
0x15d5   :  { %v9008_v34 = vsel %vm9007_vm12, %v9003_v13, inf  ;;  %v13899_v4 = vpack.c.bf16 %v9056_v0, %v9055_v40  ;;  %v9060_v13 = vld [vmem:[#allocation34 + $0x48] sm:$0xff]  ;;  %v9082_v40 = vld [vmem:[#allocation34 + $0xf8] sm:$0xff]  ;;  %v9065_v0 = vld [vmem:[#allocation34 + $0x70] sm:$0xff] }
0x15d7   :  { %v18201_v42 = vpop.xlane.xlu1 %8956  ;;  %13900 = vmatpush3.bf16.msra.mxu0 %v13899_v4 }
0x15d8   :  { %vm8958_vm6 = vcmp.eq.f32.partialorder %v8955_v58, %v18201_v42  ;;  %v9073_v58 = vld [vmem:[#allocation34 + $0xb0] sm:$0xff] }
0x15d9   :  { %v8959_v6 = vsel %vm8958_vm6, %v8954_v30, inf  ;;  %v13901_v8 = vpack.c.bf16 %v9074_v10, %v9073_v58  ;;  %v13903_v30 = vpack.c.bf16 %v9058_v25, %v9057_v44  ;;  %v9036_v58 = vshll.u32 %v9035_v31, 16  ;;  %v9066_v44 = vld [vmem:[#allocation34 + $0x78] sm:$0xff] }
0x15da   :  { %8960 = vmin.xlane.f32.xlu1 %v8959_v6  ;;  %v9059_v6 = vld [vmem:[#allocation34 + $0x40] sm:$0xff]  ;;  %v8989_v10 = vcvt.f32.s32 %v18196_v38  ;;  %v13919_v25 = vpack.c.bf16 %v9066_v44, %v9065_v0  ;;  %v9238_v0 = vld [vmem:[#allocation32 + $0x168] sm:$0xff]  ;;  %v9239_v44 = vld [vmem:[#allocation32 + $0x170] sm:$0xff] }
0x15db   :  { %13902 = vmatprep.subr.bf16.mxu0 %v13901_v8  ;;  %v13907_v57 = vpack.c.bf16 %v9060_v13, %v9059_v6  ;;  %v13917_v8 = vpack.c.bf16 %v9082_v40, %v9081_v5  ;;  %v9228_v13 = vld [vmem:[#allocation32 + $0x118] sm:$0xff]  ;;  %v9233_v5 = vld [vmem:[#allocation32 + $0x140] sm:$0xff]  ;;  %v9235_v40 = vld [vmem:[#allocation32 + $0x150] sm:$0xff] }
0x15dc   :  { %13904 = vmatpush3.bf16.msra.mxu0 %v13903_v30  ;;  %v8990_v30 = vshll.u32 %v8989_v10, 16  ;;  %v13931_v10 = vpack.c.bf16 %v9235_v40, %v9233_v5 }
0x15dd   :  { %13906 = vmatprep.subr.bf16.mxu0 %v13905_v16 }
0x15de   :  { %9009 = vmin.xlane.f32.xlu1 %v9008_v34  ;;  %v9077_v34 = vld [vmem:[#allocation34 + $0xd0] sm:$0xff] }
0x15df   :  { %v13909_v48 = vpack.c.bf16 %v9078_v46, %v9077_v34  ;;  %v9225_v34 = vld [vmem:[#allocation32 + $0x100] sm:$0xff] }
0x15e0   :  { %13908 = vmatpush3.bf16.msra.mxu0 %v13907_v57  ;;  %v13921_v57 = vpack.c.bf16 %v9228_v13, %v9226_v43  ;;  %v9246_v43 = vld [vmem:[#allocation32 + $0x1a8] sm:$0xff]  ;;  %v9248_v13 = vld [vmem:[#allocation32 + $0x1b8] sm:$0xff] }
0x15e1   :  { %13910 = vmatprep.subr.bf16.mxu0 %v13909_v48  ;;  %v9227_v48 = vld [vmem:[#allocation32 + $0x110] sm:$0xff] }
0x15e2   :  { %v13923_v39 = vpack.c.bf16 %v9227_v48, %v9225_v34  ;;  %13922 = vmatprep.subr.bf16.mxu1 %v13921_v57  ;;  %v9247_v57 = vld [vmem:[#allocation32 + $0x1b0] sm:$0xff]  ;;  %v9250_v48 = vld [vmem:[#allocation32 + $0x1c8] sm:$0xff] }
0x15e4   :  { %13912 = vmatpush3.bf16.msra.mxu0 %v13911_v60  ;;  %v13925_v60 = vpack.c.bf16 %v9232_v9, %v9230_v35  ;;  %13924 = vmatpush1.bf16.msra.mxu1 %v13923_v39  ;;  %v9252_v35 = vld [vmem:[#allocation32 + $0x1d8] sm:$0xff]  ;;  %v9249_v39 = vld [vmem:[#allocation32 + $0x1c0] sm:$0xff] }
0x15e5   :  { %13914 = vmatprep.subr.bf16.mxu0 %v13913_v55  ;;  %v9229_v55 = vld [vmem:[#allocation32 + $0x120] sm:$0xff] }
0x15e6   :  { %v13927_v31 = vpack.c.bf16 %v9231_v62, %v9229_v55  ;;  %13926 = vmatprep.subr.bf16.mxu1 %v13925_v60  ;;  %v9251_v60 = vld [vmem:[#allocation32 + $0x1d0] sm:$0xff] }
0x15e7   :  { %v13947_v55 = vpack.c.bf16 %v9251_v60, %v9249_v39 }
0x15e8   :  { %13916 = vmatpush3.bf16.msra.mxu0 %v13915_v49  ;;  %v9236_v49 = vld [vmem:[#allocation32 + $0x158] sm:$0xff]  ;;  %13928 = vmatpush1.bf16.msra.mxu1 %v13927_v31  ;;  %v8963_v31 = vcvt.f32.s32 %v18201_v42 }
0x15e9   :  { %13918 = vmatprep.subr.bf16.mxu0 %v13917_v8  ;;  %v9237_v8 = vld [vmem:[#allocation32 + $0x160] sm:$0xff] }
0x15ec   :  { %13920 = vmatpush3.bf16.msra.mxu0 %v13919_v25  ;;  %v9242_v25 = vld [vmem:[#allocation32 + $0x188] sm:$0xff] }
0x165b   :  { %v9033_v14 = vpop.xlane.xlu0 %9032 }
0x165c   :  { %v9034_v4 = vcvt.f32.s32 %v9033_v14  ;;  %v13929_v14 = vpack.c.bf16 %v9236_v49, %v9234_v21  ;;  %v9012_v49 = vcvt.f32.s32 %v18199_v22 }
0x165e   :  { %v9037_v41 = vadd.s32 %v9036_v58, %v9034_v4  ;;  %v9240_v58 = vld [vmem:[#allocation32 + $0x178] sm:$0xff]  ;;  %13930 = vmatprep.subr.bf16.mxu1 %v13929_v14  ;;  %v9013_v40 = vshll.u32 %v9012_v49, 16 }
0x165f   :  { %v8987_v59 = vpop.xlane.xlu1 %8986  ;;  %v13933_v4 = vpack.c.bf16 %v9240_v58, %v9238_v0  ;;  %13932 = vmatpush1.bf16.msra.mxu1 %v13931_v10  ;;  %v8964_v0 = vshll.u32 %v8963_v31, 16 }
0x1660   :  { %v8988_v16 = vcvt.f32.s32 %v8987_v59  ;;  %vm9038_vm13 = vcmp.eq.s32.totalorder %v18179_v51, %v9037_v41  ;;  %v9244_v41 = vld [vmem:[#allocation32 + $0x198] sm:$0xff]  ;;  %v13935_v59 = vpack.c.bf16 %v9239_v44, %v9237_v8 }
0x1661   :  { %v13299_v46 = vsel %vm9038_vm13, 1.0, %v16599_v47  ;;  %13934 = vmatprep.subr.bf16.mxu1 %v13933_v4 }
0x1662   :  { %v8991_v6 = vadd.s32 %v8990_v30, %v8988_v16  ;;  %v13937_v30 = vpack.c.bf16 %v9244_v41, %v9242_v25  ;;  %v9241_v16 = vld [vmem:[#allocation32 + $0x180] sm:$0xff] }
0x1663   :  { %13936 = vmatpush1.bf16.msra.mxu1 %v13935_v59  ;;  %v9254_v59 = vld [vmem:[#allocation32 + $0x1e8] sm:$0xff] }
0x1664   :  { %vm8992_vm14 = vcmp.eq.s32.totalorder %v18179_v51, %v8991_v6  ;;  %v9243_v6 = vld [vmem:[#allocation32 + $0x190] sm:$0xff]  ;;  %13938 = vmatprep.subr.bf16.mxu1 %v13937_v30  ;;  %v9256_v30 = vld [vmem:[#allocation32 + $0x1f8] sm:$0xff] }
0x1665   :  { %v13297_v38 = vsel %vm8992_vm14, 1.0, %v16599_v47  ;;  %v13939_v34 = vpack.c.bf16 %v9243_v6, %v9241_v16  ;;  %v13949_v16 = vpack.c.bf16 %v9256_v30, %v9254_v59  ;;  %v9253_v6 = vld [vmem:[#allocation32 + $0x1e0] sm:$0xff] }
0x1666   :  { %v14207_v33 = vpack.i.bf16 %v13297_v38, %v13299_v46  ;;  %v13941_v38 = vpack.c.bf16 %v9248_v13, %v9246_v43  ;;  %v9245_v46 = vld [vmem:[#allocation32 + $0x1a0] sm:$0xff]  ;;  %v9255_v43 = vld [vmem:[#allocation32 + $0x1f0] sm:$0xff] }
0x1667   :  { %13940 = vmatpush1.bf16.msra.mxu1 %v13939_v34  ;;  %v13943_v9 = vpack.c.bf16 %v9247_v57, %v9245_v46  ;;  %v8961_v62 = vpop.xlane.xlu1 %8960  ;;  %v13951_v13 = vpack.c.bf16 %v9255_v43, %v9253_v6 }
0x1668   :  { %14208 = vrot.lane.b32.xlu1 %v14207_v33, %s16565_s8  ;;  %13942 = vmatprep.subr.bf16.mxu1 %v13941_v38  ;;  %v13945_v33 = vpack.c.bf16 %v9252_v35, %v9250_v48  ;;  %v8962_v14 = vcvt.f32.s32 %v8961_v62  ;;  %v9329_v48 = vld [vmem:[#allocation35 + $0x2] sm:$0x3] }
0x1669   :  { %v9336_v35 = vrot.slane %v9329_v48, %v16999_v52 }
0x166a   :  { %v8965_v58 = vadd.s32 %v8964_v0, %v8962_v14 }
0x166b   :  { %13944 = vmatpush1.bf16.msra.mxu1 %v13943_v9  ;;  %v9010_v21 = vpop.xlane.xlu1 %9009 }
0x166c   :  { %13946 = vmatprep.subr.bf16.mxu1 %v13945_v33  ;;  %v9011_v5 = vcvt.f32.s32 %v9010_v21  ;;  %vm8966_vm15 = vcmp.eq.s32.totalorder %v18179_v51, %v8965_v58  ;;  %v9340_v33 = vrot.slane %v9329_v48, %v17002_v53 }
0x166d   :  { %v13296_v25 = vsel %vm8966_vm15, 1.0, %v16599_v47 }
0x166e   :  { %v9014_v10 = vadd.s32 %v9013_v40, %v9011_v5 }
0x166f   :  { %13948 = vmatpush1.bf16.msra.mxu1 %v13947_v55 }
0x1670   :  { %vm9015_vm0 = vcmp.eq.s32.totalorder %v18179_v51, %v9014_v10  ;;  %13950 = vmatprep.subr.bf16.mxu1 %v13949_v16 }
0x1671   :  { %v13298_v41 = vsel %vm9015_vm0, 1.0, %v16599_v47 }
0x1673   :  { %13952 = vmatpush1.bf16.msra.mxu1 %v13951_v13 }
0x16da   :  { %v14209_v4 = vpop.permute.xlu1 %14208 }
0x16db   :  { %v14211_v8 = vunpack.i.h.bf16 %v14209_v4  ;;  %v14210_v44 = vunpack.i.l.bf16 %v14209_v4 }
0x16dd   :  { %v18219_v22 = vsel %vm8945_vm11, %v13298_v41, %v14210_v44  ;;  %v18222_v42 = vsel %vm8945_vm11, %v13296_v25, %v14211_v8 }
0x16de   :  { %9147 = vmatprep.mubr.f32.mxu0 %v18219_v22 }
0x16df   :  { %9148 = vmatmul.mubr.f32.vlgmr.msra.gmra.mrb[36].mxu0 %v18222_v42 }
0x17b2   :  { %v13683_v34 = vpop.f32.mrb[36].mxu0 }
0x17b3   :  { %v13684_v38 = vpop.f32.mrb[37].mxu0 }
0x17b4   :  { %v18226_v46 = vadd.f32 %v13684_v38, %v13683_v34 }
0x17b6   :  { %v18230_v57 = vsub.f32 %v18168_v17, %v18226_v46 }
0x17b8   :  { %9322 = vmatmul.mubr.f32.vlgmr.msra.gmra.mrb[58].mxu1 %v18230_v57  ;;  %v9154_v50 = vmul.f32 %v18230_v57, %v18230_v57 }
0x188b   :  { %v9323_v9 = vpop.f32.mrb[58].mxu1 }
0x188c   :  { %v9330_v39 = vmul.f32 2.0, %v9323_v9  ;;  %v9325_v60 = vpop.f32.mrb[59].mxu1 }
0x188d   :  { %v9331_v55 = vmul.f32 2.0, %v9325_v60 }
0x188e   :  { %v9343_v62 = vsub.f32 %v9336_v35, %v9330_v39 }
0x188f   :  { %v9344_v21 = vsub.f32 %v9340_v33, %v9331_v55 }
0x1890   :  { %v9368_v49 = vsel %vm8969_vm10, %v9343_v62, inf  ;;  %v9345_v14 = vsel %vm8945_vm11, %v9343_v62, inf }
0x1891   :  { %9369 = vmin.xlane.f32.xlu1 %v9368_v49  ;;  %v9414_v31 = vsel %vm8969_vm10, %v9344_v21, inf  ;;  %v9391_v17 = vsel %vm8945_vm11, %v9344_v21, inf }
0x1892   :  { %9415 = vmin.xlane.f32.xlu0 %v9414_v31 }
0x1896   :  { %9392 = vmin.xlane.f32.xlu0 %v9391_v17 }
0x189a   :  { %9346 = vmin.xlane.f32.xlu0 %v9345_v14 }
0x191e   :  { %v9370_v5 = vpop.xlane.xlu1 %9369 }
0x191f   :  { %vm9371_vm5 = vcmp.le.f32.partialorder %v9343_v62, %v9370_v5  ;;  %v9416_v40 = vpop.xlane.xlu0 %9415 }
0x1920   :  { %v9372_v0 = vsel %vm9371_vm5, %v18183_v37, 64  ;;  %vm9417_vm6 = vcmp.le.f32.partialorder %v9344_v21, %v9416_v40 }
0x1921   :  { %v9418_v58 = vsel %vm9417_vm6, %v18183_v37, 64  ;;  %v9373_v10 = vsel %vm8969_vm10, %v9372_v0, 2147483647 }
0x1922   :  { %v9419_v4 = vsel %vm8969_vm10, %v9418_v58, 2147483647  ;;  %v9375_v59 = vshra.s32 %v9373_v10, 16  ;;  %v9374_v39 = vand.u32 65535, %v9373_v10  ;;  %v9464_v10 = vld [vmem:[#allocation34 + $0x180] sm:$0xff] }
0x1923   :  { %v9393_v8 = vpop.xlane.xlu0 %9392  ;;  %v9421_v44 = vshra.s32 %v9419_v4, 16  ;;  %v9420_v35 = vand.u32 65535, %v9419_v4  ;;  %v9465_v4 = vld [vmem:[#allocation34 + $0x188] sm:$0xff] }
0x1924   :  { %vm9394_vm12 = vcmp.le.f32.partialorder %v9344_v21, %v9393_v8  ;;  %v9377_v43 = vcvt.s32.f32 %v9375_v59  ;;  %v9448_v8 = vld [vmem:[#allocation34 + $0x100] sm:$0xff]  ;;  %v9467_v59 = vld [vmem:[#allocation34 + $0x198] sm:$0xff] }
0x1925   :  { %v9395_v25 = vsel %vm9394_vm12, %v18179_v51, 64  ;;  %v9423_v41 = vcvt.s32.f32 %v9421_v44  ;;  %v9422_v33 = vcvt.s32.f32 %v9420_v35  ;;  %v13953_v44 = vpack.c.bf16 %v9465_v4, %v9464_v10  ;;  %v9453_v35 = vld [vmem:[#allocation34 + $0x128] sm:$0xff]  ;;  %v9474_v4 = vld [vmem:[#allocation34 + $0x1d0] sm:$0xff] }
0x1926   :  { %v9396_v30 = vsel %vm8945_vm11, %v9395_v25, 2147483647  ;;  %v9449_v25 = vld [vmem:[#allocation34 + $0x108] sm:$0xff] }
0x1927   :  { %9424 = vmin.xlane.f32.xlu0 %v9423_v41  ;;  %v9347_v16 = vpop.xlane.xlu0 %9346  ;;  %v9398_v37 = vshra.s32 %v9396_v30, 16  ;;  %v9397_v21 = vand.u32 65535, %v9396_v30  ;;  %v13955_v30 = vpack.c.bf16 %v9449_v25, %v9448_v8  ;;  %13954 = vmatprep.subr.bf16.mxu0 %v13953_v44  ;;  %v9457_v10 = vld [vmem:[#allocation34 + $0x148] sm:$0xff]  ;;  %v9475_v8 = vld [vmem:[#allocation34 + $0x1d8] sm:$0xff] }
0x1928   :  { %vm9348_vm13 = vcmp.le.f32.partialorder %v9343_v62, %v9347_v16  ;;  %v9376_v62 = vcvt.s32.f32 %v9374_v39  ;;  %v9471_v39 = vld [vmem:[#allocation34 + $0x1b8] sm:$0xff]  ;;  %v13973_v25 = vpack.c.bf16 %v9475_v8, %v9474_v4  ;;  %v15616_v4 = vld [vmem:[%s18908_s25] sm:$0xff]  }
0x1929   :  { %v9349_v6 = vsel %vm9348_vm13, %v18179_v51, 64  ;;  %v9400_v34 = vcvt.s32.f32 %v9398_v37  ;;  %v9399_v17 = vcvt.s32.f32 %v9397_v21  ;;  %v9468_v37 = vld [vmem:[#allocation34 + $0x1a0] sm:$0xff]  ;;  %13956 = vmatpush3.bf16.msra.mxu0 %v13955_v30  ;;  %v9454_v21 = vld [vmem:[#allocation34 + $0x130] sm:$0xff] }
0x192a   :  { %v9350_v13 = vsel %vm8945_vm11, %v9349_v6, 2147483647  ;;  %v9450_v6 = vld [vmem:[#allocation34 + $0x110] sm:$0xff]  ;;  %v9476_v30 = vld [vmem:[#allocation34 + $0x1e0] sm:$0xff] }
0x192b   :  { %9378 = vmin.xlane.f32.xlu0 %v9377_v43  ;;  %v9352_v38 = vshra.s32 %v9350_v13, 16  ;;  %v9351_v14 = vand.u32 65535, %v9350_v13  ;;  %v9469_v13 = vld [vmem:[#allocation34 + $0x1a8] sm:$0xff] }
0x192d   :  { %v9354_v48 = vcvt.s32.f32 %v9352_v38  ;;  %v9353_v0 = vcvt.s32.f32 %v9351_v14  ;;  %v13961_v38 = vpack.c.bf16 %v9469_v13, %v9468_v37  ;;  %v9473_v14 = vld [vmem:[#allocation34 + $0x1c8] sm:$0xff]  ;;  %v9460_v37 = vld [vmem:[#allocation34 + $0x160] sm:$0xff] }
0x192e   :  { %v9461_v13 = vld [vmem:[#allocation34 + $0x168] sm:$0xff] }
0x192f   :  { %9401 = vmin.xlane.f32.xlu0 %v9400_v34 }
0x1933   :  { %9355 = vmin.xlane.f32.xlu0 %v9354_v48 }
0x19b4   :  { %v18247_v9 = vpop.xlane.xlu0 %9424 }
0x19b5   :  { %vm9426_vm10 = vcmp.eq.f32.partialorder %v9423_v41, %v18247_v9  ;;  %v9466_v41 = vld [vmem:[#allocation34 + $0x190] sm:$0xff] }
0x19b6   :  { %v9427_v60 = vsel %vm9426_vm10, %v9422_v33, inf  ;;  %v13957_v16 = vpack.c.bf16 %v9467_v59, %v9466_v41  ;;  %v9470_v33 = vld [vmem:[#allocation34 + $0x1b0] sm:$0xff]  ;;  %v9459_v59 = vld [vmem:[#allocation34 + $0x158] sm:$0xff]  ;;  %vm16600_vm10 = vmmov 0  }
0x19b7   :  { %9428 = vmin.xlane.f32.xlu0 %v9427_v60  ;;  %v9458_v41 = vld [vmem:[#allocation34 + $0x150] sm:$0xff] }
0x19b8   :  { %v18250_v55 = vpop.xlane.xlu0 %9378  ;;  %13958 = vmatprep.subr.bf16.mxu0 %v13957_v16  ;;  %v9477_v16 = vld [vmem:[#allocation34 + $0x1e8] sm:$0xff] }
0x19b9   :  { %vm9380_vm14 = vcmp.eq.f32.partialorder %v9377_v43, %v18250_v55  ;;  %v9451_v43 = vld [vmem:[#allocation34 + $0x118] sm:$0xff] }
0x19ba   :  { %v9381_v49 = vsel %vm9380_vm14, %v9376_v62, inf  ;;  %v13965_v62 = vpack.c.bf16 %v9471_v39, %v9470_v33  ;;  %v9479_v33 = vld [vmem:[#allocation34 + $0x1f8] sm:$0xff]  ;;  %v9462_v39 = vld [vmem:[#allocation34 + $0x170] sm:$0xff]  ;;  %vm10395_vm14 = vcmask 64512  }
0x19bb   :  { %9382 = vmin.xlane.f32.xlu0 %v9381_v49  ;;  %v9455_v49 = vld [vmem:[#allocation34 + $0x138] sm:$0xff] }
0x19bc   :  { %v18253_v31 = vpop.xlane.xlu0 %9401 }
0x19bd   :  { %vm9403_vm15 = vcmp.eq.f32.partialorder %v9400_v34, %v18253_v31  ;;  %v13959_v34 = vpack.c.bf16 %v9451_v43, %v9450_v6  ;;  %v13975_v6 = vpack.c.bf16 %v9459_v59, %v9458_v41  ;;  %v13977_v43 = vpack.c.bf16 %v9477_v16, %v9476_v30  ;;  %v15619_v59 = vld [vmem:[%s18908_s25 + $0x8] sm:$0xff]   ;;  %v15621_v30 = vld [vmem:[%s18908_s25 + $0x50] sm:$0xff]  }
0x19be   :  { %v9404_v5 = vsel %vm9403_vm15, %v9399_v17, inf  ;;  %v9472_v17 = vld [vmem:[#allocation34 + $0x1c0] sm:$0xff]  ;;  %v15622_v16 = vld [vmem:[%s18908_s25 + $0x10] sm:$0xff]  }
0x19bf   :  { %9405 = vmin.xlane.f32.xlu0 %v9404_v5  ;;  %13960 = vmatpush3.bf16.msra.mxu0 %v13959_v34  ;;  %v13967_v5 = vpack.c.bf16 %v9455_v49, %v9454_v21  ;;  %v13979_v34 = vpack.c.bf16 %v9461_v13, %v9460_v37  ;;  %v15627_v37 = vld [vmem:[%s18908_s25 + $0x60] sm:$0xff]  }
0x19c0   :  { %v18256_v40 = vpop.xlane.xlu0 %9355  ;;  %13962 = vmatprep.subr.bf16.mxu0 %v13961_v38  ;;  %v9431_v38 = vcvt.f32.s32 %v18247_v9  ;;  %v15628_v13 = vld [vmem:[%s18908_s25 + $0x20] sm:$0xff]  }
0x19c1   :  { %vm9357_vm0 = vcmp.eq.f32.partialorder %v9354_v48, %v18256_v40  ;;  %v9452_v48 = vld [vmem:[#allocation34 + $0x120] sm:$0xff] }
0x19c2   :  { %v9358_v58 = vsel %vm9357_vm0, %v9353_v0, inf  ;;  %v13963_v60 = vpack.c.bf16 %v9453_v35, %v9452_v48  ;;  %v13969_v0 = vpack.c.bf16 %v9473_v14, %v9472_v17  ;;  %v9478_v35 = vld [vmem:[#allocation34 + $0x1f0] sm:$0xff]  ;;  %v9463_v17 = vld [vmem:[#allocation34 + $0x178] sm:$0xff] }
0x19c3   :  { %9359 = vmin.xlane.f32.xlu1 %v9358_v58  ;;  %v9456_v58 = vld [vmem:[#allocation34 + $0x140] sm:$0xff]  ;;  %v13981_v49 = vpack.c.bf16 %v9479_v33, %v9478_v35  ;;  %v13983_v14 = vpack.c.bf16 %v9463_v17, %v9462_v39  ;;  %v9362_v35 = vcvt.f32.s32 %v18256_v40 }
0x19c4   :  { %13964 = vmatpush3.bf16.msra.mxu0 %v13963_v60  ;;  %v13971_v44 = vpack.c.bf16 %v9457_v10, %v9456_v58  ;;  %v9432_v60 = vshll.u32 %v9431_v38, 16 }
0x19c5   :  { %13966 = vmatprep.subr.bf16.mxu0 %v13965_v62  ;;  %v9385_v62 = vcvt.f32.s32 %v18250_v55  ;;  %v15615_v55 = vld [vmem:[%s18908_s25 + $0x40] sm:$0xff]  }
0x19c6   :  { %13721 = vmatprep.subr.bf16.mxu1 %v15615_v55  ;;  %v15623_v55 = vld [vmem:[%s18908_s25 + $0x90] sm:$0xff]  }
0x19c7   :  { %v9386_v9 = vshll.u32 %v9385_v62, 16  ;;  %13722 = vmatpush3.bf16.msra.mxu1 %v15616_v4  ;;  %v9363_v62 = vshll.u32 %v9362_v35, 16  ;;  %v15626_v4 = vld [vmem:[%s18908_s25 + $0x98] sm:$0xff]  }
0x19c8   :  { %13968 = vmatpush3.bf16.msra.mxu0 %v13967_v5 }
0x19c9   :  { %13970 = vmatprep.subr.bf16.mxu0 %v13969_v0 }
0x19cc   :  { %13972 = vmatpush3.bf16.msra.mxu0 %v13971_v44 }
0x19cd   :  { %13974 = vmatprep.subr.bf16.mxu0 %v13973_v25  ;;  %v15618_v25 = vld [vmem:[%s18908_s25 + $0x48] sm:$0xff]  }
0x19ce   :  { %13723 = vmatprep.subr.bf16.mxu1 %v15618_v25  ;;  %v15631_v25 = vld [vmem:[%s18908_s25 + $0x28] sm:$0xff]  }
0x19cf   :  { %13724 = vmatpush3.bf16.msra.mxu1 %v15619_v59  ;;  %v15633_v59 = vld [vmem:[%s18908_s25 + $0x70] sm:$0xff]  }
0x19d0   :  { %13976 = vmatpush3.bf16.msra.mxu0 %v13975_v6  ;;  %13725 = vmatprep.subr.bf16.mxu1 %v15621_v30  ;;  %v15624_v6 = vld [vmem:[%s18908_s25 + $0x58] sm:$0xff]   ;;  %v15634_v30 = vld [vmem:[%s18908_s25 + $0x30] sm:$0xff]  }
0x19d1   :  { %13978 = vmatprep.subr.bf16.mxu0 %v13977_v43  ;;  %v15625_v43 = vld [vmem:[%s18908_s25 + $0x18] sm:$0xff]  }
0x19d3   :  { %13726 = vmatpush3.bf16.msra.mxu1 %v15622_v16  ;;  %v15635_v16 = vld [vmem:[%s18908_s25 + $0xb0] sm:$0xff]  }
0x19d4   :  { %13980 = vmatpush3.bf16.msra.mxu0 %v13979_v34  ;;  %13727 = vmatprep.subr.bf16.mxu1 %v15624_v6  ;;  %v15636_v6 = vld [vmem:[%s18908_s25 + $0x78] sm:$0xff]  }
0x19d5   :  { %13982 = vmatprep.subr.bf16.mxu0 %v13981_v49 }
0x19d7   :  { %13728 = vmatpush3.bf16.msra.mxu1 %v15625_v43  ;;  %v15637_v43 = vld [vmem:[%s18908_s25 + $0x38] sm:$0xff]  }
0x19d8   :  { %13984 = vmatpush3.bf16.msra.mxu0 %v13983_v14  ;;  %13729 = vmatprep.subr.bf16.mxu1 %v15627_v37  ;;  %v15638_v37 = vld [vmem:[%s18908_s25 + $0xb8] sm:$0xff]  }
0x19d9   :  { %13777 = vmatprep.subr.bf16.mxu0 %v16599_v47 }
0x19db   :  { %13730 = vmatpush3.bf16.msra.mxu1 %v15628_v13 }
0x1a44   :  { %v9429_v48 = vpop.xlane.xlu0 %9428 }
0x1a45   :  { %v9430_v21 = vcvt.f32.s32 %v9429_v48  ;;  %v9408_v48 = vcvt.f32.s32 %v18253_v31 }
0x1a47   :  { %v9433_v5 = vadd.s32 %v9432_v60, %v9430_v21  ;;  %v9409_v60 = vshll.u32 %v9408_v48, 16 }
0x1a48   :  { %v9383_v0 = vpop.xlane.xlu0 %9382 }
0x1a49   :  { %v9384_v58 = vcvt.f32.s32 %v9383_v0  ;;  %vm9434_vm5 = vcmp.eq.s32.totalorder %v18179_v51, %v9433_v5  ;;  %v15617_v0 = vld [vmem:[%s18908_s25 + $0x80] sm:$0xff]  }
0x1a4a   :  { %v13303_v44 = vsel %vm9434_vm5, 1.0, %v16599_v47 }
0x1a4b   :  { %v9387_v10 = vadd.s32 %v9386_v9, %v9384_v58 }
0x1a4c   :  { %v9406_v34 = vpop.xlane.xlu0 %9405 }
0x1a4d   :  { %vm9388_vm6 = vcmp.eq.s32.totalorder %v18179_v51, %v9387_v10  ;;  %v9407_v33 = vcvt.f32.s32 %v9406_v34  ;;  %v15620_v10 = vld [vmem:[%s18908_s25 + $0x88] sm:$0xff]  }
0x1a4e   :  { %v13301_v8 = vsel %vm9388_vm6, 1.0, %v16599_v47 }
0x1a4f   :  { %v14212_v41 = vpack.i.bf16 %v13301_v8, %v13303_v44  ;;  %v9410_v21 = vadd.s32 %v9409_v60, %v9407_v33  ;;  %v15629_v8 = vld [vmem:[%s18908_s25 + $0xa0] sm:$0xff]   ;;  %v15630_v44 = vld [vmem:[%s18908_s25 + $0x68] sm:$0xff]  }
0x1a50   :  { %v9360_v38 = vpop.xlane.xlu1 %9359  ;;  %13731 = vmatprep.subr.bf16.mxu1 %v15630_v44 }
0x1a51   :  { %14213 = vrot.lane.b32.xlu0 %v14212_v41, %s16565_s8  ;;  %v9361_v39 = vcvt.f32.s32 %v9360_v38  ;;  %vm9411_vm12 = vcmp.eq.s32.totalorder %v18179_v51, %v9410_v21  ;;  %v15632_v41 = vld [vmem:[%s18908_s25 + $0xa8] sm:$0xff]   ;;  %13732 = vmatpush3.bf16.msra.mxu1 %v15631_v25 }
0x1a52   :  { %v13302_v40 = vsel %vm9411_vm12, 1.0, %v16599_v47  ;;  %13733 = vmatprep.subr.bf16.mxu1 %v15633_v59  ;;  %v13304_v59 = vld [vmem:[#allocation37] ss:$0 sm:$0xff] }
0x1a53   :  { %v9364_v49 = vadd.s32 %v9363_v62, %v9361_v39 }
0x1a55   :  { %vm9365_vm13 = vcmp.eq.s32.totalorder %v18179_v51, %v9364_v49  ;;  %13734 = vmatpush3.bf16.msra.mxu1 %v15634_v30 }
0x1a56   :  { %v13300_v31 = vsel %vm9365_vm13, 1.0, %v16599_v47  ;;  %13735 = vmatprep.subr.bf16.mxu1 %v15636_v6 }
0x1a59   :  { %13736 = vmatpush3.bf16.msra.mxu1 %v15637_v43 }
0x1a5a   :  { %10026 = vmatprep.subr.bf16.mxu1 %v16594_v26 }
0x1ac3   :  { %v14214_v17 = vpop.permute.xlu0 %14213 }
0x1ac4   :  { %v14216_v14 = vunpack.i.h.bf16 %v14214_v17  ;;  %v14215_v5 = vunpack.i.l.bf16 %v14214_v17  ;;  %v15640_v17 = vld [vmem:[%s18909_s29 + $0x8] sm:$0xff]  }
0x1ac6   :  { %v18285_v9 = vsel %vm8945_vm11, %v13302_v40, %v14215_v5  ;;  %v18288_v58 = vsel %vm8945_vm11, %v13300_v31, %v14216_v14  ;;  %v15641_v14 = vld [vmem:[%s18909_s29 + $0x10] sm:$0xff]   ;;  %v15642_v5 = vld [vmem:[%s18909_s29 + $0x18] sm:$0xff]   ;;  %v15643_v31 = vld [vmem:[%s18909_s29 + $0x20] sm:$0xff]  }
0x1ac7   :  { %9544 = vmatprep.mubr.f32.mxu0 %v18285_v9  ;;  %v15644_v40 = vld [vmem:[%s18909_s29 + $0x28] sm:$0xff]  }
0x1ac8   :  { %9545 = vmatmul.mubr.f32.vlgmr.msra.gmra.mrb[38].mxu0 %v18288_v58 }
0x1ac9   :  { %13778 = vmatpush3.bf16.msra.mxu0 %v15617_v0  ;;  %13793 = vmatprep.mubr.msk.bf16.mxu0 %vm16600_vm10, %v16599_v47  ;;  %v15645_v0 = vld [vmem:[%s18909_s29 + $0x30] sm:$0xff]  }
0x1aca   :  { %13779 = vmatprep.subr.bf16.mxu0 %v16599_v47 }
0x1acd   :  { %13780 = vmatpush3.bf16.msra.mxu0 %v15620_v10  ;;  %v15646_v10 = vld [vmem:[%s18909_s29 + $0x38] sm:$0xff]  }
0x1ace   :  { %13781 = vmatprep.subr.bf16.mxu0 %v16599_v47 }
0x1ad1   :  { %13782 = vmatpush3.bf16.msra.mxu0 %v15623_v55  ;;  %v15647_v55 = vld [vmem:[%s18909_s29 + $0x40] sm:$0xff]  }
0x1ad2   :  { %13783 = vmatprep.subr.bf16.mxu0 %v16599_v47 }
0x1ad5   :  { %13784 = vmatpush3.bf16.msra.mxu0 %v15626_v4  ;;  %v15648_v4 = vld [vmem:[%s18909_s29 + $0x48] sm:$0xff]  }
0x1ad6   :  { %13785 = vmatprep.subr.bf16.mxu0 %v16599_v47 }
0x1ad9   :  { %13786 = vmatpush3.bf16.msra.mxu0 %v15629_v8  ;;  %v15649_v8 = vld [vmem:[%s18909_s29 + $0x50] sm:$0xff]  }
0x1ada   :  { %13787 = vmatprep.subr.bf16.mxu0 %v16599_v47 }
0x1add   :  { %13788 = vmatpush3.bf16.msra.mxu0 %v15632_v41  ;;  %v15650_v41 = vld [vmem:[%s18909_s29 + $0x58] sm:$0xff]  }
0x1ade   :  { %13789 = vmatprep.subr.bf16.mxu0 %v16599_v47 }
0x1ae1   :  { %13790 = vmatpush3.bf16.msra.mxu0 %v15635_v16 }
0x1ae2   :  { %13791 = vmatprep.subr.bf16.mxu0 %v16599_v47 }
0x1ae5   :  { %13792 = vmatpush3.bf16.msra.mxu0 %v15638_v37 }
0x1ae6   :  { %13797 = vmatprep.subr.bf16.mxu0 %v16599_v47 }
0x1b9b   :  { %v13718_v13 = vpop.f32.mrb[38].mxu0 }
0x1b9c   :  { %v13719_v34 = vpop.f32.mrb[39].mxu0 }
0x1b9d   :  { %v18316_v38 = vadd.f32 %v13719_v34, %v13718_v13  ;;  %v15651_v13 = vld [vmem:[#allocation40] sm:$0xff]  }
0x1b9f   :  { %v9618_v48 = vadd.f32 %v18316_v38, %v18226_v46  ;;  %v15639_v46 = vld [vmem:[%s18909_s29] sm:$0xff]  }
0x1ba1   :  { %v9673_v35 = vrot.slane %v9618_v48, 7  ;;  %v9675_v33 = vrot.slane %v9618_v48, 1  ;;  %v9678_v39 = vpack.c.bf16 %v9618_v48, %v9618_v48 }
0x1ba3   :  { %9862 = vmatprep.mubr.bf16.mxu1 %v9678_v39  ;;  %v9674_v60 = vmul.f32 %v9673_v35, %v18086_v15  ;;  %v9676_v62 = vmul.f32 %v9675_v33, %v18094_v3  ;;  %v15652_v33 = vld [vmem:[#allocation40 + $0x8] sm:$0xff]  }
0x1ba5   :  { %v9677_v21 = vpack.c.bf16 %v9674_v60, %v9674_v60  ;;  %v9679_v49 = vpack.c.bf16 %v9676_v62, %v9676_v62 }
0x1ba7   :  { %9863 = vmatmul.mubr.bf16.vlgmr.msra.gmra.mrb[60].mxu1 %v9677_v21  ;;  %13794 = vmatmul.mubr.bf16.vlgmr.msra.gmra.mrb[40].mxu0 %v9679_v49 }
0x1ba8   :  { %13805 = vmatprep.mubr.msk.bf16.mxu0 %vm16600_vm10, %v16599_v47  ;;  %10027 = vmatpush1.bf16.msra.mxu1 %v15639_v46 }
0x1ba9   :  { %10028 = vmatprep.subr.bf16.mxu1 %v16594_v26  ;;  %13798 = vmatpush3.bf16.msra.mxu0 %v15651_v13  ;;  %v15660_v13 = vld [vmem:[%s18909_s29 + $0x88] sm:$0xff]  }
0x1baa   :  { %13799 = vmatprep.subr.bf16.mxu0 %v16599_v47 }
0x1bac   :  { %10029 = vmatpush1.bf16.msra.mxu1 %v15640_v17 }
0x1bad   :  { %10030 = vmatprep.subr.bf16.mxu1 %v16594_v26  ;;  %13800 = vmatpush3.bf16.msra.mxu0 %v15652_v33  ;;  %v15664_v33 = vld [vmem:[%s18909_s29 + $0xa8] sm:$0xff]  }
0x1bae   :  { %13801 = vmatprep.subr.bf16.mxu0 %v16599_v47 }
0x1bb0   :  { %10031 = vmatpush1.bf16.msra.mxu1 %v15641_v14 }
0x1bb1   :  { %10032 = vmatprep.subr.bf16.mxu1 %v16594_v26 }
0x1bb4   :  { %10033 = vmatpush1.bf16.msra.mxu1 %v15642_v5 }
0x1bb5   :  { %10034 = vmatprep.subr.bf16.mxu1 %v16594_v26 }
0x1bb8   :  { %10035 = vmatpush1.bf16.msra.mxu1 %v15643_v31 }
0x1bb9   :  { %10036 = vmatprep.subr.bf16.mxu1 %v16594_v26 }
0x1bbc   :  { %10037 = vmatpush1.bf16.msra.mxu1 %v15644_v40 }
0x1bbd   :  { %10038 = vmatprep.subr.bf16.mxu1 %v16594_v26 }
0x1bc0   :  { %10039 = vmatpush1.bf16.msra.mxu1 %v15645_v0  ;;  %v15653_v0 = vld [vmem:[#allocation40 + $0x10] sm:$0xff]  }
0x1bc1   :  { %10040 = vmatprep.subr.bf16.mxu1 %v16594_v26  ;;  %13802 = vmatpush3.bf16.msra.mxu0 %v15653_v0 }
0x1bc2   :  { %13803 = vmatprep.subr.bf16.mxu0 %v16599_v47 }
0x1bc4   :  { %10041 = vmatpush1.bf16.msra.mxu1 %v15646_v10 }
0x1bc5   :  { %10042 = vmatprep.subr.bf16.mxu1 %v16594_v26 }
0x1bc8   :  { %10043 = vmatpush1.bf16.msra.mxu1 %v15647_v55 }
0x1bc9   :  { %10044 = vmatprep.subr.bf16.mxu1 %v16594_v26 }
0x1bcc   :  { %10045 = vmatpush1.bf16.msra.mxu1 %v15648_v4 }
0x1bcd   :  { %10046 = vmatprep.subr.bf16.mxu1 %v16594_v26 }
0x1bd0   :  { %10047 = vmatpush1.bf16.msra.mxu1 %v15649_v8 }
0x1bd1   :  { %10048 = vmatprep.subr.bf16.mxu1 %v16594_v26 }
0x1bd4   :  { %10049 = vmatpush1.bf16.msra.mxu1 %v15650_v41 }
0x1bd5   :  { %13809 = vmatprep.subr.bf16.mxu1 %v16599_v47 }
0x1c7a   :  { %v13737_v44 = vpop.f32.mrb[60].mxu1  ;;  %v9904_v25 = vpop.f32.mrb[40].mxu0 }
0x1c7b   :  { %v13738_v30 = vpop.f32.mrb[61].mxu1  ;;  %v13795_v16 = vpop.f32.mrb[41].mxu0 }
0x1c7c   :  { %v13739_v6 = vadd.f32 %v13738_v30, %v13737_v44  ;;  %v13740_v43 = vpop.f32.mrb[62].mxu1  ;;  %v9907_v37 = vpop.f32.mrb[42].mxu0  ;;  %v15655_v30 = vld [vmem:[%s18909_s29 + $0x60] sm:$0xff]   ;;  %v15656_v16 = vld [vmem:[%s18909_s29 + $0x68] sm:$0xff]  }
0x1c7d   :  { %v13741_v34 = vpop.f32.mrb[63].mxu1  ;;  %v13796_v48 = vpop.f32.mrb[43].mxu0  ;;  %v15658_v43 = vld [vmem:[%s18909_s29 + $0x78] sm:$0xff]   ;;  %v15659_v37 = vld [vmem:[%s18909_s29 + $0x80] sm:$0xff]  }
0x1c7e   :  { %v9865_v35 = vadd.f32 %v13739_v6, %v13304_v59  ;;  %v15657_v6 = vld [vmem:[%s18909_s29 + $0x70] sm:$0xff]   ;;  %v15662_v48 = vld [vmem:[%s18909_s29 + $0x98] sm:$0xff]  }
0x1c7f   :  { %v15661_v34 = vld [vmem:[%s18909_s29 + $0x90] sm:$0xff]  }
0x1c80   :  { %v18349_v39 = vadd.f32 %v9904_v25, %v9865_v35  ;;  %v15663_v35 = vld [vmem:[%s18909_s29 + $0xa0] sm:$0xff]  }
0x1c82   :  { %v9910_v60 = vmax.f32 %v18349_v39, 0.0 }
0x1c84   :  { %v9935_v62 = vmax.f32 %v9910_v60, 0.0 }
0x1c86   :  { %9941 = vrot.lane.b32.xlu1 %v9935_v62, %s16565_s8  ;;  %v9938_v21 = vrot.slane %v9935_v62, 3  ;;  %v9936_v17 = vrot.slane %v9935_v62, 5  ;;  %v15665_v62 = vld [vmem:[%s18909_s29 + $0xb0] sm:$0xff]  }
0x1c88   :  { %v9939_v49 = vmul.f32 %v9938_v21, %v18137_v61  ;;  %v9937_v14 = vmul.f32 %v9936_v17, %v18128_v32  ;;  %v15654_v61 = vld [vmem:[#allocation40 + $0x18] sm:$0xff]   ;;  %v18391_v21 = vld [vmem:[#allocation41] sm:$0xf] }
0x1c89   :  { %13804 = vmatpush3.bf16.msra.mxu0 %v15654_v61  ;;  %v18364_v32 = vld [vmem:[#allocation38] sm:$0xf]  ;;  %v15667_v17 = vld [vmem:[#allocation40 + $0x20] sm:$0xff]  }
0x1c8a   :  { %v9946_v46 = vpack.c.bf16 %v9939_v49, %v9939_v49  ;;  %10264 = vmatprep.subr.bf16.mxu0 %v16594_v26  ;;  %v9950_v10 = vrot.slane %v18364_v32, %v16999_v52  ;;  %v15666_v49 = vld [vmem:[%s18909_s29 + $0xb8] sm:$0xff]  }
0x1c8c   :  { %13341 = vmatprep.mubr.msk.bf16.mxu1 %vm8945_vm11, %v9946_v46  ;;  %v10079_v46 = vrot.slane %v18391_v21, %v16999_v52 }
0x1cf8   :  { %v9942_v5 = vpop.permute.xlu1 %9941 }
0x1cf9   :  { %v9944_v31 = vsel %vm8945_vm11, %v9937_v14, %v9942_v5  ;;  %v15668_v14 = vld [vmem:[#allocation40 + $0x28] sm:$0xff]  }
0x1cfa   :  { %v9945_v40 = vpack.c.bf16 %v9944_v31, %v9944_v31 }
0x1cfc   :  { %10059 = vmatmul.mubr.bf16.vlgmr.msra.gmra.mrb[64].mxu1 %v9945_v40 }
0x1cfd   :  { %13817 = vmatprep.mubr.msk.bf16.mxu1 %vm16600_vm10, %v16599_v47  ;;  %13810 = vmatpush3.bf16.msra.mxu1 %v15667_v17 }
0x1cfe   :  { %13811 = vmatprep.subr.bf16.mxu1 %v16599_v47 }
0x1d01   :  { %13812 = vmatpush3.bf16.msra.mxu1 %v15668_v14 }
0x1d02   :  { %13813 = vmatprep.subr.bf16.mxu1 %v16599_v47 }
0x1dcf   :  { %v10060_v55 = vpop.f32.mrb[64].mxu1 }
0x1dd0   :  { %v10061_v4 = vadd.f32 %v10060_v55, %v9950_v10  ;;  %v10062_v8 = vpop.f32.mrb[65].mxu1 }
0x1dd1   :  { %v10063_v44 = vpop.f32.mrb[66].mxu1 }
0x1dd2   :  { %v10066_v25 = vmax.f32 %v10061_v4, 0.0  ;;  %v10064_v41 = vpop.f32.mrb[67].mxu1 }
0x1dd4   :  { %v10067_v59 = vpack.c.bf16 %v10066_v25, %v10066_v25 }
0x1dd6   :  { %13806 = vmatmul.mubr.msk.bf16.vlgmr.msra.gmra.mrb[44].mxu0 %vm8945_vm11, %v10067_v59 }
0x1dd7   :  { %10265 = vmatpush1.bf16.msra.mxu0 %v15655_v30  ;;  %v15669_v30 = vld [vmem:[#allocation40 + $0x30] sm:$0xff]  }
0x1dd8   :  { %10266 = vmatprep.subr.bf16.mxu0 %v16594_v26  ;;  %13814 = vmatpush3.bf16.msra.mxu1 %v15669_v30 }
0x1dd9   :  { %13815 = vmatprep.subr.bf16.mxu1 %v16599_v47 }
0x1ddb   :  { %10267 = vmatpush1.bf16.msra.mxu0 %v15656_v16  ;;  %v15670_v16 = vld [vmem:[#allocation40 + $0x38] sm:$0xff]  }
0x1ddc   :  { %10268 = vmatprep.subr.bf16.mxu0 %v16594_v26  ;;  %13816 = vmatpush3.bf16.msra.mxu1 %v15670_v16 }
0x1ddd   :  { %13821 = vmatprep.subr.bf16.mxu1 %v16599_v47 }
0x1ddf   :  { %10269 = vmatpush1.bf16.msra.mxu0 %v15657_v6 }
0x1de0   :  { %10270 = vmatprep.subr.bf16.mxu0 %v16594_v26 }
0x1de3   :  { %10271 = vmatpush1.bf16.msra.mxu0 %v15658_v43 }
0x1de4   :  { %10272 = vmatprep.subr.bf16.mxu0 %v16594_v26 }
0x1de7   :  { %10273 = vmatpush1.bf16.msra.mxu0 %v15659_v37 }
0x1de8   :  { %10274 = vmatprep.subr.bf16.mxu0 %v16594_v26 }
0x1deb   :  { %10275 = vmatpush1.bf16.msra.mxu0 %v15660_v13 }
0x1dec   :  { %10276 = vmatprep.subr.bf16.mxu0 %v16594_v26 }
0x1def   :  { %10277 = vmatpush1.bf16.msra.mxu0 %v15661_v34 }
0x1df0   :  { %10278 = vmatprep.subr.bf16.mxu0 %v16594_v26 }
0x1df3   :  { %10279 = vmatpush1.bf16.msra.mxu0 %v15662_v48 }
0x1df4   :  { %10280 = vmatprep.subr.bf16.mxu0 %v16594_v26 }
0x1df7   :  { %10281 = vmatpush1.bf16.msra.mxu0 %v15663_v35  ;;  %v10318_v35 = vrot.slane %v18391_v21, %v17002_v53 }
0x1df8   :  { %10282 = vmatprep.subr.bf16.mxu0 %v16594_v26 }
0x1dfb   :  { %10283 = vmatpush1.bf16.msra.mxu0 %v15664_v33 }
0x1dfc   :  { %10284 = vmatprep.subr.bf16.mxu0 %v16594_v26 }
0x1dff   :  { %10285 = vmatpush1.bf16.msra.mxu0 %v15665_v62 }
0x1e00   :  { %10286 = vmatprep.subr.bf16.mxu0 %v16594_v26 }
0x1e03   :  { %10287 = vmatpush1.bf16.msra.mxu0 %v15666_v49 }
0x1e04   :  { %10741 = vmatprep.subr.bf16.mxu0 %v16594_v26 }
0x1ea9   :  { %v10141_v5 = vpop.f32.mrb[44].mxu0 }
0x1eaa   :  { %v10142_v31 = vadd.f32 %v10141_v5, %v10079_v46  ;;  %v13807_v40 = vpop.f32.mrb[45].mxu0 }
0x1eab   :  { %v10144_v0 = vpop.f32.mrb[46].mxu0  ;;  %v15671_v40 = vld [vmem:[%s18910_s11] sm:$0xff]  }
0x1eac   :  { %v10147_v61 = vadd.f32 %v10142_v31, %v9910_v60  ;;  %v13808_v10 = vpop.f32.mrb[47].mxu0  ;;  %v15672_v0 = vld [vmem:[%s18911_s16] sm:$0xff]  }
0x1ead   :  { %v15673_v10 = vld [vmem:[%s18911_s16 + $0x8] sm:$0xff]  }
0x1eae   :  { %v10173_v55 = vmax.f32 %v10147_v61, 0.0 }
0x1eb0   :  { %10179 = vrot.lane.b32.xlu1 %v10173_v55, %s16565_s8  ;;  %v10176_v4 = vrot.slane %v10173_v55, 1  ;;  %v10174_v25 = vrot.slane %v10173_v55, 7  ;;  %v15675_v55 = vld [vmem:[%s18911_s16 + $0x18] sm:$0xff]  }
0x1eb2   :  { %v10177_v8 = vmul.f32 %v10176_v4, %v18094_v3  ;;  %v10175_v41 = vmul.f32 %v10174_v25, %v18086_v15  ;;  %v10188_v3 = vrot.slane %v18364_v32, %v17002_v53  ;;  %v15676_v4 = vld [vmem:[%s18911_s16 + $0x20] sm:$0xff]   ;;  %v15679_v25 = vld [vmem:[%s18911_s16 + $0x38] sm:$0xff]  }
0x1eb4   :  { %v10184_v44 = vpack.c.bf16 %v10177_v8, %v10177_v8  ;;  %v15677_v8 = vld [vmem:[%s18911_s16 + $0x28] sm:$0xff]  }
0x1eb6   :  { %13383 = vmatprep.mubr.msk.bf16.mxu0 %vm8945_vm11, %v10184_v44  ;;  %v15678_v44 = vld [vmem:[%s18911_s16 + $0x30] sm:$0xff]  }
0x1f22   :  { %v10180_v59 = vpop.permute.xlu1 %10179 }
0x1f23   :  { %v10182_v39 = vsel %vm8945_vm11, %v10175_v41, %v10180_v59  ;;  %v15680_v41 = vld [vmem:[%s18911_s16 + $0x40] sm:$0xff]   ;;  %v15681_v59 = vld [vmem:[%s18911_s16 + $0x48] sm:$0xff]  }
0x1f24   :  { %v10183_v60 = vpack.c.bf16 %v10182_v39, %v10182_v39  ;;  %v15682_v39 = vld [vmem:[%s18911_s16 + $0x50] sm:$0xff]  }
0x1f26   :  { %10297 = vmatmul.mubr.bf16.vlgmr.msra.gmra.mrb[48].mxu0 %v10183_v60  ;;  %v15683_v60 = vld [vmem:[%s18911_s16 + $0x58] sm:$0xff]  }
0x1ff9   :  { %v10298_v6 = vpop.f32.mrb[48].mxu0 }
0x1ffa   :  { %v10299_v43 = vadd.f32 %v10298_v6, %v10188_v3  ;;  %v10300_v37 = vpop.f32.mrb[49].mxu0 }
0x1ffb   :  { %v10301_v15 = vpop.f32.mrb[50].mxu0 }
0x1ffc   :  { %v10304_v13 = vmax.f32 %v10299_v43, 0.0  ;;  %v10302_v34 = vpop.f32.mrb[51].mxu0 }
0x1ffe   :  { %v10305_v48 = vpack.c.bf16 %v10304_v13, %v10304_v13 }
0x2000   :  { %13818 = vmatmul.mubr.msk.bf16.vlgmr.msra.gmra.mrb[68].mxu1 %vm8945_vm11, %v10305_v48 }
0x2001   :  { %13823 = vmatprep.mubr.msk.bf16.mxu1 %vm16600_vm10, %v16599_v47 }
0x20d3   :  { %v10380_v33 = vpop.f32.mrb[68].mxu1 }
0x20d4   :  { %v10381_v62 = vadd.f32 %v10380_v33, %v10318_v35  ;;  %v13819_v49 = vpop.f32.mrb[69].mxu1 }
0x20d5   :  { %v10383_v46 = vpop.f32.mrb[70].mxu1 }
0x20d6   :  { %v10386_v17 = vadd.f32 %v10381_v62, %v10147_v61  ;;  %v13820_v14 = vpop.f32.mrb[71].mxu1  ;;  %v15674_v61 = vld [vmem:[%s18911_s16 + $0x10] sm:$0xff]  }
0x20d8   :  { %v10389_v5 = vpack.c.bf16 %v10386_v17, %v10386_v17 }
0x20da   :  { %v10400_v31 = vsel %vm970_vm1, %v10389_v5, 0  ;;  %vm12153_vm1 = vcmp.eq.s32.totalorder %v18179_v51, 0 }
0x20db   :  { %13822 = vmatpush3.bf16.msra.mxu1 %v10400_v31 }
0x20dc   :  { %10570 = vmatprep.subr.bf16.mxu1 %v16594_v26 }
0x20de   :  { %13824 = vmatmul.mubr.msk.bf16.vlgmr.msra.gmra.mrb[72].mxu1 %vm10395_vm14, %v15671_v40 }
0x20df   :  { %10571 = vmatpush1.bf16.msra.mxu1 %v15672_v0 }
0x20e0   :  { %10572 = vmatprep.subr.bf16.mxu1 %v16594_v26 }
0x20e3   :  { %10573 = vmatpush1.bf16.msra.mxu1 %v15673_v10 }
0x20e4   :  { %10574 = vmatprep.subr.bf16.mxu1 %v16594_v26 }
0x20e7   :  { %10575 = vmatpush1.bf16.msra.mxu1 %v15674_v61 }
0x20e8   :  { %10576 = vmatprep.subr.bf16.mxu1 %v16594_v26 }
0x20eb   :  { %10577 = vmatpush1.bf16.msra.mxu1 %v15675_v55 }
0x20ec   :  { %10578 = vmatprep.subr.bf16.mxu1 %v16594_v26 }
0x20ef   :  { %10579 = vmatpush1.bf16.msra.mxu1 %v15676_v4  ;;  %v15684_v4 = vld [vmem:[%s18909_s29 + $0xc0] sm:$0xff]  }
0x20f0   :  { %10580 = vmatprep.subr.bf16.mxu1 %v16594_v26  ;;  %10742 = vmatpush1.bf16.msra.mxu0 %v15684_v4 }
0x20f1   :  { %10743 = vmatprep.subr.bf16.mxu0 %v16594_v26 }
0x20f3   :  { %10581 = vmatpush1.bf16.msra.mxu1 %v15677_v8  ;;  %v15685_v8 = vld [vmem:[%s18909_s29 + $0xc8] sm:$0xff]  }
0x20f4   :  { %10582 = vmatprep.subr.bf16.mxu1 %v16594_v26  ;;  %10744 = vmatpush1.bf16.msra.mxu0 %v15685_v8 }
0x20f5   :  { %10745 = vmatprep.subr.bf16.mxu0 %v16594_v26 }
0x20f7   :  { %10583 = vmatpush1.bf16.msra.mxu1 %v15678_v44  ;;  %v15686_v44 = vld [vmem:[%s18909_s29 + $0xd0] sm:$0xff]  }
0x20f8   :  { %10584 = vmatprep.subr.bf16.mxu1 %v16594_v26  ;;  %10746 = vmatpush1.bf16.msra.mxu0 %v15686_v44 }
0x20f9   :  { %10747 = vmatprep.subr.bf16.mxu0 %v16594_v26 }
0x20fb   :  { %10585 = vmatpush1.bf16.msra.mxu1 %v15679_v25  ;;  %v15687_v25 = vld [vmem:[%s18909_s29 + $0xd8] sm:$0xff]  }
0x20fc   :  { %10586 = vmatprep.subr.bf16.mxu1 %v16594_v26  ;;  %10748 = vmatpush1.bf16.msra.mxu0 %v15687_v25 }
0x20fd   :  { %10749 = vmatprep.subr.bf16.mxu0 %v16594_v26 }
0x20ff   :  { %10587 = vmatpush1.bf16.msra.mxu1 %v15680_v41  ;;  %v15688_v41 = vld [vmem:[%s18909_s29 + $0xe0] sm:$0xff]  }
0x2100   :  { %10588 = vmatprep.subr.bf16.mxu1 %v16594_v26  ;;  %10750 = vmatpush1.bf16.msra.mxu0 %v15688_v41 }
0x2101   :  { %10751 = vmatprep.subr.bf16.mxu0 %v16594_v26 }
0x2103   :  { %10589 = vmatpush1.bf16.msra.mxu1 %v15681_v59  ;;  %v15689_v59 = vld [vmem:[%s18909_s29 + $0xe8] sm:$0xff]  }
0x2104   :  { %10590 = vmatprep.subr.bf16.mxu1 %v16594_v26  ;;  %10752 = vmatpush1.bf16.msra.mxu0 %v15689_v59 }
0x2105   :  { %10753 = vmatprep.subr.bf16.mxu0 %v16594_v26 }
0x2107   :  { %10591 = vmatpush1.bf16.msra.mxu1 %v15682_v39  ;;  %v15690_v39 = vld [vmem:[%s18909_s29 + $0xf0] sm:$0xff]  }
0x2108   :  { %10592 = vmatprep.subr.bf16.mxu1 %v16594_v26  ;;  %10754 = vmatpush1.bf16.msra.mxu0 %v15690_v39 }
0x2109   :  { %10755 = vmatprep.subr.bf16.mxu0 %v16594_v26 }
0x210b   :  { %10593 = vmatpush1.bf16.msra.mxu1 %v15683_v60  ;;  %v15691_v60 = vld [vmem:[%s18909_s29 + $0xf8] sm:$0xff]  }
0x210c   :  { %13827 = vmatprep.subr.bf16.mxu1 %v16599_v47  ;;  %10756 = vmatpush1.bf16.msra.mxu0 %v15691_v60 }
0x210d   :  { %10757 = vmatprep.subr.bf16.mxu0 %v16594_v26 }
0x21b1   :  { %v10436_v30 = vpop.f32.mrb[72].mxu1 }
0x21b2   :  { %v13825_v16 = vpop.f32.mrb[73].mxu1  ;;  %v10467_v3 = vrot.slane %v10436_v30, 7  ;;  %v10473_v43 = vrot.slane %v10436_v30, 1 }
0x21b3   :  { %v10439_v6 = vpop.f32.mrb[74].mxu1  ;;  %v15693_v16 = vld [vmem:[%s18909_s29 + $0x108] sm:$0xff]  }
0x21b4   :  { %v10468_v37 = vrot.slane %v10439_v6, 7  ;;  %v10474_v15 = vrot.slane %v10439_v6, 1  ;;  %v13826_v13 = vpop.f32.mrb[75].mxu1  ;;  %v14217_v34 = vpack.i.bf16 %v10439_v6, %v10436_v30  ;;  %v15692_v30 = vld [vmem:[%s18909_s29 + $0x100] sm:$0xff]   ;;  %v18482_v6 = vld [vmem:[#allocation43] sm:$0x3] }
0x21b5   :  { %10758 = vmatpush1.bf16.msra.mxu0 %v15692_v30 }
0x21b6   :  { %v10469_v48 = vsel %vm673_vm2, %v10467_v3, %v10468_v37  ;;  %v10470_v35 = vsel %vm673_vm2, %v10468_v37, %v10467_v3  ;;  %v10475_v33 = vsel %vm1380_vm3, %v10473_v43, %v10474_v15  ;;  %v10476_v62 = vsel %vm1380_vm3, %v10474_v15, %v10473_v43  ;;  %14218 = vrot.lane.b32.xlu0 %v14217_v34, %s16565_s8  ;;  %v15694_v3 = vld [vmem:[%s18909_s29 + $0x110] sm:$0xff]   ;;  %v15695_v37 = vld [vmem:[%s18909_s29 + $0x118] sm:$0xff]  }
0x21b7   :  { %v10477_v49 = vmul.f32 %v10475_v33, %v17705_v18  ;;  %v10478_v46 = vmul.f32 %v10476_v62, %v17707_v23  ;;  %v10471_v5 = vmul.f32 %v10470_v35, %v17686_v12  ;;  %v10472_v31 = vmul.f32 %v10469_v48, %v17679_v1  ;;  %10759 = vmatprep.subr.bf16.mxu0 %v16594_v26  ;;  %v15696_v48 = vld [vmem:[#allocation40 + $0x40] sm:$0xff]  }
0x21b8   :  { %v10494_v43 = vrot.slane %v18482_v6, %v16999_v52 }
0x21b9   :  { %v10490_v17 = vpack.c.bf16 %v10478_v46, %v10477_v49  ;;  %10760 = vmatpush1.bf16.msra.mxu0 %v15693_v16  ;;  %v15697_v46 = vld [vmem:[#allocation40 + $0x48] sm:$0xff]  }
0x21ba   :  { %10761 = vmatprep.subr.bf16.mxu0 %v16594_v26 }
0x21bb   :  { %13403 = vmatprep.mubr.msk.bf16.mxu1 %vm8945_vm11, %v10490_v17 }
0x21bd   :  { %10762 = vmatpush1.bf16.msra.mxu0 %v15694_v3 }
0x21be   :  { %10763 = vmatprep.subr.bf16.mxu0 %v16594_v26 }
0x21c1   :  { %10764 = vmatpush1.bf16.msra.mxu0 %v15695_v37  ;;  %v15698_v37 = vld [vmem:[#allocation40 + $0x50] sm:$0xff]  }
0x21c2   :  { %10998 = vmatprep.subr.bf16.mxu0 %v16594_v26 }
0x2228   :  { %v14219_v14 = vpop.permute.xlu0 %14218 }
0x2229   :  { %v14221_v40 = vunpack.i.h.bf16 %v14219_v14  ;;  %v14220_v0 = vunpack.i.l.bf16 %v14219_v14 }
0x222b   :  { %v10487_v10 = vsel %vm8945_vm11, %v10471_v5, %v14220_v0  ;;  %v10488_v61 = vsel %vm8945_vm11, %v10472_v31, %v14221_v40 }
0x222c   :  { %v10489_v55 = vpack.c.bf16 %v10488_v61, %v10487_v10 }
0x222e   :  { %10603 = vmatmul.mubr.bf16.vlgmr.msra.gmra.mrb[76].mxu1 %v10489_v55 }
0x222f   :  { %13835 = vmatprep.mubr.msk.bf16.mxu1 %vm16600_vm10, %v16599_v47  ;;  %13828 = vmatpush3.bf16.msra.mxu1 %v15696_v48 }
0x2230   :  { %13829 = vmatprep.subr.bf16.mxu1 %v16599_v47 }
0x2233   :  { %13830 = vmatpush3.bf16.msra.mxu1 %v15697_v46 }
0x2234   :  { %13831 = vmatprep.subr.bf16.mxu1 %v16599_v47 }
0x2237   :  { %13832 = vmatpush3.bf16.msra.mxu1 %v15698_v37 }
0x2238   :  { %13833 = vmatprep.subr.bf16.mxu1 %v16599_v47 }
0x2301   :  { %v10604_v15 = vpop.f32.mrb[76].mxu1 }
0x2302   :  { %v18487_v13 = vadd.f32 %v10604_v15, %v10494_v43  ;;  %v10606_v34 = vpop.f32.mrb[77].mxu1 }
0x2303   :  { %v10607_v35 = vpop.f32.mrb[78].mxu1 }
0x2304   :  { %v10636_v33 = vmax.f32 %v18487_v13, 0.0  ;;  %v18491_v62 = vadd.f32 %v10607_v35, %v10494_v43  ;;  %v10609_v49 = vpop.f32.mrb[79].mxu1 }
0x2306   :  { %v10637_v17 = vmax.f32 %v18491_v62, 0.0  ;;  %v10638_v14 = vrot.slane %v10636_v33, 5  ;;  %v10644_v5 = vrot.slane %v10636_v33, 3 }
0x2308   :  { %v10639_v31 = vrot.slane %v10637_v17, 5  ;;  %v10645_v40 = vrot.slane %v10637_v17, 3  ;;  %v14222_v0 = vpack.i.bf16 %v10637_v17, %v10636_v33  ;;  %v15700_v17 = vld [vmem:[%s18909_s29 + $0x120] sm:$0xff]  }
0x230a   :  { %v10640_v10 = vsel %vm4183_vm7, %v10638_v14, %v10639_v31  ;;  %v10641_v61 = vsel %vm4183_vm7, %v10639_v31, %v10638_v14  ;;  %14223 = vrot.lane.b32.xlu1 %v14222_v0, %s16565_s8  ;;  %v10646_v55 = vsel %vm4204_vm8, %v10644_v5, %v10645_v40  ;;  %v10647_v4 = vsel %vm4204_vm8, %v10645_v40, %v10644_v5  ;;  %v15701_v14 = vld [vmem:[%s18909_s29 + $0x128] sm:$0xff]   ;;  %v15702_v5 = vld [vmem:[%s18909_s29 + $0x130] sm:$0xff]   ;;  %v15703_v31 = vld [vmem:[%s18909_s29 + $0x138] sm:$0xff]  }
0x230b   :  { %v10648_v8 = vmul.f32 %v10646_v55, %v17822_v24  ;;  %v10649_v44 = vmul.f32 %v10647_v4, %v17812_v19  ;;  %v10642_v60 = vmul.f32 %v10641_v61, %v17780_v63  ;;  %v10643_v30 = vmul.f32 %v10640_v10, %v17788_v36  ;;  %v15699_v19 = vld [vmem:[#allocation40 + $0x58] sm:$0xff]   ;;  %v15705_v0 = vld [vmem:[%s18909_s29 + $0x148] sm:$0xff]   ;;  %v15706_v10 = vld [vmem:[%s18909_s29 + $0x150] sm:$0xff]  }
0x230c   :  { %13834 = vmatpush3.bf16.msra.mxu1 %v15699_v19  ;;  %v10665_v63 = vrot.slane %v18364_v32, %v17005_v54  ;;  %v15704_v40 = vld [vmem:[%s18909_s29 + $0x140] sm:$0xff]   ;;  %v15707_v61 = vld [vmem:[%s18909_s29 + $0x158] sm:$0xff]   ;;  %v15709_v4 = vld [vmem:[%s18909_s29 + $0x168] sm:$0xff]  }
0x230d   :  { %v10661_v25 = vpack.c.bf16 %v10649_v44, %v10648_v8  ;;  %13839 = vmatprep.subr.bf16.mxu1 %v16599_v47  ;;  %v15708_v55 = vld [vmem:[%s18909_s29 + $0x160] sm:$0xff]   ;;  %v15710_v8 = vld [vmem:[%s18909_s29 + $0x170] sm:$0xff]   ;;  %v10797_v44 = vrot.slane %v18391_v21, %v17005_v54 }
0x230f   :  { %13440 = vmatprep.mubr.msk.bf16.mxu0 %vm8945_vm11, %v10661_v25 }
0x237c   :  { %v14224_v41 = vpop.permute.xlu1 %14223 }
0x237d   :  { %v14226_v59 = vunpack.i.h.bf16 %v14224_v41  ;;  %v14225_v39 = vunpack.i.l.bf16 %v14224_v41 }
0x237f   :  { %v10658_v16 = vsel %vm8945_vm11, %v10642_v60, %v14225_v39  ;;  %v10659_v3 = vsel %vm8945_vm11, %v10643_v30, %v14226_v59  ;;  %v15711_v39 = vld [vmem:[%s18909_s29 + $0x178] sm:$0xff]  }
0x2380   :  { %v10660_v43 = vpack.c.bf16 %v10659_v3, %v10658_v16 }
0x2382   :  { %10774 = vmatmul.mubr.bf16.vlgmr.msra.gmra.mrb[52].mxu0 %v10660_v43  ;;  %v15712_v43 = vld [vmem:[#allocation40 + $0x60] sm:$0xff]  }
0x2383   :  { %10999 = vmatpush1.bf16.msra.mxu0 %v15700_v17 }
0x2384   :  { %11000 = vmatprep.subr.bf16.mxu0 %v16594_v26 }
0x2387   :  { %11001 = vmatpush1.bf16.msra.mxu0 %v15701_v14 }
0x2388   :  { %11002 = vmatprep.subr.bf16.mxu0 %v16594_v26 }
0x238b   :  { %11003 = vmatpush1.bf16.msra.mxu0 %v15702_v5 }
0x238c   :  { %11004 = vmatprep.subr.bf16.mxu0 %v16594_v26 }
0x238f   :  { %11005 = vmatpush1.bf16.msra.mxu0 %v15703_v31 }
0x2390   :  { %11006 = vmatprep.subr.bf16.mxu0 %v16594_v26 }
0x2393   :  { %11007 = vmatpush1.bf16.msra.mxu0 %v15704_v40 }
0x2394   :  { %11008 = vmatprep.subr.bf16.mxu0 %v16594_v26 }
0x2397   :  { %11009 = vmatpush1.bf16.msra.mxu0 %v15705_v0 }
0x2398   :  { %11010 = vmatprep.subr.bf16.mxu0 %v16594_v26 }
0x239b   :  { %11011 = vmatpush1.bf16.msra.mxu0 %v15706_v10 }
0x239c   :  { %11012 = vmatprep.subr.bf16.mxu0 %v16594_v26 }
0x239f   :  { %11013 = vmatpush1.bf16.msra.mxu0 %v15707_v61 }
0x23a0   :  { %11014 = vmatprep.subr.bf16.mxu0 %v16594_v26 }
0x23a3   :  { %11015 = vmatpush1.bf16.msra.mxu0 %v15708_v55 }
0x23a4   :  { %11016 = vmatprep.subr.bf16.mxu0 %v16594_v26 }
0x23a7   :  { %11017 = vmatpush1.bf16.msra.mxu0 %v15709_v4 }
0x23a8   :  { %11018 = vmatprep.subr.bf16.mxu0 %v16594_v26 }
0x23ab   :  { %11019 = vmatpush1.bf16.msra.mxu0 %v15710_v8  ;;  %v15714_v8 = vld [vmem:[#allocation40 + $0x70] sm:$0xff]  }
0x23ac   :  { %11020 = vmatprep.subr.bf16.mxu0 %v16594_v26 }
0x23af   :  { %11021 = vmatpush1.bf16.msra.mxu0 %v15711_v39 }
0x23b0   :  { %11556 = vmatprep.subr.bf16.mxu0 %v16594_v26 }
0x2455   :  { %v10775_v36 = vpop.f32.mrb[52].mxu0 }
0x2456   :  { %v10776_v24 = vadd.f32 %v10775_v36, %v10665_v63  ;;  %v10777_v15 = vpop.f32.mrb[53].mxu0 }
0x2457   :  { %v10778_v34 = vpop.f32.mrb[54].mxu0 }
0x2458   :  { %v10779_v48 = vadd.f32 %v10778_v34, %v10665_v63  ;;  %v10780_v35 = vpop.f32.mrb[55].mxu0  ;;  %v10782_v33 = vmax.f32 %v10776_v24, 0.0  ;;  %v15713_v63 = vld [vmem:[#allocation40 + $0x68] sm:$0xff]  }
0x245a   :  { %v10783_v49 = vmax.f32 %v10779_v48, 0.0 }
0x245c   :  { %v10784_v46 = vpack.c.bf16 %v10783_v49, %v10782_v33 }
0x245e   :  { %13836 = vmatmul.mubr.msk.bf16.vlgmr.msra.gmra.mrb[80].mxu1 %vm8945_vm11, %v10784_v46 }
0x245f   :  { %13847 = vmatprep.mubr.msk.bf16.mxu1 %vm16600_vm10, %v16599_v47  ;;  %13840 = vmatpush3.bf16.msra.mxu1 %v15712_v43 }
0x2460   :  { %13841 = vmatprep.subr.bf16.mxu1 %v16599_v47 }
0x2463   :  { %13842 = vmatpush3.bf16.msra.mxu1 %v15713_v63 }
0x2464   :  { %13843 = vmatprep.subr.bf16.mxu1 %v16599_v47 }
0x2467   :  { %13844 = vmatpush3.bf16.msra.mxu1 %v15714_v8 }
0x2468   :  { %13845 = vmatprep.subr.bf16.mxu1 %v16599_v47  ;;  %v11054_v47 = vrot.slane %v18391_v21, %v18069_v27  ;;  %v15719_v21 = vld [vmem:[%s18911_s16 + $0x68] sm:$0xff]  }
0x2531   :  { %v10859_v25 = vpop.f32.mrb[80].mxu1 }
0x2532   :  { %v10860_v41 = vadd.f32 %v10859_v25, %v10797_v44  ;;  %v13837_v59 = vpop.f32.mrb[81].mxu1 }
0x2533   :  { %v10862_v60 = vpop.f32.mrb[82].mxu1 }
0x2534   :  { %v10866_v30 = vadd.f32 %v10860_v41, %v18487_v13  ;;  %v10863_v16 = vadd.f32 %v10862_v60, %v10797_v44  ;;  %v13838_v3 = vpop.f32.mrb[83].mxu1 }
0x2535   :  { %v15716_v3 = vld [vmem:[%s18912_s14] sm:$0xff]  }
0x2536   :  { %v10893_v37 = vmax.f32 %v10866_v30, 0.0  ;;  %v10867_v19 = vadd.f32 %v10863_v16, %v18491_v62 }
0x2538   :  { %v10894_v36 = vmax.f32 %v10867_v19, 0.0  ;;  %v10895_v24 = vrot.slane %v10893_v37, 7  ;;  %v10901_v15 = vrot.slane %v10893_v37, 1 }
0x253a   :  { %v10896_v34 = vrot.slane %v10894_v36, 7  ;;  %v10902_v48 = vrot.slane %v10894_v36, 1  ;;  %v14227_v35 = vpack.i.bf16 %v10894_v36, %v10893_v37 }
0x253c   :  { %14228 = vrot.lane.b32.xlu0 %v14227_v35, %s16565_s8  ;;  %v10903_v13 = vsel %vm1380_vm3, %v10901_v15, %v10902_v48  ;;  %v10904_v62 = vsel %vm1380_vm3, %v10902_v48, %v10901_v15  ;;  %v10897_v33 = vsel %vm673_vm2, %v10895_v24, %v10896_v34  ;;  %v10898_v49 = vsel %vm673_vm2, %v10896_v34, %v10895_v24  ;;  %v15717_v35 = vld [vmem:[%s18912_s14 + $0x8] sm:$0xff]  }
0x253d   :  { %v10905_v46 = vmul.f32 %v10903_v13, %v17705_v18  ;;  %v10906_v17 = vmul.f32 %v10904_v62, %v17707_v23  ;;  %v10899_v0 = vmul.f32 %v10898_v49, %v17686_v12  ;;  %v10900_v10 = vmul.f32 %v10897_v33, %v17679_v1  ;;  %v15715_v18 = vld [vmem:[#allocation40 + $0x78] sm:$0xff]   ;;  %v15723_v62 = vld [vmem:[%s18911_s16 + $0x88] sm:$0xff]   ;;  %v15724_v33 = vld [vmem:[%s18911_s16 + $0x90] sm:$0xff]  }
0x253e   :  { %13846 = vmatpush3.bf16.msra.mxu1 %v15715_v18  ;;  %v10922_v23 = vrot.slane %v18364_v32, %v18069_v27  ;;  %v15718_v27 = vld [vmem:[%s18911_s16 + $0x60] sm:$0xff]   ;;  %v15725_v49 = vld [vmem:[%s18911_s16 + $0x98] sm:$0xff]  }
0x253f   :  { %v10918_v14 = vpack.c.bf16 %v10906_v17, %v10905_v46  ;;  %v15722_v13 = vld [vmem:[%s18911_s16 + $0x80] sm:$0xff]   ;;  %v15727_v17 = vld [vmem:[%s18911_s16 + $0xa8] sm:$0xff]  }
0x2540   :  { %v15726_v46 = vld [vmem:[%s18911_s16 + $0xa0] sm:$0xff]  }
0x2541   :  { %13482 = vmatprep.mubr.msk.bf16.mxu0 %vm8945_vm11, %v10918_v14  ;;  %v15728_v14 = vld [vmem:[%s18911_s16 + $0xb0] sm:$0xff]  }
0x25ae   :  { %v14229_v5 = vpop.permute.xlu0 %14228 }
0x25af   :  { %v14231_v31 = vunpack.i.h.bf16 %v14229_v5  ;;  %v14230_v40 = vunpack.i.l.bf16 %v14229_v5  ;;  %v15729_v5 = vld [vmem:[%s18911_s16 + $0xb8] sm:$0xff]  }
0x25b1   :  { %v10915_v61 = vsel %vm8945_vm11, %v10899_v0, %v14230_v40  ;;  %v10916_v55 = vsel %vm8945_vm11, %v10900_v10, %v14231_v31 }
0x25b2   :  { %v10917_v4 = vpack.c.bf16 %v10916_v55, %v10915_v61 }
0x25b4   :  { %11031 = vmatmul.mubr.bf16.vlgmr.msra.gmra.mrb[56].mxu0 %v10917_v4 }
0x2687   :  { %v11032_v44 = vpop.f32.mrb[56].mxu0 }
0x2688   :  { %v11033_v12 = vadd.f32 %v11032_v44, %v10922_v23  ;;  %v11034_v25 = vpop.f32.mrb[57].mxu0 }
0x2689   :  { %v11035_v1 = vpop.f32.mrb[58].mxu0 }
0x268a   :  { %v11036_v41 = vadd.f32 %v11035_v1, %v10922_v23  ;;  %v11037_v59 = vpop.f32.mrb[59].mxu0  ;;  %v11039_v39 = vmax.f32 %v11033_v12, 0.0 }
0x268c   :  { %v11040_v60 = vmax.f32 %v11036_v41, 0.0 }
0x268e   :  { %v11041_v16 = vpack.c.bf16 %v11040_v60, %v11039_v39 }
0x2690   :  { %13848 = vmatmul.mubr.msk.bf16.vlgmr.msra.gmra.mrb[84].mxu1 %vm8945_vm11, %v11041_v16 }
0x2691   :  { %13853 = vmatprep.mubr.msk.bf16.mxu1 %vm5300_vm9, %v15716_v3 }
0x2763   :  { %v11116_v32 = vpop.f32.mrb[84].mxu1 }
0x2764   :  { %v11117_v43 = vadd.f32 %v11116_v32, %v11054_v47  ;;  %v13849_v37 = vpop.f32.mrb[85].mxu1 }
0x2765   :  { %v11119_v63 = vpop.f32.mrb[86].mxu1 }
0x2766   :  { %v11120_v36 = vadd.f32 %v11119_v63, %v11054_v47  ;;  %v13850_v24 = vpop.f32.mrb[87].mxu1  ;;  %v11123_v15 = vadd.f32 %v11117_v43, %v10866_v30  ;;  %v15720_v30 = vld [vmem:[%s18911_s16 + $0x70] sm:$0xff]  }
0x2768   :  { %v11124_v34 = vadd.f32 %v11120_v36, %v10867_v19  ;;  %v15721_v19 = vld [vmem:[%s18911_s16 + $0x78] sm:$0xff]  }
0x276a   :  { %v11129_v48 = vpack.c.bf16 %v11124_v34, %v11123_v15 }
0x276c   :  { %13851 = vmatprep.subr.bf16.mxu1 %v11129_v48 }
0x276d   :  { %13852 = vmatpush3.bf16.msra.mxu1 %v11129_v48 }
0x276e   :  { %11350 = vmatprep.subr.bf16.mxu1 %v16594_v26 }
0x2770   :  { %13854 = vmatmul.mubr.msk.bf16.vlgmr.msra.gmra.mrb[88].mxu1 %vm5300_vm9, %v15717_v35 }
0x2771   :  { %11351 = vmatpush1.bf16.msra.mxu1 %v15718_v27 }
0x2772   :  { %11352 = vmatprep.subr.bf16.mxu1 %v16594_v26 }
0x2775   :  { %11353 = vmatpush1.bf16.msra.mxu1 %v15719_v21 }
0x2776   :  { %11354 = vmatprep.subr.bf16.mxu1 %v16594_v26 }
0x2779   :  { %11355 = vmatpush1.bf16.msra.mxu1 %v15720_v30 }
0x277a   :  { %11356 = vmatprep.subr.bf16.mxu1 %v16594_v26 }
0x277d   :  { %11357 = vmatpush1.bf16.msra.mxu1 %v15721_v19 }
0x277e   :  { %11358 = vmatprep.subr.bf16.mxu1 %v16594_v26 }
0x2781   :  { %11359 = vmatpush1.bf16.msra.mxu1 %v15722_v13 }
0x2782   :  { %11360 = vmatprep.subr.bf16.mxu1 %v16594_v26 }
0x2785   :  { %11361 = vmatpush1.bf16.msra.mxu1 %v15723_v62 }
0x2786   :  { %11362 = vmatprep.subr.bf16.mxu1 %v16594_v26 }
0x2789   :  { %11363 = vmatpush1.bf16.msra.mxu1 %v15724_v33 }
0x278a   :  { %11364 = vmatprep.subr.bf16.mxu1 %v16594_v26 }
0x278d   :  { %11365 = vmatpush1.bf16.msra.mxu1 %v15725_v49 }
0x278e   :  { %11366 = vmatprep.subr.bf16.mxu1 %v16594_v26 }
0x2791   :  { %11367 = vmatpush1.bf16.msra.mxu1 %v15726_v46 }
0x2792   :  { %11368 = vmatprep.subr.bf16.mxu1 %v16594_v26 }
0x2795   :  { %11369 = vmatpush1.bf16.msra.mxu1 %v15727_v17 }
0x2796   :  { %11370 = vmatprep.subr.bf16.mxu1 %v16594_v26 }
0x2799   :  { %11371 = vmatpush1.bf16.msra.mxu1 %v15728_v14 }
0x279a   :  { %11372 = vmatprep.subr.bf16.mxu1 %v16594_v26 }
0x279d   :  { %11373 = vmatpush1.bf16.msra.mxu1 %v15729_v5 }
0x2843   :  { %v13855_v31 = vpop.f32.mrb[88].mxu1 }
0x2844   :  { %v11180_v40 = vpop.f32.mrb[89].mxu1  ;;  %v11222_v0 = vrot.slane %v13855_v31, 7  ;;  %v11234_v4 = vrot.slane %v13855_v31, 1 }
0x2845   :  { %v11220_v10 = vrot.slane %v11180_v40, 7  ;;  %v11232_v61 = vrot.slane %v11180_v40, 1  ;;  %v13856_v55 = vpop.f32.mrb[90].mxu1 }
0x2846   :  { %v11223_v8 = vrot.slane %v13856_v55, 7  ;;  %v11235_v18 = vrot.slane %v13856_v55, 1  ;;  %v11183_v23 = vpop.f32.mrb[91].mxu1  ;;  %v14237_v44 = vpack.i.bf16 %v13856_v55, %v13855_v31  ;;  %v15734_v55 = vld [vmem:[%s18913_s18 + $0x20] sm:$0xff]  }
0x2847   :  { %v11221_v12 = vrot.slane %v11183_v23, 7  ;;  %v11233_v25 = vrot.slane %v11183_v23, 1  ;;  %v14232_v1 = vpack.i.bf16 %v11183_v23, %v11180_v40  ;;  %v15730_v40 = vld [vmem:[%s18913_s18] sm:$0xff]  }
0x2848   :  { %v11224_v41 = vsel %vm673_vm2, %v11222_v0, %v11223_v8  ;;  %v11227_v59 = vsel %vm673_vm2, %v11223_v8, %v11220_v10  ;;  %v11236_v39 = vsel %vm1380_vm3, %v11234_v4, %v11235_v18  ;;  %v11239_v60 = vsel %vm1380_vm3, %v11235_v18, %v11232_v61  ;;  %14238 = vrot.lane.b32.xlu0 %v14237_v44, %s16565_s8  ;;  %v15736_v8 = vld [vmem:[%s18913_s18 + $0x30] sm:$0xff]   ;;  %v15737_v18 = vld [vmem:[%s18913_s18 + $0x38] sm:$0xff]   ;;  %v15738_v23 = vld [vmem:[%s18913_s18 + $0x40] sm:$0xff]  }
0x2849   :  { %v11242_v16 = vmul.f32 %v11236_v39, %v17138_v28  ;;  %v11243_v3 = vmul.f32 %v11239_v60, %v17148_v20  ;;  %14233 = vrot.lane.b32.xlu1 %v14232_v1, %s16565_s8  ;;  %v11225_v47 = vsel %vm673_vm2, %v11221_v12, %v11222_v0  ;;  %v11226_v32 = vsel %vm673_vm2, %v11220_v10, %v11221_v12  ;;  %v15731_v0 = vld [vmem:[%s18913_s18 + $0x8] sm:$0xff]   ;;  %v15732_v10 = vld [vmem:[%s18913_s18 + $0x10] sm:$0xff]   ;;  %v15741_v1 = vld [vmem:[%s18913_s18 + $0x58] sm:$0xff]  }
0x284a   :  { %v11237_v43 = vsel %vm1380_vm3, %v11233_v25, %v11234_v4  ;;  %v11238_v37 = vsel %vm1380_vm3, %v11232_v61, %v11233_v25  ;;  %v11231_v48 = vmul.f32 %v11224_v41, %v17057_v2  ;;  %v11230_v35 = vmul.f32 %v11225_v47, %v17063_v29  ;;  %11557 = vmatpush1.bf16.msra.mxu0 %v15730_v40  ;;  %v15733_v61 = vld [vmem:[%s18913_s18 + $0x18] sm:$0xff]   ;;  %v15735_v4 = vld [vmem:[%s18913_s18 + $0x28] sm:$0xff]   ;;  %v15740_v12 = vld [vmem:[%s18913_s18 + $0x50] sm:$0xff]  }
0x284b   :  { %v11240_v63 = vmul.f32 %v11238_v37, %v17102_v56  ;;  %v11241_v36 = vmul.f32 %v11237_v43, %v17096_v45  ;;  %v11267_v24 = vpack.c.bf16 %v11243_v3, %v11242_v16  ;;  %v11228_v19 = vmul.f32 %v11227_v59, %v17043_v11  ;;  %11558 = vmatprep.subr.bf16.mxu0 %v16594_v26  ;;  %v15739_v44 = vld [vmem:[%s18913_s18 + $0x48] sm:$0xff]  }
0x284c   :  { %v11229_v13 = vmul.f32 %v11226_v32, %v17036_v7  ;;  %v11271_v25 = vrot.slane %v18482_v6, %v17002_v53 }
0x284d   :  { %v11265_v15 = vpack.c.bf16 %v11241_v36, %v11240_v63 }
0x284e   :  { %11559 = vmatpush1.bf16.msra.mxu0 %v15731_v0 }
0x284f   :  { %13528 = vmatprep.mubr.msk.bf16.mxu1 %vm8945_vm11, %v11265_v15  ;;  %11560 = vmatprep.subr.bf16.mxu0 %v16594_v26 }
0x2852   :  { %11561 = vmatpush1.bf16.msra.mxu0 %v15732_v10 }
0x2853   :  { %11562 = vmatprep.subr.bf16.mxu0 %v16594_v26 }
0x2856   :  { %11563 = vmatpush1.bf16.msra.mxu0 %v15733_v61 }
0x2857   :  { %11564 = vmatprep.subr.bf16.mxu0 %v16594_v26 }
0x285a   :  { %11565 = vmatpush1.bf16.msra.mxu0 %v15734_v55 }
0x285b   :  { %11566 = vmatprep.subr.bf16.mxu0 %v16594_v26 }
0x285e   :  { %11567 = vmatpush1.bf16.msra.mxu0 %v15735_v4 }
0x285f   :  { %11568 = vmatprep.subr.bf16.mxu0 %v16594_v26 }
0x2862   :  { %11569 = vmatpush1.bf16.msra.mxu0 %v15736_v8 }
0x2863   :  { %11570 = vmatprep.subr.bf16.mxu0 %v16594_v26 }
0x2866   :  { %11571 = vmatpush1.bf16.msra.mxu0 %v15737_v18 }
0x2867   :  { %11572 = vmatprep.subr.bf16.mxu0 %v16594_v26 }
0x286a   :  { %11573 = vmatpush1.bf16.msra.mxu0 %v15738_v23 }
0x286b   :  { %11574 = vmatprep.subr.bf16.mxu0 %v16594_v26 }
0x286e   :  { %11575 = vmatpush1.bf16.msra.mxu0 %v15739_v44 }
0x286f   :  { %11576 = vmatprep.subr.bf16.mxu0 %v16594_v26 }
0x2872   :  { %11577 = vmatpush1.bf16.msra.mxu0 %v15740_v12 }
0x2873   :  { %11578 = vmatprep.subr.bf16.mxu0 %v16594_v26 }
0x2876   :  { %11579 = vmatpush1.bf16.msra.mxu0 %v15741_v1 }
0x2877   :  { %11973 = vmatprep.subr.bf16.mxu0 %v16594_v26 }
0x28ba   :  { %v14239_v34 = vpop.permute.xlu0 %14238 }
0x28bb   :  { %v14241_v27 = vunpack.i.h.bf16 %v14239_v34  ;;  %v14240_v21 = vunpack.i.l.bf16 %v14239_v34  ;;  %v14234_v30 = vpop.permute.xlu1 %14233 }
0x28bc   :  { %v14236_v62 = vunpack.i.h.bf16 %v14234_v30  ;;  %v14235_v33 = vunpack.i.l.bf16 %v14234_v30 }
0x28bd   :  { %v11262_v49 = vsel %vm8945_vm11, %v11230_v35, %v14240_v21  ;;  %v11263_v46 = vsel %vm8945_vm11, %v11231_v48, %v14241_v27 }
0x28be   :  { %v11260_v17 = vsel %vm8945_vm11, %v11228_v19, %v14235_v33  ;;  %v11261_v14 = vsel %vm8945_vm11, %v11229_v13, %v14236_v62  ;;  %v11266_v5 = vpack.c.bf16 %v11263_v46, %v11262_v49 }
0x28bf   :  { %v11264_v31 = vpack.c.bf16 %v11261_v14, %v11260_v17 }
0x28c1   :  { %11383 = vmatmul.mubr.bf16.vlgmr.msra.gmra.mrb[92].mxu1 %v11264_v31 }
0x28c2   :  { %13529 = vmatprep.mubr.msk.bf16.mxu1 %vm8945_vm11, %v11267_v24 }
0x28c9   :  { %11391 = vmatmul.mubr.bf16.gmra.mrb[96].mxu1 %v11266_v5 }
0x2994   :  { %v11384_v41 = vpop.f32.mrb[92].mxu1 }
0x2995   :  { %v11385_v59 = vadd.f32 %v11384_v41, %v11271_v25  ;;  %v11386_v39 = vpop.f32.mrb[93].mxu1 }
0x2996   :  { %v11387_v60 = vpop.f32.mrb[94].mxu1 }
0x2997   :  { %v11388_v16 = vadd.f32 %v11387_v60, %v11271_v25  ;;  %v11389_v3 = vpop.f32.mrb[95].mxu1  ;;  %v11424_v47 = vrot.slane %v11385_v59, 7  ;;  %v11436_v32 = vrot.slane %v11385_v59, 1 }
0x2999   :  { %v11425_v43 = vrot.slane %v11388_v16, 7  ;;  %v11437_v37 = vrot.slane %v11388_v16, 1  ;;  %v14242_v63 = vpack.i.bf16 %v11388_v16, %v11385_v59 }
0x299b   :  { %v11430_v36 = vsel %vm673_vm2, %v11424_v47, %v11425_v43  ;;  %v11442_v6 = vsel %vm1380_vm3, %v11436_v32, %v11437_v37  ;;  %14243 = vrot.lane.b32.xlu1 %v14242_v63, %s16565_s8  ;;  %v15745_v63 = vld [vmem:[%s16795_s27 + $0x8] ss:$12 sps:$4 sm:$0xff]  }
0x299c   :  { %v11392_v24 = vpop.f32.mrb[96].mxu1  ;;  %v11444_v46 = vmul.f32 %v11442_v6, %v17102_v56  ;;  %v11433_v8 = vmul.f32 %v11430_v36, %v17036_v7  ;;  %v15748_v36 = vld [vmem:[%s16795_s27 + $0x1c] ss:$12 sps:$4 sm:$0xff]   ;;  %v15749_v6 = vld [vmem:[%s16795_s27 + $0x20] ss:$12 sps:$4 sm:$0xff]  }
0x299d   :  { %v11393_v15 = vadd.f32 %v11392_v24, %v11271_v25  ;;  %v11394_v34 = vpop.f32.mrb[97].mxu1  ;;  %v15746_v24 = vld [vmem:[%s16795_s27 + $0x18] ss:$12 sps:$4 sm:$0xff]  }
0x299e   :  { %v11395_v48 = vpop.f32.mrb[98].mxu1  ;;  %v15753_v34 = vld [vmem:[%s16795_s27 + $0x38] ss:$12 sps:$4 sm:$0xff]  }
0x299f   :  { %v11426_v35 = vrot.slane %v11393_v15, 7  ;;  %v11438_v27 = vrot.slane %v11393_v15, 1  ;;  %v11396_v21 = vadd.f32 %v11395_v48, %v11271_v25  ;;  %v11397_v30 = vpop.f32.mrb[99].mxu1  ;;  %v15750_v48 = vld [vmem:[%s16795_s27 + $0x30] ss:$12 sps:$4 sm:$0xff]  }
0x29a0   :  { %v15760_v30 = vld [vmem:[%s16795_s27 + $0x64] ss:$12 sps:$4 sm:$0xff]  }
0x29a1   :  { %v11429_v19 = vsel %vm673_vm2, %v11425_v43, %v11426_v35  ;;  %v11441_v13 = vsel %vm1380_vm3, %v11437_v37, %v11438_v27  ;;  %v11427_v62 = vrot.slane %v11396_v21, 7  ;;  %v11439_v33 = vrot.slane %v11396_v21, 1  ;;  %v15742_v43 = vld [vmem:[%s16795_s27] ss:$12 sps:$4 sm:$0xff]   ;;  %v15744_v37 = vld [vmem:[%s16795_s27 + $0x4] ss:$12 sps:$4 sm:$0xff]  }
0x29a2   :  { %v14247_v49 = vpack.i.bf16 %v11396_v21, %v11393_v15  ;;  %v11445_v17 = vmul.f32 %v11441_v13, %v17096_v45  ;;  %v11434_v60 = vmul.f32 %v11429_v19, %v17063_v29  ;;  %11920 = vmatprep.subr.bf16.mxu1 %v15744_v37  ;;  %v15752_v15 = vld [vmem:[%s16795_s27 + $0x34] ss:$12 sps:$4 sm:$0xff]  }
0x29a3   :  { %v11428_v14 = vsel %vm673_vm2, %v11426_v35, %v11427_v62  ;;  %v11431_v5 = vsel %vm673_vm2, %v11427_v62, %v11424_v47  ;;  %v11440_v31 = vsel %vm1380_vm3, %v11438_v27, %v11439_v33  ;;  %v11443_v40 = vsel %vm1380_vm3, %v11439_v33, %v11436_v32  ;;  %11921 = vmatpush1.bf16.msra.mxu1 %v15742_v43  ;;  %v15756_v35 = vld [vmem:[%s16795_s27 + $0x4c] ss:$12 sps:$4 sm:$0xff]   ;;  %v15757_v27 = vld [vmem:[%s16795_s27 + $0x50] ss:$12 sps:$4 sm:$0xff]   ;;  %v15754_v21 = vld [vmem:[%s16795_s27 + $0x48] ss:$12 sps:$4 sm:$0xff]  }
0x29a4   :  { %14248 = vrot.lane.b32.xlu0 %v14247_v49, %s16565_s8  ;;  %v11469_v0 = vpack.c.bf16 %v11445_v17, %v11444_v46  ;;  %v11446_v10 = vmul.f32 %v11440_v31, %v17138_v28  ;;  %v11447_v61 = vmul.f32 %v11443_v40, %v17148_v20  ;;  %v11432_v18 = vmul.f32 %v11431_v5, %v17043_v11  ;;  %v15761_v19 = vld [vmem:[%s16795_s27 + $0x68] ss:$12 sps:$4 sm:$0xff]   ;;  %v15758_v13 = vld [vmem:[%s16795_s27 + $0x60] ss:$12 sps:$4 sm:$0xff]   ;;  %v15762_v49 = vld [vmem:[%s16795_s27 + $0x78] ss:$12 sps:$4 sm:$0xff]  }
0x29a5   :  { %v11435_v16 = vmul.f32 %v11428_v14, %v17057_v2  ;;  %11922 = vmatprep.subr.bf16.mxu1 %v15748_v36  ;;  %v15764_v62 = vld [vmem:[%s16795_s27 + $0x7c] ss:$12 sps:$4 sm:$0xff]   ;;  %v15765_v33 = vld [vmem:[%s16795_s27 + $0x80] ss:$12 sps:$4 sm:$0xff]   ;;  %v15769_v17 = vld [vmem:[%s16795_s27 + $0x98] ss:$12 sps:$4 sm:$0xff]  }
0x29a6   :  { %13543 = vmatprep.mubr.msk.bf16.mxu0 %vm8945_vm11, %v11469_v0  ;;  %v11471_v55 = vpack.c.bf16 %v11447_v61, %v11446_v10  ;;  %v15768_v46 = vld [vmem:[%s16795_s27 + $0x94] ss:$12 sps:$4 sm:$0xff]   ;;  %v15766_v14 = vld [vmem:[%s16795_s27 + $0x90] ss:$12 sps:$4 sm:$0xff]   ;;  %v15772_v5 = vld [vmem:[%s16795_s27 + $0xac] ss:$12 sps:$4 sm:$0xff]  }
0x29a7   :  { %11923 = vmatpush1.bf16.msra.mxu1 %v15746_v24  ;;  %v15773_v31 = vld [vmem:[%s16795_s27 + $0xb0] ss:$12 sps:$4 sm:$0xff]   ;;  %v9166_v40 = vrot.slane %v18222_v42, 4  ;;  %v15770_v0 = vld [vmem:[%s16795_s27 + $0xa8] ss:$12 sps:$4 sm:$0xff]  }
0x29a8   :  { %11924 = vmatprep.subr.bf16.mxu1 %v15752_v15  ;;  %v15776_v10 = vld [vmem:[%s16795_s27 + $0xc4] ss:$12 sps:$4 sm:$0xff]   ;;  %v15777_v61 = vld [vmem:[%s16795_s27 + $0xc8] ss:$12 sps:$4 sm:$0xff]  }
0x29ab   :  { %11925 = vmatpush1.bf16.msra.mxu1 %v15750_v48 }
0x29ac   :  { %11926 = vmatprep.subr.bf16.mxu1 %v15756_v35 }
0x29af   :  { %11927 = vmatpush1.bf16.msra.mxu1 %v15754_v21 }
0x29b0   :  { %11928 = vmatprep.subr.bf16.mxu1 %v15760_v30 }
0x29b3   :  { %11929 = vmatpush1.bf16.msra.mxu1 %v15758_v13 }
0x29b4   :  { %11930 = vmatprep.subr.bf16.mxu1 %v15764_v62  ;;  %v13530_v62 = vld [vmem:[#allocation44] ss:$0 sm:$0xff] }
0x29b7   :  { %11931 = vmatpush1.bf16.msra.mxu1 %v15762_v49  ;;  %v15788_v49 = vld [vmem:[%s16795_s27 + $0x10c] ss:$12 sps:$4 sm:$0xff]  }
0x29b8   :  { %11932 = vmatprep.subr.bf16.mxu1 %v15768_v46  ;;  %v15786_v46 = vld [vmem:[%s16795_s27 + $0x108] ss:$12 sps:$4 sm:$0xff]  }
0x29bb   :  { %11933 = vmatpush1.bf16.msra.mxu1 %v15766_v14 }
0x29bc   :  { %11934 = vmatprep.subr.bf16.mxu1 %v15772_v5 }
0x29bf   :  { %11935 = vmatpush1.bf16.msra.mxu1 %v15770_v0 }
0x29c0   :  { %11936 = vmatprep.subr.bf16.mxu1 %v15776_v10 }
0x2a0d   :  { %v14244_v4 = vpop.permute.xlu1 %14243 }
0x2a0e   :  { %v14246_v23 = vunpack.i.h.bf16 %v14244_v4  ;;  %v14245_v44 = vunpack.i.l.bf16 %v14244_v4  ;;  %v15774_v4 = vld [vmem:[%s16795_s27 + $0xc0] ss:$12 sps:$4 sm:$0xff]  }
0x2a0f   :  { %11937 = vmatpush1.bf16.msra.mxu1 %v15774_v4 }
0x2a10   :  { %v11464_v12 = vsel %vm8945_vm11, %v11432_v18, %v14245_v44  ;;  %v11465_v25 = vsel %vm8945_vm11, %v11433_v8, %v14246_v23  ;;  %v9562_v8 = vrot.slane %v18288_v58, 4  ;;  %v15780_v18 = vld [vmem:[%s16795_s27 + $0xdc] ss:$12 sps:$4 sm:$0xff]   ;;  %v15781_v23 = vld [vmem:[%s16795_s27 + $0xe0] ss:$12 sps:$4 sm:$0xff]   ;;  %v9172_v44 = vrot.slane %v18219_v22, 4 }
0x2a11   :  { %v11468_v1 = vpack.c.bf16 %v11465_v25, %v11464_v12  ;;  %v15778_v25 = vld [vmem:[%s16795_s27 + $0xd8] ss:$12 sps:$4 sm:$0xff]   ;;  %11938 = vmatprep.subr.bf16.mxu1 %v15780_v18 }
0x2a13   :  { %11589 = vmatmul.mubr.bf16.vlgmr.msra.gmra.mrb[60].mxu0 %v11468_v1  ;;  %v9563_v1 = vadd.f32 %v9562_v8, %v18288_v58  ;;  %11939 = vmatpush1.bf16.msra.mxu1 %v15778_v25 }
0x2a14   :  { %13544 = vmatprep.mubr.msk.bf16.mxu0 %vm8945_vm11, %v11471_v55  ;;  %11974 = vmatpush1.bf16.msra.mxu0 %v15745_v63  ;;  %v9167_v55 = vadd.f32 %v9166_v40, %v18222_v42  ;;  %v9568_v42 = vrot.slane %v18285_v9, 4 }
0x2a15   :  { %11975 = vmatprep.subr.bf16.mxu0 %v16594_v26 }
0x2a16   :  { %v14249_v41 = vpop.permute.xlu0 %14248  ;;  %v9168_v12 = vrot.slane %v9167_v55, 2 }
0x2a17   :  { %v14251_v59 = vunpack.i.h.bf16 %v14249_v41  ;;  %v14250_v39 = vunpack.i.l.bf16 %v14249_v41  ;;  %v15784_v41 = vld [vmem:[%s16795_s27 + $0xf4] ss:$12 sps:$4 sm:$0xff]  }
0x2a18   :  { %11976 = vmatpush1.bf16.msra.mxu0 %v15749_v6  ;;  %11940 = vmatprep.subr.bf16.mxu1 %v15784_v41 }
0x2a19   :  { %v11466_v3 = vsel %vm8945_vm11, %v11434_v60, %v14250_v39  ;;  %v11467_v47 = vsel %vm8945_vm11, %v11435_v16, %v14251_v59  ;;  %11977 = vmatprep.subr.bf16.mxu0 %v16594_v26  ;;  %v15785_v59 = vld [vmem:[%s16795_s27 + $0xf8] ss:$12 sps:$4 sm:$0xff]   ;;  %v9173_v39 = vadd.f32 %v9172_v44, %v18219_v22  ;;  %v9169_v60 = vadd.f32 %v9168_v12, %v9167_v55  ;;  %v15782_v16 = vld [vmem:[%s16795_s27 + $0xf0] ss:$12 sps:$4 sm:$0xff]  }
0x2a1a   :  { %v11470_v32 = vpack.c.bf16 %v11467_v47, %v11466_v3  ;;  %v9569_v3 = vadd.f32 %v9568_v42, %v18285_v9  ;;  %v9564_v47 = vrot.slane %v9563_v1, 2  ;;  %11941 = vmatpush1.bf16.msra.mxu1 %v15782_v16 }
0x2a1b   :  { %v9170_v43 = vrot.slane %v9169_v60, 1  ;;  %11942 = vmatprep.subr.bf16.mxu1 %v15788_v49 }
0x2a1c   :  { %11597 = vmatmul.mubr.bf16.gmra.mrb[64].mxu0 %v11470_v32  ;;  %v9174_v32 = vrot.slane %v9173_v39, 2  ;;  %v9570_v58 = vrot.slane %v9569_v3, 2  ;;  %v9565_v37 = vadd.f32 %v9564_v47, %v9563_v1 }
0x2a1d   :  { %11978 = vmatpush1.bf16.msra.mxu0 %v15753_v34  ;;  %v9171_v36 = vadd.f32 %v9170_v43, %v9169_v60 }
0x2a1e   :  { %11979 = vmatprep.subr.bf16.mxu0 %v16594_v26  ;;  %v9175_v63 = vadd.f32 %v9174_v32, %v9173_v39  ;;  %v9571_v22 = vadd.f32 %v9570_v58, %v9569_v3  ;;  %v9566_v6 = vrot.slane %v9565_v37, 1  ;;  %11943 = vmatpush1.bf16.msra.mxu1 %v15786_v46 }
0x2a1f   :  { %v9179_v24 = vmul.f32 0.125, %v9171_v36 }
0x2a20   :  { %v9176_v15 = vrot.slane %v9175_v63, 1  ;;  %v9567_v34 = vadd.f32 %v9566_v6, %v9565_v37  ;;  %v9572_v9 = vrot.slane %v9571_v22, 1 }
0x2a21   :  { %11980 = vmatpush1.bf16.msra.mxu0 %v15757_v27  ;;  %v9183_v48 = vadd.f32 1e-07, %v9179_v24  ;;  %v9181_v39 = vsub.f32 0.0, %v9179_v24 }
0x2a22   :  { %11981 = vmatprep.subr.bf16.mxu0 %v16594_v26  ;;  %v9177_v35 = vadd.f32 %v9176_v15, %v9175_v63  ;;  %v9574_v27 = vmul.f32 0.125, %v9567_v34  ;;  %v9573_v21 = vadd.f32 %v9572_v9, %v9571_v22 }
0x2a23   :  { %15790 = vlog2.f32 %v9183_v48 }
0x2a24   :  { %v18741_v30 = vmul.f32 0.125, %v9177_v35  ;;  %v9576_v22 = vsub.f32 0.0, %v9574_v27 }
0x2a25   :  { %11982 = vmatpush1.bf16.msra.mxu0 %v15761_v19  ;;  %v18743_v19 = vmul.f32 0.125, %v9573_v21 }
0x2a26   :  { %11983 = vmatprep.subr.bf16.mxu0 %v16594_v26  ;;  %v9184_v13 = vadd.f32 1e-07, %v18741_v30 }
0x2a27   :  { %v9577_v49 = vsub.f32 0.0, %v18743_v19 }
0x2a29   :  { %11984 = vmatpush1.bf16.msra.mxu0 %v15765_v33  ;;  %v9579_v33 = vadd.f32 1e-07, %v18743_v19 }
0x2a2a   :  { %11985 = vmatprep.subr.bf16.mxu0 %v16594_v26 }
0x2a2d   :  { %11986 = vmatpush1.bf16.msra.mxu0 %v15769_v17  ;;  %v15789_v17 = vld [vmem:[%s16795_s27 + $0x110] ss:$12 sps:$4 sm:$0xff]   ;;  %v15791_v0 = vpop.eup %15790 }
0x2a2e   :  { %11987 = vmatprep.subr.bf16.mxu0 %v16594_v26  ;;  %v9186_v18 = vmul.f32 0.6931472, %v15791_v0 }
0x2a30   :  { %v9189_v32 = vmul.f32 %v9186_v18, %v9181_v39 }
0x2a31   :  { %11988 = vmatpush1.bf16.msra.mxu0 %v15773_v31 }
0x2a32   :  { %11989 = vmatprep.subr.bf16.mxu0 %v16594_v26 }
0x2a35   :  { %11990 = vmatpush1.bf16.msra.mxu0 %v15777_v61 }
0x2a36   :  { %11991 = vmatprep.subr.bf16.mxu0 %v16594_v26 }
0x2a39   :  { %11992 = vmatpush1.bf16.msra.mxu0 %v15781_v23 }
0x2a3a   :  { %11993 = vmatprep.subr.bf16.mxu0 %v16594_v26 }
0x2a3d   :  { %11994 = vmatpush1.bf16.msra.mxu0 %v15785_v59 }
0x2a3e   :  { %11995 = vmatprep.subr.bf16.mxu0 %v16594_v26  ;;  %v9578_v26 = vadd.f32 1e-07, %v9574_v27 }
0x2a40   :  { %15792 = vlog2.f32 %v9578_v26 }
0x2a41   :  { %15794 = vlog2.f32 %v9184_v13  ;;  %11996 = vmatpush1.bf16.msra.mxu0 %v15789_v17 }
0x2a42   :  { %15796 = vlog2.f32 %v9579_v33 }
0x2a4a   :  { %v15793_v42 = vpop.eup %15792 }
0x2a4b   :  { %v15795_v3 = vpop.eup %15794  ;;  %v9581_v43 = vmul.f32 0.6931472, %v15793_v42 }
0x2a4c   :  { %v15797_v58 = vpop.eup %15796  ;;  %v9188_v24 = vmul.f32 0.6931472, %v15795_v3 }
0x2a4d   :  { %v18756_v9 = vmul.f32 %v9581_v43, %v9576_v22  ;;  %v9583_v48 = vmul.f32 0.6931472, %v15797_v58 }
0x2ae6   :  { %v11590_v14 = vpop.f32.mrb[60].mxu0 }
0x2ae7   :  { %v11591_v5 = vadd.f32 %v13530_v62, %v11590_v14  ;;  %v11592_v31 = vpop.f32.mrb[61].mxu0 }
0x2ae8   :  { %v11593_v40 = vpop.f32.mrb[62].mxu0 }
0x2ae9   :  { %v11605_v10 = vmax.f32 %v11591_v5, 0.0  ;;  %v11594_v61 = vadd.f32 %v13530_v62, %v11593_v40  ;;  %v11595_v55 = vpop.f32.mrb[63].mxu0  ;;  %v9585_v40 = vmul.f32 %v9583_v48, %v9577_v49 }
0x2aeb   :  { %v11606_v4 = vmax.f32 %v11594_v61, 0.0  ;;  %v11658_v8 = vrot.slane %v11605_v10, 7  ;;  %v11670_v23 = vrot.slane %v11605_v10, 1 }
0x2aed   :  { %v11659_v44 = vrot.slane %v11606_v4, 7  ;;  %v11671_v12 = vrot.slane %v11606_v4, 1  ;;  %v14252_v25 = vpack.i.bf16 %v11606_v4, %v11605_v10 }
0x2aef   :  { %v11664_v1 = vsel %vm673_vm2, %v11658_v8, %v11659_v44  ;;  %v11676_v41 = vsel %vm1380_vm3, %v11670_v23, %v11671_v12  ;;  %v11598_v59 = vpop.f32.mrb[64].mxu0  ;;  %14253 = vrot.lane.b32.xlu1 %v14252_v25, %s16565_s8 }
0x2af0   :  { %v11599_v60 = vadd.f32 %v13530_v62, %v11598_v59  ;;  %v11600_v16 = vpop.f32.mrb[65].mxu0  ;;  %v11678_v27 = vmul.f32 %v11676_v41, %v17102_v56  ;;  %v9182_v56 = vsub.f32 0.0, %v18741_v30  ;;  %v11667_v18 = vmul.f32 %v11664_v1, %v17036_v7 }
0x2af1   :  { %v11601_v47 = vpop.f32.mrb[66].mxu0 }
0x2af2   :  { %v11607_v37 = vmax.f32 %v11599_v60, 0.0  ;;  %v11602_v63 = vadd.f32 %v13530_v62, %v11601_v47  ;;  %v11603_v36 = vpop.f32.mrb[67].mxu0  ;;  %v9190_v0 = vmul.f32 %v9188_v24, %v9182_v56 }
0x2af3   :  { %9198 = vrot.lane.b32.xlu1 %v9189_v32, %s16565_s8 }
0x2af4   :  { %v11660_v6 = vrot.slane %v11607_v37, 7  ;;  %v11672_v15 = vrot.slane %v11607_v37, 1  ;;  %v11608_v34 = vmax.f32 %v11602_v63, 0.0  ;;  %v9207_v7 = vsel %vm8945_vm11, %v9190_v0, 0.0 }
0x2af6   :  { %v11663_v35 = vsel %vm673_vm2, %v11659_v44, %v11660_v6  ;;  %v11675_v21 = vsel %vm1380_vm3, %v11671_v12, %v11672_v15  ;;  %v11661_v26 = vrot.slane %v11608_v34, 7  ;;  %v11673_v13 = vrot.slane %v11608_v34, 1 }
0x2af7   :  { %9593 = vrot.lane.b32.xlu1 %v18756_v9, %s16565_s8  ;;  %v14257_v62 = vpack.i.bf16 %v11608_v34, %v11607_v37  ;;  %v11679_v33 = vmul.f32 %v11675_v21, %v17096_v45  ;;  %v11668_v59 = vmul.f32 %v11663_v35, %v17063_v29  ;;  %v9586_v29 = vsel %vm8945_vm11, %v18756_v9, 0.0 }
0x2af8   :  { %v11662_v46 = vsel %vm673_vm2, %v11660_v6, %v11661_v26  ;;  %v11665_v17 = vsel %vm673_vm2, %v11661_v26, %v11658_v8  ;;  %v11674_v14 = vsel %vm1380_vm3, %v11672_v15, %v11673_v13  ;;  %v11677_v5 = vsel %vm1380_vm3, %v11673_v13, %v11670_v23 }
0x2af9   :  { %14258 = vrot.lane.b32.xlu0 %v14257_v62, %s16565_s8  ;;  %v11703_v31 = vpack.c.bf16 %v11679_v33, %v11678_v27  ;;  %v11680_v45 = vmul.f32 %v11674_v14, %v17138_v28  ;;  %v11681_v19 = vmul.f32 %v11677_v5, %v17148_v20  ;;  %v9550_v28 = vsub.f32 %v18230_v57, %v18316_v38 }
0x2afa   :  { %v9191_v20 = vsel %vm8945_vm11, %v9189_v32, 0.0  ;;  %v11666_v8 = vmul.f32 %v11665_v17, %v17043_v11  ;;  %v11669_v39 = vmul.f32 %v11662_v46, %v17057_v2  ;;  %v9602_v2 = vsel %vm8945_vm11, %v9585_v40, 0.0 }
0x2afb   :  { %13581 = vmatprep.mubr.msk.bf16.mxu1 %vm8945_vm11, %v11703_v31  ;;  %13583 = vmatprep.mubr.msk.bf16.mxu0 %vm8945_vm11, %v11703_v31  ;;  %v11705_v10 = vpack.c.bf16 %v11681_v19, %v11680_v45  ;;  %v9551_v30 = vmul.f32 %v9550_v28, %v9550_v28  ;;  %vm12155_vm2 = vcmp.eq.s32.totalorder %v18179_v51, 1 }
0x2afc   :  { %9609 = vrot.lane.b32.xlu1 %v9585_v40, %s16565_s8 }
0x2afd   :  { %9214 = vrot.lane.b32.xlu0 %v9190_v0, %s16565_s8 }
0x2b1c   :  { %9155 = vadd.xlane.f32.xlu0 %v9154_v50 }
0x2b20   :  { %9192 = vadd.xlane.f32.xlu1 %v9191_v20 }
0x2b24   :  { %9552 = vadd.xlane.f32.xlu1 %v9551_v30 }
0x2b61   :  { %v14254_v61 = vpop.permute.xlu1 %14253 }
0x2b62   :  { %v14256_v55 = vunpack.i.h.bf16 %v14254_v61  ;;  %v14255_v4 = vunpack.i.l.bf16 %v14254_v61 }
0x2b64   :  { %v11698_v23 = vsel %vm8945_vm11, %v11666_v8, %v14255_v4  ;;  %v11699_v44 = vsel %vm8945_vm11, %v11667_v18, %v14256_v55 }
0x2b65   :  { %v11702_v12 = vpack.c.bf16 %v11699_v44, %v11698_v23  ;;  %v9199_v25 = vpop.permute.xlu1 %9198 }
0x2b66   :  { %v9201_v57 = vsel %vm8945_vm11, %v9199_v25, 0.0 }
0x2b67   :  { %11953 = vmatmul.mubr.bf16.vlgmr.msra.gmra.mrb[100].mxu1 %v11702_v12  ;;  %12006 = vmatmul.mubr.bf16.vlgmr.msra.gmra.mrb[68].mxu0 %v11702_v12 }
0x2b68   :  { %9202 = vadd.xlane.f32.xlu0 %v9201_v57  ;;  %13582 = vmatprep.mubr.msk.bf16.mxu1 %vm8945_vm11, %v11705_v10 }
0x2b69   :  { %13584 = vmatprep.mubr.msk.bf16.mxu0 %vm8945_vm11, %v11705_v10  ;;  %v9594_v38 = vpop.permute.xlu1 %9593 }
0x2b6a   :  { %v9596_v11 = vsel %vm8945_vm11, %v9594_v38, 0.0 }
0x2b6b   :  { %v14259_v42 = vpop.permute.xlu0 %14258  ;;  %9597 = vadd.xlane.f32.xlu1 %v9596_v11 }
0x2b6c   :  { %v14261_v1 = vunpack.i.h.bf16 %v14259_v42  ;;  %v14260_v41 = vunpack.i.l.bf16 %v14259_v42  ;;  %9208 = vadd.xlane.f32.xlu0 %v9207_v7 }
0x2b6e   :  { %v9610_v60 = vpop.permute.xlu1 %9609  ;;  %v11700_v16 = vsel %vm8945_vm11, %v11668_v59, %v14260_v41  ;;  %v11701_v3 = vsel %vm8945_vm11, %v11669_v39, %v14261_v1 }
0x2b6f   :  { %v9215_v47 = vpop.permute.xlu0 %9214  ;;  %v11704_v32 = vpack.c.bf16 %v11701_v3, %v11700_v16  ;;  %v9612_v43 = vsel %vm8945_vm11, %v9610_v60, 0.0  ;;  %v11657_v16 = vld [vmem:[#allocation46] sm:$0x7] }
0x2b70   :  { %9613 = vadd.xlane.f32.xlu1 %v9612_v43  ;;  %v9217_v58 = vsel %vm8945_vm11, %v9215_v47, 0.0  ;;  %v11710_v3 = vrot.slane %v11657_v16, %v16999_v52  ;;  %v11718_v47 = vrot.slane %v11657_v16, %v17005_v54 }
0x2b71   :  { %11963 = vmatmul.mubr.bf16.gmra.mrb[104].mxu1 %v11704_v32  ;;  %12014 = vmatmul.mubr.bf16.gmra.mrb[72].mxu0 %v11704_v32  ;;  %v11714_v32 = vrot.slane %v11657_v16, %v17002_v53 }
0x2b72   :  { %9218 = vadd.xlane.f32.xlu0 %v9217_v58 }
0x2b76   :  { %9587 = vadd.xlane.f32.xlu0 %v9586_v29 }
0x2b7a   :  { %9603 = vadd.xlane.f32.xlu0 %v9602_v2 }
0x2ba9   :  { %v9156_v37 = vpop.xlane.xlu0 %9155 }
0x2baa   :  { %v9157_v35 = vrot.slane %v9156_v37, 4 }
0x2bac   :  { %v9158_v62 = vadd.f32 %v9157_v35, %v9156_v37 }
0x2bad   :  { %v9193_v63 = vpop.xlane.xlu1 %9192 }
0x2bae   :  { %v9194_v34 = vmul.f32 1.442695, %v9193_v63  ;;  %v9159_v17 = vrot.slane %v9158_v62, 2 }
0x2bb0   :  { %v9160_v0 = vadd.f32 %v9159_v17, %v9158_v62 }
0x2bb1   :  { %v9553_v22 = vpop.xlane.xlu1 %9552 }
0x2bb2   :  { %v9554_v48 = vrot.slane %v9553_v22, 4  ;;  %v9161_v30 = vrot.slane %v9160_v0, 1 }
0x2bb4   :  { %v9555_v21 = vadd.f32 %v9554_v48, %v9553_v22  ;;  %v9162_v18 = vadd.f32 %v9161_v30, %v9160_v0 }
0x2bb6   :  { %v9556_v27 = vrot.slane %v9555_v21, 2  ;;  %v9164_v38 = vmul.f32 0.00390625, %v9162_v18 }
0x2bb8   :  { %v9557_v5 = vadd.f32 %v9556_v27, %v9555_v21 }
0x2bba   :  { %v9558_v50 = vrot.slane %v9557_v5, 1 }
0x2bbc   :  { %v9559_v55 = vadd.f32 %v9558_v50, %v9557_v5 }
0x2bbe   :  { %v9560_v12 = vmul.f32 0.00390625, %v9559_v55 }
0x2bc0   :  { %v9561_v7 = vadd.f32 %v9560_v12, %v9164_v38 }
0x2bc2   :  { %v12154_v59 = vsel %vm12153_vm1, %v9561_v7, 0.0 }
0x2bf5   :  { %v9203_v36 = vpop.xlane.xlu0 %9202 }
0x2bf6   :  { %v9204_v15 = vmul.f32 1.442695, %v9203_v36 }
0x2bf8   :  { %15798 = vpow2.f32 %v9204_v15  ;;  %v9598_v26 = vpop.xlane.xlu1 %9597 }
0x2bf9   :  { %v9209_v6 = vpop.xlane.xlu0 %9208  ;;  %15800 = vpow2.f32 %v9194_v34  ;;  %v9599_v49 = vmul.f32 1.442695, %v9598_v26 }
0x2bfa   :  { %v9210_v24 = vmul.f32 1.442695, %v9209_v6 }
0x2bfc   :  { %15802 = vpow2.f32 %v9210_v24 }
0x2bfd   :  { %v9614_v14 = vpop.xlane.xlu1 %9613 }
0x2bfe   :  { %v9615_v45 = vmul.f32 1.442695, %v9614_v14 }
0x2bff   :  { %v9219_v13 = vpop.xlane.xlu0 %9218 }
0x2c00   :  { %v9220_v9 = vmul.f32 1.442695, %v9219_v13 }
0x2c02   :  { %15804 = vpow2.f32 %v9220_v9  ;;  %v15799_v56 = vpop.eup %15798 }
0x2c03   :  { %v9588_v33 = vpop.xlane.xlu0 %9587  ;;  %v15801_v40 = vpop.eup %15800 }
0x2c04   :  { %v9589_v46 = vmul.f32 1.442695, %v9588_v33  ;;  %v9206_v28 = vadd.f32 %v15801_v40, %v15799_v56  ;;  %v12022_v56 = vld [vmem:[#allocation10] sm:$0x7] }
0x2c05   :  { %v12035_v40 = vrot.slane %v12022_v56, %v17005_v54  ;;  %v12031_v0 = vrot.slane %v12022_v56, %v17002_v53 }
0x2c06   :  { %15806 = vpow2.f32 %v9589_v46  ;;  %v15803_v10 = vpop.eup %15802 }
0x2c07   :  { %v9604_v31 = vpop.xlane.xlu0 %9603  ;;  %15808 = vpow2.f32 %v9599_v49  ;;  %v9212_v61 = vadd.f32 %v15803_v10, %v9206_v28  ;;  %v12080_v10 = vld [vmem:[#allocation13] sm:$0x7] }
0x2c08   :  { %v9605_v19 = vmul.f32 1.442695, %v9604_v31  ;;  %v12093_v18 = vrot.slane %v12080_v10, %v17005_v54 }
0x2c0a   :  { %15810 = vpow2.f32 %v9605_v19  ;;  %v12051_v19 = vld [vmem:[#allocation11] sm:$0x7] }
0x2c0b   :  { %15812 = vpow2.f32 %v9615_v45  ;;  %v12027_v45 = vrot.slane %v12022_v56, %v16999_v52  ;;  %v12056_v50 = vrot.slane %v12051_v19, %v16999_v52  ;;  %v12064_v30 = vrot.slane %v12051_v19, %v17005_v54 }
0x2c0c   :  { %v15805_v20 = vpop.eup %15804 }
0x2c0d   :  { %v9222_v4 = vadd.f32 %v15805_v20, %v9212_v61  ;;  %v12060_v61 = vrot.slane %v12051_v19, %v17002_v53 }
0x2c10   :  { %v15807_v8 = vpop.eup %15806 }
0x2c11   :  { %v9591_v23 = vadd.f32 %v15807_v8, %v9222_v4  ;;  %v15809_v44 = vpop.eup %15808  ;;  %v12085_v4 = vrot.slane %v12080_v10, %v16999_v52  ;;  %v12089_v8 = vrot.slane %v12080_v10, %v17002_v53 }
0x2c13   :  { %v9601_v25 = vadd.f32 %v15809_v44, %v9591_v23 }
0x2c14   :  { %v15811_v57 = vpop.eup %15810 }
0x2c15   :  { %v9607_v11 = vadd.f32 %v15811_v57, %v9601_v25  ;;  %v15813_v42 = vpop.eup %15812 }
0x2c17   :  { %v9617_v1 = vadd.f32 %v15813_v42, %v9607_v11 }
0x2c19   :  { %v9620_v41 = vmul.f32 0.5, %v9617_v1 }
0x2c1b   :  { %v12156_v39 = vsel %vm12155_vm2, %v9620_v41, 0.0 }
0x2c1c   :  { %v12157_v60 = vadd.f32 %v12156_v39, %v12154_v59 }
0x2c1e   :  { %12158 = vst [vmem:[%s16810_s5] sm:$0x1] %v12157_v60  ;;  %s16601_s5 = smov [#allocation47]  }
0x2c1f   :  { %s12164_s27 = sshll.u32 %s16601_s5, 4  ;;  %s12165_s27 = int_to_ptr.vmem [resolvable:$true] %s12164_s27 }
0x2c20   :  { %s16459_s8 = scalar_lea.vmem %s12165_s27, 1536  ;;  %p16464_p9 = scmp.lt.s32.totalorder %s12165_s27, %s12165_s27 }
0x2c21   :  { %p16460_p8 = scmp.ne.s32.totalorder %s12165_s27, %s16459_s8  ;;  %p16465_p10 = scmp.lt.s32.totalorder %s16459_s8, %s16459_s8 }
0x2c23   :  { %p16466_p11 = por %p16465_p10, %p16464_p9 }
0x2c25   :  { %p16467_p12 = pnand %p16466_p11, %p16460_p8 }
0x2c3a   :  { %v11954_v43 = vpop.f32.mrb[100].mxu1  ;;  %v12007_v58 = vpop.f32.mrb[68].mxu0 }
0x2c3b   :  { %v11955_v29 = vadd.f32 %v11954_v43, %v11710_v3  ;;  %v12008_v2 = vadd.f32 %v12007_v58, %v11718_v47  ;;  %v11956_v37 = vpop.f32.mrb[101].mxu1  ;;  %v12009_v63 = vpop.f32.mrb[69].mxu0 }
0x2c3c   :  { %v11957_v36 = vadd.f32 %v11956_v37, %v11714_v32  ;;  %v11958_v51 = vpop.f32.mrb[102].mxu1  ;;  %v12010_v22 = vpop.f32.mrb[70].mxu0 }
0x2c3d   :  { %v11959_v6 = vadd.f32 %v11958_v51, %v11710_v3  ;;  %v12011_v15 = vadd.f32 %v12010_v22, %v11718_v47  ;;  %v11960_v34 = vpop.f32.mrb[103].mxu1  ;;  %v12012_v48 = vpop.f32.mrb[71].mxu0  ;;  %12099 = vperm.xlu0 %14262, %v11955_v29   ;;  %v12039_v28 = vmul.f32 %v12027_v45, %v11955_v29  ;;  %v12041_v20 = vmul.f32 %v12035_v40, %v12008_v2 }
0x2c3e   :  { %v11961_v24 = vadd.f32 %v11960_v34, %v11714_v32  ;;  %v12040_v55 = vmul.f32 %v12031_v0, %v11957_v36 }
0x2c3f   :  { %12104 = vperm.xlu1 %14263, %v11959_v6   ;;  %v12042_v23 = vmul.f32 %v12027_v45, %v11959_v6  ;;  %v12068_v44 = vadd.f32 %v12056_v50, %v12039_v28  ;;  %v12070_v12 = vadd.f32 %v12064_v30, %v12041_v20  ;;  %v12044_v25 = vmul.f32 %v12035_v40, %v12011_v15 }
0x2c40   :  { %v12043_v57 = vmul.f32 %v12031_v0, %v11961_v24  ;;  %v12069_v11 = vadd.f32 %v12060_v61, %v12040_v55 }
0x2c41   :  { %v12071_v41 = vadd.f32 %v12056_v50, %v12042_v23 }
0x2c42   :  { %v12072_v53 = vadd.f32 %v12060_v61, %v12043_v57 }
0x2c44   :  { %v11964_v35 = vpop.f32.mrb[104].mxu1  ;;  %v12015_v21 = vpop.f32.mrb[72].mxu0 }
0x2c45   :  { %v11965_v26 = vadd.f32 %v11964_v35, %v11710_v3  ;;  %v12016_v13 = vadd.f32 %v12015_v21, %v11718_v47  ;;  %v11966_v9 = vpop.f32.mrb[105].mxu1  ;;  %v12017_v62 = vpop.f32.mrb[73].mxu0 }
0x2c46   :  { %v11967_v27 = vadd.f32 %v11966_v9, %v11714_v32  ;;  %v11968_v33 = vpop.f32.mrb[106].mxu1  ;;  %v12018_v49 = vpop.f32.mrb[74].mxu0 }
0x2c47   :  { %v12019_v46 = vadd.f32 %v12018_v49, %v11718_v47  ;;  %v11970_v17 = vpop.f32.mrb[107].mxu1  ;;  %v12020_v14 = vpop.f32.mrb[75].mxu0  ;;  %12109 = vperm.xlu1 %14263, %v11965_v26   ;;  %v11969_v31 = vadd.f32 %v11968_v33, %v11710_v3  ;;  %v12073_v3 = vadd.f32 %v12064_v30, %v12044_v25  ;;  %v12047_v58 = vmul.f32 %v12035_v40, %v12016_v13 }
0x2c48   :  { %v11971_v5 = vadd.f32 %v11970_v17, %v11714_v32  ;;  %v12045_v32 = vmul.f32 %v12027_v45, %v11965_v26  ;;  %v12046_v29 = vmul.f32 %v12031_v0, %v11967_v27 }
0x2c49   :  { %v12076_v36 = vadd.f32 %v12064_v30, %v12047_v58  ;;  %v12048_v22 = vmul.f32 %v12027_v45, %v11969_v31  ;;  %v12050_v6 = vmul.f32 %v12035_v40, %v12019_v46 }
0x2c4a   :  { %v12074_v63 = vadd.f32 %v12056_v50, %v12045_v32  ;;  %v12075_v51 = vadd.f32 %v12060_v61, %v12046_v29  ;;  %v12049_v34 = vmul.f32 %v12031_v0, %v11971_v5 }
0x2c4b   :  { %12114 = vperm.xlu1 %14263, %v11969_v31   ;;  %v12077_v9 = vadd.f32 %v12056_v50, %v12048_v22  ;;  %v12079_v62 = vadd.f32 %v12064_v30, %v12050_v6 }
0x2c4c   :  { %v12078_v33 = vadd.f32 %v12060_v61, %v12049_v34 }
0x2cbc   :  { %v12100_v38 = vpop.permute.xlu0 %12099 }
0x2cbd   :  { %v12117_v42 = vmul.f32 %v12100_v38, %v12085_v4  ;;  %v12118_v7 = vmul.f32 %v12100_v38, %v12089_v8  ;;  %v12119_v1 = vmul.f32 %v12100_v38, %v12093_v18 }
0x2cbe   :  { %v12105_v59 = vpop.permute.xlu1 %12104 }
0x2cbf   :  { %v12129_v39 = vadd.f32 %v12117_v42, %v12068_v44  ;;  %v12130_v60 = vadd.f32 %v12118_v7, %v12069_v11  ;;  %v12131_v16 = vadd.f32 %v12119_v1, %v12070_v12  ;;  %v12120_v52 = vmul.f32 %v12105_v59, %v12085_v4 }
0x2cc0   :  { %v12121_v47 = vmul.f32 %v12105_v59, %v12089_v8  ;;  %v12122_v54 = vmul.f32 %v12105_v59, %v12093_v18 }
0x2cc1   :  { %12141 = vst [vmem:[#allocation47] sm:$0xff] %v12129_v39  ;;  %12142 = vst [vmem:[#allocation47 + $0x8] sm:$0xff] %v12130_v60  ;;  %v12132_v43 = vadd.f32 %v12120_v52, %v12071_v41 }
0x2cc2   :  { %12143 = vst.msk [vmem:[#allocation47 + $0x10] sm:$0xff] %vm962_vm4, %v12131_v16  ;;  %v12133_v2 = vadd.f32 %v12121_v47, %v12072_v53  ;;  %v12134_v37 = vadd.f32 %v12122_v54, %v12073_v3 }
0x2cc3   :  { %12144 = vst [vmem:[#allocation47 + $0x18] sm:$0xff] %v12132_v43 }
0x2cc4   :  { %12145 = vst [vmem:[#allocation47 + $0x20] sm:$0xff] %v12133_v2  ;;  %12146 = vst.msk [vmem:[#allocation47 + $0x28] sm:$0xff] %vm962_vm4, %v12134_v37 }
0x2cc6   :  { %v12110_v15 = vpop.permute.xlu1 %12109 }
0x2cc7   :  { %v12123_v48 = vmul.f32 %v12110_v15, %v12085_v4  ;;  %v12124_v24 = vmul.f32 %v12110_v15, %v12089_v8  ;;  %v12125_v35 = vmul.f32 %v12110_v15, %v12093_v18 }
0x2cc9   :  { %v12135_v21 = vadd.f32 %v12123_v48, %v12074_v63  ;;  %v12136_v26 = vadd.f32 %v12124_v24, %v12075_v51  ;;  %v12137_v13 = vadd.f32 %v12125_v35, %v12076_v36 }
0x2cca   :  { %v12115_v27 = vpop.permute.xlu1 %12114 }
0x2ccb   :  { %12147 = vst [vmem:[#allocation47 + $0x30] sm:$0xff] %v12135_v21  ;;  %12148 = vst [vmem:[#allocation47 + $0x38] sm:$0xff] %v12136_v26  ;;  %v12126_v49 = vmul.f32 %v12115_v27, %v12085_v4  ;;  %v12127_v46 = vmul.f32 %v12115_v27, %v12089_v8  ;;  %v12128_v17 = vmul.f32 %v12115_v27, %v12093_v18 }
0x2ccc   :  { %12149 = vst.msk [vmem:[#allocation47 + $0x40] sm:$0xff] %vm962_vm4, %v12137_v13 }
0x2ccd   :  { %v12138_v14 = vadd.f32 %v12126_v49, %v12077_v9  ;;  %v12139_v5 = vadd.f32 %v12127_v46, %v12078_v33  ;;  %v12140_v31 = vadd.f32 %v12128_v17, %v12079_v62 }
0x2ccf   :  { %12150 = vst [vmem:[#allocation47 + $0x48] sm:$0xff] %v12138_v14  ;;  %12151 = vst [vmem:[#allocation47 + $0x50] sm:$0xff] %v12139_v5 }
0x2cd0   :  { %12152 = vst.msk [vmem:[#allocation47 + $0x58] sm:$0xff] %vm962_vm4, %v12140_v31 }
0x2cd1   :  { %16470 = shalt.err (!%p16467_p12)
}
0x2cd2   :  { %s16471_s3 = scalar_lea.hbm %s16805_s30, 1536 }
0x2cd3   :  { %p16472_p13 = scmp.ne.s32.totalorder %s16805_s30, %s16471_s3  ;;  %p16475_p0 = scmp.lt.u32.totalorder %s16471_s3, %s16805_s30 }
0x2cd5   :  { %p16477_p1 = pnand %p16475_p0, %p16472_p13 }
0x2cd7   :  { %16480 = shalt.err (!%p16477_p1)
}
0x2cd8   :  { %12170 = dma.vmem_to_hbm [thread:$0]  %s12165_s27, 1536, %s16805_s30, [#allocation4], %s16576_s24, %s16576_s24, %s16577_s26  }
0x2cd9   :  { %16511 = dma.done.wait [#allocation4], 1536  }
0x2cda   :  { %16512 = vsyncadd [#allocation4], 4294965760 }
0x2cdb   :  { %12178 = vsyncpa [#allocation3], 1 }
0x2cdc   :  { %12179 = vsyncpa [#allocation6], 1 }
0x2cdd   :  { %12180 = vsyncpa [#allocation9], 1 }
0x2cde   :  { %12181 = vsyncpa [#allocation12], 1 }
0x2cdf   :  { %12182 = vsyncpa [#allocation15], 1 }
0x2ce0   :  { %12183 = vsyncpa [#allocation18], 1 }
0x2ce1   :  { %12184 = vsyncpa [#allocation21], 1 }
0x2ce2   :  { %12185 = vsyncpa [#allocation24], 1 }
0x2ce3   :  { %12186 = vsyncpa [#allocation27], 1 }
0x2ce4   :  { %12187 = vsyncpa [#allocation30], 1 }
0x2ce5   :  { %12188 = vsyncpa [#allocation33], 1 }
0x2ce6   :  { %12189 = vsyncpa [#allocation36], 1 }
0x2ce7   :  { %12190 = vsyncpa [#allocation39], 1 }
0x2ce8   :  { %12191 = vsyncpa [#allocation42], 1 }
0x2ce9   :  { %12192 = vsyncpa [#allocation45], 1 }
0x2cea   :  { %12193 = vsyncpa [#allocation4], 1 }

</bundles_post_ra>
